<compile_context>
chip_gen: v7x
topology: tpu7x:2x2x1
jax: 0.10.0
libtpu: 0.0.40
codegen_flags: <defaults>
</compile_context>

<pallas_src>
import functools

import numpy as np
import jax
import jax.numpy as jnp
from jax.experimental import pallas as pl
from jax.experimental.pallas import tpu as pltpu

TILE_ROWS = 512          # row tile for the fused proj+MLP kernel (HBM-bound)
TILE_ROWS_XCPE = 256     # row tile for the xcpe kernel (large gathered operand)
ATTN_ROWS_TARGET = 1024  # target rows (patches*K) per attention grid step
KERNEL_VOLUME = 125      # 5x5x5 SubMConv3d


# ----------------------------------------------------------------------------
# in-kernel helpers
# ----------------------------------------------------------------------------
def _layer_norm(x, gamma, beta, eps=1e-5):
    mu = jnp.mean(x, axis=-1, keepdims=True)
    xc = x - mu
    var = jnp.mean(xc * xc, axis=-1, keepdims=True)
    return xc * jax.lax.rsqrt(var + eps) * gamma + beta


# ----------------------------------------------------------------------------
# kernel 1: xcpe (SubMConv3d + Linear + LN) + residual + norm1 + QKV
# ----------------------------------------------------------------------------
def xcpe_qkv_kernel(gathered_ref, shortcut_ref, w_conv_ref, b_conv_ref,
                    w_lin_ref, b_lin_ref, g_cpe_ref, beta_cpe_ref,
                    g1_ref, beta1_ref, w_qkv_ref, b_qkv_ref,
                    feat_ref, qkv_ref, acc_ref):
    k = pl.program_id(1)

    @pl.when(k == 0)
    def _init():
        acc_ref[...] = jnp.zeros_like(acc_ref)

    # bf16 operands, f32 accumulation on the MXU
    acc_ref[...] += jnp.dot(gathered_ref[...], w_conv_ref[...],
                            preferred_element_type=jnp.float32)

    @pl.when(k == pl.num_programs(1) - 1)
    def _finalize():
        conv = acc_ref[...] + b_conv_ref[...]
        lin = jnp.dot(conv.astype(jnp.bfloat16), w_lin_ref[...],
                      preferred_element_type=jnp.float32) + b_lin_ref[...]
        feat_new = (shortcut_ref[...].astype(jnp.float32)
                    + _layer_norm(lin, g_cpe_ref[...], beta_cpe_ref[...]))
        feat_ref[...] = feat_new.astype(feat_ref.dtype)
        xn = _layer_norm(feat_new, g1_ref[...], beta1_ref[...])
        qkv_ref[...] = (jnp.dot(xn.astype(jnp.bfloat16), w_qkv_ref[...],
                                preferred_element_type=jnp.float32)
                        + b_qkv_ref[...]).astype(qkv_ref.dtype)


def _pick_chunk(kc):
    # chunk the 125*C contraction so each block is a multiple of 128 lanes
    for steps in (5, 25, 125, 1):
        if kc % steps == 0 and ((kc // steps) % 128 == 0 or steps == 1):
            return kc // steps
    return kc


def xcpe_qkv_call(gathered, shortcut, p):
    n_pad, c = shortcut.shape
    kc = gathered.shape[1]
    chunk = _pick_chunk(kc)
    k_steps = kc // chunk
    row = TILE_ROWS_XCPE
    c3 = p["w_qkv"].shape[1]
    full2 = lambda i, k: (0, 0)
    return pl.pallas_call(
        xcpe_qkv_kernel,
        grid=(n_pad // row, k_steps),
        in_specs=[
            pl.BlockSpec((row, chunk), lambda i, k: (i, k)),
            pl.BlockSpec((row, c), lambda i, k: (i, 0)),
            pl.BlockSpec((chunk, c), lambda i, k: (k, 0)),
            pl.BlockSpec(p["b_conv"].shape, full2),
            pl.BlockSpec(p["w_cpe_lin"].shape, full2),
            pl.BlockSpec(p["b_cpe_lin"].shape, full2),
            pl.BlockSpec(p["g_cpe"].shape, full2),
            pl.BlockSpec(p["b_cpe"].shape, full2),
            pl.BlockSpec(p["g1"].shape, full2),
            pl.BlockSpec(p["b1"].shape, full2),
            pl.BlockSpec(p["w_qkv"].shape, full2),
            pl.BlockSpec(p["b_qkv"].shape, full2),
        ],
        out_specs=(
            pl.BlockSpec((row, c), lambda i, k: (i, 0)),
            pl.BlockSpec((row, c3), lambda i, k: (i, 0)),
        ),
        out_shape=(
            jax.ShapeDtypeStruct((n_pad, c), jnp.bfloat16),
            jax.ShapeDtypeStruct((n_pad, c3), jnp.bfloat16),
        ),
        scratch_shapes=[pltpu.VMEM((row, c), jnp.float32)],
        compiler_params=pltpu.CompilerParams(
            dimension_semantics=("parallel", "arbitrary"),
            vmem_limit_bytes=48 * 1024 * 1024),
    )(gathered, shortcut,
      p["w_conv"], p["b_conv"], p["w_cpe_lin"], p["b_cpe_lin"],
      p["g_cpe"], p["b_cpe"], p["g1"], p["b1"], p["w_qkv"], p["b_qkv"])


# ----------------------------------------------------------------------------
# kernel 2: serialized patch attention, MXU-friendly block-diagonal packing
# ----------------------------------------------------------------------------
def attn_kernel(qkv_ref, out_ref, *, n_heads, head_dim, channels, scale,
                patch_k, chunk_rows, n_chunks):
    # Block-diagonal additive mask: rows/cols belong to the same patch iff
    # their (row // K) match.  Off-patch scores get -1e30 (exp -> 0).
    ri = jax.lax.broadcasted_iota(jnp.int32, (chunk_rows, chunk_rows), 0) // patch_k
    ci = jax.lax.broadcasted_iota(jnp.int32, (chunk_rows, chunk_rows), 1) // patch_k
    mask = jnp.where(ri == ci, 0.0, -1e30).astype(jnp.float32)

    for c in range(n_chunks):                       # static, fully unrolled
        r0 = c * chunk_rows
        head_out = []
        for h in range(n_heads):                    # static, fully unrolled
            # per-head static Ref slices: only the needed lanes are loaded
            q = qkv_ref[r0:r0 + chunk_rows, h * head_dim:(h + 1) * head_dim]
            k = qkv_ref[r0:r0 + chunk_rows,
                        channels + h * head_dim:channels + (h + 1) * head_dim]
            v = qkv_ref[r0:r0 + chunk_rows,
                        2 * channels + h * head_dim:2 * channels + (h + 1) * head_dim]
            s = jax.lax.dot_general(q, k, (((1,), (1,)), ((), ())),
                                    preferred_element_type=jnp.float32)
            s = s * scale + mask
            s = s - jnp.max(s, axis=-1, keepdims=True)      # stable softmax
            e = jnp.exp(s)
            pr = e * pl.reciprocal(jnp.sum(e, axis=-1, keepdims=True), approx=True)
            head_out.append(jnp.dot(pr.astype(jnp.bfloat16), v,
                                    preferred_element_type=jnp.float32))
        out_ref[r0:r0 + chunk_rows, :] = (
            jnp.concatenate(head_out, axis=-1).astype(out_ref.dtype))


def attn_call(qkv_rows, n_heads, scale, patch_k):
    n_rows, c3 = qkv_rows.shape
    c = c3 // 3
    hd = c // n_heads
    pack = max(1, 128 // patch_k)           # patches packed per 128-ish row chunk
    chunk_rows = pack * patch_k
    group = max(pack, (ATTN_ROWS_TARGET // chunk_rows) * pack)   # patches / step
    rows_step = group * patch_k
    while rows_step % 8 != 0:               # keep the block sublane-aligned
        group += pack
        rows_step = group * patch_k
    rows_pad = ((n_rows + rows_step - 1) // rows_step) * rows_step
    x = jnp.pad(qkv_rows, ((0, rows_pad - n_rows), (0, 0)))
    n_chunks = rows_step // chunk_rows
    out = pl.pallas_call(
        functools.partial(attn_kernel, n_heads=n_heads, head_dim=hd,
                          channels=c, scale=scale, patch_k=patch_k,
                          chunk_rows=chunk_rows, n_chunks=n_chunks),
        grid=(rows_pad // rows_step,),
        in_specs=[pl.BlockSpec((rows_step, c3), lambda b: (b, 0))],
        out_specs=pl.BlockSpec((rows_step, c), lambda b: (b, 0)),
        out_shape=jax.ShapeDtypeStruct((rows_pad, c), jnp.bfloat16),
        compiler_params=pltpu.CompilerParams(dimension_semantics=("parallel",)),
    )(x)
    return out[:n_rows]


# ----------------------------------------------------------------------------
# kernel 3: projection + residual + norm2 + MLP + residual (fused)
# ----------------------------------------------------------------------------
def proj_mlp_kernel(attn_ref, shortcut_ref, w_proj_ref, b_proj_ref,
                    g2_ref, beta2_ref, w_m1_ref, b_m1_ref,
                    w_m2_ref, b_m2_ref, out_ref):
    x = (shortcut_ref[...].astype(jnp.float32)
         + jnp.dot(attn_ref[...], w_proj_ref[...],
                   preferred_element_type=jnp.float32) + b_proj_ref[...])
    h = _layer_norm(x, g2_ref[...], beta2_ref[...])
    h = jnp.dot(h.astype(jnp.bfloat16), w_m1_ref[...],
                preferred_element_type=jnp.float32) + b_m1_ref[...]
    h = jax.nn.gelu(h, approximate=False)   # exact (erf) GELU, matches torch nn.GELU()
    out_ref[...] = x + jnp.dot(h.astype(jnp.bfloat16), w_m2_ref[...],
                               preferred_element_type=jnp.float32) + b_m2_ref[...]


def proj_mlp_call(feat_attn, shortcut, p):
    n_pad, c = shortcut.shape
    row = TILE_ROWS
    full1 = lambda i: (0, 0)
    return pl.pallas_call(
        proj_mlp_kernel,
        grid=(n_pad // row,),
        in_specs=[
            pl.BlockSpec((row, c), lambda i: (i, 0)),
            pl.BlockSpec((row, c), lambda i: (i, 0)),
            pl.BlockSpec(p["w_proj"].shape, full1),
            pl.BlockSpec(p["b_proj"].shape, full1),
            pl.BlockSpec(p["g2"].shape, full1),
            pl.BlockSpec(p["b2"].shape, full1),
            pl.BlockSpec(p["w_m1"].shape, full1),
            pl.BlockSpec(p["b_m1"].shape, full1),
            pl.BlockSpec(p["w_m2"].shape, full1),
            pl.BlockSpec(p["b_m2"].shape, full1),
        ],
        out_specs=pl.BlockSpec((row, c), lambda i: (i, 0)),
        out_shape=jax.ShapeDtypeStruct((n_pad, c), jnp.float32),
        compiler_params=pltpu.CompilerParams(dimension_semantics=("parallel",)),
    )(feat_attn, shortcut, p["w_proj"], p["b_proj"], p["g2"], p["b2"],
      p["w_m1"], p["b_m1"], p["w_m2"], p["b_m2"])


# ----------------------------------------------------------------------------
# glue: serialization / padding / sparse-conv neighbours (mirrors torch code)
# ----------------------------------------------------------------------------
def get_padding_and_inverse(offset, patch_size):
    offset = np.asarray(offset, dtype=np.int64)
    bincount = np.diff(offset, prepend=0)
    bincount_pad = (bincount + patch_size - 1) // patch_size * patch_size
    mask_pad = bincount > patch_size
    bincount_pad = (~mask_pad) * bincount + mask_pad * bincount_pad
    _offset = np.concatenate([[0], offset])
    _offset_pad = np.concatenate([[0], np.cumsum(bincount_pad)])
    pad = np.arange(_offset_pad[-1])
    unpad = np.arange(_offset[-1])
    cu_seqlens = []
    for i in range(len(offset)):
        unpad[_offset[i]:_offset[i + 1]] += _offset_pad[i] - _offset[i]
        if bincount[i] != bincount_pad[i]:
            pad[_offset_pad[i + 1] - patch_size + bincount[i] % patch_size:
                _offset_pad[i + 1]] = \
                pad[_offset_pad[i + 1] - 2 * patch_size + bincount[i] % patch_size:
                    _offset_pad[i + 1] - patch_size]
        pad[_offset_pad[i]:_offset_pad[i + 1]] -= _offset_pad[i] - _offset[i]
        cu_seqlens.append(np.arange(_offset_pad[i], _offset_pad[i + 1],
                                    patch_size, dtype=np.int32))
    cu_seqlens = np.concatenate(cu_seqlens + [np.array([_offset_pad[-1]],
                                                       dtype=np.int32)])
    return pad, unpad, cu_seqlens


def serialize(grid_coord, batch, grid_extent=8):
    # Lexicographic space-filling code (stand-in for z-order); Block only
    # requires a consistent, batch-grouped (order, inverse) pair.
    code = (batch.astype(np.int64) * grid_extent ** 3
            + grid_coord[:, 0] * grid_extent ** 2
            + grid_coord[:, 1] * grid_extent + grid_coord[:, 2])
    order = np.argsort(code, kind="stable")
    inverse = np.empty_like(order)
    inverse[order] = np.arange(len(order))
    return order, inverse


def build_submconv_neighbors(grid_coord, batch, kernel_size=5):
    # Vectorized neighbour lookup via a dense (batch, x, y, z) index volume.
    # TODO(synk): for large/sparse extents this should be a hash lookup.
    grid_coord = np.asarray(grid_coord, dtype=np.int64)
    batch = np.asarray(batch, dtype=np.int64)
    n = grid_coord.shape[0]
    r = kernel_size // 2
    nb = int(batch.max()) + 1
    ext = grid_coord.max(axis=0) + 1
    vol = np.full((nb, ext[0], ext[1], ext[2]), -1, dtype=np.int32)
    vol[batch, grid_coord[:, 0], grid_coord[:, 1], grid_coord[:, 2]] = \
        np.arange(n, dtype=np.int32)
    d = np.arange(-r, r + 1)
    offs = np.stack(np.meshgrid(d, d, d, indexing="ij"), axis=-1).reshape(-1, 3)
    nbr = grid_coord[:, None, :] + offs[None, :, :]            # [N, 125, 3]
    valid = np.all((nbr >= 0) & (nbr < ext[None, None, :]), axis=-1)
    nbr_c = np.clip(nbr, 0, ext - 1)
    idx = vol[batch[:, None], nbr_c[..., 0], nbr_c[..., 1], nbr_c[..., 2]]
    idx = np.where(valid, idx, -1).astype(np.int32)
    return idx, (idx >= 0)


# ----------------------------------------------------------------------------
# parameter init (deterministic, synthetic)
# ----------------------------------------------------------------------------
def init_params(key, channels, n_heads, mlp_ratio, kernel_volume=KERNEL_VOLUME):
    hidden = int(channels * mlp_ratio)
    ks = jax.random.split(key, 6)

    def lin(k, fan_in, fan_out):
        bound = 1.0 / np.sqrt(fan_in)
        w = jax.random.uniform(k, (fan_in, fan_out), jnp.float32, -bound, bound)
        b = jax.random.uniform(jax.random.fold_in(k, 1), (1, fan_out),
                               jnp.float32, -bound, bound)
        # bf16 MXU operand weights, f32 biases / accumulation
        return w.astype(jnp.bfloat16), b

    p = {}
    p["w_conv"], p["b_conv"] = lin(ks[0], kernel_volume * channels, channels)
    p["w_cpe_lin"], p["b_cpe_lin"] = lin(ks[1], channels, channels)
    p["g_cpe"] = jnp.ones((1, channels), jnp.float32)
    p["b_cpe"] = jnp.zeros((1, channels), jnp.float32)
    p["g1"] = jnp.ones((1, channels), jnp.float32)
    p["b1"] = jnp.zeros((1, channels), jnp.float32)
    p["w_qkv"], p["b_qkv"] = lin(ks[2], channels, channels * 3)
    p["w_proj"], p["b_proj"] = lin(ks[3], channels, channels)
    p["g2"] = jnp.ones((1, channels), jnp.float32)
    p["b2"] = jnp.zeros((1, channels), jnp.float32)
    p["w_m1"], p["b_m1"] = lin(ks[4], channels, hidden)
    p["w_m2"], p["b_m2"] = lin(ks[5], hidden, channels)
    return p


# ----------------------------------------------------------------------------
# Block.forward
# ----------------------------------------------------------------------------
def block_forward(params, feat, grid_coord, batch, offset,
                  serialized_order, serialized_inverse,
                  patch_size_max, n_heads, qk_scale=None):
    N, C = feat.shape
    H = n_heads

    bincount = np.diff(np.asarray(offset), prepend=0)
    K = int(min(int(bincount.min()), patch_size_max))
    # Reproduces the reference default `channels // n_heads ** (-0.5)`.
    # TODO(synk): this is almost certainly a bug in the reference (should be
    #             head_dim ** -0.5); kept to preserve forward semantics.
    scale = float(qk_scale) if qk_scale else float(C // (H ** (-0.5)))

    pad, unpad, _ = get_padding_and_inverse(offset, K)
    order = np.asarray(serialized_order)[pad]        # [Npad_attn] -> original row
    inverse = unpad[np.asarray(serialized_inverse)]  # [N]         -> padded position

    # pad rows so every row-tiled kernel sees full blocks
    row_lcm = max(TILE_ROWS, TILE_ROWS_XCPE)
    n_pad = ((N + row_lcm - 1) // row_lcm) * row_lcm
    assert n_pad % TILE_ROWS_XCPE == 0 and n_pad % TILE_ROWS == 0

    feat_bf16 = feat.astype(jnp.bfloat16)
    shortcut_pad = jnp.pad(feat_bf16, ((0, n_pad - N), (0, 0)))

    # --- SubMConv3d neighbourhood gather (5x5x5) -------------------------------
    # Gather directly in bf16 so the single materialized [N, 125*C] tensor is
    # half the HBM bytes (one write + one read).
    # TODO(synk): a fully in-kernel DMA gather (scalar-prefetched nbr_idx + feat
    #             in HBM via memory_space=pl.ANY) would remove this tensor
    #             entirely; per-row 256 B DMAs are too fine-grained to win, so
    #             the gather stays as one fused XLA pass for now.
    nbr_idx, nbr_mask = build_submconv_neighbors(grid_coord, batch, kernel_size=5)
    gathered = (feat_bf16[np.clip(nbr_idx, 0, None)]
                * jnp.asarray(nbr_mask, jnp.bfloat16)[..., None]).reshape(N, -1)
    gathered = jnp.pad(gathered, ((0, n_pad - N), (0, 0)))

    # fused: SubMConv3d -> Linear -> LayerNorm -> +residual -> norm1 -> QKV
    feat1, qkv = xcpe_qkv_call(gathered, shortcut_pad, params)   # bf16 [n_pad,C],[n_pad,3C]

    # --- serialized patch attention --------------------------------------------
    # TODO(synk): the order/inverse gathers could be fused into the attention /
    #             proj kernels via scalar prefetch; left as bf16 XLA gathers.
    qkv_rows = qkv[jnp.asarray(order)]                            # [P*K, 3C] bf16
    attn_rows = attn_call(qkv_rows, H, scale, K)                  # [P*K, C]  bf16
    feat_attn = attn_rows[jnp.asarray(inverse)]                   # [N, C]    bf16
    feat_attn = jnp.pad(feat_attn, ((0, n_pad - N), (0, 0)))

    # fused: projection -> +residual -> norm2 -> MLP -> +residual
    out = proj_mlp_call(feat_attn, feat1, params)                 # f32 [n_pad, C]
    return out[:N]


# ----------------------------------------------------------------------------
# main
# ----------------------------------------------------------------------------
def make_inputs(key, counts, channels, grid_extent=8):
    n_total = int(np.sum(counts))
    keys = jax.random.split(key, len(counts) + 1)
    feat = jax.random.normal(keys[0], (n_total, channels), dtype=jnp.float32)
    coords = []
    for b, c in enumerate(counts):
        perm = np.asarray(jax.random.permutation(keys[b + 1], grid_extent ** 3))[:c]
        g = np.stack([perm // (grid_extent ** 2),
                      (perm // grid_extent) % grid_extent,
                      perm % grid_extent], axis=1)
        coords.append(g)
    grid_coord = np.concatenate(coords, axis=0).astype(np.int64)
    batch = np.repeat(np.arange(len(counts)), counts)
    offset = np.cumsum(np.asarray(counts, dtype=np.int64))
    return feat, grid_coord, batch, offset


if __name__ == "__main__":
    channels = 128          # lane-dense: C, 3C, hidden are all multiples of 128
    n_heads = 4
    patch_size_max = 16
    mlp_ratio = 2.0
    counts = np.array([40, 24])   # two point clouds, 64 points total

    key = jax.random.PRNGKey(0)
    kdata, kparam = jax.random.split(key)
    feat, grid_coord, batch, offset = make_inputs(kdata, counts, channels)
    order, inverse = serialize(grid_coord, batch)
    params = init_params(kparam, channels, n_heads, mlp_ratio)

    out = block_forward(params, feat, grid_coord, batch, offset,
                        order, inverse, patch_size_max, n_heads, qk_scale=None)
    out = jax.block_until_ready(out)
    assert out.shape == feat.shape
    assert bool(jnp.all(jnp.isfinite(out)))
    print("KERNEL_OK")
</pallas_src>

<mosaic_0001>
module attributes {stable_mosaic.version = 11 : i64} {
  func.func @xcpe_qkv_kernel(%arg0: i32, %arg1: i32, %arg2: memref<256x3200xbf16, #tpu.memory_space<vmem>>, %arg3: memref<256x128xbf16, #tpu.memory_space<vmem>>, %arg4: memref<3200x128xbf16, #tpu.memory_space<vmem>>, %arg5: memref<1x128xf32, #tpu.memory_space<vmem>>, %arg6: memref<128x128xbf16, #tpu.memory_space<vmem>>, %arg7: memref<1x128xf32, #tpu.memory_space<vmem>>, %arg8: memref<1x128xf32, #tpu.memory_space<vmem>>, %arg9: memref<1x128xf32, #tpu.memory_space<vmem>>, %arg10: memref<1x128xf32, #tpu.memory_space<vmem>>, %arg11: memref<1x128xf32, #tpu.memory_space<vmem>>, %arg12: memref<128x384xbf16, #tpu.memory_space<vmem>>, %arg13: memref<1x384xf32, #tpu.memory_space<vmem>>, %arg14: memref<256x128xbf16, #tpu.memory_space<vmem>>, %arg15: memref<256x384xbf16, #tpu.memory_space<vmem>>, %arg16: memref<256x128xf32, #tpu.memory_space<vmem>>) attributes {dimension_semantics = [#tpu.dimension_semantics<parallel>, #tpu.dimension_semantics<arbitrary>], iteration_bounds = array<i64: 2, 5>, scalar_prefetch = 0 : i64, scratch_operands = 1 : i64, tpu.core_type = #tpu.core_type<tc>, window_params = [{transform_indices = @transform_0, window_bounds = array<i64: 256, 3200>}, {transform_indices = @transform_1, window_bounds = array<i64: 256, 128>}, {transform_indices = @transform_2, window_bounds = array<i64: 3200, 128>}, {pipeline_mode = #tpu.pipeline_mode<synchronous>, transform_indices = @transform_3, window_bounds = array<i64: 1, 128>}, {pipeline_mode = #tpu.pipeline_mode<synchronous>, transform_indices = @transform_4, window_bounds = array<i64: 128, 128>}, {pipeline_mode = #tpu.pipeline_mode<synchronous>, transform_indices = @transform_5, window_bounds = array<i64: 1, 128>}, {pipeline_mode = #tpu.pipeline_mode<synchronous>, transform_indices = @transform_6, window_bounds = array<i64: 1, 128>}, {pipeline_mode = #tpu.pipeline_mode<synchronous>, transform_indices = @transform_7, window_bounds = array<i64: 1, 128>}, {pipeline_mode = #tpu.pipeline_mode<synchronous>, transform_indices = @transform_8, window_bounds = array<i64: 1, 128>}, {pipeline_mode = #tpu.pipeline_mode<synchronous>, transform_indices = @transform_9, window_bounds = array<i64: 1, 128>}, {pipeline_mode = #tpu.pipeline_mode<synchronous>, transform_indices = @transform_10, window_bounds = array<i64: 128, 384>}, {pipeline_mode = #tpu.pipeline_mode<synchronous>, transform_indices = @transform_11, window_bounds = array<i64: 1, 384>}, {transform_indices = @transform_12, window_bounds = array<i64: 256, 128>}, {transform_indices = @transform_13, window_bounds = array<i64: 256, 384>}]} {
    %c0_i32 = arith.constant 0 : i32
    %0 = arith.cmpi eq, %arg1, %c0_i32 : i32
    %1 = arith.extui %0 : i1 to i32
    %c0_i32_0 = arith.constant 0 : i32
    %2 = arith.cmpi ne, %1, %c0_i32_0 : i32
    scf.if %2 {
      %cst_9 = arith.constant 0.000000e+00 : f32
      %12 = vector.broadcast %cst_9 : f32 to vector<256x128xf32>
      %c0_10 = arith.constant 0 : index
      %c0_11 = arith.constant 0 : index
      %13 = vector.load %arg16[%c0_10, %c0_11] : memref<256x128xf32, #tpu.memory_space<vmem>>, vector<256x128xf32>
      tpu.vector_store %arg16[%c0_10, %c0_11], %12 {strides = array<i32>} : memref<256x128xf32, #tpu.memory_space<vmem>>, vector<256x128xf32>,
    } else {
    }
    %c0 = arith.constant 0 : index
    %c0_1 = arith.constant 0 : index
    %3 = vector.load %arg16[%c0, %c0_1] : memref<256x128xf32, #tpu.memory_space<vmem>>, vector<256x128xf32>
    %c0_2 = arith.constant 0 : index
    %c0_3 = arith.constant 0 : index
    %4 = vector.load %arg2[%c0_2, %c0_3] : memref<256x3200xbf16, #tpu.memory_space<vmem>>, vector<256x3200xbf16>
    %c0_4 = arith.constant 0 : index
    %c0_5 = arith.constant 0 : index
    %5 = vector.load %arg4[%c0_4, %c0_5] : memref<3200x128xbf16, #tpu.memory_space<vmem>>, vector<3200x128xbf16>
    %cst = arith.constant dense<0.000000e+00> : vector<256x128xf32>
    %6 = tpu.matmul %4, %5, %cst {dimension_numbers = #tpu.dot_dimension_numbers<[1], [0], [0], [1], [0, 0, 1, 1], [], []>} : vector<256x3200xbf16>, vector<3200x128xbf16>, vector<256x128xf32> -> vector<256x128xf32>
    %7 = arith.addf %3, %6 : vector<256x128xf32>
    %c0_6 = arith.constant 0 : index
    %c0_7 = arith.constant 0 : index
    %8 = vector.load %arg16[%c0_6, %c0_7] : memref<256x128xf32, #tpu.memory_space<vmem>>, vector<256x128xf32>
    tpu.vector_store %arg16[%c0_6, %c0_7], %7 {strides = array<i32>} : memref<256x128xf32, #tpu.memory_space<vmem>>, vector<256x128xf32>,
    %c4_i32 = arith.constant 4 : i32
    %9 = arith.cmpi eq, %arg1, %c4_i32 : i32
    %10 = arith.extui %9 : i1 to i32
    %c0_i32_8 = arith.constant 0 : i32
    %11 = arith.cmpi ne, %10, %c0_i32_8 : i32
    scf.if %11 {
      %c0_9 = arith.constant 0 : index
      %c0_10 = arith.constant 0 : index
      %12 = vector.load %arg16[%c0_9, %c0_10] : memref<256x128xf32, #tpu.memory_space<vmem>>, vector<256x128xf32>
      %c0_11 = arith.constant 0 : index
      %c0_12 = arith.constant 0 : index
      %13 = vector.load %arg5[%c0_11, %c0_12] : memref<1x128xf32, #tpu.memory_space<vmem>>, vector<1x128xf32>
      %14 = vector.broadcast %13 : vector<1x128xf32> to vector<256x128xf32>
      %15 = arith.addf %12, %14 : vector<256x128xf32>
      %16 = arith.truncf %15 : vector<256x128xf32> to vector<256x128xbf16>
      %c0_13 = arith.constant 0 : index
      %c0_14 = arith.constant 0 : index
      %17 = vector.load %arg6[%c0_13, %c0_14] : memref<128x128xbf16, #tpu.memory_space<vmem>>, vector<128x128xbf16>
      %cst_15 = arith.constant dense<0.000000e+00> : vector<256x128xf32>
      %18 = tpu.matmul %16, %17, %cst_15 {dimension_numbers = #tpu.dot_dimension_numbers<[1], [0], [0], [1], [0, 0, 1, 1], [], []>} : vector<256x128xbf16>, vector<128x128xbf16>, vector<256x128xf32> -> vector<256x128xf32>
      %c0_16 = arith.constant 0 : index
      %c0_17 = arith.constant 0 : index
      %19 = vector.load %arg7[%c0_16, %c0_17] : memref<1x128xf32, #tpu.memory_space<vmem>>, vector<1x128xf32>
      %20 = vector.broadcast %19 : vector<1x128xf32> to vector<256x128xf32>
      %21 = arith.addf %18, %20 : vector<256x128xf32>
      %c0_18 = arith.constant 0 : index
      %c0_19 = arith.constant 0 : index
      %22 = vector.load %arg3[%c0_18, %c0_19] : memref<256x128xbf16, #tpu.memory_space<vmem>>, vector<256x128xbf16>
      %23 = arith.extf %22 : vector<256x128xbf16> to vector<256x128xf32>
      %c0_20 = arith.constant 0 : index
      %c0_21 = arith.constant 0 : index
      %24 = vector.load %arg8[%c0_20, %c0_21] : memref<1x128xf32, #tpu.memory_space<vmem>>, vector<1x128xf32>
      %c0_22 = arith.constant 0 : index
      %c0_23 = arith.constant 0 : index
      %25 = vector.load %arg9[%c0_22, %c0_23] : memref<1x128xf32, #tpu.memory_space<vmem>>, vector<1x128xf32>
      %cst_24 = arith.constant dense<0.000000e+00> : vector<256xf32>
      %26 = vector.multi_reduction <add>, %21, %cst_24 [1] : vector<256x128xf32> to vector<256xf32>
      %27 = vector.shape_cast %26 : vector<256xf32> to vector<256x1xf32>
      %cst_25 = arith.constant 1.280000e+02 : f32
      %28 = vector.broadcast %cst_25 : f32 to vector<256x1xf32>
      %29 = arith.divf %27, %28 : vector<256x1xf32>
      %30 = vector.broadcast %29 : vector<256x1xf32> to vector<256x128xf32>
      %31 = arith.subf %21, %30 : vector<256x128xf32>
      %32 = arith.mulf %31, %31 : vector<256x128xf32>
      %cst_26 = arith.constant dense<0.000000e+00> : vector<256xf32>
      %33 = vector.multi_reduction <add>, %32, %cst_26 [1] : vector<256x128xf32> to vector<256xf32>
      %34 = vector.shape_cast %33 : vector<256xf32> to vector<256x1xf32>
      %cst_27 = arith.constant 1.280000e+02 : f32
      %35 = vector.broadcast %cst_27 : f32 to vector<256x1xf32>
      %36 = arith.divf %34, %35 : vector<256x1xf32>
      %cst_28 = arith.constant 9.99999974E-6 : f32
      %37 = vector.broadcast %cst_28 : f32 to vector<256x1xf32>
      %38 = arith.addf %36, %37 : vector<256x1xf32>
      %39 = math.rsqrt %38 : vector<256x1xf32>
      %40 = vector.broadcast %39 : vector<256x1xf32> to vector<256x128xf32>
      %41 = arith.mulf %31, %40 : vector<256x128xf32>
      %42 = vector.broadcast %24 : vector<1x128xf32> to vector<256x128xf32>
      %43 = arith.mulf %41, %42 : vector<256x128xf32>
      %44 = vector.broadcast %25 : vector<1x128xf32> to vector<256x128xf32>
      %45 = arith.addf %43, %44 : vector<256x128xf32>
      %46 = arith.addf %23, %45 : vector<256x128xf32>
      %47 = arith.truncf %46 : vector<256x128xf32> to vector<256x128xbf16>
      %c0_29 = arith.constant 0 : index
      %c0_30 = arith.constant 0 : index
      %48 = vector.load %arg14[%c0_29, %c0_30] : memref<256x128xbf16, #tpu.memory_space<vmem>>, vector<256x128xbf16>
      tpu.vector_store %arg14[%c0_29, %c0_30], %47 {strides = array<i32>} : memref<256x128xbf16, #tpu.memory_space<vmem>>, vector<256x128xbf16>,
      %c0_31 = arith.constant 0 : index
      %c0_32 = arith.constant 0 : index
      %49 = vector.load %arg10[%c0_31, %c0_32] : memref<1x128xf32, #tpu.memory_space<vmem>>, vector<1x128xf32>
      %c0_33 = arith.constant 0 : index
      %c0_34 = arith.constant 0 : index
      %50 = vector.load %arg11[%c0_33, %c0_34] : memref<1x128xf32, #tpu.memory_space<vmem>>, vector<1x128xf32>
      %cst_35 = arith.constant dense<0.000000e+00> : vector<256xf32>
      %51 = vector.multi_reduction <add>, %46, %cst_35 [1] : vector<256x128xf32> to vector<256xf32>
      %52 = vector.shape_cast %51 : vector<256xf32> to vector<256x1xf32>
      %cst_36 = arith.constant 1.280000e+02 : f32
      %53 = vector.broadcast %cst_36 : f32 to vector<256x1xf32>
      %54 = arith.divf %52, %53 : vector<256x1xf32>
      %55 = vector.broadcast %54 : vector<256x1xf32> to vector<256x128xf32>
      %56 = arith.subf %46, %55 : vector<256x128xf32>
      %57 = arith.mulf %56, %56 : vector<256x128xf32>
      %cst_37 = arith.constant dense<0.000000e+00> : vector<256xf32>
      %58 = vector.multi_reduction <add>, %57, %cst_37 [1] : vector<256x128xf32> to vector<256xf32>
      %59 = vector.shape_cast %58 : vector<256xf32> to vector<256x1xf32>
      %cst_38 = arith.constant 1.280000e+02 : f32
      %60 = vector.broadcast %cst_38 : f32 to vector<256x1xf32>
      %61 = arith.divf %59, %60 : vector<256x1xf32>
      %cst_39 = arith.constant 9.99999974E-6 : f32
      %62 = vector.broadcast %cst_39 : f32 to vector<256x1xf32>
      %63 = arith.addf %61, %62 : vector<256x1xf32>
      %64 = math.rsqrt %63 : vector<256x1xf32>
      %65 = vector.broadcast %64 : vector<256x1xf32> to vector<256x128xf32>
      %66 = arith.mulf %56, %65 : vector<256x128xf32>
      %67 = vector.broadcast %49 : vector<1x128xf32> to vector<256x128xf32>
      %68 = arith.mulf %66, %67 : vector<256x128xf32>
      %69 = vector.broadcast %50 : vector<1x128xf32> to vector<256x128xf32>
      %70 = arith.addf %68, %69 : vector<256x128xf32>
      %71 = arith.truncf %70 : vector<256x128xf32> to vector<256x128xbf16>
      %c0_40 = arith.constant 0 : index
      %c0_41 = arith.constant 0 : index
      %72 = vector.load %arg12[%c0_40, %c0_41] : memref<128x384xbf16, #tpu.memory_space<vmem>>, vector<128x384xbf16>
      %cst_42 = arith.constant dense<0.000000e+00> : vector<256x384xf32>
      %73 = tpu.matmul %71, %72, %cst_42 {dimension_numbers = #tpu.dot_dimension_numbers<[1], [0], [0], [1], [0, 0, 1, 1], [], []>} : vector<256x128xbf16>, vector<128x384xbf16>, vector<256x384xf32> -> vector<256x384xf32>
      %c0_43 = arith.constant 0 : index
      %c0_44 = arith.constant 0 : index
      %74 = vector.load %arg13[%c0_43, %c0_44] : memref<1x384xf32, #tpu.memory_space<vmem>>, vector<1x384xf32>
      %75 = vector.broadcast %74 : vector<1x384xf32> to vector<256x384xf32>
      %76 = arith.addf %73, %75 : vector<256x384xf32>
      %77 = arith.truncf %76 : vector<256x384xf32> to vector<256x384xbf16>
      %c0_45 = arith.constant 0 : index
      %c0_46 = arith.constant 0 : index
      %78 = vector.load %arg15[%c0_45, %c0_46] : memref<256x384xbf16, #tpu.memory_space<vmem>>, vector<256x384xbf16>
      tpu.vector_store %arg15[%c0_45, %c0_46], %77 {strides = array<i32>} : memref<256x384xbf16, #tpu.memory_space<vmem>>, vector<256x384xbf16>,
    } else {
    }
    return
  }
  func.func @transform_0(%arg0: i32, %arg1: i32) -> (i32, i32) {
    %c0_i32 = arith.constant 0 : i32
    return %arg0, %arg1 : i32, i32
  }
  func.func @transform_1(%arg0: i32, %arg1: i32) -> (i32, i32) {
    %c0_i32 = arith.constant 0 : i32
    %c0_i32_0 = arith.constant 0 : i32
    return %arg0, %c0_i32 : i32, i32
  }
  func.func @transform_2(%arg0: i32, %arg1: i32) -> (i32, i32) {
    %c0_i32 = arith.constant 0 : i32
    %c0_i32_0 = arith.constant 0 : i32
    return %arg1, %c0_i32 : i32, i32
  }
  func.func @transform_3(%arg0: i32, %arg1: i32) -> (i32, i32) {
    %c0_i32 = arith.constant 0 : i32
    %c0_i32_0 = arith.constant 0 : i32
    %c0_i32_1 = arith.constant 0 : i32
    return %c0_i32, %c0_i32_0 : i32, i32
  }
  func.func @transform_4(%arg0: i32, %arg1: i32) -> (i32, i32) {
    %c0_i32 = arith.constant 0 : i32
    %c0_i32_0 = arith.constant 0 : i32
    %c0_i32_1 = arith.constant 0 : i32
    return %c0_i32, %c0_i32_0 : i32, i32
  }
  func.func @transform_5(%arg0: i32, %arg1: i32) -> (i32, i32) {
    %c0_i32 = arith.constant 0 : i32
    %c0_i32_0 = arith.constant 0 : i32
    %c0_i32_1 = arith.constant 0 : i32
    return %c0_i32, %c0_i32_0 : i32, i32
  }
  func.func @transform_6(%arg0: i32, %arg1: i32) -> (i32, i32) {
    %c0_i32 = arith.constant 0 : i32
    %c0_i32_0 = arith.constant 0 : i32
    %c0_i32_1 = arith.constant 0 : i32
    return %c0_i32, %c0_i32_0 : i32, i32
  }
  func.func @transform_7(%arg0: i32, %arg1: i32) -> (i32, i32) {
    %c0_i32 = arith.constant 0 : i32
    %c0_i32_0 = arith.constant 0 : i32
    %c0_i32_1 = arith.constant 0 : i32
    return %c0_i32, %c0_i32_0 : i32, i32
  }
  func.func @transform_8(%arg0: i32, %arg1: i32) -> (i32, i32) {
    %c0_i32 = arith.constant 0 : i32
    %c0_i32_0 = arith.constant 0 : i32
    %c0_i32_1 = arith.constant 0 : i32
    return %c0_i32, %c0_i32_0 : i32, i32
  }
  func.func @transform_9(%arg0: i32, %arg1: i32) -> (i32, i32) {
    %c0_i32 = arith.constant 0 : i32
    %c0_i32_0 = arith.constant 0 : i32
    %c0_i32_1 = arith.constant 0 : i32
    return %c0_i32, %c0_i32_0 : i32, i32
  }
  func.func @transform_10(%arg0: i32, %arg1: i32) -> (i32, i32) {
    %c0_i32 = arith.constant 0 : i32
    %c0_i32_0 = arith.constant 0 : i32
    %c0_i32_1 = arith.constant 0 : i32
    return %c0_i32, %c0_i32_0 : i32, i32
  }
  func.func @transform_11(%arg0: i32, %arg1: i32) -> (i32, i32) {
    %c0_i32 = arith.constant 0 : i32
    %c0_i32_0 = arith.constant 0 : i32
    %c0_i32_1 = arith.constant 0 : i32
    return %c0_i32, %c0_i32_0 : i32, i32
  }
  func.func @transform_12(%arg0: i32, %arg1: i32) -> (i32, i32) {
    %c0_i32 = arith.constant 0 : i32
    %c0_i32_0 = arith.constant 0 : i32
    return %arg0, %c0_i32 : i32, i32
  }
  func.func @transform_13(%arg0: i32, %arg1: i32) -> (i32, i32) {
    %c0_i32 = arith.constant 0 : i32
    %c0_i32_0 = arith.constant 0 : i32
    return %arg0, %c0_i32 : i32, i32
  }
}

</mosaic_0001>

<bundles_post_ra>
// kernel: tpu_custom_call.1
= control target key start
LH: loop header
LB: loop body
LE: loop exit
PB: predicated region body
PF: predicated region fallthrough
CT: control target
= control target key end

     0   :  { %s17524_s0 = inlined_call_operand.hbm [shape: bf16[512,16000], index: 0, kind: input, shape index: {}]   ;;  %s17525_s1 = inlined_call_operand.hbm [shape: bf16[512,128], index: 1, kind: input, shape index: {}]   ;;  %s17526_s2 = inlined_call_operand.hbm [shape: bf16[16000,128], index: 2, kind: input, shape index: {}]   ;;  %s17527_s3 = inlined_call_operand.hbm [shape: f32[1,128], index: 3, kind: input, shape index: {}]   ;;  %s17528_s4 = inlined_call_operand.hbm [shape: bf16[128,128], index: 4, kind: input, shape index: {}]   ;;  %s17529_s5 = inlined_call_operand.hbm [shape: f32[1,128], index: 5, kind: input, shape index: {}]   ;;  %s17530_s6 = inlined_call_operand.hbm [shape: f32[1,128], index: 6, kind: input, shape index: {}]   ;;  %s17531_s7 = inlined_call_operand.hbm [shape: f32[1,128], index: 7, kind: input, shape index: {}]   ;;  %s17532_s8 = inlined_call_operand.hbm [shape: f32[1,128], index: 8, kind: input, shape index: {}]   ;;  %s17533_s9 = inlined_call_operand.hbm [shape: f32[1,128], index: 9, kind: input, shape index: {}]   ;;  %s17534_s10 = inlined_call_operand.hbm [shape: bf16[128,384], index: 10, kind: input, shape index: {}]   ;;  %s17535_s11 = inlined_call_operand.hbm [shape: f32[1,384], index: 11, kind: input, shape index: {}]   ;;  %s17536_s12 = inlined_call_operand.hbm [shape: bf16[512,128], index: 12, kind: output, shape index: {0}]   ;;  %s17537_s13 = inlined_call_operand.hbm [shape: bf16[512,384], index: 13, kind: output, shape index: {1}]  }
   0x1   :  { %17564 = sst [smem:[#allocation51_spill]] %s17524_s0 }
   0x2   :  { %17565 = sst [smem:[#allocation52_spill]] %s17525_s1 }
   0x3   :  { %17566 = sst [smem:[#allocation53_spill]] %s17526_s2 }
   0x4   :  { %17567 = sst [smem:[#allocation54_spill]] %s17527_s3 }
   0x5   :  { %17568 = sst [smem:[#allocation55_spill]] %s17528_s4 }
   0x6   :  { %17569 = sst [smem:[#allocation56_spill]] %s17529_s5 }
   0x7   :  { %17570 = sst [smem:[#allocation57_spill]] %s17530_s6 }
   0x8   :  { %17571 = sst [smem:[#allocation58_spill]] %s17531_s7 }
   0x9   :  { %17572 = sst [smem:[#allocation59_spill]] %s17533_s9 }
   0xa   :  { %17573 = sst [smem:[#allocation60_spill]] %s17536_s12 }
   0xb   :  { %17574 = sst [smem:[#allocation61_spill]] %s17537_s13 }
   0xc   :  { %19 = vsyncpa [#allocation4], 0 }
   0xd   :  { %21 = vsyncpa [#allocation4 + $0x1], 0 }
   0xe   :  { %22 = vsyncpa [#allocation7], 0 }
   0xf   :  { %24 = vsyncpa [#allocation7 + $0x1], 0 }
  0x10   :  { %25 = vsyncpa [#allocation10], 0 }
  0x11   :  { %26 = vsyncpa [#allocation13], 0 }
  0x12   :  { %27 = vsyncpa [#allocation16], 0 }
  0x13   :  { %28 = vsyncpa [#allocation19], 0 }
  0x14   :  { %29 = vsyncpa [#allocation22], 0 }
  0x15   :  { %30 = vsyncpa [#allocation5], 0 }
  0x16   :  { %32 = vsyncpa [#allocation5 + $0x1], 0 }
  0x17   :  { %33 = vsyncpa [#allocation25], 0 }
  0x18   :  { %35 = vsyncpa [#allocation25 + $0x1], 0  ;;  %s14086_s25 = smov 0   ;;  %s14088_s26 = smov 0  }
  0x19   :  { %s14090_s27 = smov 0   ;;  %s14092_s28 = smov 0  }
  0x1a   :  { %s14094_s29 = smov 0   ;;  %s14096_s30 = smov 0  }
  0x1b   :  { %s14098_s14 = smov 0   ;;  %s14100_s15 = smov 0  }
  0x1c   :  { %s14102_s16 = smov 0   ;;  %s14104_s17 = smov 0  }
  0x1d   :  { %s14106_s18 = smov 0   ;;  %s14108_s19 = smov 0  }
  0x1e   :  { %s14110_s20 = smov 0   ;;  %s14112_s21 = smov 0  }
  0x1f LB: > { %17575 = sst [smem:[#allocation36_spill]] %s13935_s25  ;;  %s14157_s22 = sadd.s32 4294967295, %s13987_s21   ;;  %s13987_s21 = sphi %s14112_s21, %s41_s21   ;;  %s13983_s20 = sphi %s14110_s20, %s17673_s20   ;;  %s13979_s19 = sphi %s14108_s19, %s17672_s19   ;;  %s13975_s18 = sphi %s14106_s18, %s17671_s18   ;;  %s13971_s17 = sphi %s14104_s17, %s17670_s17   ;;  %s13967_s16 = sphi %s14102_s16, %s17669_s16   ;;  %s13963_s15 = sphi %s14100_s15, %s17662_s15   ;;  %s13959_s14 = sphi %s14098_s14, %s17661_s14   ;;  %s13955_s30 = sphi %s14096_s30, %s17660_s30   ;;  %s13951_s29 = sphi %s14094_s29, %s17668_s29   ;;  %s13947_s28 = sphi %s14092_s28, %s17667_s28   ;;  %s13943_s27 = sphi %s14090_s27, %s17666_s27   ;;  %s13939_s26 = sphi %s14088_s26, %s17658_s26   ;;  %s13935_s25 = sphi %s14086_s25, %s17657_s25  }
  0x20   : > { %17576 = sst [smem:[#allocation37_spill]] %s13939_s26  ;;  %p9602_p0 = scmp.ge.s32.totalorder %s13987_s21, 1 }
  0x21   : > { %17577 = sst [smem:[#allocation38_spill]] %s13943_s27  ;;  %p17546_p1 = scmp.eq.s32.totalorder %s14157_s22, 0 }
  0x22   : > { %17578 = sst [smem:[#allocation39_spill]] %s13947_s28  ;;  %p379_p2 = scmp.lt.s32.totalorder %s13987_s21, 11 }
  0x23   : > { %17579 = sst [smem:[#allocation40_spill]] %s13955_s30  ;;  %s13989_s24 = smov [#allocation9]  }
  0x24   : > { %17580 = sst [smem:[#allocation41_spill]] %s13959_s14  ;;  %p14162_p3 = pnand %p9602_p0, %p379_p2 }
  0x25   : > { %17581 = sst [smem:[#allocation42_spill]] %s13963_s15  ;;  %s392_s13 = sshll.u32 %s13989_s24, 4  ;;  %s393_s13 = int_to_ptr.vmem [resolvable:$true] %s392_s13 }
  0x26   : > { %17582 = sst [smem:[#allocation43_spill]] %s13967_s16  ;;  %p12278_p4 = pneg %p14162_p3 }
  0x27   : > { %17583 = sst [smem:[#allocation44_spill]] %s13971_s17  ;;  %s13990_s12 = smov [#allocation12]  }
  0x28   : > { %17584 = sst [smem:[#allocation45_spill]] %s13975_s18  ;;  %s416_s18 = sshll.u32 %s13990_s12, 4  ;;  %s14174_s18 = int_to_ptr.vmem [resolvable:$true] %s416_s18 }
  0x29   : > { %s17585_s23 = scalar_select %p14162_p3, 1, 0 }
  0x2a   : > { %p14170_p5 = pnand %p12278_p4, %p17546_p1  ;;  %s13991_s2 = smov [#allocation15]  }
  0x2b   : > { %17586 = sst [smem:[#allocation46_spill]] %s17585_s23  ;;  %s438_s25 = sshll.u32 %s13991_s2, 4  ;;  %s14176_s25 = int_to_ptr.vmem [resolvable:$true] %s438_s25 }
  0x2c   : > { %s17587_s17 = scalar_select %p14170_p5, 1, 0 }
  0x2d   : > { %s17588_s3 = sld [smem:[#allocation54_spill]]  ;;  %p14186_p7 = pneg %p14170_p5 }
  0x33   : > { %s13439_s24 = scalar_lea.hbm %s17588_s3, 16 }
  0x34   : > { %p13440_p6 = scmp.ne.s32.totalorder %s17588_s3, %s13439_s24  ;;  %p13446_p10 = scmp.lt.u32.totalorder %s13439_s24, %s17588_s3 }
  0x36   : > { %p13442_p8 = pnand %p14186_p7, %p13440_p6 }
  0x38   : > { %p13443_p9 = pneg %p13442_p8 }
  0x3a   : > { %p13448_p11 = pnand %p13446_p10, %p13443_p9 }
  0x3c   : > { %13451 = shalt.err (!%p13448_p11)
}
  0x3d   : > { %s13452_s26 = scalar_lea.vmem %s393_s13, 16  ;;  %s13459_s0 = scalar_lea.vmem %s393_s13, 32 }
  0x3e   : > { %p13453_p12 = scmp.ne.s32.totalorder %s393_s13, %s13452_s26  ;;  %p13460_p2 = scmp.lt.s32.totalorder %s393_s13, %s393_s13 }
  0x3f   : > { %p13461_p4 = scmp.lt.s32.totalorder %s13459_s0, %s13452_s26 }
  0x40   : > { %p13455_p13 = pnand %p13453_p12, %p14186_p7 }
  0x41   : > { %p13462_p1 = por %p13461_p4, %p13460_p2 }
  0x42   : > { %p13456_p0 = pneg %p13455_p13 }
  0x44   : > { %p13463_p3 = pnand %p13462_p1, %p13456_p0 }
  0x46   : > { %13466 = shalt.err (!%p13463_p3)
}
  0x47   : > { %12281 = dma.hbm_to_vmem [thread:$0]  (!%p14170_p5), %s17588_s3, 16, %s393_s13, [#allocation10]  }
  0x48   : > { %s17590_s5 = sld [smem:[#allocation56_spill]] }
  0x4e   : > { %s13467_s2 = scalar_lea.hbm %s17590_s5, 16 }
  0x4f   : > { %p13468_p6 = scmp.ne.s32.totalorder %s17590_s5, %s13467_s2  ;;  %p13474_p1 = scmp.lt.u32.totalorder %s13467_s2, %s17590_s5 }
  0x51   : > { %p13470_p8 = pnand %p13468_p6, %p14186_p7 }
  0x53   : > { %p13471_p9 = pneg %p13470_p8 }
  0x55   : > { %p13476_p3 = pnand %p13474_p1, %p13471_p9 }
  0x57   : > { %13479 = shalt.err (!%p13476_p3)
}
  0x58   : > { %s13480_s13 = scalar_lea.vmem %s14174_s18, 16  ;;  %s13487_s15 = scalar_lea.vmem %s14174_s18, 32 }
  0x59   : > { %p13481_p10 = scmp.ne.s32.totalorder %s14174_s18, %s13480_s13  ;;  %p13488_p13 = scmp.lt.s32.totalorder %s14174_s18, %s14174_s18 }
  0x5a   : > { %p13489_p0 = scmp.lt.s32.totalorder %s13487_s15, %s13480_s13 }
  0x5b   : > { %p13483_p11 = pnand %p13481_p10, %p14186_p7 }
  0x5c   : > { %p13490_p2 = por %p13489_p0, %p13488_p13 }
  0x5d   : > { %p13484_p12 = pneg %p13483_p11 }
  0x5f   : > { %p13491_p4 = pnand %p13490_p2, %p13484_p12 }
  0x61   : > { %13494 = shalt.err (!%p13491_p4)
}
  0x62   : > { %12287 = dma.hbm_to_vmem [thread:$0]  (!%p14170_p5), %s17590_s5, 16, %s14174_s18, [#allocation13]  }
  0x63   : > { %s17591_s7 = sld [smem:[#allocation58_spill]] }
  0x69   : > { %s13495_s24 = scalar_lea.hbm %s17591_s7, 16 }
  0x6a   : > { %p13496_p6 = scmp.ne.s32.totalorder %s17591_s7, %s13495_s24  ;;  %p13502_p1 = scmp.lt.u32.totalorder %s13495_s24, %s17591_s7 }
  0x6c   : > { %p13498_p8 = pnand %p13496_p6, %p14186_p7 }
  0x6e   : > { %p13499_p9 = pneg %p13498_p8 }
  0x70   : > { %p13504_p3 = pnand %p13502_p1, %p13499_p9 }
  0x72   : > { %13507 = shalt.err (!%p13504_p3)
}
  0x73   : > { %s13508_s18 = scalar_lea.vmem %s14176_s25, 16  ;;  %s13515_s15 = scalar_lea.vmem %s14176_s25, 32 }
  0x74   : > { %p13509_p10 = scmp.ne.s32.totalorder %s14176_s25, %s13508_s18  ;;  %p13516_p13 = scmp.lt.s32.totalorder %s14176_s25, %s14176_s25 }
  0x75   : > { %p13517_p0 = scmp.lt.s32.totalorder %s13515_s15, %s13508_s18 }
  0x76   : > { %p13511_p11 = pnand %p13509_p10, %p14186_p7 }
  0x77   : > { %p13518_p2 = por %p13517_p0, %p13516_p13 }
  0x78   : > { %p13512_p12 = pneg %p13511_p11 }
  0x7a   : > { %p13519_p4 = pnand %p13518_p2, %p13512_p12 }
  0x7c   : > { %13522 = shalt.err (!%p13519_p4)
}
  0x7d   : > { %12293 = dma.hbm_to_vmem [thread:$0]  (!%p14170_p5), %s17591_s7, 16, %s14176_s25, [#allocation16]  }
  0x7e   : > { %s13992_s23 = smov [#allocation18]   ;;  %s17592_s9 = sld [smem:[#allocation59_spill]] }
  0x7f   : > { %s460_s14 = sshll.u32 %s13992_s23, 4  ;;  %s461_s14 = int_to_ptr.vmem [resolvable:$true] %s460_s14 }
  0x84   : > { %s13523_s26 = scalar_lea.hbm %s17592_s9, 16 }
  0x85   : > { %p13524_p6 = scmp.ne.s32.totalorder %s17592_s9, %s13523_s26  ;;  %p13530_p1 = scmp.lt.u32.totalorder %s13523_s26, %s17592_s9 }
  0x87   : > { %p13526_p8 = pnand %p13524_p6, %p14186_p7 }
  0x89   : > { %p13527_p9 = pneg %p13526_p8 }
  0x8b   : > { %p13532_p3 = pnand %p13530_p1, %p13527_p9 }
  0x8d   : > { %13535 = shalt.err (!%p13532_p3)
}
  0x8e   : > { %s13536_s25 = scalar_lea.vmem %s461_s14, 16  ;;  %s13543_s16 = scalar_lea.vmem %s461_s14, 32 }
  0x8f   : > { %p13537_p10 = scmp.ne.s32.totalorder %s461_s14, %s13536_s25  ;;  %p13544_p13 = scmp.lt.s32.totalorder %s461_s14, %s461_s14 }
  0x90   : > { %p13545_p0 = scmp.lt.s32.totalorder %s13543_s16, %s13536_s25 }
  0x91   : > { %p13539_p11 = pnand %p13537_p10, %p14186_p7 }
  0x92   : > { %p13546_p2 = por %p13545_p0, %p13544_p13 }
  0x93   : > { %p13540_p12 = pneg %p13539_p11 }
  0x95   : > { %p13547_p4 = pnand %p13546_p2, %p13540_p12 }
  0x97   : > { %13550 = shalt.err (!%p13547_p4)
}
  0x98   : > { %12299 = dma.hbm_to_vmem [thread:$0]  (!%p14170_p5), %s17592_s9, 16, %s461_s14, [#allocation19]  }
  0x99   : > { %s9601_s24 = sadd.s32 4294967294, %s13987_s21   ;;  %s50_s2 = sadd.s32 1, %s13979_s19 }
  0x9a   : > { %p51_p6 = scmp.ge.s32.totalorder %s50_s2, 5  ;;  %s53_s26 = sadd.s32 1, %s13983_s20 }
  0x9b   : > { %p17555_p8 = scmp.eq.s32.totalorder %s13987_s21, 0  ;;  %s88_s0 = sadd.s32 1, %s13955_s30 }
  0x9c   : > { %s17675_s2 = smov (%p51_p6, %s50_s2), 0  ;;  %s17677_s26 = smov (!%p51_p6, %s53_s26), %s13983_s20 }
  0x9d   : > { %17593 = sst [smem:[#allocation47_spill]] %s17675_s2  ;;  %s14278_s13 = ssub.s32 %s13979_s19, %s17675_s2 }
  0x9e   : > { %p95_p9 = scmp.ne.s32.totalorder %s13955_s30, %s13951_s29  ;;  %p55_p1 = scmp.ge.s32.totalorder %s17677_s26, 2 }
  0x9f   : > { %p101_p3 = scmp.ne.s32.totalorder %s13951_s29, %s13947_s28  ;;  %p17596_p12 = scmp.eq.s32.totalorder %s14157_s22, 0 }
  0xa0   : > { %p14289_p10 = por %p95_p9, %p17555_p8  ;;  %s17679_s26 = smov (%p55_p1, %s17677_s26), 0 }
  0xa1   : > { %17595 = sst [smem:[#allocation48_spill]] %s17679_s26  ;;  %p14301_p13 = por %p101_p3, %p17596_p12 }
  0xa2   : > { %p340_p0 = scmp.eq.s32.totalorder %s14157_s22, 9  ;;  %s57_s15 = ssub.s32 %s13983_s20, %s17679_s26 }
  0xa3   : > { %s17597_s18 = scalar_select %p14301_p13, 1, 0 }
  0xa4   : > { %p346_p2 = scmp.eq.s32.totalorder %s9601_s24, 9  ;;  %s59_s25 = sor.u32 %s14278_s13, %s57_s15 }
  0xa5   : > { %p86_p4 = scmp.eq.s32.totalorder %s57_s15, 0  ;;  %p14309_p6 = scmp.eq.s32.totalorder %s59_s25, 0 }
  0xa6   : > { %p14316_p1 = por %p340_p0, %p95_p9  ;;  %p14326_p12 = por %p346_p2, %p101_p3 }
  0xa7   : > { %s17598_s16 = scalar_select %p14309_p6, 1, 0 }
  0xa8   : > { %s17599_s27 = scalar_select %p14316_p1, 1, 0 }
  0xa9   : > { %s14321_s23 = scalar_select %p86_p4, %s13955_s30, %s88_s0  }
  0xaa   : > { %s17601_s3 = scalar_select %p14326_p12, 1, 0 }
  0xab   : > { %17600 = sst [smem:[#allocation49_spill]] %s14321_s23  ;;  %p17554_p11 = scmp.lt.s32.totalorder %s13987_s21, 10 }
  0xac   : > { %17602 = sst [smem:[#allocation50_spill]] %s17601_s3  ;;  %s519_s24 = sand.u32 1, %s13987_s21  }
  0xad   : > { %s521_s5 = sand.u32 1, %s13955_s30   ;;  %s10376_s25 = sshll.u32 %s13983_s20, 11 }
  0xae   : > { %s9616_s15 = sshll.u32 %s521_s5, 7  ;;  %s17603_s1 = sld [smem:[#allocation52_spill]] }
  0xaf   : > { %s523_s0 = scalar_lea.vmem [#allocation6], %s9616_s15  ;;  %p14345_p9 = pnand %p17554_p11, %p14289_p10 }
  0xb0   : > { %s530_s2 = sshll.u32 %s523_s0, 4  ;;  %s13993_s5 = smov [#allocation11]   ;;  %s14339_s2 = int_to_ptr.vmem [resolvable:$true] %s530_s2 }
  0xb1   : > { %s14349_s7 = sshll.u32 %s13993_s5, 4  ;;  %s14351_s9 = scalar_lea.sflag [#allocation7], %s519_s24  ;;  %s403_s7 = int_to_ptr.vmem [resolvable:$true] %s14349_s7 }
  0xb2   : > { %p13553_p0 = pneg %p14345_p9 }
  0xb4   : > { %s14337_s26 = scalar_lea.hbm %s17603_s1, %s10376_s25  ;;  %s13556_s0 = scalar_lea.hbm %s17603_s1, 4096 }
  0xb5   : > { %s13551_s25 = scalar_lea.hbm %s14337_s26, 2048  ;;  %p13557_p10 = scmp.lt.u32.totalorder %s14337_s26, %s17603_s1 }
  0xb6   : > { %p13552_p3 = scmp.ne.s32.totalorder %s14337_s26, %s13551_s25  ;;  %p13558_p11 = scmp.lt.u32.totalorder %s13556_s0, %s13551_s25 }
  0xb7   : > { %p13560_p12 = scmp.lt.u32.totalorder %s13551_s25, %s14337_s26 }
  0xb8   : > { %p13554_p2 = pnand %p13553_p0, %p13552_p3  ;;  %p13559_p8 = por %p13558_p11, %p13557_p10 }
  0xba   : > { %p13555_p4 = pneg %p13554_p2  ;;  %p13561_p1 = por %p13560_p12, %p13559_p8 }
  0xbc   : > { %p13562_p13 = pnand %p13561_p1, %p13555_p4 }
  0xbe   : > { %13565 = shalt.err (!%p13562_p13)
}
  0xbf   : > { %s13566_s24 = scalar_lea.vmem %s14339_s2, 2048  ;;  %s13994_s5 = smov [#allocation6]  }
  0xc0   : > { %p13567_p3 = scmp.ne.s32.totalorder %s14339_s2, %s13566_s24  ;;  %s13571_s14 = sshll.u32 %s13994_s5, 4  ;;  %s13572_s14 = int_to_ptr.vmem [resolvable:$false] %s13571_s14 }
  0xc1   : > { %s13573_s3 = scalar_lea.vmem %s13572_s14, 4096  ;;  %p13574_p5 = scmp.lt.s32.totalorder %s14339_s2, %s13572_s14 }
  0xc2   : > { %p13569_p2 = pnand %p13567_p3, %p13553_p0  ;;  %p13575_p11 = scmp.lt.s32.totalorder %s13573_s3, %s13566_s24 }
  0xc4   : > { %p13570_p6 = pneg %p13569_p2  ;;  %p13576_p10 = por %p13575_p11, %p13574_p5 }
  0xc6   : > { %p13577_p8 = pnand %p13576_p10, %p13570_p6 }
  0xc8   : > { %13580 = shalt.err (!%p13577_p8)
}
  0xc9   : > { %s17561_s30 = smov 64   ;;  %s17562_s25 = smov 4  }
  0xca   : > { %12312 = dma.hbm_to_vmem [thread:$0]  (!%p14345_p9), %s14337_s26, 2048, %s14339_s2, %s14351_s9, %s17561_s30, %s17561_s30, %s17562_s25  }
  0xcb   : > { %s13997_s15 = smov [#allocation14]   ;;  %s17605_s4 = sld [smem:[#allocation55_spill]] }
  0xcc   : > { %s427_s0 = sshll.u32 %s13997_s15, 4  ;;  %s428_s0 = int_to_ptr.vmem [resolvable:$true] %s427_s0 }
  0xd1   : > { %s13581_s14 = scalar_lea.hbm %s17605_s4, 1024 }
  0xd2   : > { %p13582_p5 = scmp.ne.s32.totalorder %s17605_s4, %s13581_s14  ;;  %p13588_p1 = scmp.lt.u32.totalorder %s13581_s14, %s17605_s4 }
  0xd4   : > { %p13584_p13 = pnand %p13582_p5, %p14186_p7 }
  0xd6   : > { %p13585_p6 = pneg %p13584_p13 }
  0xd8   : > { %p13590_p12 = pnand %p13588_p1, %p13585_p6 }
  0xda   : > { %13593 = shalt.err (!%p13590_p12)
}
  0xdb   : > { %s13594_s2 = scalar_lea.vmem %s403_s7, 1024  ;;  %p13602_p3 = scmp.lt.s32.totalorder %s403_s7, %s403_s7 }
  0xdc   : > { %p13595_p9 = scmp.ne.s32.totalorder %s403_s7, %s13594_s2  ;;  %p13603_p2 = scmp.lt.s32.totalorder %s13594_s2, %s13594_s2 }
  0xde   : > { %p13597_p0 = pnand %p13595_p9, %p14186_p7  ;;  %p13604_p11 = por %p13603_p2, %p13602_p3 }
  0xe0   : > { %p13598_p4 = pneg %p13597_p0 }
  0xe2   : > { %p13605_p10 = pnand %p13604_p11, %p13598_p4 }
  0xe4   : > { %13608 = shalt.err (!%p13605_p10)
}
  0xe5   : > { %p17606_p8 = scmp.ne.s32.totalorder %s17587_s17, 0  ;;  %s17607_s6 = sld [smem:[#allocation57_spill]] }
  0xe7   : > { %12284 = dma.hbm_to_vmem [thread:$0]  (!%p17606_p8), %s17605_s4, 1024, %s403_s7, [#allocation10], %s17561_s30, %s17561_s30, %s17562_s25  }
  0xeb   : > { %s13609_s24 = scalar_lea.hbm %s17607_s6, 16 }
  0xec   : > { %p13610_p5 = scmp.ne.s32.totalorder %s17607_s6, %s13609_s24  ;;  %p13616_p1 = scmp.lt.u32.totalorder %s13609_s24, %s17607_s6 }
  0xee   : > { %p13612_p13 = pnand %p13610_p5, %p14186_p7 }
  0xf0   : > { %p13613_p6 = pneg %p13612_p13 }
  0xf2   : > { %p13618_p12 = pnand %p13616_p1, %p13613_p6 }
  0xf4   : > { %13621 = shalt.err (!%p13618_p12)
}
  0xf5   : > { %s13622_s2 = scalar_lea.vmem %s428_s0, 16  ;;  %s13629_s7 = scalar_lea.vmem %s428_s0, 32 }
  0xf6   : > { %p13623_p9 = scmp.ne.s32.totalorder %s428_s0, %s13622_s2  ;;  %p13630_p3 = scmp.lt.s32.totalorder %s428_s0, %s428_s0 }
  0xf7   : > { %p13631_p2 = scmp.lt.s32.totalorder %s13629_s7, %s13622_s2 }
  0xf8   : > { %p13625_p0 = pnand %p13623_p9, %p14186_p7 }
  0xf9   : > { %p13632_p11 = por %p13631_p2, %p13630_p3 }
  0xfa   : > { %p13626_p4 = pneg %p13625_p0 }
  0xfc   : > { %p13633_p10 = pnand %p13632_p11, %p13626_p4 }
  0xfe   : > { %13636 = shalt.err (!%p13633_p10)
}
  0xff   : > { %12290 = dma.hbm_to_vmem [thread:$0]  (!%p17606_p8), %s17607_s6, 16, %s428_s0, [#allocation13]  }
 0x100   : > { %s13998_s26 = smov [#allocation17]   ;;  %s13999_s24 = smov [#allocation20]  }
 0x101   : > { %s449_s15 = sshll.u32 %s13998_s26, 4  ;;  %s470_s5 = sshll.u32 %s13999_s24, 4  ;;  %s450_s15 = int_to_ptr.vmem [resolvable:$true] %s449_s15  ;;  %s471_s5 = int_to_ptr.vmem [resolvable:$true] %s470_s5 }
 0x102   : > { %s13637_s23 = scalar_lea.hbm %s17532_s8, 16 }
 0x103   : > { %p13638_p5 = scmp.ne.s32.totalorder %s17532_s8, %s13637_s23  ;;  %p13644_p1 = scmp.lt.u32.totalorder %s13637_s23, %s17532_s8 }
 0x105   : > { %p13640_p13 = pnand %p13638_p5, %p14186_p7 }
 0x107   : > { %p13641_p6 = pneg %p13640_p13 }
 0x109   : > { %p13646_p12 = pnand %p13644_p1, %p13641_p6 }
 0x10b   : > { %13649 = shalt.err (!%p13646_p12)
}
 0x10c   : > { %s13650_s0 = scalar_lea.vmem %s450_s15, 16  ;;  %s13657_s28 = scalar_lea.vmem %s450_s15, 32 }
 0x10d   : > { %p13651_p9 = scmp.ne.s32.totalorder %s450_s15, %s13650_s0  ;;  %p13658_p3 = scmp.lt.s32.totalorder %s450_s15, %s450_s15 }
 0x10e   : > { %p13659_p2 = scmp.lt.s32.totalorder %s13657_s28, %s13650_s0 }
 0x10f   : > { %p13653_p0 = pnand %p13651_p9, %p14186_p7 }
 0x110   : > { %p13660_p11 = por %p13659_p2, %p13658_p3 }
 0x111   : > { %p13654_p4 = pneg %p13653_p0 }
 0x113   : > { %p13661_p10 = pnand %p13660_p11, %p13654_p4 }
 0x115   : > { %13664 = shalt.err (!%p13661_p10)
}
 0x116   : > { %12296 = dma.hbm_to_vmem [thread:$0]  (!%p17606_p8), %s17532_s8, 16, %s450_s15, [#allocation16]  }
 0x117   : > { %s13665_s3 = scalar_lea.hbm %s17534_s10, 3072 }
 0x118   : > { %p13666_p5 = scmp.ne.s32.totalorder %s17534_s10, %s13665_s3  ;;  %p13672_p1 = scmp.lt.u32.totalorder %s13665_s3, %s17534_s10 }
 0x11a   : > { %p13668_p13 = pnand %p13666_p5, %p14186_p7 }
 0x11c   : > { %p13669_p6 = pneg %p13668_p13 }
 0x11e   : > { %p13674_p12 = pnand %p13672_p1, %p13669_p6 }
 0x120   : > { %13677 = shalt.err (!%p13674_p12)
}
 0x121   : > { %s13678_s0 = scalar_lea.vmem %s471_s5, 3072  ;;  %p13686_p3 = scmp.lt.s32.totalorder %s471_s5, %s471_s5 }
 0x122   : > { %p13679_p9 = scmp.ne.s32.totalorder %s471_s5, %s13678_s0  ;;  %p13687_p2 = scmp.lt.s32.totalorder %s13678_s0, %s13678_s0 }
 0x124   : > { %p13681_p0 = pnand %p13679_p9, %p14186_p7  ;;  %p13688_p11 = por %p13687_p2, %p13686_p3 }
 0x126   : > { %p13682_p4 = pneg %p13681_p0 }
 0x128   : > { %p13689_p10 = pnand %p13688_p11, %p13682_p4 }
 0x12a   : > { %13692 = shalt.err (!%p13689_p10)
}
 0x12b   : > { %s14000_s15 = smov 192   ;;  %s14001_s28 = smov 12  }
 0x12c   : > { %12302 = dma.hbm_to_vmem [thread:$0]  (!%p17606_p8), %s17534_s10, 3072, %s471_s5, [#allocation19], %s14000_s15, %s14000_s15, %s14001_s28  }
 0x12d   : > { %s14002_s30 = smov [#allocation21]   ;;  %s13693_s2 = scalar_lea.hbm %s17535_s11, 48 }
 0x12e   : > { %s484_s14 = sshll.u32 %s14002_s30, 4  ;;  %p13694_p5 = scmp.ne.s32.totalorder %s17535_s11, %s13693_s2  ;;  %s485_s14 = int_to_ptr.vmem [resolvable:$true] %s484_s14 }
 0x12f   : > { %p13700_p1 = scmp.lt.u32.totalorder %s13693_s2, %s17535_s11 }
 0x130   : > { %p13696_p13 = pnand %p13694_p5, %p14186_p7 }
 0x132   : > { %p13697_p6 = pneg %p13696_p13 }
 0x134   : > { %p13702_p12 = pnand %p13700_p1, %p13697_p6 }
 0x136   : > { %13705 = shalt.err (!%p13702_p12)
}
 0x137   : > { %s13706_s5 = scalar_lea.vmem %s485_s14, 48  ;;  %s13713_s15 = scalar_lea.vmem %s485_s14, 64 }
 0x138   : > { %p13707_p9 = scmp.ne.s32.totalorder %s485_s14, %s13706_s5  ;;  %p13714_p3 = scmp.lt.s32.totalorder %s485_s14, %s485_s14 }
 0x139   : > { %p13715_p2 = scmp.lt.s32.totalorder %s13713_s15, %s13706_s5 }
 0x13a   : > { %p13709_p0 = pnand %p13707_p9, %p14186_p7 }
 0x13b   : > { %p13716_p11 = por %p13715_p2, %p13714_p3 }
 0x13c   : > { %p13710_p4 = pneg %p13709_p0 }
 0x13e   : > { %p13717_p10 = pnand %p13716_p11, %p13710_p4 }
 0x140   : > { %13720 = shalt.err (!%p13717_p10)
}
 0x141   : > { %s17608_s25 = sld [smem:[#allocation43_spill]]  ;;  %s17609_s24 = sld [smem:[#allocation42_spill]] }
 0x142   : > { %s17610_s12 = sld [smem:[#allocation41_spill]]  ;;  %p17611_p5 = scmp.ne.s32.totalorder %s17598_s16, 0 }
 0x143   : > { %12305 = dma.hbm_to_vmem [thread:$0]  (!%p17606_p8), %s17535_s11, 48, %s485_s14, [#allocation22]  }
 0x144   : > { %p17612_p13 = scmp.eq.s32.totalorder %s13987_s21, 0  ;;  %s501_s23 = smul.u32 25, %s13979_s19 }
 0x145   : > { %p17613_p12 = scmp.eq.s32.totalorder %s14157_s22, 0  ;;  %p17615_p0 = scmp.lt.s32.totalorder %s13987_s21, 10 }
 0x146   : > { %s12226_s16 = smul.u32 4000, %s13983_s20 }
 0x147   : > { %s62_s30 = sadd.s32 1, %s17608_s25  ;;  %p69_p7 = scmp.ne.s32.totalorder %s17608_s25, %s17609_s24 }
 0x148   : > { %s14482_s17 = scalar_select %p17611_p5, %s17608_s25, %s62_s30  }
 0x149   : > { %p71_p6 = por %p17612_p13, %p69_p7  ;;  %p75_p1 = scmp.ne.s32.totalorder %s17609_s24, %s17610_s12 }
 0x14a   : > { %s495_s3 = sand.u32 1, %s17608_s25   ;;  %s506_s14 = sadd.s32 %s12226_s16, %s501_s23 }
 0x14b   : > { %p14492_p9 = por %p17613_p12, %p75_p1  ;;  %s12225_s7 = smul.u32 3200, %s495_s3 }
 0x14c   : > { %p14498_p4 = pnand %p17615_p0, %p71_p6  ;;  %s9615_s15 = sshll.u32 %s506_s14, 6 }
 0x14d   : > { %s499_s0 = scalar_lea.vmem [#allocation3], %s12225_s7  ;;  %s17617_s25 = sld [smem:[#allocation51_spill]] }
 0x14e   : > { %s509_s5 = sshll.u32 %s499_s0, 4  ;;  %s14510_s30 = scalar_lea.sflag [#allocation4], %s495_s3  ;;  %s14503_s5 = int_to_ptr.vmem [resolvable:$true] %s509_s5 }
 0x14f   : > { %p13723_p3 = pneg %p14498_p4 }
 0x153   : > { %s17618_s24 = smov %s17617_s25  ;;  %s14508_s12 = scalar_lea.hbm %s17617_s25, %s9615_s15 }
 0x154   : > { %s13721_s4 = scalar_lea.hbm %s14508_s12, 51200  ;;  %s13726_s16 = scalar_lea.hbm %s17618_s24, 512000 }
 0x155   : > { %p13722_p8 = scmp.ne.s32.totalorder %s14508_s12, %s13721_s4  ;;  %p13727_p10 = scmp.lt.u32.totalorder %s14508_s12, %s17618_s24 }
 0x156   : > { %p13728_p7 = scmp.lt.u32.totalorder %s13726_s16, %s13721_s4  ;;  %p13730_p13 = scmp.lt.u32.totalorder %s13721_s4, %s14508_s12 }
 0x157   : > { %p13724_p2 = pnand %p13723_p3, %p13722_p8 }
 0x158   : > { %p13729_p5 = por %p13728_p7, %p13727_p10 }
 0x159   : > { %p13725_p11 = pneg %p13724_p2 }
 0x15a   : > { %p13731_p6 = por %p13730_p13, %p13729_p5 }
 0x15c   : > { %p13732_p1 = pnand %p13731_p6, %p13725_p11 }
 0x15e   : > { %13735 = shalt.err (!%p13732_p1)
}
 0x15f   : > { %s13736_s3 = scalar_lea.vmem %s14503_s5, 51200  ;;  %s14003_s15 = smov [#allocation3]  }
 0x160   : > { %p13737_p12 = scmp.ne.s32.totalorder %s14503_s5, %s13736_s3  ;;  %s13741_s28 = sshll.u32 %s14003_s15, 4  ;;  %s13742_s28 = int_to_ptr.vmem [resolvable:$false] %s13741_s28 }
 0x161   : > { %s13743_s26 = scalar_lea.vmem %s13742_s28, 102400  ;;  %p13744_p2 = scmp.lt.s32.totalorder %s14503_s5, %s13742_s28 }
 0x162   : > { %p13739_p0 = pnand %p13737_p12, %p13723_p3  ;;  %p13745_p10 = scmp.lt.s32.totalorder %s13743_s26, %s13736_s3 }
 0x164   : > { %p13740_p8 = pneg %p13739_p0  ;;  %p13746_p7 = por %p13745_p10, %p13744_p2 }
 0x166   : > { %p13747_p5 = pnand %p13746_p7, %p13740_p8 }
 0x168   : > { %13750 = shalt.err (!%p13747_p5)
}
 0x169   : > { %s14004_s4 = smov 8000   ;;  %s17619_s25 = sld [smem:[#allocation38_spill]] }
 0x16a   : > { %s17620_s23 = sld [smem:[#allocation37_spill]]  ;;  %s14005_s16 = smov 1600  }
 0x16b   : > { %s17621_s7 = sld [smem:[#allocation36_spill]]  ;;  %s14006_s14 = smov 100  }
 0x16c   : > { %12309 = dma.hbm_to_vmem [thread:$0]  (!%p14498_p4), %s14508_s12, 51200, %s14503_s5, %s14510_s30, %s14004_s4, %s14005_s16, %s14006_s14  }
 0x16d   : > { %p17622_p3 = scmp.eq.s32.totalorder %s14278_s13, 0  ;;  %s10377_s28 = smul.u32 25600, %s13979_s19 }
 0x16e   : > { %p17623_p6 = scmp.eq.s32.totalorder %s13987_s21, 0  ;;  %p17624_p12 = scmp.eq.s32.totalorder %s14157_s22, 0 }
 0x16f   : > { %s114_s0 = sadd.s32 1, %s17619_s25  ;;  %s542_s15 = sand.u32 1, %s17619_s25  }
 0x170   : > { %s14542_s3 = scalar_select %p17622_p3, %s17619_s25, %s114_s0  }
 0x171   : > { %p121_p11 = scmp.ne.s32.totalorder %s17619_s25, %s17620_s23  ;;  %p127_p13 = scmp.ne.s32.totalorder %s17620_s23, %s17621_s7 }
 0x172   : > { %s12227_s6 = smul.u32 1600, %s542_s15  ;;  %p17626_p8 = scmp.lt.s32.totalorder %s13987_s21, 10 }
 0x173   : > { %p123_p1 = por %p121_p11, %p17623_p6  ;;  %p14554_p0 = por %p127_p13, %p17624_p12 }
 0x174   : > { %s17628_s12 = sld [smem:[#allocation53_spill]]  ;;  %s544_s4 = scalar_lea.vmem [#allocation8], %s12227_s6 }
 0x175   : > { %s17625_s26 = scalar_select %p14554_p0, 1, 0 }
 0x176   : > { %p14560_p2 = pnand %p17626_p8, %p123_p1  ;;  %s551_s25 = sshll.u32 %s544_s4, 4  ;;  %s14569_s25 = int_to_ptr.vmem [resolvable:$true] %s551_s25 }
 0x178   : > { %p13753_p10 = pneg %p14560_p2 }
 0x17a   : > { %s14567_s30 = scalar_lea.hbm %s17628_s12, %s10377_s28  ;;  %s13756_s14 = scalar_lea.hbm %s17628_s12, 128000 }
 0x17b   : > { %s13751_s23 = scalar_lea.hbm %s14567_s30, 25600  ;;  %p13757_p3 = scmp.lt.u32.totalorder %s14567_s30, %s17628_s12 }
 0x17c   : > { %p13752_p4 = scmp.ne.s32.totalorder %s14567_s30, %s13751_s23  ;;  %p13758_p11 = scmp.lt.u32.totalorder %s13756_s14, %s13751_s23 }
 0x17d   : > { %p13760_p6 = scmp.lt.u32.totalorder %s13751_s23, %s14567_s30 }
 0x17e   : > { %p13754_p7 = pnand %p13753_p10, %p13752_p4  ;;  %p13759_p13 = por %p13758_p11, %p13757_p3 }
 0x180   : > { %p13755_p5 = pneg %p13754_p7  ;;  %p13761_p1 = por %p13760_p6, %p13759_p13 }
 0x182   : > { %p13762_p12 = pnand %p13761_p1, %p13755_p5 }
 0x184   : > { %13765 = shalt.err (!%p13762_p12)
}
 0x185   : > { %s13766_s6 = scalar_lea.vmem %s14569_s25, 25600  ;;  %s14007_s28 = smov [#allocation8]  }
 0x186   : > { %p13767_p8 = scmp.ne.s32.totalorder %s14569_s25, %s13766_s6  ;;  %s13771_s13 = sshll.u32 %s14007_s28, 4  ;;  %s13772_s13 = int_to_ptr.vmem [resolvable:$false] %s13771_s13 }
 0x187   : > { %s13773_s5 = scalar_lea.vmem %s13772_s13, 51200  ;;  %p13774_p0 = scmp.lt.s32.totalorder %s14569_s25, %s13772_s13 }
 0x188   : > { %p13769_p4 = pnand %p13767_p8, %p13753_p10  ;;  %p13775_p3 = scmp.lt.s32.totalorder %s13773_s5, %s13766_s6 }
 0x18a   : > { %p13770_p7 = pneg %p13769_p4  ;;  %p13776_p11 = por %p13775_p3, %p13774_p0 }
 0x18c   : > { %p13777_p13 = pnand %p13776_p11, %p13770_p7 }
 0x18e   : > { %13780 = shalt.err (!%p13777_p13)
}
 0x18f   : > { %s17629_s4 = smov 4   ;;  %s17630_s23 = smov 64  }
 0x190   : > { %12315 = dma.hbm_to_vmem [thread:$0]  (!%p14560_p2), %s14567_s30, 25600, %s14569_s25, %s14351_s9, %s17630_s23, %s17630_s23, %s17629_s4  }
 0x191   : > { %s17631_s7 = sld [smem:[#allocation46_spill]] }
 0x197   : > { %p17632_p10 = scmp.ne.s32.totalorder %s17631_s7, 0 }
 0x198   : > { %s17633_s16 = sld [smem:[#allocation42_spill]] (!%p17632_p10) }
 0x199   : > { %563 = sbr.rel (%p17632_p10) target bundleno = 2861 (0xb2d), region = 68 }
 0x19e   : > { %s565_s14 = sand.u32 (!%p17632_p10), 1, %s17633_s16  }
 0x19f   : > { %s12228_s0 = smul.u32 (!%p17632_p10), 3200, %s565_s14  ;;  %s566_s15 = scalar_lea.sflag (!%p17632_p10), [#allocation4], %s565_s14 }
 0x1a1   : > { %s14603_s6 = scalar_lea.vmem [#allocation3], %s12228_s0 }
 0x1a2   : > { %13894 = dma.done.wait (%p14492_p9), %s566_s15, 51200  }
 0x1a3   : > { %13896 = vsyncadd (%p14492_p9), %s566_s15, 4294916096  ;;  %s574_s1 = sand.u32 1, %s14157_s22   ;;  %s14611_s9 = sand.u32 1, %s13951_s29  }
 0x1a4   : > { %s9621_s30 = sshll.u32 %s14611_s9, 7  ;;  %s575_s25 = scalar_lea.sflag [#allocation7], %s574_s1 }
 0x1a5   : > { %s14614_s28 = scalar_lea.vmem [#allocation6], %s9621_s30  ;;  %p17634_p0 = scmp.ne.s32.totalorder %s17597_s18, 0 }
 0x1a7   : > { %13898 = dma.done.wait (%p17634_p0), %s575_s25, 2048  }
 0x1a8   : > { %13900 = vsyncadd (%p17634_p0), %s575_s25, 4294965248  ;;  %s17635_s13 = sld [smem:[#allocation37_spill]]  ;;  %p17636_p9 = scmp.ne.s32.totalorder %s17625_s26, 0 }
 0x1ae   : > { %s585_s2 = sand.u32 1, %s17635_s13  }
 0x1af   : > { %s12229_s5 = smul.u32 1600, %s585_s2 }
 0x1b1   : > { %s14621_s4 = scalar_lea.vmem [#allocation8], %s12229_s5 }
 0x1b2   : > { %13902 = dma.done.wait (%p17636_p9), %s575_s25, 25600  }
 0x1b3   : > { %13904 = vsyncadd (%p17636_p9), %s575_s25, 4294941696  ;;  %p17637_p2 = scmp.eq.s32.totalorder %s14157_s22, 0 }
 0x1b5   : > { %13906 = dma.done.wait (%p17637_p2), [#allocation10], 1040   ;;  %p17638_p5 = pmov %p17637_p2 }
 0x1b6   : > { %p17639_p6 = pmov %p17637_p2 }
 0x1b7   : > { %13908 = vsyncadd (%p17638_p5), [#allocation10], 4294966256 }
 0x1b8   : > { %13910 = dma.done.wait (%p17639_p6), [#allocation13], 32   ;;  %p17640_p1 = pmov %p17637_p2 }
 0x1ba   : > { %13912 = vsyncadd (%p17640_p1), [#allocation13], 4294967264  ;;  %p17641_p12 = pmov %p17640_p1 }
 0x1bb   : > { %p17642_p8 = pmov %p17640_p1 }
 0x1bc   : > { %13914 = dma.done.wait (%p17641_p12), [#allocation16], 32  }
 0x1bd   : > { %13916 = vsyncadd (%p17642_p8), [#allocation16], 4294967264  ;;  %p17643_p4 = pmov %p17640_p1 }
 0x1be   : > { %p17644_p7 = pmov %p17640_p1 }
 0x1bf   : > { %13918 = dma.done.wait (%p17643_p4), [#allocation19], 3088  }
 0x1c0   : > { %13920 = vsyncadd (%p17644_p7), [#allocation19], 4294964208  ;;  %p17645_p3 = pmov %p17640_p1 }
 0x1c1   : > { %p17646_p11 = pmov %p17640_p1 }
 0x1c2   : > { %13922 = dma.done.wait (%p17645_p3), [#allocation22], 48  }
 0x1c3   : > { %13924 = vsyncadd (%p17646_p11), [#allocation22], 4294967248  ;;  %s12230_s18 = smul.u32 384, %s14611_s9  ;;  %s14648_s26 = scalar_lea.vmem [#allocation23], %s9621_s30 }
 0x1c4   : > { %s17647_s7 = sld [smem:[#allocation44_spill]] }
 0x1c5   : > { %s14650_s23 = scalar_lea.vmem [#allocation24], %s12230_s18 }
 0x1ca   : > { %p9632_p13 = scmp.ne.s32.totalorder %s17647_s7, 0 }
 0x1cb   : > { %v14008_v0 = vmov (!%p9632_p13), 0.0  }
 0x1cc   : > { %691 = sbr.rel (%p9632_p13) target bundleno = 476 (0x1dc), region = 120  ;;  %692 = vst [vmem:[#allocation2] sm:$0xff] (!%p9632_p13), %v14008_v0  ;;  %693 = vst [vmem:[#allocation2 + $0x8] sm:$0xff] (!%p9632_p13), %v14008_v0 }
 0x1cd   : > { %694 = vst [vmem:[#allocation2 + $0x10] sm:$0xff] (!%p9632_p13), %v14008_v0  ;;  %695 = vst [vmem:[#allocation2 + $0x18] sm:$0xff] (!%p9632_p13), %v14008_v0 }
 0x1ce   : > { %696 = vst [vmem:[#allocation2 + $0x20] sm:$0xff] (!%p9632_p13), %v14008_v0  ;;  %697 = vst [vmem:[#allocation2 + $0x28] sm:$0xff] (!%p9632_p13), %v14008_v0 }
 0x1cf   : > { %698 = vst [vmem:[#allocation2 + $0x30] sm:$0xff] (!%p9632_p13), %v14008_v0  ;;  %699 = vst [vmem:[#allocation2 + $0x38] sm:$0xff] (!%p9632_p13), %v14008_v0 }
 0x1d0   : > { %700 = vst [vmem:[#allocation2 + $0x40] sm:$0xff] (!%p9632_p13), %v14008_v0  ;;  %701 = vst [vmem:[#allocation2 + $0x48] sm:$0xff] (!%p9632_p13), %v14008_v0 }
 0x1d1   : > { %702 = vst [vmem:[#allocation2 + $0x50] sm:$0xff] (!%p9632_p13), %v14008_v0  ;;  %703 = vst [vmem:[#allocation2 + $0x58] sm:$0xff] (!%p9632_p13), %v14008_v0 }
 0x1d2   : > { %704 = vst [vmem:[#allocation2 + $0x60] sm:$0xff] (!%p9632_p13), %v14008_v0  ;;  %705 = vst [vmem:[#allocation2 + $0x68] sm:$0xff] (!%p9632_p13), %v14008_v0 }
 0x1d3   : > { %706 = vst [vmem:[#allocation2 + $0x70] sm:$0xff] %v14008_v0  ;;  %707 = vst [vmem:[#allocation2 + $0x78] sm:$0xff] %v14008_v0 }
 0x1d4   : > { %708 = vst [vmem:[#allocation2 + $0x80] sm:$0xff] %v14008_v0  ;;  %709 = vst [vmem:[#allocation2 + $0x88] sm:$0xff] %v14008_v0 }
 0x1d5   : > { %710 = vst [vmem:[#allocation2 + $0x90] sm:$0xff] %v14008_v0  ;;  %711 = vst [vmem:[#allocation2 + $0x98] sm:$0xff] %v14008_v0 }
 0x1d6   : > { %712 = vst [vmem:[#allocation2 + $0xa0] sm:$0xff] %v14008_v0  ;;  %713 = vst [vmem:[#allocation2 + $0xa8] sm:$0xff] %v14008_v0 }
 0x1d7   : > { %714 = vst [vmem:[#allocation2 + $0xb0] sm:$0xff] %v14008_v0  ;;  %715 = vst [vmem:[#allocation2 + $0xb8] sm:$0xff] %v14008_v0 }
 0x1d8   : > { %716 = vst [vmem:[#allocation2 + $0xc0] sm:$0xff] %v14008_v0  ;;  %717 = vst [vmem:[#allocation2 + $0xc8] sm:$0xff] %v14008_v0 }
 0x1d9   : > { %718 = vst [vmem:[#allocation2 + $0xd0] sm:$0xff] %v14008_v0  ;;  %719 = vst [vmem:[#allocation2 + $0xd8] sm:$0xff] %v14008_v0 }
 0x1da   : > { %720 = vst [vmem:[#allocation2 + $0xe0] sm:$0xff] %v14008_v0  ;;  %721 = vst [vmem:[#allocation2 + $0xe8] sm:$0xff] %v14008_v0 }
 0x1db   : > { %722 = vst [vmem:[#allocation2 + $0xf0] sm:$0xff] %v14008_v0  ;;  %723 = vst [vmem:[#allocation2 + $0xf8] sm:$0xff] %v14008_v0 }
 0x1dc PF: > { %v12477_v1 = vld [vmem:[%s14621_s4 + $0x40] sm:$0xff]   ;;  %v12479_v3 = vld [vmem:[%s14621_s4 + $0x48] sm:$0xff]   ;;  %v12481_v5 = vld [vmem:[%s14621_s4 + $0x50] sm:$0xff]   ;;  %s17648_s22 = sld [smem:[#allocation44_spill]] }
 0x1dd   : > { %v12478_v2 = vld [vmem:[%s14621_s4] sm:$0xff]   ;;  %10649 = vmatprep.subr.bf16.mxu0 %v12477_v1  ;;  %12209 = vmatprep.subr.bf16.mxu1 %v12477_v1  ;;  %v12480_v4 = vld [vmem:[%s14621_s4 + $0x8] sm:$0xff]   ;;  %v12482_v6 = vld [vmem:[%s14621_s4 + $0x10] sm:$0xff]  }
 0x1de   : > { %10650 = vmatpush3.bf16.msra.mxu0 %v12478_v2  ;;  %12217 = vmatpush3.bf16.msra.mxu1 %v12478_v2  ;;  %v12483_v7 = vld [vmem:[%s14621_s4 + $0x58] sm:$0xff]   ;;  %v12485_v9 = vld [vmem:[%s14621_s4 + $0x60] sm:$0xff]   ;;  %v12487_v11 = vld [vmem:[%s14621_s4 + $0x68] sm:$0xff]  }
 0x1df   : > { %10651 = vmatprep.subr.bf16.mxu0 %v12479_v3  ;;  %12210 = vmatprep.subr.bf16.mxu1 %v12479_v3  ;;  %v12484_v8 = vld [vmem:[%s14621_s4 + $0x18] sm:$0xff]   ;;  %v12486_v10 = vld [vmem:[%s14621_s4 + $0x20] sm:$0xff]   ;;  %v12488_v14 = vld [vmem:[%s14621_s4 + $0x28] sm:$0xff]  }
 0x1e0   : > { %v12495_v12 = vld [vmem:[%s14603_s6 + $0x4] ss:$100 sps:$4 sm:$0xff]   ;;  %v12489_v15 = vld [vmem:[%s14621_s4 + $0x70] sm:$0xff]   ;;  %v12491_v17 = vld [vmem:[%s14621_s4 + $0x78] sm:$0xff]  }
 0x1e1   : > { %v12498_v13 = vld [vmem:[%s14603_s6 + $0x964] ss:$100 sps:$4 sm:$0xff]   ;;  %4820 = vmatprep.mubr.bf16.mxu0 %v12495_v12  ;;  %v12490_v16 = vld [vmem:[%s14621_s4 + $0x30] sm:$0xff]   ;;  %v12492_v18 = vld [vmem:[%s14621_s4 + $0x38] sm:$0xff]  }
 0x1e2   : > { %10652 = vmatpush3.bf16.msra.mxu0 %v12480_v4  ;;  %12218 = vmatpush3.bf16.msra.mxu1 %v12480_v4  ;;  %v12499_v19 = vld [vmem:[%s14621_s4 + $0xc0] sm:$0xff]   ;;  %v12501_v24 = vld [vmem:[%s14621_s4 + $0xc8] sm:$0xff]   ;;  %v12511_v32 = vld [vmem:[%s14621_s4 + $0xd0] sm:$0xff]   ;;  %p10233_p10 = scmp.ne.s32.totalorder %s17648_s22, 4 }
 0x1e3   : > { %10653 = vmatprep.subr.bf16.mxu0 %v12481_v5  ;;  %12211 = vmatprep.subr.bf16.mxu1 %v12481_v5  ;;  %v12493_v20 = vld [vmem:[%s14603_s6] ss:$100 sps:$4 sm:$0xff]   ;;  %v12505_v26 = vld [vmem:[%s14603_s6 + $0xcc] ss:$100 sps:$4 sm:$0xff]   ;;  %v12513_v35 = vld [vmem:[%s14621_s4 + $0xd8] sm:$0xff]  }
 0x1e4   : > { %4916 = vmatprep.mubr.bf16.mxu1 %v12498_v13  ;;  %v12496_v21 = vld [vmem:[%s14603_s6 + $0x960] ss:$100 sps:$4 sm:$0xff]   ;;  %v12507_v27 = vld [vmem:[%s14603_s6 + $0xa2c] ss:$100 sps:$4 sm:$0xff]   ;;  %v12515_v36 = vld [vmem:[%s14603_s6 + $0x194] ss:$100 sps:$4 sm:$0xff]  }
 0x1e5   : > { %v12502_v22 = vld [vmem:[%s14621_s4 + $0x140] sm:$0xff]   ;;  %v12503_v28 = vld [vmem:[%s14621_s4 + $0x88] sm:$0xff]   ;;  %v12512_v33 = vld [vmem:[%s14621_s4 + $0x90] sm:$0xff]  }
 0x1e6   : > { %10654 = vmatpush3.bf16.msra.mxu0 %v12482_v6  ;;  %12219 = vmatpush3.bf16.msra.mxu1 %v12482_v6  ;;  %v12500_v23 = vld [vmem:[%s14621_s4 + $0x80] sm:$0xff]   ;;  %v12522_v29 = vld [vmem:[%s14621_s4 + $0x148] sm:$0xff]   ;;  %v12517_v37 = vld [vmem:[%s14603_s6 + $0xaf4] ss:$100 sps:$4 sm:$0xff]  }
 0x1e7   : > { %10655 = vmatprep.subr.bf16.mxu0 %v12483_v7  ;;  %12212 = vmatprep.subr.bf16.mxu1 %v12483_v7  ;;  %v12504_v25 = vld [vmem:[%s14621_s4 + $0x100] sm:$0xff]   ;;  %v12509_v30 = vld [vmem:[%s14603_s6 + $0xc8] ss:$100 sps:$4 sm:$0xff]   ;;  %v12514_v38 = vld [vmem:[%s14621_s4 + $0x98] sm:$0xff]  }
 0x1e8   : > { %v12510_v31 = vld [vmem:[%s14603_s6 + $0xa28] ss:$100 sps:$4 sm:$0xff]   ;;  %v12519_v39 = vld [vmem:[%s14603_s6 + $0x190] ss:$100 sps:$4 sm:$0xff]   ;;  %v12521_v41 = vld [vmem:[%s14621_s4 + $0xe0] sm:$0xff]  }
 0x1e9   : > { %v12524_v34 = vld [vmem:[%s14621_s4 + $0x108] sm:$0xff]   ;;  %v12520_v40 = vld [vmem:[%s14603_s6 + $0xaf0] ss:$100 sps:$4 sm:$0xff]   ;;  %v12523_v42 = vld [vmem:[%s14621_s4 + $0xa0] sm:$0xff]  }
 0x1ea   : > { %10656 = vmatpush3.bf16.msra.mxu0 %v12484_v8  ;;  %12220 = vmatpush3.bf16.msra.mxu1 %v12484_v8  ;;  %v12525_v43 = vld [vmem:[%s14621_s4 + $0xe8] sm:$0xff]   ;;  %v12536_v44 = vld [vmem:[%s14621_s4 + $0x150] sm:$0xff]   ;;  %v12527_v45 = vld [vmem:[%s14603_s6 + $0x25c] ss:$100 sps:$4 sm:$0xff]  }
 0x1eb   : > { %10657 = vmatprep.subr.bf16.mxu0 %v12485_v9  ;;  %12213 = vmatprep.subr.bf16.mxu1 %v12485_v9  ;;  %v12529_v46 = vld [vmem:[%s14603_s6 + $0xbbc] ss:$100 sps:$4 sm:$0xff]   ;;  %v12538_v47 = vld [vmem:[%s14621_s4 + $0x110] sm:$0xff]   ;;  %v12526_v48 = vld [vmem:[%s14621_s4 + $0xa8] sm:$0xff]  }
 0x1ec   : > { %v12533_v49 = vld [vmem:[%s14621_s4 + $0xf0] sm:$0xff]   ;;  %v12531_v50 = vld [vmem:[%s14603_s6 + $0x258] ss:$100 sps:$4 sm:$0xff]   ;;  %v12539_v54 = vld [vmem:[%s14603_s6 + $0x324] ss:$100 sps:$4 sm:$0xff]  }
 0x1ed   : > { %v12532_v51 = vld [vmem:[%s14603_s6 + $0xbb8] ss:$100 sps:$4 sm:$0xff]   ;;  %v12534_v52 = vld [vmem:[%s14621_s4 + $0xb0] sm:$0xff]   ;;  %v12541_v59 = vld [vmem:[%s14603_s6 + $0x8] ss:$100 sps:$4 sm:$0xff]  }
 0x1ee   : > { %10658 = vmatpush3.bf16.msra.mxu0 %v12486_v10  ;;  %12221 = vmatpush3.bf16.msra.mxu1 %v12486_v10  ;;  %v12535_v53 = vld [vmem:[%s14621_s4 + $0xf8] sm:$0xff]   ;;  %v12543_v55 = vld [vmem:[%s14603_s6 + $0xc] ss:$100 sps:$4 sm:$0xff]   ;;  %v12544_v60 = vld [vmem:[%s14603_s6 + $0x320] ss:$100 sps:$4 sm:$0xff]  }
 0x1ef   : > { %10659 = vmatprep.subr.bf16.mxu0 %v12487_v11  ;;  %12214 = vmatprep.subr.bf16.mxu1 %v12487_v11  ;;  %v12553_v56 = vld [vmem:[%s14621_s4 + $0x158] sm:$0xff]   ;;  %v12545_v61 = vld [vmem:[%s14621_s4 + $0x1c0] sm:$0xff]   ;;  %v12547_v63 = vld [vmem:[%s14603_s6 + $0x3ec] ss:$100 sps:$4 sm:$0xff]  }
 0x1f0   : > { %v12554_v57 = vld [vmem:[%s14621_s4 + $0x118] sm:$0xff]   ;;  %v12546_v62 = vld [vmem:[%s14621_s4 + $0x180] sm:$0xff]   ;;  %v12561_v2 = vld [vmem:[%s14621_s4 + $0x1c8] sm:$0xff]  }
 0x1f1   : > { %v12537_v58 = vld [vmem:[%s14621_s4 + $0xb8] sm:$0xff]   ;;  %v12563_v1 = vld [vmem:[%s14621_s4 + $0x160] sm:$0xff]   ;;  %v12562_v4 = vld [vmem:[%s14621_s4 + $0x188] sm:$0xff]  }
 0x1f2   : > { %10660 = vmatpush3.bf16.msra.mxu0 %v12488_v14  ;;  %12222 = vmatpush3.bf16.msra.mxu1 %v12488_v14  ;;  %v12549_v0 = vld [vmem:[%s14603_s6 + $0xd4] ss:$100 sps:$4 sm:$0xff]   ;;  %v12564_v3 = vld [vmem:[%s14621_s4 + $0x120] sm:$0xff]   ;;  %v12551_v5 = vld [vmem:[%s14603_s6 + $0x3e8] ss:$100 sps:$4 sm:$0xff]  }
 0x1f3   : > { %10661 = vmatprep.subr.bf16.mxu0 %v12489_v15  ;;  %12215 = vmatprep.subr.bf16.mxu1 %v12489_v15  ;;  %v12552_v6 = vld [vmem:[%s14603_s6 + $0xd0] ss:$100 sps:$4 sm:$0xff]   ;;  %v12557_v8 = vld [vmem:[%s14603_s6 + $0x19c] ss:$100 sps:$4 sm:$0xff]   ;;  %v12577_v9 = vld [vmem:[%s14621_s4 + $0x168] sm:$0xff]  }
 0x1f4   : > { %v12555_v7 = vld [vmem:[%s14603_s6 + $0x4b4] ss:$100 sps:$4 sm:$0xff]   ;;  %v12579_v11 = vld [vmem:[%s14621_s4 + $0x128] sm:$0xff]   ;;  %v12565_v15 = vld [vmem:[%s14603_s6 + $0x57c] ss:$100 sps:$4 sm:$0xff]  }
 0x1f5   : > { %v12578_v10 = vld [vmem:[%s14621_s4 + $0x1d0] sm:$0xff]   ;;  %v12560_v14 = vld [vmem:[%s14603_s6 + $0x198] ss:$100 sps:$4 sm:$0xff]  }
 0x1f6   : > { %10662 = vmatpush3.bf16.msra.mxu0 %v12490_v16  ;;  %12223 = vmatpush3.bf16.msra.mxu1 %v12490_v16  ;;  %v12580_v12 = vld [vmem:[%s14621_s4 + $0x190] sm:$0xff]  }
 0x1f7   : > { %10663 = vmatprep.subr.bf16.mxu0 %v12491_v17  ;;  %12216 = vmatprep.subr.bf16.mxu1 %v12491_v17  ;;  %v12559_v13 = vld [vmem:[%s14603_s6 + $0x4b0] ss:$100 sps:$4 sm:$0xff]  }
 0x1f8   : > { %v12587_v16 = vld [vmem:[%s14621_s4 + $0x170] sm:$0xff]  }
 0x1f9   : > { %v12588_v17 = vld [vmem:[%s14621_s4 + $0x130] sm:$0xff]  }
 0x1fa   : > { %10664 = vmatpush3.bf16.msra.mxu0 %v12492_v18  ;;  %12224 = vmatpush3.bf16.msra.mxu1 %v12492_v18  ;;  %v12567_v18 = vld [vmem:[%s14603_s6 + $0x264] ss:$100 sps:$4 sm:$0xff]  }
 0x1fb   : > { %10761 = vmatprep.subr.bf16.mxu1 %v12499_v19  ;;  %10873 = vmatprep.subr.bf16.mxu0 %v12502_v22  ;;  %v12595_v19 = vld [vmem:[%s14621_s4 + $0x1d8] sm:$0xff]   ;;  %v12570_v22 = vld [vmem:[%s14603_s6 + $0x260] ss:$100 sps:$4 sm:$0xff]  }
 0x1fd   : > { %4821 = vmatmul.mubr.bf16.vlgmr.msra.gmra.mrb[0].mxu0 %v12493_v20  ;;  %4917 = vmatmul.mubr.bf16.vlgmr.msra.gmra.mrb[0].mxu1 %v12496_v21  ;;  %v12596_v20 = vld [vmem:[%s14621_s4 + $0x198] sm:$0xff]  }
 0x1fe   : > { %10762 = vmatpush3.bf16.msra.mxu1 %v12500_v23  ;;  %10874 = vmatpush3.bf16.msra.mxu0 %v12504_v25  ;;  %v12569_v21 = vld [vmem:[%s14603_s6 + $0x578] ss:$100 sps:$4 sm:$0xff]   ;;  %v12571_v23 = vld [vmem:[%s14603_s6 + $0x644] ss:$100 sps:$4 sm:$0xff]  }
 0x1ff   : > { %10763 = vmatprep.subr.bf16.mxu1 %v12501_v24  ;;  %4828 = vmatprep.mubr.bf16.mxu0 %v12505_v26  ;;  %v12573_v24 = vld [vmem:[%s14603_s6 + $0x32c] ss:$100 sps:$4 sm:$0xff]   ;;  %v12603_v25 = vld [vmem:[%s14621_s4 + $0x178] sm:$0xff]  }
 0x200   : > { %4924 = vmatprep.mubr.bf16.mxu1 %v12507_v27  ;;  %10875 = vmatprep.subr.bf16.mxu0 %v12522_v29  ;;  %v12604_v26 = vld [vmem:[%s14621_s4 + $0x138] sm:$0xff]   ;;  %v12611_v27 = vld [vmem:[%s14621_s4 + $0x1e0] sm:$0xff]   ;;  %v12576_v29 = vld [vmem:[%s14603_s6 + $0x328] ss:$100 sps:$4 sm:$0xff]  }
 0x202   : > { %10764 = vmatpush3.bf16.msra.mxu1 %v12503_v28  ;;  %10876 = vmatpush3.bf16.msra.mxu0 %v12524_v34  ;;  %v12575_v28 = vld [vmem:[%s14603_s6 + $0x640] ss:$100 sps:$4 sm:$0xff]   ;;  %v12585_v34 = vld [vmem:[%s14603_s6 + $0x708] ss:$100 sps:$4 sm:$0xff]  }
 0x203   : > { %10765 = vmatprep.subr.bf16.mxu1 %v12511_v32  ;;  %10877 = vmatprep.subr.bf16.mxu0 %v12536_v44  ;;  %v12581_v32 = vld [vmem:[%s14603_s6 + $0x70c] ss:$100 sps:$4 sm:$0xff]  }
 0x204   : > { %v12643_v44 = vld [vmem:[%s14621_s4 + $0x1f0] sm:$0xff]  }
 0x205   : > { %4829 = vmatmul.mubr.bf16.gmra.mrb[4].mxu0 %v12509_v30  ;;  %4925 = vmatmul.mubr.bf16.gmra.mrb[4].mxu1 %v12510_v31  ;;  %v12612_v30 = vld [vmem:[%s14621_s4 + $0x1a0] sm:$0xff]  }
 0x206   : > { %10766 = vmatpush3.bf16.msra.mxu1 %v12512_v33  ;;  %4836 = vmatprep.mubr.bf16.mxu0 %v12515_v36  ;;  %v12613_v31 = vld [vmem:[%s14621_s4 + $0x240] sm:$0xff]   ;;  %v12583_v33 = vld [vmem:[%s14603_s6 + $0x3f4] ss:$100 sps:$4 sm:$0xff]   ;;  %v12627_v36 = vld [vmem:[%s14621_s4 + $0x1e8] sm:$0xff]  }
 0x207   : > { %10767 = vmatprep.subr.bf16.mxu1 %v12513_v35  ;;  %4932 = vmatprep.mubr.bf16.mxu1 %v12517_v37  ;;  %v12586_v35 = vld [vmem:[%s14603_s6 + $0x3f0] ss:$100 sps:$4 sm:$0xff]   ;;  %v12628_v37 = vld [vmem:[%s14621_s4 + $0x1a8] sm:$0xff]  }
 0x208   : > { %10878 = vmatpush3.bf16.msra.mxu0 %v12538_v47  ;;  %v12602_v47 = vld [vmem:[%s14603_s6 + $0x580] ss:$100 sps:$4 sm:$0xff]  }
 0x209   : > { %10879 = vmatprep.subr.bf16.mxu0 %v12553_v56  ;;  %v12617_v56 = vld [vmem:[%s14603_s6 + $0xdc] ss:$100 sps:$4 sm:$0xff]  }
 0x20a   : > { %10768 = vmatpush3.bf16.msra.mxu1 %v12514_v38  ;;  %v12589_v38 = vld [vmem:[%s14603_s6 + $0x7d4] ss:$100 sps:$4 sm:$0xff]  }
 0x20b   : > { %10769 = vmatprep.subr.bf16.mxu1 %v12521_v41  ;;  %v12594_v41 = vld [vmem:[%s14603_s6 + $0x4b8] ss:$100 sps:$4 sm:$0xff]  }
 0x20c   : > { %10880 = vmatpush3.bf16.msra.mxu0 %v12554_v57  ;;  %v12629_v57 = vld [vmem:[%s14621_s4 + $0x248] sm:$0xff]  }
 0x20d   : > { %4837 = vmatmul.mubr.bf16.gmra.mrb[8].mxu0 %v12519_v39  ;;  %4933 = vmatmul.mubr.bf16.gmra.mrb[8].mxu1 %v12520_v40  ;;  %v12591_v39 = vld [vmem:[%s14603_s6 + $0x4bc] ss:$100 sps:$4 sm:$0xff]   ;;  %v12593_v40 = vld [vmem:[%s14603_s6 + $0x7d0] ss:$100 sps:$4 sm:$0xff]  }
 0x20e   : > { %10770 = vmatpush3.bf16.msra.mxu1 %v12523_v42  ;;  %4844 = vmatprep.mubr.bf16.mxu0 %v12527_v45  ;;  %v12597_v42 = vld [vmem:[%s14603_s6 + $0x89c] ss:$100 sps:$4 sm:$0xff]   ;;  %v12644_v45 = vld [vmem:[%s14621_s4 + $0x1b0] sm:$0xff]  }
 0x20f   : > { %10771 = vmatprep.subr.bf16.mxu1 %v12525_v43  ;;  %4940 = vmatprep.mubr.bf16.mxu1 %v12529_v46  ;;  %v12599_v43 = vld [vmem:[%s14603_s6 + $0x584] ss:$100 sps:$4 sm:$0xff]   ;;  %v12601_v46 = vld [vmem:[%s14603_s6 + $0x898] ss:$100 sps:$4 sm:$0xff]  }
 0x210   : > { %10881 = vmatprep.subr.bf16.mxu0 %v12563_v1  ;;  %v12646_v1 = vld [vmem:[%s14621_s4 + $0x210] sm:$0xff]  }
 0x211   : > { %10882 = vmatpush3.bf16.msra.mxu0 %v12564_v3  ;;  %v12625_v3 = vld [vmem:[%s14603_s6 + $0x7d8] ss:$100 sps:$4 sm:$0xff]  }
 0x212   : > { %10772 = vmatpush3.bf16.msra.mxu1 %v12526_v48  ;;  %10883 = vmatprep.subr.bf16.mxu0 %v12577_v9  ;;  %v12605_v48 = vld [vmem:[%s14603_s6 + $0x64c] ss:$100 sps:$4 sm:$0xff]   ;;  %v12678_v9 = vld [vmem:[%s14621_s4 + $0x220] sm:$0xff]  }
 0x213   : > { %10773 = vmatprep.subr.bf16.mxu1 %v12533_v49  ;;  %v12609_v49 = vld [vmem:[%s14603_s6 + $0x14] ss:$100 sps:$4 sm:$0xff]  }
 0x215   : > { %4845 = vmatmul.mubr.bf16.gmra.mrb[12].mxu0 %v12531_v50  ;;  %4941 = vmatmul.mubr.bf16.gmra.mrb[12].mxu1 %v12532_v51  ;;  %v12659_v50 = vld [vmem:[%s14621_s4 + $0x1f8] sm:$0xff]  }
 0x216   : > { %10774 = vmatpush3.bf16.msra.mxu1 %v12534_v52  ;;  %4852 = vmatprep.mubr.bf16.mxu0 %v12539_v54  ;;  %v12660_v51 = vld [vmem:[%s14621_s4 + $0x1b8] sm:$0xff]   ;;  %v12607_v52 = vld [vmem:[%s14603_s6 + $0x10] ss:$100 sps:$4 sm:$0xff]   ;;  %v12614_v54 = vld [vmem:[%s14621_s4 + $0x200] sm:$0xff]  }
 0x217   : > { %10775 = vmatprep.subr.bf16.mxu1 %v12535_v53  ;;  %4981 = vmatprep.mubr.bf16.mxu1 %v12543_v55  ;;  %v12610_v53 = vld [vmem:[%s14603_s6 + $0x648] ss:$100 sps:$4 sm:$0xff]   ;;  %v12615_v55 = vld [vmem:[%s14603_s6 + $0x714] ss:$100 sps:$4 sm:$0xff]  }
 0x218   : > { %10884 = vmatpush3.bf16.msra.mxu0 %v12579_v11  ;;  %v12635_v11 = vld [vmem:[%s14603_s6 + $0x8a0] ss:$100 sps:$4 sm:$0xff]  }
 0x219   : > { %10885 = vmatprep.subr.bf16.mxu0 %v12587_v16  ;;  %v12639_v16 = vld [vmem:[%s14603_s6 + $0x334] ss:$100 sps:$4 sm:$0xff]  }
 0x21a   : > { %10776 = vmatpush3.bf16.msra.mxu1 %v12537_v58  ;;  %v12675_v58 = vld [vmem:[%s14621_s4 + $0x2c0] sm:$0xff]  }
 0x21b   : > { %10985 = vmatprep.subr.bf16.mxu1 %v12545_v61  ;;  %v12619_v61 = vld [vmem:[%s14603_s6 + $0x710] ss:$100 sps:$4 sm:$0xff]  }
 0x21c   : > { %10886 = vmatpush3.bf16.msra.mxu0 %v12588_v17  ;;  %v12710_v17 = vld [vmem:[%s14621_s4 + $0x230] sm:$0xff]  }
 0x21d   : > { %4853 = vmatmul.mubr.bf16.gmra.mrb[16].mxu0 %v12544_v60  ;;  %4982 = vmatmul.mubr.bf16.vlgmr.msra.gmra.mrb[16].mxu1 %v12541_v59  ;;  %v12630_v59 = vld [vmem:[%s14621_s4 + $0x208] sm:$0xff]   ;;  %v12645_v60 = vld [vmem:[%s14621_s4 + $0x250] sm:$0xff]  }
 0x21e   : > { %10986 = vmatpush3.bf16.msra.mxu1 %v12546_v62  ;;  %4860 = vmatprep.mubr.bf16.mxu0 %v12547_v63  ;;  %v12620_v62 = vld [vmem:[%s14603_s6 + $0xd8] ss:$100 sps:$4 sm:$0xff]  }
 0x21f   : > { %4989 = vmatprep.mubr.bf16.mxu1 %v12549_v0  ;;  %10987 = vmatprep.subr.bf16.mxu1 %v12561_v2  ;;  %v12621_v63 = vld [vmem:[%s14603_s6 + $0x7dc] ss:$100 sps:$4 sm:$0xff]   ;;  %v12623_v0 = vld [vmem:[%s14603_s6 + $0x1a4] ss:$100 sps:$4 sm:$0xff]  }
 0x220   : > { %10887 = vmatprep.subr.bf16.mxu0 %v12603_v25  ;;  %v12661_v2 = vld [vmem:[%s14621_s4 + $0x258] sm:$0xff]  }
 0x221   : > { %10888 = vmatpush3.bf16.msra.mxu0 %v12604_v26  ;;  %v12652_v25 = vld [vmem:[%s14603_s6 + $0x3f8] ss:$100 sps:$4 sm:$0xff]  }
 0x222   : > { %10988 = vmatpush3.bf16.msra.mxu1 %v12562_v4  ;;  %11097 = vmatprep.subr.bf16.mxu0 %v12613_v31  ;;  %v12662_v4 = vld [vmem:[%s14621_s4 + $0x218] sm:$0xff]   ;;  %v12663_v31 = vld [vmem:[%s14603_s6 + $0xbc4] ss:$100 sps:$4 sm:$0xff]  }
 0x223   : > { %10989 = vmatprep.subr.bf16.mxu1 %v12578_v10  ;;  %v12693_v10 = vld [vmem:[%s14621_s4 + $0x268] sm:$0xff]   ;;  %v12653_v26 = vld [vmem:[%s14603_s6 + $0xafc] ss:$100 sps:$4 sm:$0xff]  }
 0x225   : > { %4861 = vmatmul.mubr.bf16.gmra.mrb[20].mxu0 %v12551_v5  ;;  %4990 = vmatmul.mubr.bf16.gmra.mrb[20].mxu1 %v12552_v6  ;;  %v12677_v5 = vld [vmem:[%s14621_s4 + $0x260] sm:$0xff]  }
 0x226   : > { %4868 = vmatprep.mubr.bf16.mxu0 %v12555_v7  ;;  %4997 = vmatprep.mubr.bf16.mxu1 %v12557_v8  ;;  %v12626_v6 = vld [vmem:[%s14603_s6 + $0x1a0] ss:$100 sps:$4 sm:$0xff]   ;;  %v12633_v8 = vld [vmem:[%s14603_s6 + $0x26c] ss:$100 sps:$4 sm:$0xff]  }
 0x227   : > { %10990 = vmatpush3.bf16.msra.mxu1 %v12580_v12  ;;  %v12631_v7 = vld [vmem:[%s14603_s6 + $0x8a4] ss:$100 sps:$4 sm:$0xff]  }
 0x228   : > { %10991 = vmatprep.subr.bf16.mxu1 %v12595_v19  ;;  %v12636_v12 = vld [vmem:[%s14603_s6 + $0x268] ss:$100 sps:$4 sm:$0xff]   ;;  %v12642_v19 = vld [vmem:[%s14603_s6 + $0x330] ss:$100 sps:$4 sm:$0xff]  }
 0x22b   : > { %10992 = vmatpush3.bf16.msra.mxu1 %v12596_v20  ;;  %v12647_v20 = vld [vmem:[%s14603_s6 + $0xa34] ss:$100 sps:$4 sm:$0xff]  }
 0x22c   : > { %10993 = vmatprep.subr.bf16.mxu1 %v12611_v27  ;;  %v12655_v27 = vld [vmem:[%s14603_s6 + $0x4c4] ss:$100 sps:$4 sm:$0xff]  }
 0x22d   : > { %4869 = vmatmul.mubr.bf16.gmra.mrb[24].mxu0 %v12559_v13  ;;  %4998 = vmatmul.mubr.bf16.gmra.mrb[24].mxu1 %v12560_v14  ;;  %v12694_v13 = vld [vmem:[%s14621_s4 + $0x228] sm:$0xff]   ;;  %v12709_v14 = vld [vmem:[%s14621_s4 + $0x270] sm:$0xff]  }
 0x22e   : > { %4876 = vmatprep.mubr.bf16.mxu0 %v12565_v15  ;;  %5005 = vmatprep.mubr.bf16.mxu1 %v12567_v18  ;;  %v12637_v15 = vld [vmem:[%s14603_s6 + $0x96c] ss:$100 sps:$4 sm:$0xff]  }
 0x22f   : > { %10994 = vmatpush3.bf16.msra.mxu1 %v12612_v30  ;;  %v12641_v18 = vld [vmem:[%s14603_s6 + $0x968] ss:$100 sps:$4 sm:$0xff]   ;;  %v12658_v30 = vld [vmem:[%s14603_s6 + $0x4c0] ss:$100 sps:$4 sm:$0xff]  }
 0x230   : > { %10995 = vmatprep.subr.bf16.mxu1 %v12627_v36  ;;  %v12673_v36 = vld [vmem:[%s14603_s6 + $0x1c] ss:$100 sps:$4 sm:$0xff]  }
 0x233   : > { %10996 = vmatpush3.bf16.msra.mxu1 %v12628_v37  ;;  %v12671_v37 = vld [vmem:[%s14603_s6 + $0x18] ss:$100 sps:$4 sm:$0xff]  }
 0x234   : > { %10997 = vmatprep.subr.bf16.mxu1 %v12643_v44  ;;  %v12707_v44 = vld [vmem:[%s14621_s4 + $0x2d0] sm:$0xff]  }
 0x235   : > { %4877 = vmatmul.mubr.bf16.gmra.mrb[28].mxu0 %v12569_v21  ;;  %5006 = vmatmul.mubr.bf16.gmra.mrb[28].mxu1 %v12570_v22  ;;  %v12649_v21 = vld [vmem:[%s14603_s6 + $0x3fc] ss:$100 sps:$4 sm:$0xff]  }
 0x236   : > { %4884 = vmatprep.mubr.bf16.mxu0 %v12571_v23  ;;  %5013 = vmatprep.mubr.bf16.mxu1 %v12573_v24  ;;  %v12725_v22 = vld [vmem:[%s14621_s4 + $0x278] sm:$0xff]   ;;  %v12651_v24 = vld [vmem:[%s14603_s6 + $0xa30] ss:$100 sps:$4 sm:$0xff]  }
 0x237   : > { %10998 = vmatpush3.bf16.msra.mxu1 %v12644_v45  ;;  %v12726_v23 = vld [vmem:[%s14621_s4 + $0x238] sm:$0xff]  }
 0x238   : > { %10999 = vmatprep.subr.bf16.mxu1 %v12659_v50  ;;  %v12683_v45 = vld [vmem:[%s14603_s6 + $0x718] ss:$100 sps:$4 sm:$0xff]  }
 0x239   : > { %v12723_v50 = vld [vmem:[%s14621_s4 + $0x2d8] sm:$0xff]  }
 0x23b   : > { %11000 = vmatpush3.bf16.msra.mxu1 %v12660_v51  ;;  %v12689_v51 = vld [vmem:[%s14603_s6 + $0x7e0] ss:$100 sps:$4 sm:$0xff]  }
 0x23c   : > { %11209 = vmatprep.subr.bf16.mxu1 %v12675_v58  ;;  %v12755_v58 = vld [vmem:[%s14621_s4 + $0x2e8] sm:$0xff]  }
 0x23d   : > { %4885 = vmatmul.mubr.bf16.gmra.mrb[32].mxu0 %v12575_v28  ;;  %5014 = vmatmul.mubr.bf16.gmra.mrb[32].mxu1 %v12576_v29  ;;  %v12741_v28 = vld [vmem:[%s14621_s4 + $0x340] sm:$0xff]   ;;  %v12657_v29 = vld [vmem:[%s14603_s6 + $0xaf8] ss:$100 sps:$4 sm:$0xff]  }
 0x23e   : > { %4892 = vmatprep.mubr.bf16.mxu0 %v12581_v32  ;;  %5021 = vmatprep.mubr.bf16.mxu1 %v12583_v33  ;;  %v12665_v32 = vld [vmem:[%s14603_s6 + $0x58c] ss:$100 sps:$4 sm:$0xff]   ;;  %v12667_v33 = vld [vmem:[%s14603_s6 + $0xbc0] ss:$100 sps:$4 sm:$0xff]  }
 0x245   : > { %4893 = vmatmul.mubr.bf16.gmra.mrb[36].mxu0 %v12585_v34  ;;  %5022 = vmatmul.mubr.bf16.gmra.mrb[36].mxu1 %v12586_v35  ;;  %v12668_v34 = vld [vmem:[%s14603_s6 + $0x588] ss:$100 sps:$4 sm:$0xff]   ;;  %v12669_v35 = vld [vmem:[%s14603_s6 + $0x654] ss:$100 sps:$4 sm:$0xff]  }
 0x246   : > { %4900 = vmatprep.mubr.bf16.mxu0 %v12589_v38  ;;  %5029 = vmatprep.mubr.bf16.mxu1 %v12591_v39  ;;  %v12674_v38 = vld [vmem:[%s14603_s6 + $0x650] ss:$100 sps:$4 sm:$0xff]   ;;  %v12676_v39 = vld [vmem:[%s14621_s4 + $0x280] sm:$0xff]  }
 0x24d   : > { %4901 = vmatmul.mubr.bf16.gmra.mrb[40].mxu0 %v12593_v40  ;;  %5030 = vmatmul.mubr.bf16.gmra.mrb[40].mxu1 %v12594_v41  ;;  %v12679_v40 = vld [vmem:[%s14603_s6 + $0x71c] ss:$100 sps:$4 sm:$0xff]   ;;  %v12681_v41 = vld [vmem:[%s14603_s6 + $0xe4] ss:$100 sps:$4 sm:$0xff]  }
 0x24e   : > { %4908 = vmatprep.mubr.bf16.mxu0 %v12597_v42  ;;  %5037 = vmatprep.mubr.bf16.mxu1 %v12599_v43  ;;  %v12691_v42 = vld [vmem:[%s14621_s4 + $0x2c8] sm:$0xff]  }
 0x24f   : > { %v12692_v43 = vld [vmem:[%s14621_s4 + $0x288] sm:$0xff]  }
 0x255   : > { %4909 = vmatmul.mubr.bf16.gmra.mrb[44].mxu0 %v12601_v46  ;;  %5038 = vmatmul.mubr.bf16.gmra.mrb[44].mxu1 %v12602_v47  ;;  %v12684_v46 = vld [vmem:[%s14603_s6 + $0xe0] ss:$100 sps:$4 sm:$0xff]  }
 0x256   : > { %5045 = vmatprep.mubr.bf16.mxu1 %v12605_v48  ;;  %5142 = vmatprep.mubr.bf16.mxu0 %v12609_v49  ;;  %v12685_v47 = vld [vmem:[%s14603_s6 + $0x7e4] ss:$100 sps:$4 sm:$0xff]   ;;  %v12687_v48 = vld [vmem:[%s14603_s6 + $0x1ac] ss:$100 sps:$4 sm:$0xff]  }
 0x257   : > { %v12708_v49 = vld [vmem:[%s14621_s4 + $0x290] sm:$0xff]  }
 0x25d   : > { %5046 = vmatmul.mubr.bf16.gmra.mrb[48].mxu1 %v12610_v53  ;;  %5143 = vmatmul.mubr.bf16.vlgmr.msra.gmra.mrb[48].mxu0 %v12607_v52  ;;  %v12690_v52 = vld [vmem:[%s14603_s6 + $0x1a8] ss:$100 sps:$4 sm:$0xff]   ;;  %v12724_v53 = vld [vmem:[%s14621_s4 + $0x298] sm:$0xff]  }
 0x25e   : > { %11098 = vmatpush3.bf16.msra.mxu0 %v12614_v54  ;;  %5053 = vmatprep.mubr.bf16.mxu1 %v12615_v55  ;;  %v12739_v54 = vld [vmem:[%s14621_s4 + $0x2e0] sm:$0xff]   ;;  %v12695_v55 = vld [vmem:[%s14603_s6 + $0x8ac] ss:$100 sps:$4 sm:$0xff]  }
 0x25f   : > { %5150 = vmatprep.mubr.bf16.mxu0 %v12617_v56  ;;  %11099 = vmatprep.subr.bf16.mxu0 %v12629_v57  ;;  %v12697_v56 = vld [vmem:[%s14603_s6 + $0x274] ss:$100 sps:$4 sm:$0xff]   ;;  %v12740_v57 = vld [vmem:[%s14621_s4 + $0x2a0] sm:$0xff]  }
 0x262   : > { %11100 = vmatpush3.bf16.msra.mxu0 %v12630_v59  ;;  %v12699_v59 = vld [vmem:[%s14603_s6 + $0x8a8] ss:$100 sps:$4 sm:$0xff]  }
 0x263   : > { %11101 = vmatprep.subr.bf16.mxu0 %v12645_v60  ;;  %v12700_v60 = vld [vmem:[%s14603_s6 + $0x270] ss:$100 sps:$4 sm:$0xff]  }
 0x265   : > { %5054 = vmatmul.mubr.bf16.gmra.mrb[52].mxu1 %v12619_v61  ;;  %5151 = vmatmul.mubr.bf16.gmra.mrb[52].mxu0 %v12620_v62  ;;  %v12756_v61 = vld [vmem:[%s14621_s4 + $0x2a8] sm:$0xff]   ;;  %v12701_v62 = vld [vmem:[%s14603_s6 + $0x974] ss:$100 sps:$4 sm:$0xff]  }
 0x266   : > { %5061 = vmatprep.mubr.bf16.mxu1 %v12621_v63  ;;  %5158 = vmatprep.mubr.bf16.mxu0 %v12623_v0  ;;  %v12703_v63 = vld [vmem:[%s14603_s6 + $0x33c] ss:$100 sps:$4 sm:$0xff]   ;;  %v12771_v0 = vld [vmem:[%s14621_s4 + $0x2f0] sm:$0xff]  }
 0x267   : > { %11102 = vmatpush3.bf16.msra.mxu0 %v12646_v1  ;;  %v12772_v1 = vld [vmem:[%s14621_s4 + $0x2b0] sm:$0xff]  }
 0x268   : > { %11103 = vmatprep.subr.bf16.mxu0 %v12661_v2  ;;  %v12787_v2 = vld [vmem:[%s14621_s4 + $0x2f8] sm:$0xff]  }
 0x26b   : > { %11104 = vmatpush3.bf16.msra.mxu0 %v12662_v4  ;;  %v12803_v4 = vld [vmem:[%s14621_s4 + $0x3c0] sm:$0xff]  }
 0x26c   : > { %11105 = vmatprep.subr.bf16.mxu0 %v12677_v5  ;;  %v12705_v5 = vld [vmem:[%s14603_s6 + $0x970] ss:$100 sps:$4 sm:$0xff]  }
 0x26d   : > { %5062 = vmatmul.mubr.bf16.gmra.mrb[56].mxu1 %v12625_v3  ;;  %5159 = vmatmul.mubr.bf16.gmra.mrb[56].mxu0 %v12626_v6  ;;  %v12788_v3 = vld [vmem:[%s14621_s4 + $0x2b8] sm:$0xff]  }
 0x26e   : > { %5069 = vmatprep.mubr.bf16.mxu1 %v12631_v7  ;;  %5166 = vmatprep.mubr.bf16.mxu0 %v12633_v8  ;;  %v12706_v6 = vld [vmem:[%s14603_s6 + $0x338] ss:$100 sps:$4 sm:$0xff]   ;;  %v12713_v8 = vld [vmem:[%s14603_s6 + $0x404] ss:$100 sps:$4 sm:$0xff]  }
 0x26f   : > { %11106 = vmatpush3.bf16.msra.mxu0 %v12678_v9  ;;  %v12711_v7 = vld [vmem:[%s14603_s6 + $0xa3c] ss:$100 sps:$4 sm:$0xff]  }
 0x270   : > { %11107 = vmatprep.subr.bf16.mxu0 %v12693_v10  ;;  %v12715_v9 = vld [vmem:[%s14603_s6 + $0xa38] ss:$100 sps:$4 sm:$0xff]   ;;  %v12716_v10 = vld [vmem:[%s14603_s6 + $0x400] ss:$100 sps:$4 sm:$0xff]  }
 0x273   : > { %11108 = vmatpush3.bf16.msra.mxu0 %v12694_v13  ;;  %v12721_v13 = vld [vmem:[%s14603_s6 + $0xb00] ss:$100 sps:$4 sm:$0xff]  }
 0x274   : > { %11109 = vmatprep.subr.bf16.mxu0 %v12709_v14  ;;  %v12722_v14 = vld [vmem:[%s14603_s6 + $0x4c8] ss:$100 sps:$4 sm:$0xff]  }
 0x275   : > { %5070 = vmatmul.mubr.bf16.gmra.mrb[60].mxu1 %v12635_v11  ;;  %5167 = vmatmul.mubr.bf16.gmra.mrb[60].mxu0 %v12636_v12  ;;  %v12717_v11 = vld [vmem:[%s14603_s6 + $0xb04] ss:$100 sps:$4 sm:$0xff]   ;;  %v12719_v12 = vld [vmem:[%s14603_s6 + $0x4cc] ss:$100 sps:$4 sm:$0xff]  }
 0x276   : > { %5077 = vmatprep.mubr.bf16.mxu1 %v12637_v15  ;;  %5174 = vmatprep.mubr.bf16.mxu0 %v12639_v16  ;;  %v12727_v15 = vld [vmem:[%s14603_s6 + $0xbcc] ss:$100 sps:$4 sm:$0xff]   ;;  %v12729_v16 = vld [vmem:[%s14603_s6 + $0x594] ss:$100 sps:$4 sm:$0xff]  }
 0x277   : > { %11110 = vmatpush3.bf16.msra.mxu0 %v12710_v17  ;;  %v12731_v17 = vld [vmem:[%s14603_s6 + $0xbc8] ss:$100 sps:$4 sm:$0xff]  }
 0x278   : > { %11111 = vmatprep.subr.bf16.mxu0 %v12725_v22 }
 0x27b   : > { %11112 = vmatpush3.bf16.msra.mxu0 %v12726_v23 }
 0x27c   : > { %11321 = vmatprep.subr.bf16.mxu0 %v12741_v28  ;;  %v12737_v28 = vld [vmem:[%s14603_s6 + $0x24] ss:$100 sps:$4 sm:$0xff]  }
 0x27d   : > { %5078 = vmatmul.mubr.bf16.gmra.mrb[64].mxu1 %v12641_v18  ;;  %5175 = vmatmul.mubr.bf16.gmra.mrb[64].mxu0 %v12642_v19  ;;  %v12732_v18 = vld [vmem:[%s14603_s6 + $0x590] ss:$100 sps:$4 sm:$0xff]  }
 0x27e   : > { %5085 = vmatprep.mubr.bf16.mxu1 %v12647_v20  ;;  %5182 = vmatprep.mubr.bf16.mxu0 %v12649_v21 }
 0x285   : > { %5086 = vmatmul.mubr.bf16.gmra.mrb[68].mxu1 %v12651_v24  ;;  %5183 = vmatmul.mubr.bf16.gmra.mrb[68].mxu0 %v12652_v25 }
 0x286   : > { %5093 = vmatprep.mubr.bf16.mxu1 %v12653_v26  ;;  %5190 = vmatprep.mubr.bf16.mxu0 %v12655_v27  ;;  %v12733_v27 = vld [vmem:[%s14603_s6 + $0x65c] ss:$100 sps:$4 sm:$0xff]  }
 0x28d   : > { %5094 = vmatmul.mubr.bf16.gmra.mrb[72].mxu1 %v12657_v29  ;;  %5191 = vmatmul.mubr.bf16.gmra.mrb[72].mxu0 %v12658_v30 }
 0x28e   : > { %5101 = vmatprep.mubr.bf16.mxu1 %v12663_v31  ;;  %5198 = vmatprep.mubr.bf16.mxu0 %v12665_v32 }
 0x295   : > { %5102 = vmatmul.mubr.bf16.gmra.mrb[76].mxu1 %v12667_v33  ;;  %5199 = vmatmul.mubr.bf16.gmra.mrb[76].mxu0 %v12668_v34  ;;  %v12735_v33 = vld [vmem:[%s14603_s6 + $0x20] ss:$100 sps:$4 sm:$0xff]   ;;  %v12738_v34 = vld [vmem:[%s14603_s6 + $0x658] ss:$100 sps:$4 sm:$0xff]  }
 0x296   : > { %5206 = vmatprep.mubr.bf16.mxu0 %v12669_v35  ;;  %5303 = vmatprep.mubr.bf16.mxu1 %v12673_v36 }
 0x29d   : > { %5207 = vmatmul.mubr.bf16.gmra.mrb[80].mxu0 %v12674_v38  ;;  %5304 = vmatmul.mubr.bf16.vlgmr.msra.gmra.mrb[80].mxu1 %v12671_v37 }
 0x29e   : > { %11210 = vmatpush3.bf16.msra.mxu1 %v12676_v39  ;;  %5214 = vmatprep.mubr.bf16.mxu0 %v12679_v40 }
 0x29f   : > { %5311 = vmatprep.mubr.bf16.mxu1 %v12681_v41  ;;  %11211 = vmatprep.subr.bf16.mxu1 %v12691_v42 }
 0x2a2   : > { %11212 = vmatpush3.bf16.msra.mxu1 %v12692_v43  ;;  %v12742_v43 = vld [vmem:[%s14621_s4 + $0x300] sm:$0xff]  }
 0x2a3   : > { %11213 = vmatprep.subr.bf16.mxu1 %v12707_v44  ;;  %v12743_v44 = vld [vmem:[%s14603_s6 + $0x724] ss:$100 sps:$4 sm:$0xff]  }
 0x2a5   : > { %5215 = vmatmul.mubr.bf16.gmra.mrb[84].mxu0 %v12683_v45  ;;  %5312 = vmatmul.mubr.bf16.gmra.mrb[84].mxu1 %v12684_v46 }
 0x2a6   : > { %5222 = vmatprep.mubr.bf16.mxu0 %v12685_v47  ;;  %5319 = vmatprep.mubr.bf16.mxu1 %v12687_v48  ;;  %v12745_v47 = vld [vmem:[%s14603_s6 + $0xec] ss:$100 sps:$4 sm:$0xff]  }
 0x2a7   : > { %11214 = vmatpush3.bf16.msra.mxu1 %v12708_v49  ;;  %v12757_v48 = vld [vmem:[%s14621_s4 + $0x348] sm:$0xff]  }
 0x2a8   : > { %11215 = vmatprep.subr.bf16.mxu1 %v12723_v50 }
 0x2ab   : > { %11216 = vmatpush3.bf16.msra.mxu1 %v12724_v53  ;;  %v12747_v53 = vld [vmem:[%s14603_s6 + $0x720] ss:$100 sps:$4 sm:$0xff]  }
 0x2ac   : > { %11217 = vmatprep.subr.bf16.mxu1 %v12739_v54  ;;  %v12748_v54 = vld [vmem:[%s14603_s6 + $0xe8] ss:$100 sps:$4 sm:$0xff]  }
 0x2ad   : > { %5223 = vmatmul.mubr.bf16.gmra.mrb[88].mxu0 %v12689_v51  ;;  %5320 = vmatmul.mubr.bf16.gmra.mrb[88].mxu1 %v12690_v52  ;;  %v12758_v51 = vld [vmem:[%s14621_s4 + $0x308] sm:$0xff]   ;;  %v12773_v52 = vld [vmem:[%s14621_s4 + $0x350] sm:$0xff]  }
 0x2ae   : > { %5230 = vmatprep.mubr.bf16.mxu0 %v12695_v55  ;;  %5327 = vmatprep.mubr.bf16.mxu1 %v12697_v56 }
 0x2af   : > { %11218 = vmatpush3.bf16.msra.mxu1 %v12740_v57 }
 0x2b0   : > { %11219 = vmatprep.subr.bf16.mxu1 %v12755_v58 }
 0x2b3   : > { %11220 = vmatpush3.bf16.msra.mxu1 %v12756_v61 }
 0x2b4   : > { %11221 = vmatprep.subr.bf16.mxu1 %v12771_v0  ;;  %v12751_v0 = vld [vmem:[%s14603_s6 + $0x1b4] ss:$100 sps:$4 sm:$0xff]  }
 0x2b5   : > { %5231 = vmatmul.mubr.bf16.gmra.mrb[92].mxu0 %v12699_v59  ;;  %5328 = vmatmul.mubr.bf16.gmra.mrb[92].mxu1 %v12700_v60 }
 0x2b6   : > { %5238 = vmatprep.mubr.bf16.mxu0 %v12701_v62  ;;  %5335 = vmatprep.mubr.bf16.mxu1 %v12703_v63  ;;  %v12749_v63 = vld [vmem:[%s14603_s6 + $0x7ec] ss:$100 sps:$4 sm:$0xff]  }
 0x2b7   : > { %11222 = vmatpush3.bf16.msra.mxu1 %v12772_v1 }
 0x2b8   : > { %11223 = vmatprep.subr.bf16.mxu1 %v12787_v2 }
 0x2bb   : > { %11224 = vmatpush3.bf16.msra.mxu1 %v12788_v3  ;;  %v12774_v3 = vld [vmem:[%s14621_s4 + $0x310] sm:$0xff]  }
 0x2bc   : > { %11433 = vmatprep.subr.bf16.mxu1 %v12803_v4 }
 0x2bd   : > { %5239 = vmatmul.mubr.bf16.gmra.mrb[96].mxu0 %v12705_v5  ;;  %5336 = vmatmul.mubr.bf16.gmra.mrb[96].mxu1 %v12706_v6  ;;  %v12789_v6 = vld [vmem:[%s14621_s4 + $0x358] sm:$0xff]  }
 0x2be   : > { %5246 = vmatprep.mubr.bf16.mxu0 %v12711_v7  ;;  %5343 = vmatprep.mubr.bf16.mxu1 %v12713_v8  ;;  %v12790_v7 = vld [vmem:[%s14621_s4 + $0x318] sm:$0xff]   ;;  %v12805_v8 = vld [vmem:[%s14621_s4 + $0x360] sm:$0xff]  }
 0x2c5   : > { %5247 = vmatmul.mubr.bf16.gmra.mrb[100].mxu0 %v12715_v9  ;;  %5344 = vmatmul.mubr.bf16.gmra.mrb[100].mxu1 %v12716_v10  ;;  %v12753_v9 = vld [vmem:[%s14603_s6 + $0x7e8] ss:$100 sps:$4 sm:$0xff]   ;;  %v12754_v10 = vld [vmem:[%s14603_s6 + $0x1b0] ss:$100 sps:$4 sm:$0xff]  }
 0x2c6   : > { %5254 = vmatprep.mubr.bf16.mxu0 %v12717_v11  ;;  %5351 = vmatprep.mubr.bf16.mxu1 %v12719_v12 }
 0x2cd   : > { %5255 = vmatmul.mubr.bf16.gmra.mrb[104].mxu0 %v12721_v13  ;;  %5352 = vmatmul.mubr.bf16.gmra.mrb[104].mxu1 %v12722_v14 }
 0x2ce   : > { %5262 = vmatprep.mubr.bf16.mxu0 %v12727_v15  ;;  %5359 = vmatprep.mubr.bf16.mxu1 %v12729_v16 }
 0x2d0   : > { %v10737_v19 = vpop.f32.mrb[0].mxu1  ;;  %v10665_v20 = vpop.f32.mrb[0].mxu0 }
 0x2d1   : > { %v10738_v21 = vpop.f32.mrb[1].mxu1  ;;  %v10666_v22 = vpop.f32.mrb[1].mxu0 }
 0x2d2   : > { %v14863_v23 = vadd.f32 %v10738_v21, %v10737_v19  ;;  %v10740_v24 = vpop.f32.mrb[2].mxu1  ;;  %v14865_v25 = vadd.f32 %v10666_v22, %v10665_v20  ;;  %v10668_v26 = vpop.f32.mrb[2].mxu0  ;;  %v12759_v19 = vld [vmem:[%s14603_s6 + $0x8b4] ss:$100 sps:$4 sm:$0xff]   ;;  %v12761_v20 = vld [vmem:[%s14603_s6 + $0x27c] ss:$100 sps:$4 sm:$0xff]  }
 0x2d3   : > { %v10741_v29 = vpop.f32.mrb[3].mxu1  ;;  %v10669_v30 = vpop.f32.mrb[3].mxu0 }
 0x2d4   : > { %v14869_v31 = vadd.f32 %v10741_v29, %v10740_v24  ;;  %v14871_v32 = vadd.f32 %v10669_v30, %v10668_v26  ;;  %v12806_v24 = vld [vmem:[%s14621_s4 + $0x320] sm:$0xff]   ;;  %v12821_v26 = vld [vmem:[%s14621_s4 + $0x368] sm:$0xff]   ;;  %v12837_v30 = vld [vmem:[%s14621_s4 + $0x370] sm:$0xff]  }
 0x2d5   : > { %5263 = vmatmul.mubr.bf16.gmra.mrb[108].mxu0 %v12731_v17  ;;  %5360 = vmatmul.mubr.bf16.gmra.mrb[108].mxu1 %v12732_v18  ;;  %v12822_v29 = vld [vmem:[%s14621_s4 + $0x328] sm:$0xff]  }
 0x2d6   : > { %5367 = vmatprep.mubr.bf16.mxu1 %v12733_v27  ;;  %5464 = vmatprep.mubr.bf16.mxu0 %v12737_v28 }
 0x2d8   : > { %v10743_v35 = vpop.f32.mrb[4].mxu1  ;;  %v10671_v36 = vpop.f32.mrb[4].mxu0 }
 0x2d9   : > { %v10744_v37 = vpop.f32.mrb[5].mxu1  ;;  %v10672_v38 = vpop.f32.mrb[5].mxu0 }
 0x2da   : > { %v14875_v39 = vadd.f32 %v10744_v37, %v10743_v35  ;;  %v10746_v40 = vpop.f32.mrb[6].mxu1  ;;  %v14877_v41 = vadd.f32 %v10672_v38, %v10671_v36  ;;  %v10674_v42 = vpop.f32.mrb[6].mxu0 }
 0x2db   : > { %v10747_v45 = vpop.f32.mrb[7].mxu1  ;;  %v10675_v46 = vpop.f32.mrb[7].mxu0 }
 0x2dc   : > { %v14883_v49 = vadd.f32 %v10747_v45, %v10746_v40  ;;  %v14885_v50 = vadd.f32 %v10675_v46, %v10674_v42  ;;  %v12765_v45 = vld [vmem:[%s14603_s6 + $0x97c] ss:$100 sps:$4 sm:$0xff]   ;;  %v12767_v46 = vld [vmem:[%s14603_s6 + $0x344] ss:$100 sps:$4 sm:$0xff]  }
 0x2dd   : > { %5368 = vmatmul.mubr.bf16.gmra.mrb[112].mxu1 %v12738_v34  ;;  %5465 = vmatmul.mubr.bf16.vlgmr.msra.gmra.mrb[112].mxu0 %v12735_v33  ;;  %v12763_v33 = vld [vmem:[%s14603_s6 + $0x8b0] ss:$100 sps:$4 sm:$0xff]   ;;  %v12764_v34 = vld [vmem:[%s14603_s6 + $0x278] ss:$100 sps:$4 sm:$0xff]  }
 0x2de   : > { %11322 = vmatpush3.bf16.msra.mxu0 %v12742_v43  ;;  %5375 = vmatprep.mubr.bf16.mxu1 %v12743_v44 }
 0x2df   : > { %5472 = vmatprep.mubr.bf16.mxu0 %v12745_v47  ;;  %11323 = vmatprep.subr.bf16.mxu0 %v12757_v48 }
 0x2e0   : > { %v10749_v55 = vpop.f32.mrb[8].mxu1  ;;  %v10677_v56 = vpop.f32.mrb[8].mxu0 }
 0x2e1   : > { %v10750_v57 = vpop.f32.mrb[9].mxu1  ;;  %v10678_v58 = vpop.f32.mrb[9].mxu0 }
 0x2e2   : > { %v14891_v59 = vadd.f32 %v10750_v57, %v10749_v55  ;;  %v10752_v60 = vpop.f32.mrb[10].mxu1  ;;  %v14893_v61 = vadd.f32 %v10678_v58, %v10677_v56  ;;  %v10680_v62 = vpop.f32.mrb[10].mxu0  ;;  %11324 = vmatpush3.bf16.msra.mxu0 %v12758_v51  ;;  %v12838_v51 = vld [vmem:[%s14621_s4 + $0x330] sm:$0xff]   ;;  %v12853_v55 = vld [vmem:[%s14621_s4 + $0x378] sm:$0xff]   ;;  %v12869_v58 = vld [vmem:[%s14621_s4 + $0x440] sm:$0xff]  }
 0x2e3   : > { %v10753_v1 = vpop.f32.mrb[11].mxu1  ;;  %v10681_v2 = vpop.f32.mrb[11].mxu0  ;;  %11325 = vmatprep.subr.bf16.mxu0 %v12773_v52  ;;  %v12854_v56 = vld [vmem:[%s14621_s4 + $0x338] sm:$0xff]  }
 0x2e4   : > { %v14898_v4 = vadd.f32 %v10753_v1, %v10752_v60  ;;  %v14900_v5 = vadd.f32 %v10681_v2, %v10680_v62  ;;  %v12769_v60 = vld [vmem:[%s14603_s6 + $0x978] ss:$100 sps:$4 sm:$0xff]   ;;  %v12770_v62 = vld [vmem:[%s14603_s6 + $0x340] ss:$100 sps:$4 sm:$0xff]  }
 0x2e5   : > { %5376 = vmatmul.mubr.bf16.gmra.mrb[116].mxu1 %v12747_v53  ;;  %5473 = vmatmul.mubr.bf16.gmra.mrb[116].mxu0 %v12748_v54 }
 0x2e6   : > { %5383 = vmatprep.mubr.bf16.mxu1 %v12749_v63  ;;  %5480 = vmatprep.mubr.bf16.mxu0 %v12751_v0 }
 0x2e7   : > { %11326 = vmatpush3.bf16.msra.mxu0 %v12774_v3 }
 0x2e8   : > { %v10755_v11 = vpop.f32.mrb[12].mxu1  ;;  %v10683_v12 = vpop.f32.mrb[12].mxu0  ;;  %11327 = vmatprep.subr.bf16.mxu0 %v12789_v6 }
 0x2e9   : > { %v10756_v13 = vpop.f32.mrb[13].mxu1  ;;  %v10684_v14 = vpop.f32.mrb[13].mxu0 }
 0x2ea   : > { %v14907_v15 = vadd.f32 %v10756_v13, %v10755_v11  ;;  %v10758_v16 = vpop.f32.mrb[14].mxu1  ;;  %v14909_v17 = vadd.f32 %v10684_v14, %v10683_v12  ;;  %v10686_v18 = vpop.f32.mrb[14].mxu0 }
 0x2eb   : > { %v10759_v21 = vpop.f32.mrb[15].mxu1  ;;  %v10687_v22 = vpop.f32.mrb[15].mxu0  ;;  %11328 = vmatpush3.bf16.msra.mxu0 %v12790_v7  ;;  %v12775_v7 = vld [vmem:[%s14603_s6 + $0xa44] ss:$100 sps:$4 sm:$0xff]  }
 0x2ec   : > { %v14915_v27 = vadd.f32 %v10759_v21, %v10758_v16  ;;  %v14917_v28 = vadd.f32 %v10687_v22, %v10686_v18  ;;  %11329 = vmatprep.subr.bf16.mxu0 %v12805_v8  ;;  %v12777_v8 = vld [vmem:[%s14603_s6 + $0x40c] ss:$100 sps:$4 sm:$0xff]   ;;  %v12779_v16 = vld [vmem:[%s14603_s6 + $0xa40] ss:$100 sps:$4 sm:$0xff]  }
 0x2ed   : > { %5384 = vmatmul.mubr.bf16.gmra.mrb[120].mxu1 %v12753_v9  ;;  %5481 = vmatmul.mubr.bf16.gmra.mrb[120].mxu0 %v12754_v10  ;;  %v12780_v18 = vld [vmem:[%s14603_s6 + $0x408] ss:$100 sps:$4 sm:$0xff]  }
 0x2ee   : > { %5391 = vmatprep.mubr.bf16.mxu1 %v12759_v19  ;;  %5488 = vmatprep.mubr.bf16.mxu0 %v12761_v20 }
 0x2ef   : > { %11330 = vmatpush3.bf16.msra.mxu0 %v12806_v24 }
 0x2f0   : > { %v10777_v35 = vpop.f32.mrb[16].mxu1  ;;  %v10689_v36 = vpop.f32.mrb[16].mxu0  ;;  %11331 = vmatprep.subr.bf16.mxu0 %v12821_v26 }
 0x2f1   : > { %v10778_v37 = vpop.f32.mrb[17].mxu1  ;;  %v10690_v38 = vpop.f32.mrb[17].mxu0 }
 0x2f2   : > { %v10779_v40 = vadd.f32 %v10778_v37, %v10777_v35  ;;  %v10780_v42 = vpop.f32.mrb[18].mxu1  ;;  %v14923_v43 = vadd.f32 %v10690_v38, %v10689_v36  ;;  %v10692_v44 = vpop.f32.mrb[18].mxu0 }
 0x2f3   : > { %v10781_v47 = vpop.f32.mrb[19].mxu1  ;;  %v10693_v48 = vpop.f32.mrb[19].mxu0  ;;  %11332 = vmatpush3.bf16.msra.mxu0 %v12822_v29 }
 0x2f4   : > { %v14929_v52 = vadd.f32 %v10779_v40, %v14865_v25  ;;  %v10782_v53 = vadd.f32 %v10781_v47, %v10780_v42  ;;  %v14931_v54 = vadd.f32 %v10693_v48, %v10692_v44  ;;  %11333 = vmatprep.subr.bf16.mxu0 %v12837_v30  ;;  %v12781_v30 = vld [vmem:[%s14603_s6 + $0xb0c] ss:$100 sps:$4 sm:$0xff]  }
 0x2f5   : > { %5392 = vmatmul.mubr.bf16.gmra.mrb[124].mxu1 %v12763_v33  ;;  %5489 = vmatmul.mubr.bf16.gmra.mrb[124].mxu0 %v12764_v34  ;;  %v12783_v33 = vld [vmem:[%s14603_s6 + $0x4d4] ss:$100 sps:$4 sm:$0xff]   ;;  %v12785_v40 = vld [vmem:[%s14603_s6 + $0xb08] ss:$100 sps:$4 sm:$0xff]  }
 0x2f6   : > { %v14936_v57 = vadd.f32 %v10782_v53, %v14871_v32  ;;  %5399 = vmatprep.mubr.bf16.mxu1 %v12765_v45  ;;  %5496 = vmatprep.mubr.bf16.mxu0 %v12767_v46  ;;  %v12786_v42 = vld [vmem:[%s14603_s6 + $0x4d0] ss:$100 sps:$4 sm:$0xff]  }
 0x2f7   : > { %11334 = vmatpush3.bf16.msra.mxu0 %v12838_v51 }
 0x2f8   : > { %v10783_v25 = vpop.f32.mrb[20].mxu1  ;;  %v10695_v63 = vpop.f32.mrb[20].mxu0  ;;  %11335 = vmatprep.subr.bf16.mxu0 %v12853_v55  ;;  %v12791_v55 = vld [vmem:[%s14603_s6 + $0xbd4] ss:$100 sps:$4 sm:$0xff]  }
 0x2f9   : > { %v10784_v0 = vpop.f32.mrb[21].mxu1  ;;  %v10696_v1 = vpop.f32.mrb[21].mxu0 }
 0x2fa   : > { %v10785_v2 = vadd.f32 %v10784_v0, %v10783_v25  ;;  %v10786_v3 = vpop.f32.mrb[22].mxu1  ;;  %v14941_v6 = vadd.f32 %v10696_v1, %v10695_v63  ;;  %v10698_v32 = vpop.f32.mrb[22].mxu0  ;;  %v12795_v0 = vld [vmem:[%s14603_s6 + $0xbd0] ss:$100 sps:$4 sm:$0xff]   ;;  %v12796_v1 = vld [vmem:[%s14603_s6 + $0x598] ss:$100 sps:$4 sm:$0xff]  }
 0x2fb   : > { %v10787_v9 = vpop.f32.mrb[23].mxu1  ;;  %v10699_v10 = vpop.f32.mrb[23].mxu0  ;;  %11336 = vmatpush3.bf16.msra.mxu0 %v12854_v56  ;;  %v12793_v56 = vld [vmem:[%s14603_s6 + $0x59c] ss:$100 sps:$4 sm:$0xff]  }
 0x2fc   : > { %v14946_v11 = vadd.f32 %v10785_v2, %v14877_v41  ;;  %v10788_v12 = vadd.f32 %v10787_v9, %v10786_v3  ;;  %v14948_v13 = vadd.f32 %v10699_v10, %v10698_v32  ;;  %11545 = vmatprep.subr.bf16.mxu0 %v12869_v58 }
 0x2fd   : > { %5400 = vmatmul.mubr.bf16.gmra.mrb[128].mxu1 %v12769_v60  ;;  %5497 = vmatmul.mubr.bf16.gmra.mrb[128].mxu0 %v12770_v62 }
 0x2fe   : > { %v14951_v14 = vadd.f32 %v10788_v12, %v14885_v50  ;;  %5407 = vmatprep.mubr.bf16.mxu1 %v12775_v7  ;;  %5504 = vmatprep.mubr.bf16.mxu0 %v12777_v8  ;;  %v12797_v12 = vld [vmem:[%s14603_s6 + $0x664] ss:$100 sps:$4 sm:$0xff]  }
 0x300   : > { %v10789_v19 = vpop.f32.mrb[24].mxu1  ;;  %v10701_v20 = vpop.f32.mrb[24].mxu0 }
 0x301   : > { %v10790_v21 = vpop.f32.mrb[25].mxu1  ;;  %v10702_v41 = vpop.f32.mrb[25].mxu0 }
 0x302   : > { %v10791_v22 = vadd.f32 %v10790_v21, %v10789_v19  ;;  %v10792_v24 = vpop.f32.mrb[26].mxu1  ;;  %v14955_v26 = vadd.f32 %v10702_v41, %v10701_v20  ;;  %v10704_v29 = vpop.f32.mrb[26].mxu0 }
 0x303   : > { %v10793_v34 = vpop.f32.mrb[27].mxu1  ;;  %v10705_v50 = vpop.f32.mrb[27].mxu0 }
 0x304   : > { %v14960_v35 = vadd.f32 %v10791_v22, %v14893_v61  ;;  %v10794_v36 = vadd.f32 %v10793_v34, %v10792_v24  ;;  %v14962_v37 = vadd.f32 %v10705_v50, %v10704_v29  ;;  %v12799_v22 = vld [vmem:[%s14603_s6 + $0x28] ss:$100 sps:$4 sm:$0xff]   ;;  %v12802_v24 = vld [vmem:[%s14603_s6 + $0x660] ss:$100 sps:$4 sm:$0xff]  }
 0x305   : > { %5408 = vmatmul.mubr.bf16.gmra.mrb[132].mxu1 %v12779_v16  ;;  %5505 = vmatmul.mubr.bf16.gmra.mrb[132].mxu0 %v12780_v18  ;;  %v12801_v16 = vld [vmem:[%s14603_s6 + $0x2c] ss:$100 sps:$4 sm:$0xff]  }
 0x306   : > { %v14965_v38 = vadd.f32 %v10794_v36, %v14900_v5  ;;  %5415 = vmatprep.mubr.bf16.mxu1 %v12781_v30  ;;  %5512 = vmatprep.mubr.bf16.mxu0 %v12783_v33 }
 0x308   : > { %v10795_v44 = vpop.f32.mrb[28].mxu1  ;;  %v10707_v45 = vpop.f32.mrb[28].mxu0 }
 0x309   : > { %v10796_v46 = vpop.f32.mrb[29].mxu1  ;;  %v10708_v47 = vpop.f32.mrb[29].mxu0 }
 0x30a   : > { %v10797_v61 = vadd.f32 %v10796_v46, %v10795_v44  ;;  %v10798_v48 = vpop.f32.mrb[30].mxu1  ;;  %v14969_v51 = vadd.f32 %v10708_v47, %v10707_v45  ;;  %v10710_v53 = vpop.f32.mrb[30].mxu0  ;;  %v12809_v46 = vld [vmem:[%s14603_s6 + $0xf4] ss:$100 sps:$4 sm:$0xff]   ;;  %v12819_v47 = vld [vmem:[%s14621_s4 + $0x3c8] sm:$0xff]  }
 0x30b   : > { %v10799_v58 = vpop.f32.mrb[31].mxu1  ;;  %v10711_v5 = vpop.f32.mrb[31].mxu0 }
 0x30c   : > { %v14974_v60 = vadd.f32 %v10797_v61, %v14909_v17  ;;  %v10800_v62 = vadd.f32 %v10799_v58, %v10798_v48  ;;  %v14976_v25 = vadd.f32 %v10711_v5, %v10710_v53  ;;  %v12835_v58 = vld [vmem:[%s14621_s4 + $0x3d0] sm:$0xff]   ;;  %v12811_v5 = vld [vmem:[%s14603_s6 + $0x728] ss:$100 sps:$4 sm:$0xff]  }
 0x30d   : > { %5416 = vmatmul.mubr.bf16.gmra.mrb[136].mxu1 %v12785_v40  ;;  %5513 = vmatmul.mubr.bf16.gmra.mrb[136].mxu0 %v12786_v42  ;;  %v12804_v42 = vld [vmem:[%s14621_s4 + $0x380] sm:$0xff]  }
 0x30e   : > { %v14979_v63 = vadd.f32 %v10800_v62, %v14917_v28  ;;  %5423 = vmatprep.mubr.bf16.mxu1 %v12791_v55  ;;  %5520 = vmatprep.mubr.bf16.mxu0 %v12793_v56  ;;  %v12820_v56 = vld [vmem:[%s14621_s4 + $0x388] sm:$0xff]   ;;  %v12812_v62 = vld [vmem:[%s14603_s6 + $0xf0] ss:$100 sps:$4 sm:$0xff]  }
 0x310   : > { %v10801_v2 = vpop.f32.mrb[32].mxu1  ;;  %v10713_v3 = vpop.f32.mrb[32].mxu0 }
 0x311   : > { %v10802_v32 = vpop.f32.mrb[33].mxu1  ;;  %v10714_v7 = vpop.f32.mrb[33].mxu0 }
 0x312   : > { %v10803_v17 = vadd.f32 %v10802_v32, %v10801_v2  ;;  %v10804_v8 = vpop.f32.mrb[34].mxu1  ;;  %v14983_v9 = vadd.f32 %v10714_v7, %v10713_v3  ;;  %v10716_v10 = vpop.f32.mrb[34].mxu0 }
 0x313   : > { %v10805_v18 = vpop.f32.mrb[35].mxu1  ;;  %v10717_v28 = vpop.f32.mrb[35].mxu0 }
 0x314   : > { %v14988_v19 = vadd.f32 %v10803_v17, %v14923_v43  ;;  %v10806_v20 = vadd.f32 %v10805_v18, %v10804_v8  ;;  %v14990_v21 = vadd.f32 %v10717_v28, %v10716_v10  ;;  %v12813_v17 = vld [vmem:[%s14603_s6 + $0x7f4] ss:$100 sps:$4 sm:$0xff]   ;;  %v12815_v8 = vld [vmem:[%s14603_s6 + $0x1bc] ss:$100 sps:$4 sm:$0xff]  }
 0x315   : > { %5424 = vmatmul.mubr.bf16.gmra.mrb[140].mxu1 %v12795_v0  ;;  %5521 = vmatmul.mubr.bf16.gmra.mrb[140].mxu0 %v12796_v1 }
 0x316   : > { %v14993_v41 = vadd.f32 %v10806_v20, %v14931_v54  ;;  %5528 = vmatprep.mubr.bf16.mxu0 %v12797_v12  ;;  %5625 = vmatprep.mubr.bf16.mxu1 %v12801_v16  ;;  %v12807_v54 = vld [vmem:[%s14603_s6 + $0x72c] ss:$100 sps:$4 sm:$0xff]  }
 0x317   : > { %v12836_v16 = vld [vmem:[%s14621_s4 + $0x390] sm:$0xff]  }
 0x318   : > { %v10807_v29 = vpop.f32.mrb[36].mxu1  ;;  %v10719_v30 = vpop.f32.mrb[36].mxu0 }
 0x319   : > { %v10808_v43 = vpop.f32.mrb[37].mxu1  ;;  %v10720_v33 = vpop.f32.mrb[37].mxu0 }
 0x31a   : > { %v10809_v34 = vadd.f32 %v10808_v43, %v10807_v29  ;;  %v10810_v50 = vpop.f32.mrb[38].mxu1  ;;  %v14997_v36 = vadd.f32 %v10720_v33, %v10719_v30  ;;  %v10722_v40 = vpop.f32.mrb[38].mxu0  ;;  %v12867_v30 = vld [vmem:[%s14621_s4 + $0x3e0] sm:$0xff]   ;;  %v12817_v43 = vld [vmem:[%s14603_s6 + $0x7f0] ss:$100 sps:$4 sm:$0xff]  }
 0x31b   : > { %v10811_v44 = vpop.f32.mrb[39].mxu1  ;;  %v10723_v45 = vpop.f32.mrb[39].mxu0  ;;  %v12818_v33 = vld [vmem:[%s14603_s6 + $0x1b8] ss:$100 sps:$4 sm:$0xff]  }
 0x31c   : > { %v15004_v61 = vadd.f32 %v10809_v34, %v14941_v6  ;;  %v10812_v48 = vadd.f32 %v10811_v44, %v10810_v50  ;;  %v15006_v53 = vadd.f32 %v10723_v45, %v10722_v40  ;;  %v12823_v45 = vld [vmem:[%s14603_s6 + $0x8bc] ss:$100 sps:$4 sm:$0xff]  }
 0x31d   : > { %5529 = vmatmul.mubr.bf16.gmra.mrb[144].mxu0 %v12802_v24  ;;  %5626 = vmatmul.mubr.bf16.vlgmr.msra.gmra.mrb[144].mxu1 %v12799_v22  ;;  %v12851_v22 = vld [vmem:[%s14621_s4 + $0x3d8] sm:$0xff]  }
 0x31e   : > { %v15009_v55 = vadd.f32 %v10812_v48, %v14948_v13  ;;  %11434 = vmatpush3.bf16.msra.mxu1 %v12804_v42  ;;  %5536 = vmatprep.mubr.bf16.mxu0 %v12807_v54  ;;  %v12852_v24 = vld [vmem:[%s14621_s4 + $0x398] sm:$0xff]  }
 0x31f   : > { %5633 = vmatprep.mubr.bf16.mxu1 %v12809_v46  ;;  %11435 = vmatprep.subr.bf16.mxu1 %v12819_v47  ;;  %v12825_v46 = vld [vmem:[%s14603_s6 + $0x284] ss:$100 sps:$4 sm:$0xff]  }
 0x320   : > { %v10813_v6 = vpop.f32.mrb[40].mxu1  ;;  %v10725_v0 = vpop.f32.mrb[40].mxu0 }
 0x321   : > { %v10814_v1 = vpop.f32.mrb[41].mxu1  ;;  %v10726_v2 = vpop.f32.mrb[41].mxu0 }
 0x322   : > { %v10815_v3 = vadd.f32 %v10814_v1, %v10813_v6  ;;  %v10816_v32 = vpop.f32.mrb[42].mxu1  ;;  %v15015_v13 = vadd.f32 %v10726_v2, %v10725_v0  ;;  %v10728_v7 = vpop.f32.mrb[42].mxu0  ;;  %11436 = vmatpush3.bf16.msra.mxu1 %v12820_v56  ;;  %v12868_v56 = vld [vmem:[%s14621_s4 + $0x3a0] sm:$0xff]   ;;  %v12884_v1 = vld [vmem:[%s14621_s4 + $0x3a8] sm:$0xff]   ;;  %v12899_v2 = vld [vmem:[%s14621_s4 + $0x3f0] sm:$0xff]  }
 0x323   : > { %v10817_v10 = vpop.f32.mrb[43].mxu1  ;;  %v10729_v12 = vpop.f32.mrb[43].mxu0  ;;  %11437 = vmatprep.subr.bf16.mxu1 %v12835_v58  ;;  %v12883_v58 = vld [vmem:[%s14621_s4 + $0x3e8] sm:$0xff]  }
 0x324   : > { %v15021_v18 = vadd.f32 %v10815_v3, %v14955_v26  ;;  %v10818_v28 = vadd.f32 %v10817_v10, %v10816_v32  ;;  %v15023_v20 = vadd.f32 %v10729_v12, %v10728_v7  ;;  %v12827_v3 = vld [vmem:[%s14603_s6 + $0x8b8] ss:$100 sps:$4 sm:$0xff]   ;;  %v12828_v32 = vld [vmem:[%s14603_s6 + $0x280] ss:$100 sps:$4 sm:$0xff]  }
 0x325   : > { %5537 = vmatmul.mubr.bf16.gmra.mrb[148].mxu0 %v12811_v5  ;;  %5634 = vmatmul.mubr.bf16.gmra.mrb[148].mxu1 %v12812_v62 }
 0x326   : > { %v15028_v29 = vadd.f32 %v10818_v28, %v14962_v37  ;;  %5544 = vmatprep.mubr.bf16.mxu0 %v12813_v17  ;;  %5641 = vmatprep.mubr.bf16.mxu1 %v12815_v8  ;;  %v12829_v28 = vld [vmem:[%s14603_s6 + $0x984] ss:$100 sps:$4 sm:$0xff]  }
 0x327   : > { %11438 = vmatpush3.bf16.msra.mxu1 %v12836_v16 }
 0x328   : > { %v10819_v26 = vpop.f32.mrb[44].mxu1  ;;  %v10731_v34 = vpop.f32.mrb[44].mxu0  ;;  %11439 = vmatprep.subr.bf16.mxu1 %v12851_v22  ;;  %v12831_v22 = vld [vmem:[%s14603_s6 + $0x34c] ss:$100 sps:$4 sm:$0xff]  }
 0x329   : > { %v10820_v50 = vpop.f32.mrb[45].mxu1  ;;  %v10732_v40 = vpop.f32.mrb[45].mxu0 }
 0x32a   : > { %v10821_v42 = vadd.f32 %v10820_v50, %v10819_v26  ;;  %v10822_v54 = vpop.f32.mrb[46].mxu1  ;;  %v15033_v44 = vadd.f32 %v10732_v40, %v10731_v34  ;;  %v10734_v37 = vpop.f32.mrb[46].mxu0  ;;  %v12915_v40 = vld [vmem:[%s14621_s4 + $0x3f8] sm:$0xff]  }
 0x32b   : > { %v10823_v47 = vpop.f32.mrb[47].mxu1  ;;  %v10735_v48 = vpop.f32.mrb[47].mxu0  ;;  %11440 = vmatpush3.bf16.msra.mxu1 %v12852_v24 }
 0x32c   : > { %v15040_v5 = vadd.f32 %v10821_v42, %v14969_v51  ;;  %v10824_v62 = vadd.f32 %v10823_v47, %v10822_v54  ;;  %v15042_v6 = vadd.f32 %v10735_v48, %v10734_v37  ;;  %11441 = vmatprep.subr.bf16.mxu1 %v12867_v30  ;;  %v12916_v42 = vld [vmem:[%s14621_s4 + $0x3b8] sm:$0xff]  }
 0x32d   : > { %5545 = vmatmul.mubr.bf16.gmra.mrb[152].mxu0 %v12817_v43  ;;  %5642 = vmatmul.mubr.bf16.gmra.mrb[152].mxu1 %v12818_v33  ;;  %v12900_v43 = vld [vmem:[%s14621_s4 + $0x3b0] sm:$0xff]  }
 0x32e   : > { %v15045_v0 = vadd.f32 %v10824_v62, %v14976_v25  ;;  %5552 = vmatprep.mubr.bf16.mxu0 %v12823_v45  ;;  %5649 = vmatprep.mubr.bf16.mxu1 %v12825_v46  ;;  %v12834_v45 = vld [vmem:[%s14603_s6 + $0x348] ss:$100 sps:$4 sm:$0xff]  }
 0x32f   : > { %11442 = vmatpush3.bf16.msra.mxu1 %v12868_v56 }
 0x330   : > { %v10825_v51 = vpop.f32.mrb[48].mxu1  ;;  %v10889_v7 = vpop.f32.mrb[48].mxu0  ;;  %11443 = vmatprep.subr.bf16.mxu1 %v12883_v58 }
 0x331   : > { %v10826_v17 = vpop.f32.mrb[49].mxu1  ;;  %v10890_v8 = vpop.f32.mrb[49].mxu0 }
 0x332   : > { %v10827_v10 = vadd.f32 %v10826_v17, %v10825_v51  ;;  %v10891_v12 = vadd.f32 %v10890_v8, %v10889_v7  ;;  %v10828_v25 = vpop.f32.mrb[50].mxu1  ;;  %v10892_v16 = vpop.f32.mrb[50].mxu0 }
 0x333   : > { %v10829_v24 = vpop.f32.mrb[51].mxu1  ;;  %v10893_v30 = vpop.f32.mrb[51].mxu0  ;;  %11444 = vmatpush3.bf16.msra.mxu1 %v12884_v1 }
 0x334   : > { %v15055_v33 = vadd.f32 %v10827_v10, %v14983_v9  ;;  %v15058_v26 = vadd.f32 %v10891_v12, %v14929_v52  ;;  %v10830_v34 = vadd.f32 %v10829_v24, %v10828_v25  ;;  %v10894_v50 = vadd.f32 %v10893_v30, %v10892_v16  ;;  %11445 = vmatprep.subr.bf16.mxu1 %v12899_v2  ;;  %v12931_v9 = vld [vmem:[%s14621_s4 + $0x4c0] sm:$0xff]   ;;  %v12839_v2 = vld [vmem:[%s14603_s6 + $0xa4c] ss:$100 sps:$4 sm:$0xff]  }
 0x335   : > { %5553 = vmatmul.mubr.bf16.gmra.mrb[156].mxu0 %v12827_v3  ;;  %5650 = vmatmul.mubr.bf16.gmra.mrb[156].mxu1 %v12828_v32  ;;  %v12833_v52 = vld [vmem:[%s14603_s6 + $0x980] ss:$100 sps:$4 sm:$0xff]   ;;  %v12844_v25 = vld [vmem:[%s14603_s6 + $0x410] ss:$100 sps:$4 sm:$0xff]  }
 0x336   : > { %v15063_v54 = vadd.f32 %v10830_v34, %v14990_v21  ;;  %v15066_v37 = vadd.f32 %v10894_v50, %v14936_v57  ;;  %5560 = vmatprep.mubr.bf16.mxu0 %v12829_v28  ;;  %5657 = vmatprep.mubr.bf16.mxu1 %v12831_v22  ;;  %v12841_v57 = vld [vmem:[%s14603_s6 + $0x414] ss:$100 sps:$4 sm:$0xff]  }
 0x337   : > { %11446 = vmatpush3.bf16.msra.mxu1 %v12900_v43  ;;  %v12845_v50 = vld [vmem:[%s14603_s6 + $0xb14] ss:$100 sps:$4 sm:$0xff]  }
 0x338   : > { %v10831_v46 = vpop.f32.mrb[52].mxu1  ;;  %v10895_v47 = vpop.f32.mrb[52].mxu0  ;;  %11447 = vmatprep.subr.bf16.mxu1 %v12915_v40 }
 0x339   : > { %v10832_v48 = vpop.f32.mrb[53].mxu1  ;;  %v10896_v56 = vpop.f32.mrb[53].mxu0 }
 0x33a   : > { %v10833_v58 = vadd.f32 %v10832_v48, %v10831_v46  ;;  %v10897_v62 = vadd.f32 %v10896_v56, %v10895_v47  ;;  %v10834_v21 = vpop.f32.mrb[54].mxu1  ;;  %v10898_v1 = vpop.f32.mrb[54].mxu0  ;;  %v12849_v48 = vld [vmem:[%s14603_s6 + $0xb10] ss:$100 sps:$4 sm:$0xff]  }
 0x33b   : > { %v10835_v3 = vpop.f32.mrb[55].mxu1  ;;  %v10899_v32 = vpop.f32.mrb[55].mxu0  ;;  %11448 = vmatpush3.bf16.msra.mxu1 %v12916_v42 }
 0x33c   : > { %v15074_v51 = vadd.f32 %v10833_v58, %v14997_v36  ;;  %v15077_v7 = vadd.f32 %v10897_v62, %v14946_v11  ;;  %v10836_v17 = vadd.f32 %v10835_v3, %v10834_v21  ;;  %v10900_v8 = vadd.f32 %v10899_v32, %v10898_v1  ;;  %11657 = vmatprep.subr.bf16.mxu1 %v12931_v9  ;;  %v12843_v36 = vld [vmem:[%s14603_s6 + $0xa48] ss:$100 sps:$4 sm:$0xff]   ;;  %v12855_v3 = vld [vmem:[%s14603_s6 + $0xbdc] ss:$100 sps:$4 sm:$0xff]  }
 0x33d   : > { %5561 = vmatmul.mubr.bf16.gmra.mrb[160].mxu0 %v12833_v52  ;;  %5658 = vmatmul.mubr.bf16.gmra.mrb[160].mxu1 %v12834_v45 }
 0x33e   : > { %v15080_v10 = vadd.f32 %v10836_v17, %v15006_v53  ;;  %v15083_v12 = vadd.f32 %v10900_v8, %v14951_v14  ;;  %5568 = vmatprep.mubr.bf16.mxu0 %v12839_v2  ;;  %5665 = vmatprep.mubr.bf16.mxu1 %v12841_v57  ;;  %v12847_v53 = vld [vmem:[%s14603_s6 + $0x4dc] ss:$100 sps:$4 sm:$0xff]  }
 0x340   : > { %v10837_v16 = vpop.f32.mrb[56].mxu1  ;;  %v10901_v11 = vpop.f32.mrb[56].mxu0 }
 0x341   : > { %v10838_v28 = vpop.f32.mrb[57].mxu1  ;;  %v10902_v22 = vpop.f32.mrb[57].mxu0 }
 0x342   : > { %v10839_v24 = vadd.f32 %v10838_v28, %v10837_v16  ;;  %v10903_v30 = vadd.f32 %v10902_v22, %v10901_v11  ;;  %v10840_v43 = vpop.f32.mrb[58].mxu1  ;;  %v10904_v34 = vpop.f32.mrb[58].mxu0  ;;  %v12859_v28 = vld [vmem:[%s14603_s6 + $0xbd8] ss:$100 sps:$4 sm:$0xff]  }
 0x343   : > { %v10841_v40 = vpop.f32.mrb[59].mxu1  ;;  %v10905_v42 = vpop.f32.mrb[59].mxu0 }
 0x344   : > { %v15090_v14 = vadd.f32 %v10839_v24, %v15015_v13  ;;  %v15093_v9 = vadd.f32 %v10903_v30, %v14960_v35  ;;  %v10842_v52 = vadd.f32 %v10841_v40, %v10840_v43  ;;  %v10906_v45 = vadd.f32 %v10905_v42, %v10904_v34  ;;  %v12850_v13 = vld [vmem:[%s14603_s6 + $0x4d8] ss:$100 sps:$4 sm:$0xff]   ;;  %v12861_v40 = vld [vmem:[%s14603_s6 + $0x66c] ss:$100 sps:$4 sm:$0xff]  }
 0x345   : > { %5569 = vmatmul.mubr.bf16.gmra.mrb[164].mxu0 %v12843_v36  ;;  %5666 = vmatmul.mubr.bf16.gmra.mrb[164].mxu1 %v12844_v25 }
 0x346   : > { %v15096_v46 = vadd.f32 %v10842_v52, %v15023_v20  ;;  %v15099_v47 = vadd.f32 %v10906_v45, %v14965_v38  ;;  %5576 = vmatprep.mubr.bf16.mxu0 %v12845_v50  ;;  %5673 = vmatprep.mubr.bf16.mxu1 %v12847_v53  ;;  %v12857_v20 = vld [vmem:[%s14603_s6 + $0x5a4] ss:$100 sps:$4 sm:$0xff]  }
 0x348   : > { %v10843_v56 = vpop.f32.mrb[60].mxu1  ;;  %v10907_v58 = vpop.f32.mrb[60].mxu0 }
 0x349   : > { %v10844_v35 = vpop.f32.mrb[61].mxu1  ;;  %v10908_v62 = vpop.f32.mrb[61].mxu0 }
 0x34a   : > { %v10845_v21 = vadd.f32 %v10844_v35, %v10843_v56  ;;  %v10909_v1 = vadd.f32 %v10908_v62, %v10907_v58  ;;  %v10846_v2 = vpop.f32.mrb[62].mxu1  ;;  %v10910_v57 = vpop.f32.mrb[62].mxu0  ;;  %v12866_v35 = vld [vmem:[%s14603_s6 + $0x668] ss:$100 sps:$4 sm:$0xff]  }
 0x34b   : > { %v10847_v32 = vpop.f32.mrb[63].mxu1  ;;  %v10911_v17 = vpop.f32.mrb[63].mxu0 }
 0x34c   : > { %v15106_v38 = vadd.f32 %v10845_v21, %v15033_v44  ;;  %v15109_v8 = vadd.f32 %v10909_v1, %v14974_v60  ;;  %v10848_v36 = vadd.f32 %v10847_v32, %v10846_v2  ;;  %v10912_v25 = vadd.f32 %v10911_v17, %v10910_v57  ;;  %v12860_v44 = vld [vmem:[%s14603_s6 + $0x5a0] ss:$100 sps:$4 sm:$0xff]   ;;  %v12871_v32 = vld [vmem:[%s14603_s6 + $0x734] ss:$100 sps:$4 sm:$0xff]  }
 0x34d   : > { %5577 = vmatmul.mubr.bf16.gmra.mrb[168].mxu0 %v12849_v48  ;;  %5674 = vmatmul.mubr.bf16.gmra.mrb[168].mxu1 %v12850_v13 }
 0x34e   : > { %v15112_v16 = vadd.f32 %v10848_v36, %v15042_v6  ;;  %v15115_v11 = vadd.f32 %v10912_v25, %v14979_v63  ;;  %5584 = vmatprep.mubr.bf16.mxu0 %v12855_v3  ;;  %5681 = vmatprep.mubr.bf16.mxu1 %v12857_v20  ;;  %v12865_v6 = vld [vmem:[%s14603_s6 + $0x34] ss:$100 sps:$4 sm:$0xff]   ;;  %v12870_v20 = vld [vmem:[%s14621_s4 + $0x400] sm:$0xff]   ;;  %v12885_v25 = vld [vmem:[%s14621_s4 + $0x448] sm:$0xff]  }
 0x34f   : > { %v12873_v36 = vld [vmem:[%s14603_s6 + $0xfc] ss:$100 sps:$4 sm:$0xff]  }
 0x350   : > { %v10849_v22 = vpop.f32.mrb[64].mxu1  ;;  %v10913_v24 = vpop.f32.mrb[64].mxu0 }
 0x351   : > { %v10850_v60 = vpop.f32.mrb[65].mxu1  ;;  %v10914_v30 = vpop.f32.mrb[65].mxu0 }
 0x352   : > { %v10851_v43 = vadd.f32 %v10850_v60, %v10849_v22  ;;  %v10915_v34 = vadd.f32 %v10914_v30, %v10913_v24  ;;  %v10852_v50 = vpop.f32.mrb[66].mxu1  ;;  %v10916_v53 = vpop.f32.mrb[66].mxu0  ;;  %v12886_v60 = vld [vmem:[%s14621_s4 + $0x408] sm:$0xff]   ;;  %v12901_v30 = vld [vmem:[%s14621_s4 + $0x450] sm:$0xff]  }
 0x353   : > { %v10853_v42 = vpop.f32.mrb[67].mxu1  ;;  %v10917_v52 = vpop.f32.mrb[67].mxu0 }
 0x354   : > { %v15122_v63 = vadd.f32 %v10851_v43, %v14863_v23  ;;  %v15125_v45 = vadd.f32 %v10915_v34, %v14988_v19  ;;  %v10854_v48 = vadd.f32 %v10853_v42, %v10852_v50  ;;  %v10918_v13 = vadd.f32 %v10917_v52, %v10916_v53  ;;  %v12863_v23 = vld [vmem:[%s14603_s6 + $0x30] ss:$100 sps:$4 sm:$0xff]  }
 0x355   : > { %5585 = vmatmul.mubr.bf16.gmra.mrb[172].mxu0 %v12859_v28  ;;  %5682 = vmatmul.mubr.bf16.gmra.mrb[172].mxu1 %v12860_v44 }
 0x356   : > { %v15128_v56 = vadd.f32 %v10854_v48, %v14869_v31  ;;  %v15131_v58 = vadd.f32 %v10918_v13, %v14993_v41  ;;  %5689 = vmatprep.mubr.bf16.mxu1 %v12861_v40  ;;  %5786 = vmatprep.mubr.bf16.mxu0 %v12865_v6  ;;  %v12879_v13 = vld [vmem:[%s14603_s6 + $0x1c4] ss:$100 sps:$4 sm:$0xff]  }
 0x358   : > { %v10855_v19 = vpop.f32.mrb[68].mxu1  ;;  %v10919_v62 = vpop.f32.mrb[68].mxu0 }
 0x359   : > { %v10856_v21 = vpop.f32.mrb[69].mxu1  ;;  %v10920_v1 = vpop.f32.mrb[69].mxu0 }
 0x35a   : > { %v10857_v2 = vadd.f32 %v10856_v21, %v10855_v19  ;;  %v10921_v57 = vadd.f32 %v10920_v1, %v10919_v62  ;;  %v10858_v3 = vpop.f32.mrb[70].mxu1  ;;  %v10922_v31 = vpop.f32.mrb[70].mxu0  ;;  %v12902_v19 = vld [vmem:[%s14621_s4 + $0x410] sm:$0xff]  }
 0x35b   : > { %v10859_v41 = vpop.f32.mrb[71].mxu1  ;;  %v10923_v17 = vpop.f32.mrb[71].mxu0 }
 0x35c   : > { %v15140_v28 = vadd.f32 %v10857_v2, %v14875_v39  ;;  %v15143_v44 = vadd.f32 %v10921_v57, %v15004_v61  ;;  %v10860_v22 = vadd.f32 %v10859_v41, %v10858_v3  ;;  %v10924_v24 = vadd.f32 %v10923_v17, %v10922_v31  ;;  %v12875_v39 = vld [vmem:[%s14603_s6 + $0x730] ss:$100 sps:$4 sm:$0xff]   ;;  %v12876_v61 = vld [vmem:[%s14603_s6 + $0xf8] ss:$100 sps:$4 sm:$0xff]  }
 0x35d   : > { %5690 = vmatmul.mubr.bf16.gmra.mrb[176].mxu1 %v12866_v35  ;;  %5787 = vmatmul.mubr.bf16.vlgmr.msra.gmra.mrb[176].mxu0 %v12863_v23  ;;  %v12917_v57 = vld [vmem:[%s14621_s4 + $0x458] sm:$0xff]  }
 0x35e   : > { %v15148_v43 = vadd.f32 %v10860_v22, %v14883_v49  ;;  %v15151_v34 = vadd.f32 %v10924_v24, %v15009_v55  ;;  %11546 = vmatpush3.bf16.msra.mxu0 %v12870_v20  ;;  %5697 = vmatprep.mubr.bf16.mxu1 %v12871_v32  ;;  %v12877_v55 = vld [vmem:[%s14603_s6 + $0x7fc] ss:$100 sps:$4 sm:$0xff]  }
 0x35f   : > { %5794 = vmatprep.mubr.bf16.mxu0 %v12873_v36  ;;  %11547 = vmatprep.subr.bf16.mxu0 %v12885_v25  ;;  %v12918_v3 = vld [vmem:[%s14621_s4 + $0x418] sm:$0xff]  }
 0x360   : > { %v10861_v50 = vpop.f32.mrb[72].mxu1  ;;  %v10925_v53 = vpop.f32.mrb[72].mxu0  ;;  %v12881_v32 = vld [vmem:[%s14603_s6 + $0x7f8] ss:$100 sps:$4 sm:$0xff]  }
 0x361   : > { %v10862_v40 = vpop.f32.mrb[73].mxu1  ;;  %v10926_v6 = vpop.f32.mrb[73].mxu0 }
 0x362   : > { %v10863_v42 = vadd.f32 %v10862_v40, %v10861_v50  ;;  %v10927_v49 = vadd.f32 %v10926_v6, %v10925_v53  ;;  %v10864_v52 = vpop.f32.mrb[74].mxu1  ;;  %v10928_v48 = vpop.f32.mrb[74].mxu0  ;;  %11548 = vmatpush3.bf16.msra.mxu0 %v12886_v60  ;;  %v12887_v60 = vld [vmem:[%s14603_s6 + $0x8c4] ss:$100 sps:$4 sm:$0xff]  }
 0x363   : > { %v10865_v23 = vpop.f32.mrb[75].mxu1  ;;  %v10929_v35 = vpop.f32.mrb[75].mxu0  ;;  %11549 = vmatprep.subr.bf16.mxu0 %v12901_v30  ;;  %v12889_v30 = vld [vmem:[%s14603_s6 + $0x28c] ss:$100 sps:$4 sm:$0xff]   ;;  %v12934_v50 = vld [vmem:[%s14621_s4 + $0x420] sm:$0xff]  }
 0x364   : > { %v15159_v62 = vadd.f32 %v10863_v42, %v14891_v59  ;;  %v15162_v21 = vadd.f32 %v10927_v49, %v15021_v18  ;;  %v10866_v1 = vadd.f32 %v10865_v23, %v10864_v52  ;;  %v10930_v2 = vadd.f32 %v10929_v35, %v10928_v48  ;;  %v12933_v59 = vld [vmem:[%s14621_s4 + $0x460] sm:$0xff]   ;;  %v12949_v53 = vld [vmem:[%s14621_s4 + $0x468] sm:$0xff]  }
 0x365   : > { %5698 = vmatmul.mubr.bf16.gmra.mrb[180].mxu1 %v12875_v39  ;;  %5795 = vmatmul.mubr.bf16.gmra.mrb[180].mxu0 %v12876_v61  ;;  %v12882_v18 = vld [vmem:[%s14603_s6 + $0x1c0] ss:$100 sps:$4 sm:$0xff]   ;;  %v12950_v52 = vld [vmem:[%s14621_s4 + $0x428] sm:$0xff]  }
 0x366   : > { %v15167_v31 = vadd.f32 %v10866_v1, %v14898_v4  ;;  %v15170_v20 = vadd.f32 %v10930_v2, %v15028_v29  ;;  %5705 = vmatprep.mubr.bf16.mxu1 %v12877_v55  ;;  %5802 = vmatprep.mubr.bf16.mxu0 %v12879_v13  ;;  %v12891_v13 = vld [vmem:[%s14603_s6 + $0x8c0] ss:$100 sps:$4 sm:$0xff]  }
 0x367   : > { %11550 = vmatpush3.bf16.msra.mxu0 %v12902_v19 }
 0x368   : > { %v10867_v41 = vpop.f32.mrb[76].mxu1  ;;  %v10931_v17 = vpop.f32.mrb[76].mxu0  ;;  %11551 = vmatprep.subr.bf16.mxu0 %v12917_v57 }
 0x369   : > { %v10868_v36 = vpop.f32.mrb[77].mxu1  ;;  %v10932_v25 = vpop.f32.mrb[77].mxu0 }
 0x36a   : > { %v10869_v4 = vadd.f32 %v10868_v36, %v10867_v41  ;;  %v10933_v22 = vadd.f32 %v10932_v25, %v10931_v17  ;;  %v10870_v24 = vpop.f32.mrb[78].mxu1  ;;  %v10934_v29 = vpop.f32.mrb[78].mxu0  ;;  %v12966_v41 = vld [vmem:[%s14621_s4 + $0x430] sm:$0xff]  }
 0x36b   : > { %v10871_v39 = vpop.f32.mrb[79].mxu1  ;;  %v10935_v61 = vpop.f32.mrb[79].mxu0  ;;  %11552 = vmatpush3.bf16.msra.mxu0 %v12918_v3  ;;  %v12893_v3 = vld [vmem:[%s14603_s6 + $0x98c] ss:$100 sps:$4 sm:$0xff]  }
 0x36c   : > { %v15180_v40 = vadd.f32 %v10869_v4, %v14907_v15  ;;  %v15183_v6 = vadd.f32 %v10933_v22, %v15040_v5  ;;  %v10872_v42 = vadd.f32 %v10871_v39, %v10870_v24  ;;  %v10936_v49 = vadd.f32 %v10935_v61, %v10934_v29  ;;  %11553 = vmatprep.subr.bf16.mxu0 %v12933_v59  ;;  %v12965_v15 = vld [vmem:[%s14621_s4 + $0x470] sm:$0xff]   ;;  %v12892_v5 = vld [vmem:[%s14603_s6 + $0x288] ss:$100 sps:$4 sm:$0xff]   ;;  %v12981_v22 = vld [vmem:[%s14621_s4 + $0x478] sm:$0xff]  }
 0x36d   : > { %5706 = vmatmul.mubr.bf16.gmra.mrb[184].mxu1 %v12881_v32  ;;  %5803 = vmatmul.mubr.bf16.gmra.mrb[184].mxu0 %v12882_v18  ;;  %v12895_v59 = vld [vmem:[%s14603_s6 + $0x354] ss:$100 sps:$4 sm:$0xff]  }
 0x36e   : > { %v15187_v48 = vadd.f32 %v10872_v42, %v14915_v27  ;;  %v15190_v55 = vadd.f32 %v10936_v49, %v15045_v0  ;;  %5713 = vmatprep.mubr.bf16.mxu1 %v12887_v60  ;;  %5810 = vmatprep.mubr.bf16.mxu0 %v12889_v30  ;;  %v12982_v24 = vld [vmem:[%s14621_s4 + $0x438] sm:$0xff]   ;;  %v12898_v30 = vld [vmem:[%s14603_s6 + $0x350] ss:$100 sps:$4 sm:$0xff]  }
 0x36f   : > { %11554 = vmatpush3.bf16.msra.mxu0 %v12934_v50 }
 0x370   : > { %v10937_v23 = vpop.f32.mrb[80].mxu0  ;;  %v11001_v35 = vpop.f32.mrb[80].mxu1  ;;  %11555 = vmatprep.subr.bf16.mxu0 %v12949_v53 }
 0x371   : > { %v10938_v19 = vpop.f32.mrb[81].mxu0  ;;  %v11002_v1 = vpop.f32.mrb[81].mxu1 }
 0x372   : > { %v10939_v27 = vadd.f32 %v10938_v19, %v10937_v23  ;;  %v11003_v2 = vadd.f32 %v11002_v1, %v11001_v35  ;;  %v10940_v57 = vpop.f32.mrb[82].mxu0  ;;  %v11004_v0 = vpop.f32.mrb[82].mxu1 }
 0x373   : > { %v10941_v32 = vpop.f32.mrb[83].mxu0  ;;  %v11005_v18 = vpop.f32.mrb[83].mxu1  ;;  %11556 = vmatpush3.bf16.msra.mxu0 %v12950_v52 }
 0x374   : > { %v15199_v17 = vadd.f32 %v10939_v27, %v15055_v33  ;;  %v15202_v36 = vadd.f32 %v11003_v2, %v15058_v26  ;;  %v10942_v25 = vadd.f32 %v10941_v32, %v10940_v57  ;;  %v11006_v4 = vadd.f32 %v11005_v18, %v11004_v0  ;;  %11557 = vmatprep.subr.bf16.mxu0 %v12965_v15  ;;  %v12997_v33 = vld [vmem:[%s14621_s4 + $0x540] sm:$0xff]   ;;  %v12897_v26 = vld [vmem:[%s14603_s6 + $0x988] ss:$100 sps:$4 sm:$0xff]   ;;  %v12903_v15 = vld [vmem:[%s14603_s6 + $0xa54] ss:$100 sps:$4 sm:$0xff]  }
 0x375   : > { %5714 = vmatmul.mubr.bf16.gmra.mrb[188].mxu1 %v12891_v13  ;;  %5811 = vmatmul.mubr.bf16.gmra.mrb[188].mxu0 %v12892_v5  ;;  %v12908_v57 = vld [vmem:[%s14603_s6 + $0x418] ss:$100 sps:$4 sm:$0xff]  }
 0x376   : > { %v15207_v29 = vadd.f32 %v10942_v25, %v15063_v54  ;;  %v15210_v60 = vadd.f32 %v11006_v4, %v15066_v37  ;;  %5721 = vmatprep.mubr.bf16.mxu1 %v12893_v3  ;;  %5818 = vmatprep.mubr.bf16.mxu0 %v12895_v59  ;;  %v12905_v37 = vld [vmem:[%s14603_s6 + $0x41c] ss:$100 sps:$4 sm:$0xff]  }
 0x377   : > { %11558 = vmatpush3.bf16.msra.mxu0 %v12966_v41  ;;  %v12909_v4 = vld [vmem:[%s14603_s6 + $0xb1c] ss:$100 sps:$4 sm:$0xff]  }
 0x378   : > { %v10943_v39 = vpop.f32.mrb[84].mxu0  ;;  %v11007_v61 = vpop.f32.mrb[84].mxu1  ;;  %11559 = vmatprep.subr.bf16.mxu0 %v12981_v22 }
 0x379   : > { %v10944_v50 = vpop.f32.mrb[85].mxu0  ;;  %v11008_v53 = vpop.f32.mrb[85].mxu1 }
 0x37a   : > { %v10945_v42 = vadd.f32 %v10944_v50, %v10943_v39  ;;  %v11009_v49 = vadd.f32 %v11008_v53, %v11007_v61  ;;  %v10946_v54 = vpop.f32.mrb[86].mxu0  ;;  %v11010_v52 = vpop.f32.mrb[86].mxu1  ;;  %v12913_v50 = vld [vmem:[%s14603_s6 + $0xb18] ss:$100 sps:$4 sm:$0xff]  }
 0x37b   : > { %v10947_v13 = vpop.f32.mrb[87].mxu0  ;;  %v11011_v5 = vpop.f32.mrb[87].mxu1  ;;  %11560 = vmatpush3.bf16.msra.mxu0 %v12982_v24 }
 0x37c   : > { %v15218_v23 = vadd.f32 %v10945_v42, %v15074_v51  ;;  %v15221_v35 = vadd.f32 %v11009_v49, %v15077_v7  ;;  %v10948_v19 = vadd.f32 %v10947_v13, %v10946_v54  ;;  %v11012_v1 = vadd.f32 %v11011_v5, %v11010_v52  ;;  %11769 = vmatprep.subr.bf16.mxu0 %v12997_v33  ;;  %v12907_v51 = vld [vmem:[%s14603_s6 + $0xa50] ss:$100 sps:$4 sm:$0xff]   ;;  %v12919_v13 = vld [vmem:[%s14603_s6 + $0xbe4] ss:$100 sps:$4 sm:$0xff]  }
 0x37d   : > { %5722 = vmatmul.mubr.bf16.gmra.mrb[192].mxu1 %v12897_v26  ;;  %5819 = vmatmul.mubr.bf16.gmra.mrb[192].mxu0 %v12898_v30  ;;  %v12921_v5 = vld [vmem:[%s14603_s6 + $0x5ac] ss:$100 sps:$4 sm:$0xff]  }
 0x37e   : > { %v15224_v27 = vadd.f32 %v10948_v19, %v15080_v10  ;;  %v15227_v2 = vadd.f32 %v11012_v1, %v15083_v12  ;;  %5729 = vmatprep.mubr.bf16.mxu1 %v12903_v15  ;;  %5826 = vmatprep.mubr.bf16.mxu0 %v12905_v37  ;;  %v12911_v10 = vld [vmem:[%s14603_s6 + $0x4e4] ss:$100 sps:$4 sm:$0xff]  }
 0x380   : > { %v10949_v0 = vpop.f32.mrb[88].mxu0  ;;  %v11013_v7 = vpop.f32.mrb[88].mxu1 }
 0x381   : > { %v10950_v3 = vpop.f32.mrb[89].mxu0  ;;  %v11014_v59 = vpop.f32.mrb[89].mxu1 }
 0x382   : > { %v10951_v32 = vadd.f32 %v10950_v3, %v10949_v0  ;;  %v11015_v18 = vadd.f32 %v11014_v59, %v11013_v7  ;;  %v10952_v41 = vpop.f32.mrb[90].mxu0  ;;  %v11016_v25 = vpop.f32.mrb[90].mxu1 }
 0x383   : > { %v10953_v22 = vpop.f32.mrb[91].mxu0  ;;  %v11017_v24 = vpop.f32.mrb[91].mxu1 }
 0x384   : > { %v15234_v12 = vadd.f32 %v10951_v32, %v15090_v14  ;;  %v15237_v33 = vadd.f32 %v11015_v18, %v15093_v9  ;;  %v10954_v26 = vadd.f32 %v10953_v22, %v10952_v41  ;;  %v11018_v30 = vadd.f32 %v11017_v24, %v11016_v25  ;;  %v12914_v14 = vld [vmem:[%s14603_s6 + $0x4e0] ss:$100 sps:$4 sm:$0xff]   ;;  %v12924_v18 = vld [vmem:[%s14603_s6 + $0x5a8] ss:$100 sps:$4 sm:$0xff]   ;;  %v12925_v22 = vld [vmem:[%s14603_s6 + $0x674] ss:$100 sps:$4 sm:$0xff]  }
 0x385   : > { %5730 = vmatmul.mubr.bf16.gmra.mrb[196].mxu1 %v12907_v51  ;;  %5827 = vmatmul.mubr.bf16.gmra.mrb[196].mxu0 %v12908_v57  ;;  %v12929_v24 = vld [vmem:[%s14603_s6 + $0x3c] ss:$100 sps:$4 sm:$0xff]  }
 0x386   : > { %v15240_v39 = vadd.f32 %v10954_v26, %v15096_v46  ;;  %v15243_v61 = vadd.f32 %v11018_v30, %v15099_v47  ;;  %5737 = vmatprep.mubr.bf16.mxu1 %v12909_v4  ;;  %5834 = vmatprep.mubr.bf16.mxu0 %v12911_v10 }
 0x388   : > { %v10955_v53 = vpop.f32.mrb[92].mxu0  ;;  %v11019_v42 = vpop.f32.mrb[92].mxu1 }
 0x389   : > { %v10956_v9 = vpop.f32.mrb[93].mxu0  ;;  %v11020_v49 = vpop.f32.mrb[93].mxu1 }
 0x38a   : > { %v10957_v54 = vadd.f32 %v10956_v9, %v10955_v53  ;;  %v11021_v52 = vadd.f32 %v11020_v49, %v11019_v42  ;;  %v10958_v15 = vpop.f32.mrb[94].mxu0  ;;  %v11022_v37 = vpop.f32.mrb[94].mxu1 }
 0x38b   : > { %v10959_v19 = vpop.f32.mrb[95].mxu0  ;;  %v11023_v46 = vpop.f32.mrb[95].mxu1 }
 0x38c   : > { %v15250_v47 = vadd.f32 %v10957_v54, %v15106_v38  ;;  %v15253_v1 = vadd.f32 %v11021_v52, %v15109_v8  ;;  %v10960_v51 = vadd.f32 %v10959_v19, %v10958_v15  ;;  %v11024_v57 = vadd.f32 %v11023_v46, %v11022_v37  ;;  %v12923_v8 = vld [vmem:[%s14603_s6 + $0xbe0] ss:$100 sps:$4 sm:$0xff]   ;;  %v12927_v54 = vld [vmem:[%s14603_s6 + $0x38] ss:$100 sps:$4 sm:$0xff]   ;;  %v12930_v52 = vld [vmem:[%s14603_s6 + $0x670] ss:$100 sps:$4 sm:$0xff]  }
 0x38d   : > { %5738 = vmatmul.mubr.bf16.gmra.mrb[200].mxu1 %v12913_v50  ;;  %5835 = vmatmul.mubr.bf16.gmra.mrb[200].mxu0 %v12914_v14  ;;  %v12932_v19 = vld [vmem:[%s14621_s4 + $0x480] sm:$0xff]  }
 0x38e   : > { %v15256_v0 = vadd.f32 %v10960_v51, %v15112_v16  ;;  %v15259_v7 = vadd.f32 %v11024_v57, %v15115_v11  ;;  %5745 = vmatprep.mubr.bf16.mxu1 %v12919_v13  ;;  %5842 = vmatprep.mubr.bf16.mxu0 %v12921_v5  ;;  %v12937_v51 = vld [vmem:[%s14603_s6 + $0x104] ss:$100 sps:$4 sm:$0xff]  }
 0x38f   : > { %v12947_v57 = vld [vmem:[%s14621_s4 + $0x4c8] sm:$0xff]  }
 0x390   : > { %v10961_v3 = vpop.f32.mrb[96].mxu0  ;;  %v11025_v38 = vpop.f32.mrb[96].mxu1 }
 0x391   : > { %v10962_v59 = vpop.f32.mrb[97].mxu0  ;;  %v11026_v32 = vpop.f32.mrb[97].mxu1 }
 0x392   : > { %v10963_v41 = vadd.f32 %v10962_v59, %v10961_v3  ;;  %v11027_v25 = vadd.f32 %v11026_v32, %v11025_v38  ;;  %v10964_v4 = vpop.f32.mrb[98].mxu0  ;;  %v11028_v10 = vpop.f32.mrb[98].mxu1 }
 0x393   : > { %v10965_v26 = vpop.f32.mrb[99].mxu0  ;;  %v11029_v16 = vpop.f32.mrb[99].mxu1 }
 0x394   : > { %v15266_v11 = vadd.f32 %v10963_v41, %v15122_v63  ;;  %v15269_v30 = vadd.f32 %v11027_v25, %v15125_v45  ;;  %v10966_v50 = vadd.f32 %v10965_v26, %v10964_v4  ;;  %v11030_v14 = vadd.f32 %v11029_v16, %v11028_v10 }
 0x395   : > { %5746 = vmatmul.mubr.bf16.gmra.mrb[204].mxu1 %v12923_v8  ;;  %5843 = vmatmul.mubr.bf16.gmra.mrb[204].mxu0 %v12924_v18 }
 0x396   : > { %v15272_v53 = vadd.f32 %v10966_v50, %v15128_v56  ;;  %v15275_v42 = vadd.f32 %v11030_v14, %v15131_v58  ;;  %5850 = vmatprep.mubr.bf16.mxu0 %v12925_v22  ;;  %5947 = vmatprep.mubr.bf16.mxu1 %v12929_v24  ;;  %v12935_v56 = vld [vmem:[%s14603_s6 + $0x73c] ss:$100 sps:$4 sm:$0xff]   ;;  %v12941_v50 = vld [vmem:[%s14603_s6 + $0x804] ss:$100 sps:$4 sm:$0xff]   ;;  %v12943_v14 = vld [vmem:[%s14603_s6 + $0x1cc] ss:$100 sps:$4 sm:$0xff]  }
 0x397   : > { %v12939_v22 = vld [vmem:[%s14603_s6 + $0x738] ss:$100 sps:$4 sm:$0xff]   ;;  %v12940_v24 = vld [vmem:[%s14603_s6 + $0x100] ss:$100 sps:$4 sm:$0xff]  }
 0x398   : > { %v10967_v63 = vpop.f32.mrb[100].mxu0  ;;  %v11031_v9 = vpop.f32.mrb[100].mxu1 }
 0x399   : > { %v10968_v45 = vpop.f32.mrb[101].mxu0  ;;  %v11032_v49 = vpop.f32.mrb[101].mxu1 }
 0x39a   : > { %v10969_v15 = vadd.f32 %v10968_v45, %v10967_v63  ;;  %v11033_v37 = vadd.f32 %v11032_v49, %v11031_v9  ;;  %v10970_v13 = vpop.f32.mrb[102].mxu0  ;;  %v11034_v5 = vpop.f32.mrb[102].mxu1  ;;  %v12964_v45 = vld [vmem:[%s14621_s4 + $0x490] sm:$0xff]  }
 0x39b   : > { %v10971_v46 = vpop.f32.mrb[103].mxu0  ;;  %v11035_v58 = vpop.f32.mrb[103].mxu1 }
 0x39c   : > { %v15284_v3 = vadd.f32 %v10969_v15, %v15140_v28  ;;  %v15287_v38 = vadd.f32 %v11033_v37, %v15143_v44  ;;  %v10972_v59 = vadd.f32 %v10971_v46, %v10970_v13  ;;  %v11036_v32 = vadd.f32 %v11035_v58, %v11034_v5  ;;  %v12948_v28 = vld [vmem:[%s14621_s4 + $0x488] sm:$0xff]   ;;  %v12963_v44 = vld [vmem:[%s14621_s4 + $0x4d0] sm:$0xff]   ;;  %v12979_v37 = vld [vmem:[%s14621_s4 + $0x4d8] sm:$0xff]  }
 0x39d   : > { %5851 = vmatmul.mubr.bf16.gmra.mrb[208].mxu0 %v12930_v52  ;;  %5948 = vmatmul.mubr.bf16.vlgmr.msra.gmra.mrb[208].mxu1 %v12927_v54 }
 0x39e   : > { %v15290_v8 = vadd.f32 %v10972_v59, %v15148_v43  ;;  %v15293_v18 = vadd.f32 %v11036_v32, %v15151_v34  ;;  %11658 = vmatpush3.bf16.msra.mxu1 %v12932_v19  ;;  %5858 = vmatprep.mubr.bf16.mxu0 %v12935_v56  ;;  %v12995_v56 = vld [vmem:[%s14621_s4 + $0x4e0] sm:$0xff]  }
 0x39f   : > { %5955 = vmatprep.mubr.bf16.mxu1 %v12937_v51  ;;  %11659 = vmatprep.subr.bf16.mxu1 %v12947_v57  ;;  %v12945_v51 = vld [vmem:[%s14603_s6 + $0x800] ss:$100 sps:$4 sm:$0xff]   ;;  %v12946_v57 = vld [vmem:[%s14603_s6 + $0x1c8] ss:$100 sps:$4 sm:$0xff]  }
 0x3a0   : > { %v10973_v41 = vpop.f32.mrb[104].mxu0  ;;  %v11037_v25 = vpop.f32.mrb[104].mxu1 }
 0x3a1   : > { %v10974_v4 = vpop.f32.mrb[105].mxu0  ;;  %v11038_v10 = vpop.f32.mrb[105].mxu1 }
 0x3a2   : > { %v10975_v43 = vadd.f32 %v10974_v4, %v10973_v41  ;;  %v11039_v26 = vadd.f32 %v11038_v10, %v11037_v25  ;;  %v10976_v34 = vpop.f32.mrb[106].mxu0  ;;  %v11040_v16 = vpop.f32.mrb[106].mxu1  ;;  %11660 = vmatpush3.bf16.msra.mxu1 %v12948_v28  ;;  %v12951_v28 = vld [vmem:[%s14603_s6 + $0x8cc] ss:$100 sps:$4 sm:$0xff]   ;;  %v12996_v4 = vld [vmem:[%s14621_s4 + $0x4a0] sm:$0xff]  }
 0x3a3   : > { %v10977_v63 = vpop.f32.mrb[107].mxu0  ;;  %v11041_v9 = vpop.f32.mrb[107].mxu1  ;;  %11661 = vmatprep.subr.bf16.mxu1 %v12963_v44  ;;  %v12953_v44 = vld [vmem:[%s14603_s6 + $0x294] ss:$100 sps:$4 sm:$0xff]  }
 0x3a4   : > { %v15303_v49 = vadd.f32 %v10975_v43, %v15159_v62  ;;  %v15306_v54 = vadd.f32 %v11039_v26, %v15162_v21  ;;  %v10978_v52 = vadd.f32 %v10977_v63, %v10976_v34  ;;  %v11042_v15 = vadd.f32 %v11041_v9, %v11040_v16  ;;  %v12980_v62 = vld [vmem:[%s14621_s4 + $0x498] sm:$0xff]   ;;  %v13011_v26 = vld [vmem:[%s14621_s4 + $0x4e8] sm:$0xff]  }
 0x3a5   : > { %5859 = vmatmul.mubr.bf16.gmra.mrb[212].mxu0 %v12939_v22  ;;  %5956 = vmatmul.mubr.bf16.gmra.mrb[212].mxu1 %v12940_v24 }
 0x3a6   : > { %v15310_v13 = vadd.f32 %v10978_v52, %v15167_v31  ;;  %v15313_v5 = vadd.f32 %v11042_v15, %v15170_v20  ;;  %5866 = vmatprep.mubr.bf16.mxu0 %v12941_v50  ;;  %5963 = vmatprep.mubr.bf16.mxu1 %v12943_v14  ;;  %v13027_v14 = vld [vmem:[%s14621_s4 + $0x4f0] sm:$0xff]  }
 0x3a7   : > { %11662 = vmatpush3.bf16.msra.mxu1 %v12964_v45  ;;  %v12955_v45 = vld [vmem:[%s14603_s6 + $0x8c8] ss:$100 sps:$4 sm:$0xff]   ;;  %v12956_v52 = vld [vmem:[%s14603_s6 + $0x290] ss:$100 sps:$4 sm:$0xff]  }
 0x3a8   : > { %v10979_v21 = vpop.f32.mrb[108].mxu0  ;;  %v11043_v19 = vpop.f32.mrb[108].mxu1  ;;  %11663 = vmatprep.subr.bf16.mxu1 %v12979_v37 }
 0x3a9   : > { %v10980_v46 = vpop.f32.mrb[109].mxu0  ;;  %v11044_v58 = vpop.f32.mrb[109].mxu1 }
 0x3aa   : > { %v10981_v31 = vadd.f32 %v10980_v46, %v10979_v21  ;;  %v11045_v59 = vadd.f32 %v11044_v58, %v11043_v19  ;;  %v10982_v20 = vpop.f32.mrb[110].mxu0  ;;  %v11046_v32 = vpop.f32.mrb[110].mxu1  ;;  %v12959_v21 = vld [vmem:[%s14603_s6 + $0x35c] ss:$100 sps:$4 sm:$0xff]   ;;  %v13028_v46 = vld [vmem:[%s14621_s4 + $0x4b0] sm:$0xff]  }
 0x3ab   : > { %v10983_v41 = vpop.f32.mrb[111].mxu0  ;;  %v11047_v25 = vpop.f32.mrb[111].mxu1  ;;  %11664 = vmatpush3.bf16.msra.mxu1 %v12980_v62  ;;  %v12957_v62 = vld [vmem:[%s14603_s6 + $0x994] ss:$100 sps:$4 sm:$0xff]  }
 0x3ac   : > { %v15323_v10 = vadd.f32 %v10981_v31, %v15180_v40  ;;  %v15326_v22 = vadd.f32 %v11045_v59, %v15183_v6  ;;  %v10984_v24 = vadd.f32 %v10983_v41, %v10982_v20  ;;  %v11048_v43 = vadd.f32 %v11047_v25, %v11046_v32  ;;  %11665 = vmatprep.subr.bf16.mxu1 %v12995_v56  ;;  %v13012_v40 = vld [vmem:[%s14621_s4 + $0x4a8] sm:$0xff]   ;;  %v13043_v59 = vld [vmem:[%s14621_s4 + $0x4f8] sm:$0xff]  }
 0x3ad   : > { %5867 = vmatmul.mubr.bf16.gmra.mrb[216].mxu0 %v12945_v51  ;;  %5964 = vmatmul.mubr.bf16.gmra.mrb[216].mxu1 %v12946_v57 }
 0x3ae   : > { %v15330_v34 = vadd.f32 %v10984_v24, %v15187_v48  ;;  %v15333_v16 = vadd.f32 %v11048_v43, %v15190_v55  ;;  %5874 = vmatprep.mubr.bf16.mxu0 %v12951_v28  ;;  %5971 = vmatprep.mubr.bf16.mxu1 %v12953_v44  ;;  %v13059_v44 = vld [vmem:[%s14621_s4 + $0x5c0] sm:$0xff]   ;;  %v12962_v24 = vld [vmem:[%s14603_s6 + $0x358] ss:$100 sps:$4 sm:$0xff]  }
 0x3af   : > { %11666 = vmatpush3.bf16.msra.mxu1 %v12996_v4  ;;  %v12961_v4 = vld [vmem:[%s14603_s6 + $0x990] ss:$100 sps:$4 sm:$0xff]  }
 0x3b0   : > { %v11049_v6 = vpop.f32.mrb[112].mxu1  ;;  %v11113_v50 = vpop.f32.mrb[112].mxu0  ;;  %11667 = vmatprep.subr.bf16.mxu1 %v13011_v26 }
 0x3b1   : > { %v11050_v63 = vpop.f32.mrb[113].mxu1  ;;  %v11114_v9 = vpop.f32.mrb[113].mxu0 }
 0x3b2   : > { %v11051_v48 = vadd.f32 %v11050_v63, %v11049_v6  ;;  %v11115_v15 = vadd.f32 %v11114_v9, %v11113_v50  ;;  %v11052_v55 = vpop.f32.mrb[114].mxu1  ;;  %v11116_v37 = vpop.f32.mrb[114].mxu0  ;;  %v12967_v6 = vld [vmem:[%s14603_s6 + $0xa5c] ss:$100 sps:$4 sm:$0xff]   ;;  %v12969_v50 = vld [vmem:[%s14603_s6 + $0x424] ss:$100 sps:$4 sm:$0xff]  }
 0x3b3   : > { %v11053_v19 = vpop.f32.mrb[115].mxu1  ;;  %v11117_v56 = vpop.f32.mrb[115].mxu0  ;;  %11668 = vmatpush3.bf16.msra.mxu1 %v13012_v40 }
 0x3b4   : > { %v11054_v58 = vadd.f32 %v11053_v19, %v11052_v55  ;;  %v11118_v51 = vadd.f32 %v11117_v56, %v11116_v37  ;;  %v15343_v57 = vadd.f32 %v11051_v48, %v15199_v17  ;;  %v15346_v31 = vadd.f32 %v11115_v15, %v15202_v36  ;;  %11669 = vmatprep.subr.bf16.mxu1 %v13027_v14  ;;  %v13044_v17 = vld [vmem:[%s14621_s4 + $0x4b8] sm:$0xff]  }
 0x3b5   : > { %5875 = vmatmul.mubr.bf16.gmra.mrb[220].mxu0 %v12955_v45  ;;  %5972 = vmatmul.mubr.bf16.gmra.mrb[220].mxu1 %v12956_v52 }
 0x3b6   : > { %5882 = vmatprep.mubr.bf16.mxu0 %v12957_v62  ;;  %5979 = vmatprep.mubr.bf16.mxu1 %v12959_v21  ;;  %v15350_v20 = vadd.f32 %v11054_v58, %v15207_v29  ;;  %v15353_v32 = vadd.f32 %v11118_v51, %v15210_v60  ;;  %v12971_v21 = vld [vmem:[%s14603_s6 + $0xa58] ss:$100 sps:$4 sm:$0xff]   ;;  %v12973_v51 = vld [vmem:[%s14603_s6 + $0xb24] ss:$100 sps:$4 sm:$0xff]  }
 0x3b7   : > { %11670 = vmatpush3.bf16.msra.mxu1 %v13028_v46 }
 0x3b8   : > { %v11055_v36 = vpop.f32.mrb[116].mxu1  ;;  %v11119_v28 = vpop.f32.mrb[116].mxu0  ;;  %11671 = vmatprep.subr.bf16.mxu1 %v13043_v59  ;;  %v12975_v59 = vld [vmem:[%s14603_s6 + $0x4ec] ss:$100 sps:$4 sm:$0xff]  }
 0x3b9   : > { %v11056_v41 = vpop.f32.mrb[117].mxu1  ;;  %v11120_v25 = vpop.f32.mrb[117].mxu0 }
 0x3ba   : > { %v11057_v43 = vadd.f32 %v11056_v41, %v11055_v36  ;;  %v11121_v26 = vadd.f32 %v11120_v25, %v11119_v28  ;;  %v11058_v40 = vpop.f32.mrb[118].mxu1  ;;  %v11122_v29 = vpop.f32.mrb[118].mxu0 }
 0x3bb   : > { %v11059_v14 = vpop.f32.mrb[119].mxu1  ;;  %v11123_v60 = vpop.f32.mrb[119].mxu0  ;;  %11672 = vmatpush3.bf16.msra.mxu1 %v13044_v17 }
 0x3bc   : > { %v11060_v63 = vadd.f32 %v11059_v14, %v11058_v40  ;;  %v11124_v9 = vadd.f32 %v11123_v60, %v11122_v29  ;;  %v15362_v45 = vadd.f32 %v11057_v43, %v15218_v23  ;;  %v15365_v52 = vadd.f32 %v11121_v26, %v15221_v35  ;;  %11881 = vmatprep.subr.bf16.mxu1 %v13059_v44  ;;  %v12972_v35 = vld [vmem:[%s14603_s6 + $0x420] ss:$100 sps:$4 sm:$0xff]   ;;  %v12978_v40 = vld [vmem:[%s14603_s6 + $0x4e8] ss:$100 sps:$4 sm:$0xff]   ;;  %v12985_v60 = vld [vmem:[%s14603_s6 + $0x5b4] ss:$100 sps:$4 sm:$0xff]  }
 0x3bd   : > { %5883 = vmatmul.mubr.bf16.gmra.mrb[224].mxu0 %v12961_v4  ;;  %5980 = vmatmul.mubr.bf16.gmra.mrb[224].mxu1 %v12962_v24  ;;  %v12977_v26 = vld [vmem:[%s14603_s6 + $0xb20] ss:$100 sps:$4 sm:$0xff]   ;;  %v12983_v14 = vld [vmem:[%s14603_s6 + $0xbec] ss:$100 sps:$4 sm:$0xff]  }
 0x3be   : > { %5890 = vmatprep.mubr.bf16.mxu0 %v12967_v6  ;;  %5987 = vmatprep.mubr.bf16.mxu1 %v12969_v50  ;;  %v15368_v48 = vadd.f32 %v11060_v63, %v15224_v27  ;;  %v15371_v15 = vadd.f32 %v11124_v9, %v15227_v2 }
 0x3c0   : > { %v11061_v55 = vpop.f32.mrb[120].mxu1  ;;  %v11125_v37 = vpop.f32.mrb[120].mxu0 }
 0x3c1   : > { %v11062_v23 = vpop.f32.mrb[121].mxu1  ;;  %v11126_v62 = vpop.f32.mrb[121].mxu0 }
 0x3c2   : > { %v11063_v19 = vadd.f32 %v11062_v23, %v11061_v55  ;;  %v11127_v56 = vadd.f32 %v11126_v62, %v11125_v37  ;;  %v11064_v46 = vpop.f32.mrb[122].mxu1  ;;  %v11128_v58 = vpop.f32.mrb[122].mxu0 }
 0x3c3   : > { %v11065_v17 = vpop.f32.mrb[123].mxu1  ;;  %v11129_v36 = vpop.f32.mrb[123].mxu0 }
 0x3c4   : > { %v11066_v27 = vadd.f32 %v11065_v17, %v11064_v46  ;;  %v11130_v28 = vadd.f32 %v11129_v36, %v11128_v58  ;;  %v15378_v2 = vadd.f32 %v11063_v19, %v15234_v12  ;;  %v15381_v44 = vadd.f32 %v11127_v56, %v15237_v33  ;;  %v12987_v56 = vld [vmem:[%s14603_s6 + $0xbe8] ss:$100 sps:$4 sm:$0xff]   ;;  %v12988_v46 = vld [vmem:[%s14603_s6 + $0x5b0] ss:$100 sps:$4 sm:$0xff]   ;;  %v12989_v17 = vld [vmem:[%s14603_s6 + $0x67c] ss:$100 sps:$4 sm:$0xff]  }
 0x3c5   : > { %5891 = vmatmul.mubr.bf16.gmra.mrb[228].mxu0 %v12971_v21  ;;  %5988 = vmatmul.mubr.bf16.gmra.mrb[228].mxu1 %v12972_v35  ;;  %v12993_v36 = vld [vmem:[%s14603_s6 + $0x44] ss:$100 sps:$4 sm:$0xff]  }
 0x3c6   : > { %5898 = vmatprep.mubr.bf16.mxu0 %v12973_v51  ;;  %5995 = vmatprep.mubr.bf16.mxu1 %v12975_v59  ;;  %v15384_v41 = vadd.f32 %v11066_v27, %v15240_v39  ;;  %v15387_v25 = vadd.f32 %v11130_v28, %v15243_v61 }
 0x3c8   : > { %v11067_v4 = vpop.f32.mrb[124].mxu1  ;;  %v11131_v24 = vpop.f32.mrb[124].mxu0 }
 0x3c9   : > { %v11068_v43 = vpop.f32.mrb[125].mxu1  ;;  %v11132_v12 = vpop.f32.mrb[125].mxu0 }
 0x3ca   : > { %v11069_v33 = vadd.f32 %v11068_v43, %v11067_v4  ;;  %v11133_v29 = vadd.f32 %v11132_v12, %v11131_v24  ;;  %v11070_v6 = vpop.f32.mrb[126].mxu1  ;;  %v11134_v50 = vpop.f32.mrb[126].mxu0 }
 0x3cb   : > { %v11071_v63 = vpop.f32.mrb[127].mxu1  ;;  %v11135_v9 = vpop.f32.mrb[127].mxu0 }
 0x3cc   : > { %v11072_v39 = vadd.f32 %v11071_v63, %v11070_v6  ;;  %v11136_v55 = vadd.f32 %v11135_v9, %v11134_v50  ;;  %v15394_v61 = vadd.f32 %v11069_v33, %v15250_v47  ;;  %v15397_v37 = vadd.f32 %v11133_v29, %v15253_v1  ;;  %v12994_v29 = vld [vmem:[%s14603_s6 + $0x678] ss:$100 sps:$4 sm:$0xff]   ;;  %v12998_v63 = vld [vmem:[%s14621_s4 + $0x500] sm:$0xff]  }
 0x3cd   : > { %5899 = vmatmul.mubr.bf16.gmra.mrb[232].mxu0 %v12977_v26  ;;  %5996 = vmatmul.mubr.bf16.gmra.mrb[232].mxu1 %v12978_v40  ;;  %v12999_v9 = vld [vmem:[%s14603_s6 + $0x744] ss:$100 sps:$4 sm:$0xff]  }
 0x3ce   : > { %5906 = vmatprep.mubr.bf16.mxu0 %v12983_v14  ;;  %6003 = vmatprep.mubr.bf16.mxu1 %v12985_v60  ;;  %v15400_v23 = vadd.f32 %v11072_v39, %v15256_v0  ;;  %v15403_v62 = vadd.f32 %v11136_v55, %v15259_v7  ;;  %v13001_v55 = vld [vmem:[%s14603_s6 + $0x10c] ss:$100 sps:$4 sm:$0xff]  }
 0x3d0   : > { %v11073_v21 = vpop.f32.mrb[128].mxu1  ;;  %v11137_v35 = vpop.f32.mrb[128].mxu0 }
 0x3d1   : > { %v11074_v19 = vpop.f32.mrb[129].mxu1  ;;  %v11138_v47 = vpop.f32.mrb[129].mxu0 }
 0x3d2   : > { %v11075_v1 = vadd.f32 %v11074_v19, %v11073_v21  ;;  %v11139_v58 = vadd.f32 %v11138_v47, %v11137_v35  ;;  %v11076_v51 = vpop.f32.mrb[130].mxu1  ;;  %v11140_v59 = vpop.f32.mrb[130].mxu0 }
 0x3d3   : > { %v11077_v27 = vpop.f32.mrb[131].mxu1  ;;  %v11141_v28 = vpop.f32.mrb[131].mxu0 }
 0x3d4   : > { %v11078_v0 = vadd.f32 %v11077_v27, %v11076_v51  ;;  %v11142_v4 = vadd.f32 %v11141_v28, %v11140_v59  ;;  %v15410_v7 = vadd.f32 %v11075_v1, %v15266_v11  ;;  %v15413_v24 = vadd.f32 %v11139_v58, %v15269_v30  ;;  %v12991_v30 = vld [vmem:[%s14603_s6 + $0x40] ss:$100 sps:$4 sm:$0xff]  }
 0x3d5   : > { %5907 = vmatmul.mubr.bf16.gmra.mrb[236].mxu0 %v12987_v56  ;;  %6004 = vmatmul.mubr.bf16.gmra.mrb[236].mxu1 %v12988_v46  ;;  %v13014_v56 = vld [vmem:[%s14621_s4 + $0x508] sm:$0xff]  }
 0x3d6   : > { %6011 = vmatprep.mubr.bf16.mxu1 %v12989_v17  ;;  %6108 = vmatprep.mubr.bf16.mxu0 %v12993_v36  ;;  %v15416_v43 = vadd.f32 %v11078_v0, %v15272_v53  ;;  %v15419_v12 = vadd.f32 %v11142_v4, %v15275_v42  ;;  %v13013_v42 = vld [vmem:[%s14621_s4 + $0x548] sm:$0xff]   ;;  %v13003_v17 = vld [vmem:[%s14603_s6 + $0x740] ss:$100 sps:$4 sm:$0xff]  }
 0x3d7   : > { %v13004_v36 = vld [vmem:[%s14603_s6 + $0x108] ss:$100 sps:$4 sm:$0xff]  }
 0x3d8   : > { %v11079_v26 = vpop.f32.mrb[132].mxu1  ;;  %v11143_v11 = vpop.f32.mrb[132].mxu0  ;;  %v13005_v4 = vld [vmem:[%s14603_s6 + $0x80c] ss:$100 sps:$4 sm:$0xff]  }
 0x3d9   : > { %v11080_v40 = vpop.f32.mrb[133].mxu1  ;;  %v11144_v33 = vpop.f32.mrb[133].mxu0 }
 0x3da   : > { %v11081_v6 = vadd.f32 %v11080_v40, %v11079_v26  ;;  %v11145_v50 = vadd.f32 %v11144_v33, %v11143_v11  ;;  %v11082_v14 = vpop.f32.mrb[134].mxu1  ;;  %v11146_v60 = vpop.f32.mrb[134].mxu0  ;;  %v13007_v26 = vld [vmem:[%s14603_s6 + $0x1d4] ss:$100 sps:$4 sm:$0xff]  }
 0x3db   : > { %v11083_v53 = vpop.f32.mrb[135].mxu1  ;;  %v11147_v39 = vpop.f32.mrb[135].mxu0  ;;  %v13030_v40 = vld [vmem:[%s14621_s4 + $0x510] sm:$0xff]  }
 0x3dc   : > { %v11084_v21 = vadd.f32 %v11083_v53, %v11082_v14  ;;  %v11148_v35 = vadd.f32 %v11147_v39, %v11146_v60  ;;  %v15428_v19 = vadd.f32 %v11081_v6, %v15284_v3  ;;  %v15431_v47 = vadd.f32 %v11145_v50, %v15287_v38  ;;  %v13029_v3 = vld [vmem:[%s14621_s4 + $0x550] sm:$0xff]  }
 0x3dd   : > { %6012 = vmatmul.mubr.bf16.gmra.mrb[240].mxu1 %v12994_v29  ;;  %6109 = vmatmul.mubr.bf16.vlgmr.msra.gmra.mrb[240].mxu0 %v12991_v30  ;;  %v13045_v29 = vld [vmem:[%s14621_s4 + $0x558] sm:$0xff]  }
 0x3de   : > { %11770 = vmatpush3.bf16.msra.mxu0 %v12998_v63  ;;  %6019 = vmatprep.mubr.bf16.mxu1 %v12999_v9  ;;  %v15435_v46 = vadd.f32 %v11084_v21, %v15290_v8  ;;  %v15438_v1 = vadd.f32 %v11148_v35, %v15293_v18 }
 0x3df   : > { %6116 = vmatprep.mubr.bf16.mxu0 %v13001_v55  ;;  %11771 = vmatprep.subr.bf16.mxu0 %v13013_v42  ;;  %v13009_v55 = vld [vmem:[%s14603_s6 + $0x808] ss:$100 sps:$4 sm:$0xff]   ;;  %v13010_v42 = vld [vmem:[%s14603_s6 + $0x1d0] ss:$100 sps:$4 sm:$0xff]  }
 0x3e0   : > { %v11085_v58 = vpop.f32.mrb[136].mxu1  ;;  %v11149_v38 = vpop.f32.mrb[136].mxu0 }
 0x3e1   : > { %v11086_v51 = vpop.f32.mrb[137].mxu1  ;;  %v11150_v59 = vpop.f32.mrb[137].mxu0 }
 0x3e2   : > { %v11087_v27 = vadd.f32 %v11086_v51, %v11085_v58  ;;  %v11151_v28 = vadd.f32 %v11150_v59, %v11149_v38  ;;  %v11088_v0 = vpop.f32.mrb[138].mxu1  ;;  %v11152_v8 = vpop.f32.mrb[138].mxu0  ;;  %11772 = vmatpush3.bf16.msra.mxu0 %v13014_v56  ;;  %v13062_v51 = vld [vmem:[%s14621_s4 + $0x520] sm:$0xff]  }
 0x3e3   : > { %v11089_v18 = vpop.f32.mrb[139].mxu1  ;;  %v11153_v11 = vpop.f32.mrb[139].mxu0  ;;  %11773 = vmatprep.subr.bf16.mxu0 %v13029_v3  ;;  %v13015_v3 = vld [vmem:[%s14603_s6 + $0x8d4] ss:$100 sps:$4 sm:$0xff]  }
 0x3e4   : > { %v11090_v33 = vadd.f32 %v11089_v18, %v11088_v0  ;;  %v11154_v30 = vadd.f32 %v11153_v11, %v11152_v8  ;;  %v15448_v6 = vadd.f32 %v11087_v27, %v15303_v49  ;;  %v15451_v50 = vadd.f32 %v11151_v28, %v15306_v54  ;;  %v13046_v49 = vld [vmem:[%s14621_s4 + $0x518] sm:$0xff]   ;;  %v13061_v54 = vld [vmem:[%s14621_s4 + $0x560] sm:$0xff]   ;;  %v13077_v28 = vld [vmem:[%s14621_s4 + $0x568] sm:$0xff]  }
 0x3e5   : > { %6020 = vmatmul.mubr.bf16.gmra.mrb[244].mxu1 %v13003_v17  ;;  %6117 = vmatmul.mubr.bf16.gmra.mrb[244].mxu0 %v13004_v36 }
 0x3e6   : > { %6027 = vmatprep.mubr.bf16.mxu1 %v13005_v4  ;;  %6124 = vmatprep.mubr.bf16.mxu0 %v13007_v26  ;;  %v15454_v14 = vadd.f32 %v11090_v33, %v15310_v13  ;;  %v15457_v60 = vadd.f32 %v11154_v30, %v15313_v5  ;;  %v13017_v5 = vld [vmem:[%s14603_s6 + $0x29c] ss:$100 sps:$4 sm:$0xff]   ;;  %v13093_v26 = vld [vmem:[%s14621_s4 + $0x570] sm:$0xff]  }
 0x3e7   : > { %11774 = vmatpush3.bf16.msra.mxu0 %v13030_v40  ;;  %v13019_v40 = vld [vmem:[%s14603_s6 + $0x8d0] ss:$100 sps:$4 sm:$0xff]   ;;  %v13020_v33 = vld [vmem:[%s14603_s6 + $0x298] ss:$100 sps:$4 sm:$0xff]  }
 0x3e8   : > { %v11091_v63 = vpop.f32.mrb[140].mxu1  ;;  %v11155_v9 = vpop.f32.mrb[140].mxu0  ;;  %11775 = vmatprep.subr.bf16.mxu0 %v13045_v29 }
 0x3e9   : > { %v11092_v53 = vpop.f32.mrb[141].mxu1  ;;  %v11156_v39 = vpop.f32.mrb[141].mxu0 }
 0x3ea   : > { %v11093_v21 = vadd.f32 %v11092_v53, %v11091_v63  ;;  %v11157_v13 = vadd.f32 %v11156_v39, %v11155_v9  ;;  %v11094_v35 = vpop.f32.mrb[142].mxu1  ;;  %v11158_v56 = vpop.f32.mrb[142].mxu0  ;;  %v13023_v63 = vld [vmem:[%s14603_s6 + $0x99c] ss:$100 sps:$4 sm:$0xff]   ;;  %v13094_v53 = vld [vmem:[%s14621_s4 + $0x530] sm:$0xff]  }
 0x3eb   : > { %v11095_v58 = vpop.f32.mrb[143].mxu1  ;;  %v11159_v38 = vpop.f32.mrb[143].mxu0  ;;  %11776 = vmatpush3.bf16.msra.mxu0 %v13046_v49 }
 0x3ec   : > { %v11096_v59 = vadd.f32 %v11095_v58, %v11094_v35  ;;  %v11160_v17 = vadd.f32 %v11159_v38, %v11158_v56  ;;  %11777 = vmatprep.subr.bf16.mxu0 %v13061_v54  ;;  %v15467_v36 = vadd.f32 %v11093_v21, %v15323_v10  ;;  %v15470_v27 = vadd.f32 %v11157_v13, %v15326_v22  ;;  %v13078_v10 = vld [vmem:[%s14621_s4 + $0x528] sm:$0xff]   ;;  %v13109_v13 = vld [vmem:[%s14621_s4 + $0x578] sm:$0xff]  }
 0x3ed   : > { %6028 = vmatmul.mubr.bf16.gmra.mrb[248].mxu1 %v13009_v55  ;;  %6125 = vmatmul.mubr.bf16.gmra.mrb[248].mxu0 %v13010_v42 }
 0x3ee   : > { %6035 = vmatprep.mubr.bf16.mxu1 %v13015_v3  ;;  %6132 = vmatprep.mubr.bf16.mxu0 %v13017_v5  ;;  %v15474_v0 = vadd.f32 %v11096_v59, %v15330_v34  ;;  %v15477_v8 = vadd.f32 %v11160_v17, %v15333_v16  ;;  %v13026_v16 = vld [vmem:[%s14603_s6 + $0x364] ss:$100 sps:$4 sm:$0xff]  }
 0x3ef   : > { %11778 = vmatpush3.bf16.msra.mxu0 %v13062_v51  ;;  %v15501_v5 = vld [vmem:[%s14621_s4 + $0x600] sm:$0xff]   ;;  %v13021_v51 = vld [vmem:[%s14603_s6 + $0x998] ss:$100 sps:$4 sm:$0xff]  }
 0x3f0   : > { %v11161_v4 = vpop.f32.mrb[144].mxu0  ;;  %v11225_v22 = vpop.f32.mrb[144].mxu1  ;;  %11779 = vmatprep.subr.bf16.mxu0 %v13077_v28  ;;  %v13024_v59 = vld [vmem:[%s14603_s6 + $0x360] ss:$100 sps:$4 sm:$0xff]  }
 0x3f1   : > { %v11162_v18 = vpop.f32.mrb[145].mxu0  ;;  %v11226_v11 = vpop.f32.mrb[145].mxu1 }
 0x3f2   : > { %v11163_v30 = vadd.f32 %v11162_v18, %v11161_v4  ;;  %v11227_v34 = vadd.f32 %v11226_v11, %v11225_v22  ;;  %v11164_v29 = vpop.f32.mrb[146].mxu0  ;;  %v11228_v49 = vpop.f32.mrb[146].mxu1  ;;  %v13036_v4 = vld [vmem:[%s14603_s6 + $0x42c] ss:$100 sps:$4 sm:$0xff]  }
 0x3f3   : > { %v11165_v9 = vpop.f32.mrb[147].mxu0  ;;  %v11229_v54 = vpop.f32.mrb[147].mxu1  ;;  %11780 = vmatpush3.bf16.msra.mxu0 %v13078_v10  ;;  %v13033_v10 = vld [vmem:[%s14603_s6 + $0xa64] ss:$100 sps:$4 sm:$0xff]  }
 0x3f4   : > { %v15487_v39 = vadd.f32 %v11163_v30, %v15343_v57  ;;  %v15490_v55 = vadd.f32 %v11227_v34, %v15346_v31  ;;  %v11166_v42 = vadd.f32 %v11165_v9, %v11164_v29  ;;  %v11230_v21 = vadd.f32 %v11229_v54, %v11228_v49  ;;  %11781 = vmatprep.subr.bf16.mxu0 %v13093_v26  ;;  %v13110_v57 = vld [vmem:[%s14621_s4 + $0x538] sm:$0xff]  }
 0x3f5   : > { %6036 = vmatmul.mubr.bf16.gmra.mrb[252].mxu1 %v13019_v40  ;;  %6133 = vmatmul.mubr.bf16.gmra.mrb[252].mxu0 %v13020_v33 }
 0x3f6   : > { %v15494_v35 = vadd.f32 %v11166_v42, %v15350_v20  ;;  %v15497_v56 = vadd.f32 %v11230_v21, %v15353_v32  ;;  %6043 = vmatprep.mubr.bf16.mxu1 %v13023_v63  ;;  %6140 = vmatprep.mubr.bf16.mxu0 %v13026_v16  ;;  %v13031_v63 = vld [vmem:[%s14603_s6 + $0xa60] ss:$100 sps:$4 sm:$0xff]   ;;  %v13034_v16 = vld [vmem:[%s14603_s6 + $0x428] ss:$100 sps:$4 sm:$0xff]  }
 0x3f7   : > { %11782 = vmatpush3.bf16.msra.mxu0 %v13094_v53  ;;  %v13039_v21 = vld [vmem:[%s14603_s6 + $0xb2c] ss:$100 sps:$4 sm:$0xff]  }
 0x3f8   : > { %v11167_v31 = vpop.f32.mrb[148].mxu0  ;;  %v11231_v3 = vpop.f32.mrb[148].mxu1  ;;  %11783 = vmatprep.subr.bf16.mxu0 %v13109_v13  ;;  %v13042_v13 = vld [vmem:[%s14603_s6 + $0x4f4] ss:$100 sps:$4 sm:$0xff]  }
 0x3f9   : > { %v11168_v58 = vpop.f32.mrb[149].mxu0  ;;  %v11232_v38 = vpop.f32.mrb[149].mxu1 }
 0x3fa   : > { %v11169_v20 = vadd.f32 %v11168_v58, %v11167_v31  ;;  %v11233_v17 = vadd.f32 %v11232_v38, %v11231_v3  ;;  %v11170_v28 = vpop.f32.mrb[150].mxu0  ;;  %v11234_v32 = vpop.f32.mrb[150].mxu1 }
 0x3fb   : > { %v11171_v22 = vpop.f32.mrb[151].mxu0  ;;  %v11235_v26 = vpop.f32.mrb[151].mxu1  ;;  %11784 = vmatpush3.bf16.msra.mxu0 %v13110_v57 }
 0x3fc   : > { %v15508_v18 = vadd.f32 %v11169_v20, %v15362_v45  ;;  %v15511_v11 = vadd.f32 %v11233_v17, %v15365_v52  ;;  %v11172_v40 = vadd.f32 %v11171_v22, %v11170_v28  ;;  %v11236_v33 = vadd.f32 %v11235_v26, %v11234_v32  ;;  %12065 = vmatprep.subr.bf16.mxu0 %v15501_v5  ;;  %v13040_v28 = vld [vmem:[%s14603_s6 + $0x4f0] ss:$100 sps:$4 sm:$0xff]  }
 0x3fd   : > { %6044 = vmatmul.mubr.bf16.gmra.mrb[0].mxu1 %v13021_v51  ;;  %6141 = vmatmul.mubr.bf16.gmra.mrb[0].mxu0 %v13024_v59  ;;  %v13049_v26 = vld [vmem:[%s14603_s6 + $0xbf4] ss:$100 sps:$4 sm:$0xff]  }
 0x3fe   : > { %v15515_v30 = vadd.f32 %v11172_v40, %v15368_v48  ;;  %v15518_v34 = vadd.f32 %v11236_v33, %v15371_v15  ;;  %6051 = vmatprep.mubr.bf16.mxu1 %v13033_v10  ;;  %6148 = vmatprep.mubr.bf16.mxu0 %v13036_v4  ;;  %v13052_v40 = vld [vmem:[%s14603_s6 + $0x5bc] ss:$100 sps:$4 sm:$0xff]  }
 0x400   : > { %v11173_v45 = vpop.f32.mrb[152].mxu0  ;;  %v11237_v29 = vpop.f32.mrb[152].mxu1 }
 0x401   : > { %v11174_v52 = vpop.f32.mrb[153].mxu0  ;;  %v11238_v49 = vpop.f32.mrb[153].mxu1 }
 0x402   : > { %v11175_v9 = vadd.f32 %v11174_v52, %v11173_v45  ;;  %v11239_v54 = vadd.f32 %v11238_v49, %v11237_v29  ;;  %v11176_v53 = vpop.f32.mrb[154].mxu0  ;;  %v11240_v42 = vpop.f32.mrb[154].mxu1 }
 0x403   : > { %v11177_v57 = vpop.f32.mrb[155].mxu0  ;;  %v11241_v48 = vpop.f32.mrb[155].mxu1 }
 0x404   : > { %v15525_v15 = vadd.f32 %v11175_v9, %v15378_v2  ;;  %v15528_v31 = vadd.f32 %v11239_v54, %v15381_v44  ;;  %v11178_v3 = vadd.f32 %v11177_v57, %v11176_v53  ;;  %v11242_v58 = vadd.f32 %v11241_v48, %v11240_v42  ;;  %v13037_v44 = vld [vmem:[%s14603_s6 + $0xb28] ss:$100 sps:$4 sm:$0xff]   ;;  %v13050_v53 = vld [vmem:[%s14603_s6 + $0x5b8] ss:$100 sps:$4 sm:$0xff]  }
 0x405   : > { %6052 = vmatmul.mubr.bf16.gmra.mrb[4].mxu1 %v13031_v63  ;;  %6149 = vmatmul.mubr.bf16.gmra.mrb[4].mxu0 %v13034_v16  ;;  %v13055_v48 = vld [vmem:[%s14603_s6 + $0x684] ss:$100 sps:$4 sm:$0xff]  }
 0x406   : > { %v15531_v38 = vadd.f32 %v11178_v3, %v15384_v41  ;;  %v15534_v51 = vadd.f32 %v11242_v58, %v15387_v25  ;;  %6059 = vmatprep.mubr.bf16.mxu1 %v13039_v21  ;;  %6156 = vmatprep.mubr.bf16.mxu0 %v13042_v13  ;;  %v13058_v3 = vld [vmem:[%s14603_s6 + $0x4c] ss:$100 sps:$4 sm:$0xff]  }
 0x408   : > { %v11179_v59 = vpop.f32.mrb[156].mxu0  ;;  %v11243_v2 = vpop.f32.mrb[156].mxu1 }
 0x409   : > { %v11180_v20 = vpop.f32.mrb[157].mxu0  ;;  %v11244_v17 = vpop.f32.mrb[157].mxu1 }
 0x40a   : > { %v11181_v32 = vadd.f32 %v11180_v20, %v11179_v59  ;;  %v11245_v10 = vadd.f32 %v11244_v17, %v11243_v2  ;;  %v11182_v4 = vpop.f32.mrb[158].mxu0  ;;  %v11246_v22 = vpop.f32.mrb[158].mxu1 }
 0x40b   : > { %v11183_v33 = vpop.f32.mrb[159].mxu0  ;;  %v11247_v41 = vpop.f32.mrb[159].mxu1 }
 0x40c   : > { %v15541_v25 = vadd.f32 %v11181_v32, %v15394_v61  ;;  %v15544_v45 = vadd.f32 %v11245_v10, %v15397_v37  ;;  %v11184_v29 = vadd.f32 %v11183_v33, %v11182_v4  ;;  %v11248_v52 = vadd.f32 %v11247_v41, %v11246_v22  ;;  %v13047_v37 = vld [vmem:[%s14603_s6 + $0xbf0] ss:$100 sps:$4 sm:$0xff]   ;;  %v13053_v10 = vld [vmem:[%s14603_s6 + $0x680] ss:$100 sps:$4 sm:$0xff]   ;;  %v13056_v4 = vld [vmem:[%s14603_s6 + $0x48] ss:$100 sps:$4 sm:$0xff]  }
 0x40d   : > { %6060 = vmatmul.mubr.bf16.gmra.mrb[8].mxu1 %v13037_v44  ;;  %6157 = vmatmul.mubr.bf16.gmra.mrb[8].mxu0 %v13040_v28  ;;  %v13060_v41 = vld [vmem:[%s14621_s4 + $0x580] sm:$0xff]  }
 0x40e   : > { %v15547_v49 = vadd.f32 %v11184_v29, %v15400_v23  ;;  %v15550_v63 = vadd.f32 %v11248_v52, %v15403_v62  ;;  %6067 = vmatprep.mubr.bf16.mxu1 %v13049_v26  ;;  %6164 = vmatprep.mubr.bf16.mxu0 %v13052_v40  ;;  %v13068_v52 = vld [vmem:[%s14603_s6 + $0x114] ss:$100 sps:$4 sm:$0xff]  }
 0x410   : > { %v11185_v16 = vpop.f32.mrb[160].mxu0  ;;  %v11249_v61 = vpop.f32.mrb[160].mxu1 }
 0x411   : > { %v11186_v9 = vpop.f32.mrb[161].mxu0  ;;  %v11250_v54 = vpop.f32.mrb[161].mxu1 }
 0x412   : > { %v11187_v42 = vadd.f32 %v11186_v9, %v11185_v16  ;;  %v11251_v21 = vadd.f32 %v11250_v54, %v11249_v61  ;;  %v11188_v13 = vpop.f32.mrb[162].mxu0  ;;  %v11252_v57 = vpop.f32.mrb[162].mxu1  ;;  %v13075_v16 = vld [vmem:[%s14621_s4 + $0x5c8] sm:$0xff]  }
 0x413   : > { %v11189_v58 = vpop.f32.mrb[163].mxu0  ;;  %v11253_v23 = vpop.f32.mrb[163].mxu1 }
 0x414   : > { %v15557_v62 = vadd.f32 %v11187_v42, %v15410_v7  ;;  %v15560_v59 = vadd.f32 %v11251_v21, %v15413_v24  ;;  %v11190_v2 = vadd.f32 %v11189_v58, %v11188_v13  ;;  %v11254_v20 = vadd.f32 %v11253_v23, %v11252_v57  ;;  %v13066_v58 = vld [vmem:[%s14603_s6 + $0x110] ss:$100 sps:$4 sm:$0xff]  }
 0x415   : > { %6068 = vmatmul.mubr.bf16.gmra.mrb[12].mxu1 %v13047_v37  ;;  %6165 = vmatmul.mubr.bf16.gmra.mrb[12].mxu0 %v13050_v53 }
 0x416   : > { %v15563_v17 = vadd.f32 %v11190_v2, %v15416_v43  ;;  %v15566_v44 = vadd.f32 %v11254_v20, %v15419_v12  ;;  %6172 = vmatprep.mubr.bf16.mxu0 %v13055_v48  ;;  %6269 = vmatprep.mubr.bf16.mxu1 %v13058_v3  ;;  %v13065_v43 = vld [vmem:[%s14603_s6 + $0x74c] ss:$100 sps:$4 sm:$0xff]   ;;  %v13071_v20 = vld [vmem:[%s14603_s6 + $0x814] ss:$100 sps:$4 sm:$0xff]  }
 0x417   : > { %v13063_v3 = vld [vmem:[%s14603_s6 + $0x748] ss:$100 sps:$4 sm:$0xff]  }
 0x418   : > { %v11191_v7 = vpop.f32.mrb[164].mxu0  ;;  %v11255_v28 = vpop.f32.mrb[164].mxu1 }
 0x419   : > { %v11192_v24 = vpop.f32.mrb[165].mxu0  ;;  %v11256_v32 = vpop.f32.mrb[165].mxu1 }
 0x41a   : > { %v11193_v22 = vadd.f32 %v11192_v24, %v11191_v7  ;;  %v11257_v26 = vadd.f32 %v11256_v32, %v11255_v28  ;;  %v11194_v40 = vpop.f32.mrb[166].mxu0  ;;  %v11258_v33 = vpop.f32.mrb[166].mxu1  ;;  %v13074_v7 = vld [vmem:[%s14603_s6 + $0x1dc] ss:$100 sps:$4 sm:$0xff]   ;;  %v13092_v32 = vld [vmem:[%s14621_s4 + $0x590] sm:$0xff]  }
 0x41b   : > { %v11195_v29 = vpop.f32.mrb[167].mxu0  ;;  %v11259_v12 = vpop.f32.mrb[167].mxu1 }
 0x41c   : > { %v15575_v61 = vadd.f32 %v11193_v22, %v15428_v19  ;;  %v15578_v9 = vadd.f32 %v11257_v26, %v15431_v47  ;;  %v11196_v54 = vadd.f32 %v11195_v29, %v11194_v40  ;;  %v11260_v37 = vadd.f32 %v11259_v12, %v11258_v33  ;;  %v13076_v19 = vld [vmem:[%s14621_s4 + $0x588] sm:$0xff]   ;;  %v13091_v47 = vld [vmem:[%s14621_s4 + $0x5d0] sm:$0xff]   ;;  %v13107_v40 = vld [vmem:[%s14621_s4 + $0x5d8] sm:$0xff]  }
 0x41d   : > { %6173 = vmatmul.mubr.bf16.gmra.mrb[16].mxu0 %v13053_v10  ;;  %6270 = vmatmul.mubr.bf16.vlgmr.msra.gmra.mrb[16].mxu1 %v13056_v4  ;;  %v13123_v29 = vld [vmem:[%s14621_s4 + $0x5e0] sm:$0xff]  }
 0x41e   : > { %v15581_v53 = vadd.f32 %v11196_v54, %v15435_v46  ;;  %v15584_v42 = vadd.f32 %v11260_v37, %v15438_v1  ;;  %11882 = vmatpush3.bf16.msra.mxu1 %v13060_v41  ;;  %6180 = vmatprep.mubr.bf16.mxu0 %v13065_v43  ;;  %v13072_v54 = vld [vmem:[%s14603_s6 + $0x1d8] ss:$100 sps:$4 sm:$0xff]  }
 0x41f   : > { %6277 = vmatprep.mubr.bf16.mxu1 %v13068_v52  ;;  %11883 = vmatprep.subr.bf16.mxu1 %v13075_v16  ;;  %v13069_v16 = vld [vmem:[%s14603_s6 + $0x810] ss:$100 sps:$4 sm:$0xff]  }
 0x420   : > { %v11197_v21 = vpop.f32.mrb[168].mxu0  ;;  %v11261_v13 = vpop.f32.mrb[168].mxu1 }
 0x421   : > { %v11198_v57 = vpop.f32.mrb[169].mxu0  ;;  %v11262_v48 = vpop.f32.mrb[169].mxu1 }
 0x422   : > { %v11199_v46 = vadd.f32 %v11198_v57, %v11197_v21  ;;  %v11263_v23 = vadd.f32 %v11262_v48, %v11261_v13  ;;  %v11200_v1 = vpop.f32.mrb[170].mxu0  ;;  %v11264_v2 = vpop.f32.mrb[170].mxu1  ;;  %11884 = vmatpush3.bf16.msra.mxu1 %v13076_v19  ;;  %v13084_v21 = vld [vmem:[%s14603_s6 + $0x2a4] ss:$100 sps:$4 sm:$0xff]  }
 0x423   : > { %v11201_v28 = vpop.f32.mrb[171].mxu0  ;;  %v11265_v24 = vpop.f32.mrb[171].mxu1  ;;  %11885 = vmatprep.subr.bf16.mxu1 %v13091_v47  ;;  %v13081_v47 = vld [vmem:[%s14603_s6 + $0x8dc] ss:$100 sps:$4 sm:$0xff]  }
 0x424   : > { %v15594_v10 = vadd.f32 %v11199_v46, %v15448_v6  ;;  %v15597_v4 = vadd.f32 %v11263_v23, %v15451_v50  ;;  %v11202_v22 = vadd.f32 %v11201_v28, %v11200_v1  ;;  %v11266_v26 = vadd.f32 %v11265_v24, %v11264_v2  ;;  %v13108_v6 = vld [vmem:[%s14621_s4 + $0x598] sm:$0xff]   ;;  %v13124_v48 = vld [vmem:[%s14621_s4 + $0x5a0] sm:$0xff]   ;;  %v13138_v1 = vld [vmem:[%s14621_s4 + $0x5e8] sm:$0xff]  }
 0x425   : > { %6181 = vmatmul.mubr.bf16.gmra.mrb[20].mxu0 %v13063_v3  ;;  %6278 = vmatmul.mubr.bf16.gmra.mrb[20].mxu1 %v13066_v58  ;;  %v13153_v28 = vld [vmem:[%s14621_s4 + $0x5f0] sm:$0xff]  }
 0x426   : > { %v15601_v33 = vadd.f32 %v11202_v22, %v15454_v14  ;;  %v15604_v41 = vadd.f32 %v11266_v26, %v15457_v60  ;;  %6188 = vmatprep.mubr.bf16.mxu0 %v13071_v20  ;;  %6285 = vmatprep.mubr.bf16.mxu1 %v13074_v7  ;;  %v13079_v22 = vld [vmem:[%s14603_s6 + $0x8d8] ss:$100 sps:$4 sm:$0xff]   ;;  %v13082_v26 = vld [vmem:[%s14603_s6 + $0x2a0] ss:$100 sps:$4 sm:$0xff]  }
 0x427   : > { %11886 = vmatpush3.bf16.msra.mxu1 %v13092_v32 }
 0x428   : > { %v11203_v50 = vpop.f32.mrb[172].mxu0  ;;  %v11267_v43 = vpop.f32.mrb[172].mxu1  ;;  %11887 = vmatprep.subr.bf16.mxu1 %v13107_v40 }
 0x429   : > { %v11204_v12 = vpop.f32.mrb[173].mxu0  ;;  %v11268_v52 = vpop.f32.mrb[173].mxu1 }
 0x42a   : > { %v11205_v14 = vadd.f32 %v11204_v12, %v11203_v50  ;;  %v11269_v37 = vadd.f32 %v11268_v52, %v11267_v43  ;;  %v11206_v60 = vpop.f32.mrb[174].mxu0  ;;  %v11270_v19 = vpop.f32.mrb[174].mxu1  ;;  %v13087_v50 = vld [vmem:[%s14603_s6 + $0x9a4] ss:$100 sps:$4 sm:$0xff]   ;;  %v13090_v43 = vld [vmem:[%s14603_s6 + $0x36c] ss:$100 sps:$4 sm:$0xff]  }
 0x42b   : > { %v11207_v13 = vpop.f32.mrb[175].mxu0  ;;  %v11271_v57 = vpop.f32.mrb[175].mxu1  ;;  %11888 = vmatpush3.bf16.msra.mxu1 %v13108_v6  ;;  %v13154_v52 = vld [vmem:[%s14621_s4 + $0x5b0] sm:$0xff]  }
 0x42c   : > { %v15614_v3 = vadd.f32 %v11205_v14, %v15467_v36  ;;  %v15617_v58 = vadd.f32 %v11269_v37, %v15470_v27  ;;  %v11208_v46 = vadd.f32 %v11207_v13, %v11206_v60  ;;  %v11272_v23 = vadd.f32 %v11271_v57, %v11270_v19  ;;  %11889 = vmatprep.subr.bf16.mxu1 %v13123_v29  ;;  %v13139_v36 = vld [vmem:[%s14621_s4 + $0x5a8] sm:$0xff]   ;;  %v13168_v60 = vld [vmem:[%s14621_s4 + $0x5f8] sm:$0xff]  }
 0x42d   : > { %6189 = vmatmul.mubr.bf16.gmra.mrb[24].mxu0 %v13069_v16  ;;  %6286 = vmatmul.mubr.bf16.gmra.mrb[24].mxu1 %v13072_v54 }
 0x42e   : > { %v15621_v2 = vadd.f32 %v11208_v46, %v15474_v0  ;;  %v15624_v20 = vadd.f32 %v11272_v23, %v15477_v8  ;;  %6196 = vmatprep.mubr.bf16.mxu0 %v13081_v47  ;;  %6293 = vmatprep.mubr.bf16.mxu1 %v13084_v21  ;;  %v13088_v46 = vld [vmem:[%s14603_s6 + $0x368] ss:$100 sps:$4 sm:$0xff]  }
 0x42f   : > { %11890 = vmatpush3.bf16.msra.mxu1 %v13124_v48  ;;  %v13085_v48 = vld [vmem:[%s14603_s6 + $0x9a0] ss:$100 sps:$4 sm:$0xff]  }
 0x430   : > { %v11273_v27 = vpop.f32.mrb[176].mxu1  ;;  %v11337_v7 = vpop.f32.mrb[176].mxu0  ;;  %11891 = vmatprep.subr.bf16.mxu1 %v13138_v1 }
 0x431   : > { %v11274_v24 = vpop.f32.mrb[177].mxu1  ;;  %v11338_v32 = vpop.f32.mrb[177].mxu0 }
 0x432   : > { %v11275_v0 = vadd.f32 %v11274_v24, %v11273_v27  ;;  %v11339_v40 = vadd.f32 %v11338_v32, %v11337_v7  ;;  %v11276_v8 = vpop.f32.mrb[178].mxu1  ;;  %v11340_v6 = vpop.f32.mrb[178].mxu0  ;;  %v13097_v27 = vld [vmem:[%s14603_s6 + $0xa6c] ss:$100 sps:$4 sm:$0xff]  }
 0x433   : > { %v11277_v29 = vpop.f32.mrb[179].mxu1  ;;  %v11341_v12 = vpop.f32.mrb[179].mxu0  ;;  %11892 = vmatpush3.bf16.msra.mxu1 %v13139_v36 }
 0x434   : > { %v15634_v16 = vadd.f32 %v11275_v0, %v15487_v39  ;;  %v15637_v54 = vadd.f32 %v11339_v40, %v15490_v55  ;;  %v11278_v14 = vadd.f32 %v11277_v29, %v11276_v8  ;;  %v11342_v37 = vadd.f32 %v11341_v12, %v11340_v6  ;;  %11893 = vmatprep.subr.bf16.mxu1 %v13153_v28  ;;  %v13169_v39 = vld [vmem:[%s14621_s4 + $0x5b8] sm:$0xff]  }
 0x435   : > { %6197 = vmatmul.mubr.bf16.gmra.mrb[28].mxu0 %v13079_v22  ;;  %6294 = vmatmul.mubr.bf16.gmra.mrb[28].mxu1 %v13082_v26 }
 0x436   : > { %v15641_v19 = vadd.f32 %v11278_v14, %v15494_v35  ;;  %v15644_v47 = vadd.f32 %v11342_v37, %v15497_v56  ;;  %6204 = vmatprep.mubr.bf16.mxu0 %v13087_v50  ;;  %6301 = vmatprep.mubr.bf16.mxu1 %v13090_v43  ;;  %v13100_v56 = vld [vmem:[%s14603_s6 + $0x434] ss:$100 sps:$4 sm:$0xff]  }
 0x437   : > { %11894 = vmatpush3.bf16.msra.mxu1 %v13154_v52  ;;  %v13098_v43 = vld [vmem:[%s14603_s6 + $0x430] ss:$100 sps:$4 sm:$0xff]  }
 0x438   : > { %v11279_v55 = vpop.f32.mrb[180].mxu1  ;;  %v11343_v21 = vpop.f32.mrb[180].mxu0  ;;  %11895 = vmatprep.subr.bf16.mxu1 %v13168_v60  ;;  %v13103_v37 = vld [vmem:[%s14603_s6 + $0xb34] ss:$100 sps:$4 sm:$0xff]   ;;  %v13106_v60 = vld [vmem:[%s14603_s6 + $0x4fc] ss:$100 sps:$4 sm:$0xff]  }
 0x439   : > { %v11280_v13 = vpop.f32.mrb[181].mxu1  ;;  %v11344_v57 = vpop.f32.mrb[181].mxu0 }
 0x43a   : > { %v11281_v23 = vadd.f32 %v11280_v13, %v11279_v55  ;;  %v11345_v1 = vadd.f32 %v11344_v57, %v11343_v21  ;;  %v11282_v35 = vpop.f32.mrb[182].mxu1  ;;  %v11346_v36 = vpop.f32.mrb[182].mxu0 }
 0x43b   : > { %v11283_v7 = vpop.f32.mrb[183].mxu1  ;;  %v11347_v28 = vpop.f32.mrb[183].mxu0  ;;  %11896 = vmatpush3.bf16.msra.mxu1 %v13169_v39 }
 0x43c   : > { %v15652_v24 = vadd.f32 %v11281_v23, %v15508_v18  ;;  %v15655_v32 = vadd.f32 %v11345_v1, %v15511_v11  ;;  %v11284_v22 = vadd.f32 %v11283_v7, %v11282_v35  ;;  %v11348_v26 = vadd.f32 %v11347_v28, %v11346_v36  ;;  %v13095_v11 = vld [vmem:[%s14603_s6 + $0xa68] ss:$100 sps:$4 sm:$0xff]   ;;  %v13104_v35 = vld [vmem:[%s14603_s6 + $0x4f8] ss:$100 sps:$4 sm:$0xff]  }
 0x43d   : > { %6205 = vmatmul.mubr.bf16.gmra.mrb[32].mxu0 %v13085_v48  ;;  %6302 = vmatmul.mubr.bf16.gmra.mrb[32].mxu1 %v13088_v46  ;;  %v13113_v28 = vld [vmem:[%s14603_s6 + $0xbfc] ss:$100 sps:$4 sm:$0xff]  }
 0x43e   : > { %v15658_v0 = vadd.f32 %v11284_v22, %v15515_v30  ;;  %v15661_v40 = vadd.f32 %v11348_v26, %v15518_v34  ;;  %6212 = vmatprep.mubr.bf16.mxu0 %v13097_v27  ;;  %6309 = vmatprep.mubr.bf16.mxu1 %v13100_v56  ;;  %v13116_v22 = vld [vmem:[%s14603_s6 + $0x5c4] ss:$100 sps:$4 sm:$0xff]  }
 0x440   : > { %v11285_v8 = vpop.f32.mrb[184].mxu1  ;;  %v11349_v18 = vpop.f32.mrb[184].mxu0 }
 0x441   : > { %v11286_v6 = vpop.f32.mrb[185].mxu1  ;;  %v11350_v50 = vpop.f32.mrb[185].mxu0 }
 0x442   : > { %v11287_v29 = vadd.f32 %v11286_v6, %v11285_v8  ;;  %v11351_v12 = vadd.f32 %v11350_v50, %v11349_v18  ;;  %v11288_v52 = vpop.f32.mrb[186].mxu1  ;;  %v11352_v14 = vpop.f32.mrb[186].mxu0 }
 0x443   : > { %v11289_v39 = vpop.f32.mrb[187].mxu1  ;;  %v11353_v30 = vpop.f32.mrb[187].mxu0 }
 0x444   : > { %v15668_v34 = vadd.f32 %v11287_v29, %v15525_v15  ;;  %v15671_v55 = vadd.f32 %v11351_v12, %v15528_v31  ;;  %v11290_v21 = vadd.f32 %v11289_v39, %v11288_v52  ;;  %v11354_v13 = vadd.f32 %v11353_v30, %v11352_v14  ;;  %v13101_v31 = vld [vmem:[%s14603_s6 + $0xb30] ss:$100 sps:$4 sm:$0xff]   ;;  %v13114_v52 = vld [vmem:[%s14603_s6 + $0x5c0] ss:$100 sps:$4 sm:$0xff]  }
 0x445   : > { %6213 = vmatmul.mubr.bf16.gmra.mrb[36].mxu0 %v13095_v11  ;;  %6310 = vmatmul.mubr.bf16.gmra.mrb[36].mxu1 %v13098_v43  ;;  %v13119_v30 = vld [vmem:[%s14603_s6 + $0x68c] ss:$100 sps:$4 sm:$0xff]  }
 0x446   : > { %v15674_v57 = vadd.f32 %v11290_v21, %v15531_v38  ;;  %v15677_v48 = vadd.f32 %v11354_v13, %v15534_v51  ;;  %6220 = vmatprep.mubr.bf16.mxu0 %v13103_v37  ;;  %6317 = vmatprep.mubr.bf16.mxu1 %v13106_v60  ;;  %v13122_v21 = vld [vmem:[%s14603_s6 + $0x54] ss:$100 sps:$4 sm:$0xff]  }
 0x448   : > { %v11291_v46 = vpop.f32.mrb[188].mxu1  ;;  %v11355_v15 = vpop.f32.mrb[188].mxu0 }
 0x449   : > { %v11292_v23 = vpop.f32.mrb[189].mxu1  ;;  %v11356_v1 = vpop.f32.mrb[189].mxu0 }
 0x44a   : > { %v11293_v36 = vadd.f32 %v11292_v23, %v11291_v46  ;;  %v11357_v27 = vadd.f32 %v11356_v1, %v11355_v15  ;;  %v11294_v56 = vpop.f32.mrb[190].mxu1  ;;  %v11358_v7 = vpop.f32.mrb[190].mxu0 }
 0x44b   : > { %v11295_v26 = vpop.f32.mrb[191].mxu1  ;;  %v11359_v38 = vpop.f32.mrb[191].mxu0 }
 0x44c   : > { %v15684_v51 = vadd.f32 %v11293_v36, %v15541_v25  ;;  %v15687_v8 = vadd.f32 %v11357_v27, %v15544_v45  ;;  %v11296_v18 = vadd.f32 %v11295_v26, %v11294_v56  ;;  %v11360_v6 = vadd.f32 %v11359_v38, %v11358_v7  ;;  %v13111_v45 = vld [vmem:[%s14603_s6 + $0xbf8] ss:$100 sps:$4 sm:$0xff]   ;;  %v13117_v27 = vld [vmem:[%s14603_s6 + $0x688] ss:$100 sps:$4 sm:$0xff]   ;;  %v13120_v56 = vld [vmem:[%s14603_s6 + $0x50] ss:$100 sps:$4 sm:$0xff]  }
 0x44d   : > { %6221 = vmatmul.mubr.bf16.gmra.mrb[40].mxu0 %v13101_v31  ;;  %6318 = vmatmul.mubr.bf16.gmra.mrb[40].mxu1 %v13104_v35  ;;  %v13128_v38 = vld [vmem:[%s14603_s6 + $0x754] ss:$100 sps:$4 sm:$0xff]  }
 0x44e   : > { %v15690_v50 = vadd.f32 %v11296_v18, %v15547_v49  ;;  %v15693_v11 = vadd.f32 %v11360_v6, %v15550_v63  ;;  %6228 = vmatprep.mubr.bf16.mxu0 %v13113_v28  ;;  %6325 = vmatprep.mubr.bf16.mxu1 %v13116_v22  ;;  %v13140_v6 = vld [vmem:[%s14621_s4 + $0x608] sm:$0xff]  }
 0x450   : > { %v11297_v43 = vpop.f32.mrb[192].mxu1  ;;  %v11361_v25 = vpop.f32.mrb[192].mxu0 }
 0x451   : > { %v11298_v29 = vpop.f32.mrb[193].mxu1  ;;  %v11362_v12 = vpop.f32.mrb[193].mxu0 }
 0x452   : > { %v11299_v14 = vadd.f32 %v11298_v29, %v11297_v43  ;;  %v11363_v37 = vadd.f32 %v11362_v12, %v11361_v25  ;;  %v11300_v60 = vpop.f32.mrb[194].mxu1  ;;  %v11364_v39 = vpop.f32.mrb[194].mxu0 }
 0x453   : > { %v11301_v13 = vpop.f32.mrb[195].mxu1  ;;  %v11365_v49 = vpop.f32.mrb[195].mxu0 }
 0x454   : > { %v15700_v63 = vadd.f32 %v11299_v14, %v15557_v62  ;;  %v15703_v46 = vadd.f32 %v11363_v37, %v15560_v59  ;;  %v11302_v15 = vadd.f32 %v11301_v13, %v11300_v60  ;;  %v11366_v23 = vadd.f32 %v11365_v49, %v11364_v39  ;;  %v13126_v39 = vld [vmem:[%s14603_s6 + $0x750] ss:$100 sps:$4 sm:$0xff]   ;;  %v13134_v49 = vld [vmem:[%s14603_s6 + $0x81c] ss:$100 sps:$4 sm:$0xff]  }
 0x455   : > { %6229 = vmatmul.mubr.bf16.gmra.mrb[44].mxu0 %v13111_v45  ;;  %6326 = vmatmul.mubr.bf16.gmra.mrb[44].mxu1 %v13114_v52 }
 0x456   : > { %v15706_v1 = vadd.f32 %v11302_v15, %v15563_v17  ;;  %v15709_v31 = vadd.f32 %v11366_v23, %v15566_v44  ;;  %6333 = vmatprep.mubr.bf16.mxu1 %v13119_v30  ;;  %6430 = vmatprep.mubr.bf16.mxu0 %v13122_v21  ;;  %v13131_v44 = vld [vmem:[%s14603_s6 + $0x11c] ss:$100 sps:$4 sm:$0xff]   ;;  %v13137_v15 = vld [vmem:[%s14603_s6 + $0x1e4] ss:$100 sps:$4 sm:$0xff]  }
 0x457   : > { %v13129_v30 = vld [vmem:[%s14603_s6 + $0x118] ss:$100 sps:$4 sm:$0xff]  }
 0x458   : > { %v11303_v62 = vpop.f32.mrb[196].mxu1  ;;  %v11367_v35 = vpop.f32.mrb[196].mxu0 }
 0x459   : > { %v11304_v36 = vpop.f32.mrb[197].mxu1  ;;  %v11368_v59 = vpop.f32.mrb[197].mxu0 }
 0x45a   : > { %v11305_v7 = vadd.f32 %v11304_v36, %v11303_v62  ;;  %v11369_v28 = vadd.f32 %v11368_v59, %v11367_v35  ;;  %v11306_v22 = vpop.f32.mrb[198].mxu1  ;;  %v11370_v26 = vpop.f32.mrb[198].mxu0 }
 0x45b   : > { %v11307_v17 = vpop.f32.mrb[199].mxu1  ;;  %v11371_v18 = vpop.f32.mrb[199].mxu0 }
 0x45c   : > { %v15717_v43 = vadd.f32 %v11305_v7, %v15575_v61  ;;  %v15720_v25 = vadd.f32 %v11369_v28, %v15578_v9  ;;  %v11308_v29 = vadd.f32 %v11307_v17, %v11306_v22  ;;  %v11372_v12 = vadd.f32 %v11371_v18, %v11370_v26  ;;  %v13155_v61 = vld [vmem:[%s14621_s4 + $0x610] sm:$0xff]   ;;  %v13183_v28 = vld [vmem:[%s14621_s4 + $0x620] sm:$0xff]  }
 0x45d   : > { %6334 = vmatmul.mubr.bf16.gmra.mrb[48].mxu1 %v13117_v27  ;;  %6431 = vmatmul.mubr.bf16.vlgmr.msra.gmra.mrb[48].mxu0 %v13120_v56  ;;  %v13170_v27 = vld [vmem:[%s14621_s4 + $0x618] sm:$0xff]   ;;  %v13135_v17 = vld [vmem:[%s14603_s6 + $0x1e0] ss:$100 sps:$4 sm:$0xff]  }
 0x45e   : > { %v15723_v45 = vadd.f32 %v11308_v29, %v15581_v53  ;;  %v15726_v52 = vadd.f32 %v11372_v12, %v15584_v42  ;;  %12066 = vmatpush3.bf16.msra.mxu0 %v15501_v5  ;;  %6341 = vmatprep.mubr.bf16.mxu1 %v13128_v38  ;;  %v13132_v38 = vld [vmem:[%s14603_s6 + $0x818] ss:$100 sps:$4 sm:$0xff]   ;;  %v13146_v29 = vld [vmem:[%s14603_s6 + $0x2ac] ss:$100 sps:$4 sm:$0xff]  }
 0x45f   : > { %6438 = vmatprep.mubr.bf16.mxu0 %v13131_v44  ;;  %12067 = vmatprep.subr.bf16.mxu0 %v13140_v6 }
 0x460   : > { %v11309_v9 = vpop.f32.mrb[200].mxu1  ;;  %v11373_v14 = vpop.f32.mrb[200].mxu0 }
 0x461   : > { %v11310_v37 = vpop.f32.mrb[201].mxu1  ;;  %v11374_v60 = vpop.f32.mrb[201].mxu0 }
 0x462   : > { %v11311_v53 = vadd.f32 %v11310_v37, %v11309_v9  ;;  %v11375_v21 = vadd.f32 %v11374_v60, %v11373_v14  ;;  %v11312_v13 = vpop.f32.mrb[202].mxu1  ;;  %v11376_v42 = vpop.f32.mrb[202].mxu0  ;;  %12068 = vmatpush3.bf16.msra.mxu0 %v13140_v6 }
 0x463   : > { %v11313_v5 = vpop.f32.mrb[203].mxu1  ;;  %v11377_v23 = vpop.f32.mrb[203].mxu0  ;;  %12069 = vmatprep.subr.bf16.mxu0 %v13155_v61 }
 0x464   : > { %v15735_v62 = vadd.f32 %v11311_v53, %v15594_v10  ;;  %v15738_v35 = vadd.f32 %v11375_v21, %v15597_v4  ;;  %v11314_v36 = vadd.f32 %v11313_v5, %v11312_v13  ;;  %v11378_v59 = vadd.f32 %v11377_v23, %v11376_v42  ;;  %v13209_v21 = vld [vmem:[%s14621_s4 + $0x630] sm:$0xff]  }
 0x465   : > { %6342 = vmatmul.mubr.bf16.gmra.mrb[52].mxu1 %v13126_v39  ;;  %6439 = vmatmul.mubr.bf16.gmra.mrb[52].mxu0 %v13129_v30  ;;  %v13196_v39 = vld [vmem:[%s14621_s4 + $0x628] sm:$0xff]  }
 0x466   : > { %v15742_v56 = vadd.f32 %v11314_v36, %v15601_v33  ;;  %v15745_v7 = vadd.f32 %v11378_v59, %v15604_v41  ;;  %6349 = vmatprep.mubr.bf16.mxu1 %v13134_v49  ;;  %6446 = vmatprep.mubr.bf16.mxu0 %v13137_v15  ;;  %v13143_v41 = vld [vmem:[%s14603_s6 + $0x8e4] ss:$100 sps:$4 sm:$0xff]   ;;  %v13152_v59 = vld [vmem:[%s14603_s6 + $0x374] ss:$100 sps:$4 sm:$0xff]  }
 0x467   : > { %12070 = vmatpush3.bf16.msra.mxu0 %v13155_v61  ;;  %v13141_v49 = vld [vmem:[%s14603_s6 + $0x8e0] ss:$100 sps:$4 sm:$0xff]   ;;  %v13144_v15 = vld [vmem:[%s14603_s6 + $0x2a8] ss:$100 sps:$4 sm:$0xff]  }
 0x468   : > { %v11315_v10 = vpop.f32.mrb[204].mxu1  ;;  %v11379_v4 = vpop.f32.mrb[204].mxu0  ;;  %12071 = vmatprep.subr.bf16.mxu0 %v13170_v27 }
 0x469   : > { %v11316_v22 = vpop.f32.mrb[205].mxu1  ;;  %v11380_v26 = vpop.f32.mrb[205].mxu0 }
 0x46a   : > { %v11317_v18 = vadd.f32 %v11316_v22, %v11315_v10  ;;  %v11381_v33 = vadd.f32 %v11380_v26, %v11379_v4  ;;  %v11318_v44 = vpop.f32.mrb[206].mxu1  ;;  %v11382_v6 = vpop.f32.mrb[206].mxu0 }
 0x46b   : > { %v11319_v12 = vpop.f32.mrb[207].mxu1  ;;  %v11383_v9 = vpop.f32.mrb[207].mxu0  ;;  %12072 = vmatpush3.bf16.msra.mxu0 %v13170_v27 }
 0x46c   : > { %v15753_v61 = vadd.f32 %v11317_v18, %v15614_v3  ;;  %v15756_v14 = vadd.f32 %v11381_v33, %v15617_v58  ;;  %v11320_v37 = vadd.f32 %v11319_v12, %v11318_v44  ;;  %v11384_v60 = vadd.f32 %v11383_v9, %v11382_v6  ;;  %12073 = vmatprep.subr.bf16.mxu0 %v13183_v28  ;;  %v13147_v6 = vld [vmem:[%s14603_s6 + $0x9a8] ss:$100 sps:$4 sm:$0xff]  }
 0x46d   : > { %6350 = vmatmul.mubr.bf16.gmra.mrb[56].mxu1 %v13132_v38  ;;  %6447 = vmatmul.mubr.bf16.gmra.mrb[56].mxu0 %v13135_v17  ;;  %v13222_v38 = vld [vmem:[%s14621_s4 + $0x638] sm:$0xff]  }
 0x46e   : > { %v15760_v30 = vadd.f32 %v11320_v37, %v15621_v2  ;;  %v15763_v53 = vadd.f32 %v11384_v60, %v15624_v20  ;;  %6357 = vmatprep.mubr.bf16.mxu1 %v13143_v41  ;;  %6454 = vmatprep.mubr.bf16.mxu0 %v13146_v29  ;;  %v13149_v20 = vld [vmem:[%s14603_s6 + $0x9ac] ss:$100 sps:$4 sm:$0xff]   ;;  %v13158_v37 = vld [vmem:[%s14603_s6 + $0xa74] ss:$100 sps:$4 sm:$0xff]   ;;  %v13161_v60 = vld [vmem:[%s14603_s6 + $0x43c] ss:$100 sps:$4 sm:$0xff]  }
 0x46f   : > { %12074 = vmatpush3.bf16.msra.mxu0 %v13183_v28  ;;  %v13150_v41 = vld [vmem:[%s14603_s6 + $0x370] ss:$100 sps:$4 sm:$0xff]  }
 0x470   : > { %v11385_v3 = vpop.f32.mrb[208].mxu0  ;;  %v11449_v58 = vpop.f32.mrb[208].mxu1  ;;  %12075 = vmatprep.subr.bf16.mxu0 %v13196_v39 }
 0x471   : > { %v11386_v13 = vpop.f32.mrb[209].mxu0  ;;  %v11450_v42 = vpop.f32.mrb[209].mxu1 }
 0x472   : > { %v11387_v5 = vadd.f32 %v11386_v13, %v11385_v3  ;;  %v11451_v2 = vadd.f32 %v11450_v42, %v11449_v58  ;;  %v11388_v23 = vpop.f32.mrb[210].mxu0  ;;  %v11452_v36 = vpop.f32.mrb[210].mxu1 }
 0x473   : > { %v11389_v27 = vpop.f32.mrb[211].mxu0  ;;  %v11453_v10 = vpop.f32.mrb[211].mxu1  ;;  %12076 = vmatpush3.bf16.msra.mxu0 %v13196_v39 }
 0x474   : > { %v15771_v4 = vadd.f32 %v11387_v5, %v15634_v16  ;;  %v15774_v28 = vadd.f32 %v11451_v2, %v15637_v54  ;;  %v11390_v22 = vadd.f32 %v11389_v27, %v11388_v23  ;;  %v11454_v26 = vadd.f32 %v11453_v10, %v11452_v36  ;;  %12077 = vmatprep.subr.bf16.mxu0 %v13209_v21  ;;  %v13159_v23 = vld [vmem:[%s14603_s6 + $0x438] ss:$100 sps:$4 sm:$0xff]  }
 0x475   : > { %6358 = vmatmul.mubr.bf16.gmra.mrb[60].mxu1 %v13141_v49  ;;  %6455 = vmatmul.mubr.bf16.gmra.mrb[60].mxu0 %v13144_v15  ;;  %v13164_v10 = vld [vmem:[%s14603_s6 + $0xb3c] ss:$100 sps:$4 sm:$0xff]  }
 0x476   : > { %v15778_v17 = vadd.f32 %v11390_v22, %v15641_v19  ;;  %v15781_v18 = vadd.f32 %v11454_v26, %v15644_v47  ;;  %6365 = vmatprep.mubr.bf16.mxu1 %v13149_v20  ;;  %6462 = vmatprep.mubr.bf16.mxu0 %v13152_v59  ;;  %v13167_v22 = vld [vmem:[%s14603_s6 + $0x504] ss:$100 sps:$4 sm:$0xff]  }
 0x477   : > { %12078 = vmatpush3.bf16.msra.mxu0 %v13209_v21 }
 0x478   : > { %v11391_v16 = vpop.f32.mrb[212].mxu0  ;;  %v11455_v54 = vpop.f32.mrb[212].mxu1  ;;  %12079 = vmatprep.subr.bf16.mxu0 %v13222_v38 }
 0x479   : > { %v11392_v33 = vpop.f32.mrb[213].mxu0  ;;  %v11456_v44 = vpop.f32.mrb[213].mxu1 }
 0x47a   : > { %v11393_v29 = vadd.f32 %v11392_v33, %v11391_v16  ;;  %v11457_v12 = vadd.f32 %v11456_v44, %v11455_v54  ;;  %v11394_v9 = vpop.f32.mrb[214].mxu0  ;;  %v11458_v19 = vpop.f32.mrb[214].mxu1 }
 0x47b   : > { %v11395_v39 = vpop.f32.mrb[215].mxu0  ;;  %v11459_v47 = vpop.f32.mrb[215].mxu1  ;;  %12080 = vmatpush3.bf16.msra.mxu0 %v13222_v38 }
 0x47c   : > { %v15788_v3 = vadd.f32 %v11393_v29, %v15652_v24  ;;  %v15791_v58 = vadd.f32 %v11457_v12, %v15655_v32  ;;  %v11396_v21 = vadd.f32 %v11395_v39, %v11394_v9  ;;  %v11460_v13 = vadd.f32 %v11459_v47, %v11458_v19  ;;  %v13156_v32 = vld [vmem:[%s14603_s6 + $0xa70] ss:$100 sps:$4 sm:$0xff]   ;;  %v13165_v12 = vld [vmem:[%s14603_s6 + $0x500] ss:$100 sps:$4 sm:$0xff]  }
 0x47d   : > { %6366 = vmatmul.mubr.bf16.gmra.mrb[64].mxu1 %v13147_v6  ;;  %6463 = vmatmul.mubr.bf16.gmra.mrb[64].mxu0 %v13150_v41  ;;  %v13173_v39 = vld [vmem:[%s14603_s6 + $0xc04] ss:$100 sps:$4 sm:$0xff]   ;;  %v13176_v47 = vld [vmem:[%s14603_s6 + $0x5cc] ss:$100 sps:$4 sm:$0xff]  }
 0x47e   : > { %v15794_v42 = vadd.f32 %v11396_v21, %v15658_v0  ;;  %v15797_v49 = vadd.f32 %v11460_v13, %v15661_v40  ;;  %6373 = vmatprep.mubr.bf16.mxu1 %v13158_v37  ;;  %6470 = vmatprep.mubr.bf16.mxu0 %v13161_v60 }
 0x480   : > { %v11397_v15 = vpop.f32.mrb[216].mxu0  ;;  %v11461_v24 = vpop.f32.mrb[216].mxu1 }
 0x481   : > { %v11398_v5 = vpop.f32.mrb[217].mxu0  ;;  %v11462_v2 = vpop.f32.mrb[217].mxu1 }
 0x482   : > { %v11399_v36 = vadd.f32 %v11398_v5, %v11397_v15  ;;  %v11463_v20 = vadd.f32 %v11462_v2, %v11461_v24  ;;  %v11400_v59 = vpop.f32.mrb[218].mxu0  ;;  %v11464_v27 = vpop.f32.mrb[218].mxu1 }
 0x483   : > { %v11401_v26 = vpop.f32.mrb[219].mxu0  ;;  %v11465_v0 = vpop.f32.mrb[219].mxu1 }
 0x484   : > { %v15804_v40 = vadd.f32 %v11399_v36, %v15668_v34  ;;  %v15807_v38 = vadd.f32 %v11463_v20, %v15671_v55  ;;  %v11402_v16 = vadd.f32 %v11401_v26, %v11400_v59  ;;  %v11466_v54 = vadd.f32 %v11465_v0, %v11464_v27  ;;  %v13162_v55 = vld [vmem:[%s14603_s6 + $0xb38] ss:$100 sps:$4 sm:$0xff]   ;;  %v13174_v20 = vld [vmem:[%s14603_s6 + $0x5c8] ss:$100 sps:$4 sm:$0xff]  }
 0x485   : > { %6374 = vmatmul.mubr.bf16.gmra.mrb[68].mxu1 %v13156_v32  ;;  %6471 = vmatmul.mubr.bf16.gmra.mrb[68].mxu0 %v13159_v23  ;;  %v13179_v26 = vld [vmem:[%s14603_s6 + $0x694] ss:$100 sps:$4 sm:$0xff]   ;;  %v13182_v0 = vld [vmem:[%s14603_s6 + $0x5c] ss:$100 sps:$4 sm:$0xff]  }
 0x486   : > { %v15810_v33 = vadd.f32 %v11402_v16, %v15674_v57  ;;  %v15813_v44 = vadd.f32 %v11466_v54, %v15677_v48  ;;  %6381 = vmatprep.mubr.bf16.mxu1 %v13164_v10  ;;  %6478 = vmatprep.mubr.bf16.mxu0 %v13167_v22 }
 0x488   : > { %v11403_v6 = vpop.f32.mrb[220].mxu0  ;;  %v11467_v34 = vpop.f32.mrb[220].mxu1 }
 0x489   : > { %v11404_v41 = vpop.f32.mrb[221].mxu0  ;;  %v11468_v29 = vpop.f32.mrb[221].mxu1 }
 0x48a   : > { %v11405_v9 = vadd.f32 %v11404_v41, %v11403_v6  ;;  %v11469_v19 = vadd.f32 %v11468_v29, %v11467_v34  ;;  %v11406_v37 = vpop.f32.mrb[222].mxu0  ;;  %v11470_v60 = vpop.f32.mrb[222].mxu1 }
 0x48b   : > { %v11407_v21 = vpop.f32.mrb[223].mxu0  ;;  %v11471_v57 = vpop.f32.mrb[223].mxu1 }
 0x48c   : > { %v15820_v48 = vadd.f32 %v11405_v9, %v15684_v51  ;;  %v15823_v13 = vadd.f32 %v11469_v19, %v15687_v8  ;;  %v11408_v15 = vadd.f32 %v11407_v21, %v11406_v37  ;;  %v11472_v24 = vadd.f32 %v11471_v57, %v11470_v60  ;;  %v13171_v8 = vld [vmem:[%s14603_s6 + $0xc00] ss:$100 sps:$4 sm:$0xff]   ;;  %v13180_v19 = vld [vmem:[%s14603_s6 + $0x58] ss:$100 sps:$4 sm:$0xff]  }
 0x48d   : > { %6382 = vmatmul.mubr.bf16.gmra.mrb[72].mxu1 %v13162_v55  ;;  %6479 = vmatmul.mubr.bf16.gmra.mrb[72].mxu0 %v13165_v12  ;;  %v13186_v21 = vld [vmem:[%s14603_s6 + $0x75c] ss:$100 sps:$4 sm:$0xff]   ;;  %v13189_v57 = vld [vmem:[%s14603_s6 + $0x124] ss:$100 sps:$4 sm:$0xff]  }
 0x48e   : > { %v15826_v5 = vadd.f32 %v11408_v15, %v15690_v50  ;;  %v15829_v2 = vadd.f32 %v11472_v24, %v15693_v11  ;;  %6389 = vmatprep.mubr.bf16.mxu1 %v13173_v39  ;;  %6486 = vmatprep.mubr.bf16.mxu0 %v13176_v47 }
 0x490   : > { %v11409_v32 = vpop.f32.mrb[224].mxu0  ;;  %v11473_v51 = vpop.f32.mrb[224].mxu1 }
 0x491   : > { %v11410_v23 = vpop.f32.mrb[225].mxu0  ;;  %v11474_v36 = vpop.f32.mrb[225].mxu1 }
 0x492   : > { %v11411_v59 = vadd.f32 %v11410_v23, %v11409_v32  ;;  %v11475_v27 = vadd.f32 %v11474_v36, %v11473_v51  ;;  %v11412_v10 = vpop.f32.mrb[226].mxu0  ;;  %v11476_v22 = vpop.f32.mrb[226].mxu1 }
 0x493   : > { %v11413_v16 = vpop.f32.mrb[227].mxu0  ;;  %v11477_v50 = vpop.f32.mrb[227].mxu1 }
 0x494   : > { %v15836_v11 = vadd.f32 %v11411_v59, %v15700_v63  ;;  %v15839_v54 = vadd.f32 %v11475_v27, %v15703_v46  ;;  %v11414_v6 = vadd.f32 %v11413_v16, %v11412_v10  ;;  %v11478_v34 = vadd.f32 %v11477_v50, %v11476_v22  ;;  %v13177_v46 = vld [vmem:[%s14603_s6 + $0x690] ss:$100 sps:$4 sm:$0xff]   ;;  %v13187_v27 = vld [vmem:[%s14603_s6 + $0x120] ss:$100 sps:$4 sm:$0xff]  }
 0x495   : > { %6390 = vmatmul.mubr.bf16.gmra.mrb[76].mxu1 %v13171_v8  ;;  %6487 = vmatmul.mubr.bf16.gmra.mrb[76].mxu0 %v13174_v20  ;;  %v13192_v16 = vld [vmem:[%s14603_s6 + $0x824] ss:$100 sps:$4 sm:$0xff]   ;;  %v13195_v50 = vld [vmem:[%s14603_s6 + $0x1ec] ss:$100 sps:$4 sm:$0xff]  }
 0x496   : > { %v15842_v41 = vadd.f32 %v11414_v6, %v15706_v1  ;;  %v15845_v29 = vadd.f32 %v11478_v34, %v15709_v31  ;;  %6494 = vmatprep.mubr.bf16.mxu0 %v13179_v26  ;;  %6591 = vmatprep.mubr.bf16.mxu1 %v13182_v0 }
 0x498   : > { %v11415_v55 = vpop.f32.mrb[228].mxu0  ;;  %v11479_v63 = vpop.f32.mrb[228].mxu1 }
 0x499   : > { %v11416_v12 = vpop.f32.mrb[229].mxu0  ;;  %v11480_v9 = vpop.f32.mrb[229].mxu1 }
 0x49a   : > { %v11417_v37 = vadd.f32 %v11416_v12, %v11415_v55  ;;  %v11481_v60 = vadd.f32 %v11480_v9, %v11479_v63  ;;  %v11418_v39 = vpop.f32.mrb[230].mxu0  ;;  %v11482_v47 = vpop.f32.mrb[230].mxu1 }
 0x49b   : > { %v11419_v15 = vpop.f32.mrb[231].mxu0  ;;  %v11483_v1 = vpop.f32.mrb[231].mxu1 }
 0x49c   : > { %v15852_v31 = vadd.f32 %v11417_v37, %v15717_v43  ;;  %v15855_v24 = vadd.f32 %v11481_v60, %v15720_v25  ;;  %v11420_v32 = vadd.f32 %v11419_v15, %v11418_v39  ;;  %v11484_v51 = vadd.f32 %v11483_v1, %v11482_v47  ;;  %v13184_v25 = vld [vmem:[%s14603_s6 + $0x758] ss:$100 sps:$4 sm:$0xff]   ;;  %v13193_v60 = vld [vmem:[%s14603_s6 + $0x1e8] ss:$100 sps:$4 sm:$0xff]  }
 0x49d   : > { %6495 = vmatmul.mubr.bf16.gmra.mrb[80].mxu0 %v13177_v46  ;;  %6592 = vmatmul.mubr.bf16.vlgmr.msra.gmra.mrb[80].mxu1 %v13180_v19  ;;  %v13199_v15 = vld [vmem:[%s14603_s6 + $0x8ec] ss:$100 sps:$4 sm:$0xff]   ;;  %v13202_v1 = vld [vmem:[%s14603_s6 + $0x2b4] ss:$100 sps:$4 sm:$0xff]  }
 0x49e   : > { %v15858_v23 = vadd.f32 %v11420_v32, %v15723_v45  ;;  %v15861_v36 = vadd.f32 %v11484_v51, %v15726_v52  ;;  %6502 = vmatprep.mubr.bf16.mxu0 %v13186_v21  ;;  %6599 = vmatprep.mubr.bf16.mxu1 %v13189_v57 }
 0x4a0   : > { %v11421_v8 = vpop.f32.mrb[232].mxu0  ;;  %v11485_v43 = vpop.f32.mrb[232].mxu1 }
 0x4a1   : > { %v11422_v20 = vpop.f32.mrb[233].mxu0  ;;  %v11486_v59 = vpop.f32.mrb[233].mxu1 }
 0x4a2   : > { %v11423_v10 = vadd.f32 %v11422_v20, %v11421_v8  ;;  %v11487_v22 = vadd.f32 %v11486_v59, %v11485_v43  ;;  %v11424_v26 = vpop.f32.mrb[234].mxu0  ;;  %v11488_v0 = vpop.f32.mrb[234].mxu1 }
 0x4a3   : > { %v11425_v6 = vpop.f32.mrb[235].mxu0  ;;  %v11489_v45 = vpop.f32.mrb[235].mxu1 }
 0x4a4   : > { %v15868_v52 = vadd.f32 %v11423_v10, %v15735_v62  ;;  %v15871_v34 = vadd.f32 %v11487_v22, %v15738_v35  ;;  %v11426_v55 = vadd.f32 %v11425_v6, %v11424_v26  ;;  %v11490_v63 = vadd.f32 %v11489_v45, %v11488_v0  ;;  %v13190_v35 = vld [vmem:[%s14603_s6 + $0x820] ss:$100 sps:$4 sm:$0xff]   ;;  %v13200_v22 = vld [vmem:[%s14603_s6 + $0x2b0] ss:$100 sps:$4 sm:$0xff]  }
 0x4a5   : > { %6503 = vmatmul.mubr.bf16.gmra.mrb[84].mxu0 %v13184_v25  ;;  %6600 = vmatmul.mubr.bf16.gmra.mrb[84].mxu1 %v13187_v27  ;;  %v13205_v6 = vld [vmem:[%s14603_s6 + $0x9b4] ss:$100 sps:$4 sm:$0xff]   ;;  %v13208_v45 = vld [vmem:[%s14603_s6 + $0x37c] ss:$100 sps:$4 sm:$0xff]  }
 0x4a6   : > { %v15874_v12 = vadd.f32 %v11426_v55, %v15742_v56  ;;  %v15877_v9 = vadd.f32 %v11490_v63, %v15745_v7  ;;  %6510 = vmatprep.mubr.bf16.mxu0 %v13192_v16  ;;  %6607 = vmatprep.mubr.bf16.mxu1 %v13195_v50 }
 0x4a8   : > { %v11427_v46 = vpop.f32.mrb[236].mxu0  ;;  %v11491_v62 = vpop.f32.mrb[236].mxu1 }
 0x4a9   : > { %v11428_v19 = vpop.f32.mrb[237].mxu0  ;;  %v11492_v37 = vpop.f32.mrb[237].mxu1 }
 0x4aa   : > { %v11429_v39 = vadd.f32 %v11428_v19, %v11427_v46  ;;  %v11493_v47 = vadd.f32 %v11492_v37, %v11491_v62  ;;  %v11430_v21 = vpop.f32.mrb[238].mxu0  ;;  %v11494_v57 = vpop.f32.mrb[238].mxu1 }
 0x4ab   : > { %v11431_v32 = vpop.f32.mrb[239].mxu0  ;;  %v11495_v56 = vpop.f32.mrb[239].mxu1 }
 0x4ac   : > { %v15884_v7 = vadd.f32 %v11429_v39, %v15753_v61  ;;  %v15887_v51 = vadd.f32 %v11493_v47, %v15756_v14  ;;  %v11432_v8 = vadd.f32 %v11431_v32, %v11430_v21  ;;  %v11496_v43 = vadd.f32 %v11495_v56, %v11494_v57  ;;  %v13197_v14 = vld [vmem:[%s14603_s6 + $0x8e8] ss:$100 sps:$4 sm:$0xff]   ;;  %v13206_v47 = vld [vmem:[%s14603_s6 + $0x378] ss:$100 sps:$4 sm:$0xff]  }
 0x4ad   : > { %6511 = vmatmul.mubr.bf16.gmra.mrb[88].mxu0 %v13190_v35  ;;  %6608 = vmatmul.mubr.bf16.gmra.mrb[88].mxu1 %v13193_v60  ;;  %v13212_v32 = vld [vmem:[%s14603_s6 + $0xa7c] ss:$100 sps:$4 sm:$0xff]   ;;  %v13215_v56 = vld [vmem:[%s14603_s6 + $0x444] ss:$100 sps:$4 sm:$0xff]  }
 0x4ae   : > { %v15890_v20 = vadd.f32 %v11432_v8, %v15760_v30  ;;  %v15893_v59 = vadd.f32 %v11496_v43, %v15763_v53  ;;  %6518 = vmatprep.mubr.bf16.mxu0 %v13199_v15  ;;  %6615 = vmatprep.mubr.bf16.mxu1 %v13202_v1 }
 0x4b0   : > { %v11497_v25 = vpop.f32.mrb[240].mxu1  ;;  %v11561_v61 = vpop.f32.mrb[240].mxu0 }
 0x4b1   : > { %v11498_v27 = vpop.f32.mrb[241].mxu1  ;;  %v11562_v10 = vpop.f32.mrb[241].mxu0 }
 0x4b2   : > { %v11499_v26 = vadd.f32 %v11498_v27, %v11497_v25  ;;  %v11563_v0 = vadd.f32 %v11562_v10, %v11561_v61  ;;  %v11500_v16 = vpop.f32.mrb[242].mxu1  ;;  %v11564_v50 = vpop.f32.mrb[242].mxu0 }
 0x4b3   : > { %v11501_v55 = vpop.f32.mrb[243].mxu1  ;;  %v11565_v30 = vpop.f32.mrb[243].mxu0 }
 0x4b4   : > { %v15900_v53 = vadd.f32 %v11499_v26, %v15771_v4  ;;  %v15903_v63 = vadd.f32 %v11563_v0, %v15774_v28  ;;  %v11502_v46 = vadd.f32 %v11501_v55, %v11500_v16  ;;  %v11566_v62 = vadd.f32 %v11565_v30, %v11564_v50  ;;  %v13203_v28 = vld [vmem:[%s14603_s6 + $0x9b0] ss:$100 sps:$4 sm:$0xff]   ;;  %v13213_v0 = vld [vmem:[%s14603_s6 + $0x440] ss:$100 sps:$4 sm:$0xff]  }
 0x4b5   : > { %6519 = vmatmul.mubr.bf16.gmra.mrb[92].mxu0 %v13197_v14  ;;  %6616 = vmatmul.mubr.bf16.gmra.mrb[92].mxu1 %v13200_v22  ;;  %v13218_v55 = vld [vmem:[%s14603_s6 + $0xb44] ss:$100 sps:$4 sm:$0xff]   ;;  %v13221_v30 = vld [vmem:[%s14603_s6 + $0x50c] ss:$100 sps:$4 sm:$0xff]  }
 0x4b6   : > { %v15906_v19 = vadd.f32 %v11502_v46, %v15778_v17  ;;  %v15909_v37 = vadd.f32 %v11566_v62, %v15781_v18  ;;  %6526 = vmatprep.mubr.bf16.mxu0 %v13205_v6  ;;  %6623 = vmatprep.mubr.bf16.mxu1 %v13208_v45 }
 0x4b8   : > { %v11503_v35 = vpop.f32.mrb[244].mxu1  ;;  %v11567_v4 = vpop.f32.mrb[244].mxu0 }
 0x4b9   : > { %v11504_v60 = vpop.f32.mrb[245].mxu1  ;;  %v11568_v39 = vpop.f32.mrb[245].mxu0 }
 0x4ba   : > { %v11505_v21 = vadd.f32 %v11504_v60, %v11503_v35  ;;  %v11569_v57 = vadd.f32 %v11568_v39, %v11567_v4  ;;  %v11506_v15 = vpop.f32.mrb[246].mxu1  ;;  %v11570_v1 = vpop.f32.mrb[246].mxu0 }
 0x4bb   : > { %v11507_v8 = vpop.f32.mrb[247].mxu1  ;;  %v11571_v17 = vpop.f32.mrb[247].mxu0 }
 0x4bc   : > { %v15916_v18 = vadd.f32 %v11505_v21, %v15788_v3  ;;  %v15919_v43 = vadd.f32 %v11569_v57, %v15791_v58  ;;  %v11508_v25 = vadd.f32 %v11507_v8, %v11506_v15  ;;  %v11572_v61 = vadd.f32 %v11571_v17, %v11570_v1  ;;  %v13210_v58 = vld [vmem:[%s14603_s6 + $0xa78] ss:$100 sps:$4 sm:$0xff]   ;;  %v13219_v57 = vld [vmem:[%s14603_s6 + $0x508] ss:$100 sps:$4 sm:$0xff]  }
 0x4bd   : > { %6527 = vmatmul.mubr.bf16.gmra.mrb[96].mxu0 %v13203_v28  ;;  %6624 = vmatmul.mubr.bf16.gmra.mrb[96].mxu1 %v13206_v47  ;;  %v13225_v8 = vld [vmem:[%s14603_s6 + $0xc0c] ss:$100 sps:$4 sm:$0xff]   ;;  %v13228_v17 = vld [vmem:[%s14603_s6 + $0x5d4] ss:$100 sps:$4 sm:$0xff]  }
 0x4be   : > { %v15922_v27 = vadd.f32 %v11508_v25, %v15794_v42  ;;  %v15925_v10 = vadd.f32 %v11572_v61, %v15797_v49  ;;  %6534 = vmatprep.mubr.bf16.mxu0 %v13212_v32  ;;  %6631 = vmatprep.mubr.bf16.mxu1 %v13215_v56 }
 0x4c0   : > { %v11509_v14 = vpop.f32.mrb[248].mxu1  ;;  %v11573_v3 = vpop.f32.mrb[248].mxu0 }
 0x4c1   : > { %v11510_v22 = vpop.f32.mrb[249].mxu1  ;;  %v11574_v26 = vpop.f32.mrb[249].mxu0 }
 0x4c2   : > { %v11511_v16 = vadd.f32 %v11510_v22, %v11509_v14  ;;  %v11575_v50 = vadd.f32 %v11574_v26, %v11573_v3  ;;  %v11512_v6 = vpop.f32.mrb[250].mxu1  ;;  %v11576_v45 = vpop.f32.mrb[250].mxu0 }
 0x4c3   : > { %v11513_v46 = vpop.f32.mrb[251].mxu1  ;;  %v11577_v42 = vpop.f32.mrb[251].mxu0 }
 0x4c4   : > { %v15932_v49 = vadd.f32 %v11511_v16, %v15804_v40  ;;  %v15935_v62 = vadd.f32 %v11575_v50, %v15807_v38  ;;  %v11514_v35 = vadd.f32 %v11513_v46, %v11512_v6  ;;  %v11578_v4 = vadd.f32 %v11577_v42, %v11576_v45  ;;  %v13216_v38 = vld [vmem:[%s14603_s6 + $0xb40] ss:$100 sps:$4 sm:$0xff]   ;;  %v13226_v50 = vld [vmem:[%s14603_s6 + $0x5d0] ss:$100 sps:$4 sm:$0xff]  }
 0x4c5   : > { %6535 = vmatmul.mubr.bf16.gmra.mrb[100].mxu0 %v13210_v58  ;;  %6632 = vmatmul.mubr.bf16.gmra.mrb[100].mxu1 %v13213_v0  ;;  %v13231_v46 = vld [vmem:[%s14603_s6 + $0x69c] ss:$100 sps:$4 sm:$0xff]  }
 0x4c6   : > { %v15938_v60 = vadd.f32 %v11514_v35, %v15810_v33  ;;  %v15941_v39 = vadd.f32 %v11578_v4, %v15813_v44  ;;  %6542 = vmatprep.mubr.bf16.mxu0 %v13218_v55  ;;  %6639 = vmatprep.mubr.bf16.mxu1 %v13221_v30  ;;  %v13232_v42 = vld [vmem:[%s14603_s6 + $0x60] ss:$100 sps:$4 sm:$0xff]  }
 0x4c8   : > { %v11515_v28 = vpop.f32.mrb[252].mxu1  ;;  %v11579_v40 = vpop.f32.mrb[252].mxu0 }
 0x4c9   : > { %v11516_v47 = vpop.f32.mrb[253].mxu1  ;;  %v11580_v21 = vpop.f32.mrb[253].mxu0 }
 0x4ca   : > { %v11517_v15 = vadd.f32 %v11516_v47, %v11515_v28  ;;  %v11581_v1 = vadd.f32 %v11580_v21, %v11579_v40  ;;  %v11518_v32 = vpop.f32.mrb[254].mxu1  ;;  %v11582_v56 = vpop.f32.mrb[254].mxu0 }
 0x4cb   : > { %v11519_v25 = vpop.f32.mrb[255].mxu1  ;;  %v11583_v33 = vpop.f32.mrb[255].mxu0 }
 0x4cc   : > { %v15948_v44 = vadd.f32 %v11517_v15, %v15820_v48  ;;  %v15951_v61 = vadd.f32 %v11581_v1, %v15823_v13  ;;  %v11520_v14 = vadd.f32 %v11519_v25, %v11518_v32  ;;  %v11584_v3 = vadd.f32 %v11583_v33, %v11582_v56  ;;  %v13223_v13 = vld [vmem:[%s14603_s6 + $0xc08] ss:$100 sps:$4 sm:$0xff]   ;;  %v13237_v33 = vld [vmem:[%s14603_s6 + $0x1f0] ss:$100 sps:$4 sm:$0xff]  }
 0x4cd   : > { %6543 = vmatmul.mubr.bf16.gmra.mrb[104].mxu0 %v13216_v38  ;;  %6640 = vmatmul.mubr.bf16.gmra.mrb[104].mxu1 %v13219_v57  ;;  %v13233_v1 = vld [vmem:[%s14603_s6 + $0x128] ss:$100 sps:$4 sm:$0xff]  }
 0x4ce   : > { %v15954_v22 = vadd.f32 %v11520_v14, %v15826_v5  ;;  %v15957_v26 = vadd.f32 %v11584_v3, %v15829_v2  ;;  %6550 = vmatprep.mubr.bf16.mxu0 %v13225_v8  ;;  %6647 = vmatprep.mubr.bf16.mxu1 %v13228_v17  ;;  %v13236_v25 = vld [vmem:[%s14603_s6 + $0x764] ss:$100 sps:$4 sm:$0xff]  }
 0x4d0   : > { %v11521_v58 = vpop.f32.mrb[0].mxu1  ;;  %v11585_v48 = vpop.f32.mrb[0].mxu0 }
 0x4d1   : > { %v11522_v0 = vpop.f32.mrb[1].mxu1  ;;  %v11586_v16 = vpop.f32.mrb[1].mxu0 }
 0x4d2   : > { %v11523_v6 = vadd.f32 %v11522_v0, %v11521_v58  ;;  %v11587_v45 = vadd.f32 %v11586_v16, %v11585_v48  ;;  %v11524_v55 = vpop.f32.mrb[2].mxu1  ;;  %v11588_v30 = vpop.f32.mrb[2].mxu0 }
 0x4d3   : > { %v11525_v35 = vpop.f32.mrb[3].mxu1  ;;  %v11589_v5 = vpop.f32.mrb[3].mxu0 }
 0x4d4   : > { %v15964_v2 = vadd.f32 %v11523_v6, %v15836_v11  ;;  %v15967_v4 = vadd.f32 %v11587_v45, %v15839_v54  ;;  %v11526_v28 = vadd.f32 %v11525_v35, %v11524_v55  ;;  %v11590_v40 = vadd.f32 %v11589_v5, %v11588_v30  ;;  %v13229_v54 = vld [vmem:[%s14603_s6 + $0x698] ss:$100 sps:$4 sm:$0xff]   ;;  %v13241_v35 = vld [vmem:[%s14603_s6 + $0x82c] ss:$100 sps:$4 sm:$0xff]   ;;  %v13242_v5 = vld [vmem:[%s14603_s6 + $0x380] ss:$100 sps:$4 sm:$0xff]  }
 0x4d5   : > { %6551 = vmatmul.mubr.bf16.gmra.mrb[108].mxu0 %v13223_v13  ;;  %6648 = vmatmul.mubr.bf16.gmra.mrb[108].mxu1 %v13226_v50  ;;  %v13238_v45 = vld [vmem:[%s14603_s6 + $0x2b8] ss:$100 sps:$4 sm:$0xff]  }
 0x4d6   : > { %v15970_v47 = vadd.f32 %v11526_v28, %v15842_v41  ;;  %v15973_v21 = vadd.f32 %v11590_v40, %v15845_v29  ;;  %6655 = vmatprep.mubr.bf16.mxu1 %v13231_v46  ;;  %12081 = vmatprep.mubr.bf16.mxu0 %v13232_v42 }
 0x4d8   : > { %v11527_v38 = vpop.f32.mrb[4].mxu1  ;;  %v11591_v11 = vpop.f32.mrb[4].mxu0 }
 0x4d9   : > { %v11528_v57 = vpop.f32.mrb[5].mxu1  ;;  %v11592_v15 = vpop.f32.mrb[5].mxu0 }
 0x4da   : > { %v11529_v32 = vadd.f32 %v11528_v57, %v11527_v38  ;;  %v11593_v56 = vadd.f32 %v11592_v15, %v11591_v11  ;;  %v11530_v8 = vpop.f32.mrb[6].mxu1  ;;  %v11594_v17 = vpop.f32.mrb[6].mxu0 }
 0x4db   : > { %v11531_v14 = vpop.f32.mrb[7].mxu1  ;;  %v11595_v41 = vpop.f32.mrb[7].mxu0 }
 0x4dc   : > { %v15980_v29 = vadd.f32 %v11529_v32, %v15852_v31  ;;  %v15983_v3 = vadd.f32 %v11593_v56, %v15855_v24  ;;  %v11532_v58 = vadd.f32 %v11531_v14, %v11530_v8  ;;  %v11596_v48 = vadd.f32 %v11595_v41, %v11594_v17  ;;  %v13234_v24 = vld [vmem:[%s14603_s6 + $0x760] ss:$100 sps:$4 sm:$0xff]   ;;  %v13243_v56 = vld [vmem:[%s14603_s6 + $0x448] ss:$100 sps:$4 sm:$0xff]   ;;  %v13246_v14 = vld [vmem:[%s14603_s6 + $0x8f4] ss:$100 sps:$4 sm:$0xff]  }
 0x4dd   : > { %6656 = vmatmul.mubr.bf16.gmra.mrb[112].mxu1 %v13229_v54  ;;  %12082 = vmatmul.mubr.bf16.vlgmr.msra.gmra.mrb[112].mxu0 %v13233_v1  ;;  %v13247_v41 = vld [vmem:[%s14603_s6 + $0x510] ss:$100 sps:$4 sm:$0xff]  }
 0x4de   : > { %v15986_v0 = vadd.f32 %v11532_v58, %v15858_v23  ;;  %v15989_v16 = vadd.f32 %v11596_v48, %v15861_v36  ;;  %6663 = vmatprep.mubr.bf16.mxu1 %v13236_v25  ;;  %12085 = vmatprep.mubr.bf16.mxu0 %v13237_v33 }
 0x4e0   : > { %v11533_v13 = vpop.f32.mrb[8].mxu1  ;;  %v11597_v31 = vpop.f32.mrb[8].mxu0 }
 0x4e1   : > { %v11534_v50 = vpop.f32.mrb[9].mxu1  ;;  %v11598_v6 = vpop.f32.mrb[9].mxu0 }
 0x4e2   : > { %v11535_v55 = vadd.f32 %v11534_v50, %v11533_v13  ;;  %v11599_v30 = vadd.f32 %v11598_v6, %v11597_v31  ;;  %v11536_v46 = vpop.f32.mrb[10].mxu1  ;;  %v11600_v42 = vpop.f32.mrb[10].mxu0 }
 0x4e3   : > { %v11537_v28 = vpop.f32.mrb[11].mxu1  ;;  %v11601_v23 = vpop.f32.mrb[11].mxu0 }
 0x4e4   : > { %v15996_v36 = vadd.f32 %v11535_v55, %v15868_v52  ;;  %v15999_v40 = vadd.f32 %v11599_v30, %v15871_v34  ;;  %v11538_v38 = vadd.f32 %v11537_v28, %v11536_v46  ;;  %v11602_v11 = vadd.f32 %v11601_v23, %v11600_v42  ;;  %v13239_v34 = vld [vmem:[%s14603_s6 + $0x828] ss:$100 sps:$4 sm:$0xff]   ;;  %v13248_v30 = vld [vmem:[%s14603_s6 + $0x5d8] ss:$100 sps:$4 sm:$0xff]   ;;  %v13252_v23 = vld [vmem:[%s14603_s6 + $0x6a0] ss:$100 sps:$4 sm:$0xff]  }
 0x4e5   : > { %6664 = vmatmul.mubr.bf16.gmra.mrb[116].mxu1 %v13234_v24  ;;  %12086 = vmatmul.mubr.bf16.gmra.mrb[116].mxu0 %v13238_v45  ;;  %v13251_v28 = vld [vmem:[%s14603_s6 + $0x9bc] ss:$100 sps:$4 sm:$0xff]  }
 0x4e6   : > { %v16002_v57 = vadd.f32 %v11538_v38, %v15874_v12  ;;  %v16005_v15 = vadd.f32 %v11602_v11, %v15877_v9  ;;  %6671 = vmatprep.mubr.bf16.mxu1 %v13241_v35  ;;  %12089 = vmatprep.mubr.bf16.mxu0 %v13242_v5 }
 0x4e8   : > { %v11539_v54 = vpop.f32.mrb[12].mxu1  ;;  %v11603_v52 = vpop.f32.mrb[12].mxu0 }
 0x4e9   : > { %v11540_v1 = vpop.f32.mrb[13].mxu1  ;;  %v11604_v32 = vpop.f32.mrb[13].mxu0 }
 0x4ea   : > { %v11541_v8 = vadd.f32 %v11540_v1, %v11539_v54  ;;  %v11605_v17 = vadd.f32 %v11604_v32, %v11603_v52  ;;  %v11542_v25 = vpop.f32.mrb[14].mxu1  ;;  %v11606_v33 = vpop.f32.mrb[14].mxu0 }
 0x4eb   : > { %v11543_v58 = vpop.f32.mrb[15].mxu1  ;;  %v11607_v12 = vpop.f32.mrb[15].mxu0 }
 0x4ec   : > { %v16012_v9 = vadd.f32 %v11541_v8, %v15884_v7  ;;  %v16015_v48 = vadd.f32 %v11605_v17, %v15887_v51  ;;  %v11544_v13 = vadd.f32 %v11543_v58, %v11542_v25  ;;  %v11608_v31 = vadd.f32 %v11607_v12, %v11606_v33  ;;  %v13244_v51 = vld [vmem:[%s14603_s6 + $0x8f0] ss:$100 sps:$4 sm:$0xff]   ;;  %v13253_v17 = vld [vmem:[%s14603_s6 + $0x768] ss:$100 sps:$4 sm:$0xff]  }
 0x4ed   : > { %6672 = vmatmul.mubr.bf16.gmra.mrb[120].mxu1 %v13239_v34  ;;  %12090 = vmatmul.mubr.bf16.gmra.mrb[120].mxu0 %v13243_v56  ;;  %v13256_v58 = vld [vmem:[%s14603_s6 + $0xa84] ss:$100 sps:$4 sm:$0xff]   ;;  %v13257_v12 = vld [vmem:[%s14603_s6 + $0x830] ss:$100 sps:$4 sm:$0xff]  }
 0x4ee   : > { %v16018_v50 = vadd.f32 %v11544_v13, %v15890_v20  ;;  %v16021_v6 = vadd.f32 %v11608_v31, %v15893_v59  ;;  %6679 = vmatprep.mubr.bf16.mxu1 %v13246_v14  ;;  %12093 = vmatprep.mubr.bf16.mxu0 %v13247_v41 }
 0x4f0   : > { %v11609_v24 = vpop.f32.mrb[16].mxu0  ;;  %v11673_v7 = vpop.f32.mrb[16].mxu1 }
 0x4f1   : > { %v11610_v45 = vpop.f32.mrb[17].mxu0  ;;  %v11674_v55 = vpop.f32.mrb[17].mxu1 }
 0x4f2   : > { %v11611_v46 = vadd.f32 %v11610_v45, %v11609_v24  ;;  %v11675_v42 = vadd.f32 %v11674_v55, %v11673_v7  ;;  %v11612_v35 = vpop.f32.mrb[18].mxu0  ;;  %v11676_v5 = vpop.f32.mrb[18].mxu1 }
 0x4f3   : > { %v11613_v38 = vpop.f32.mrb[19].mxu0  ;;  %v11677_v20 = vpop.f32.mrb[19].mxu1 }
 0x4f4   : > { %v16028_v59 = vadd.f32 %v11611_v46, %v15900_v53  ;;  %v16031_v11 = vadd.f32 %v11675_v42, %v15903_v63  ;;  %v11614_v54 = vadd.f32 %v11613_v38, %v11612_v35  ;;  %v11678_v52 = vadd.f32 %v11677_v20, %v11676_v5  ;;  %v13249_v63 = vld [vmem:[%s14603_s6 + $0x9b8] ss:$100 sps:$4 sm:$0xff]   ;;  %v13261_v38 = vld [vmem:[%s14603_s6 + $0xb4c] ss:$100 sps:$4 sm:$0xff]   ;;  %v13262_v20 = vld [vmem:[%s14603_s6 + $0x9c0] ss:$100 sps:$4 sm:$0xff]  }
 0x4f5   : > { %6680 = vmatmul.mubr.bf16.gmra.mrb[124].mxu1 %v13244_v51  ;;  %12094 = vmatmul.mubr.bf16.gmra.mrb[124].mxu0 %v13248_v30  ;;  %v13258_v42 = vld [vmem:[%s14603_s6 + $0x8f8] ss:$100 sps:$4 sm:$0xff]  }
 0x4f6   : > { %v16034_v1 = vadd.f32 %v11614_v54, %v15906_v19  ;;  %v16037_v32 = vadd.f32 %v11678_v52, %v15909_v37  ;;  %6687 = vmatprep.mubr.bf16.mxu1 %v13251_v28  ;;  %12097 = vmatprep.mubr.bf16.mxu0 %v13252_v23 }
 0x4f8   : > { %v11615_v34 = vpop.f32.mrb[20].mxu0  ;;  %v11679_v53 = vpop.f32.mrb[20].mxu1 }
 0x4f9   : > { %v11616_v56 = vpop.f32.mrb[21].mxu0  ;;  %v11680_v8 = vpop.f32.mrb[21].mxu1 }
 0x4fa   : > { %v11617_v25 = vadd.f32 %v11616_v56, %v11615_v34  ;;  %v11681_v33 = vadd.f32 %v11680_v8, %v11679_v53  ;;  %v11618_v14 = vpop.f32.mrb[22].mxu0  ;;  %v11682_v41 = vpop.f32.mrb[22].mxu1 }
 0x4fb   : > { %v11619_v13 = vpop.f32.mrb[23].mxu0  ;;  %v11683_v19 = vpop.f32.mrb[23].mxu1 }
 0x4fc   : > { %v16044_v37 = vadd.f32 %v11617_v25, %v15916_v18  ;;  %v16047_v31 = vadd.f32 %v11681_v33, %v15919_v43  ;;  %v11620_v24 = vadd.f32 %v11619_v13, %v11618_v14  ;;  %v11684_v7 = vadd.f32 %v11683_v19, %v11682_v41  ;;  %v13254_v43 = vld [vmem:[%s14603_s6 + $0xa80] ss:$100 sps:$4 sm:$0xff]   ;;  %v13263_v33 = vld [vmem:[%s14603_s6 + $0xa88] ss:$100 sps:$4 sm:$0xff]   ;;  %v13266_v13 = vld [vmem:[%s14603_s6 + $0xc14] ss:$100 sps:$4 sm:$0xff]  }
 0x4fd   : > { %6688 = vmatmul.mubr.bf16.gmra.mrb[128].mxu1 %v13249_v63  ;;  %12098 = vmatmul.mubr.bf16.gmra.mrb[128].mxu0 %v13253_v17  ;;  %v13267_v19 = vld [vmem:[%s14603_s6 + $0xb50] ss:$100 sps:$4 sm:$0xff]  }
 0x4fe   : > { %v16050_v45 = vadd.f32 %v11620_v24, %v15922_v27  ;;  %v16053_v55 = vadd.f32 %v11684_v7, %v15925_v10  ;;  %6695 = vmatprep.mubr.bf16.mxu1 %v13256_v58  ;;  %12101 = vmatprep.mubr.bf16.mxu0 %v13257_v12 }
 0x500   : > { %v11621_v51 = vpop.f32.mrb[24].mxu0  ;;  %v11685_v18 = vpop.f32.mrb[24].mxu1 }
 0x501   : > { %v11622_v30 = vpop.f32.mrb[25].mxu0  ;;  %v11686_v46 = vpop.f32.mrb[25].mxu1 }
 0x502   : > { %v11623_v35 = vadd.f32 %v11622_v30, %v11621_v51  ;;  %v11687_v5 = vadd.f32 %v11686_v46, %v11685_v18  ;;  %v11624_v28 = vpop.f32.mrb[26].mxu0  ;;  %v11688_v23 = vpop.f32.mrb[26].mxu1 }
 0x503   : > { %v11625_v54 = vpop.f32.mrb[27].mxu0  ;;  %v11689_v27 = vpop.f32.mrb[27].mxu1 }
 0x504   : > { %v16060_v10 = vadd.f32 %v11623_v35, %v15932_v49  ;;  %v16063_v52 = vadd.f32 %v11687_v5, %v15935_v62  ;;  %v11626_v34 = vadd.f32 %v11625_v54, %v11624_v28  ;;  %v11690_v53 = vadd.f32 %v11689_v27, %v11688_v23  ;;  %v13259_v62 = vld [vmem:[%s14603_s6 + $0xb48] ss:$100 sps:$4 sm:$0xff]   ;;  %v13264_v5 = vld [vmem:[%s14603_s6 + $0xc10] ss:$100 sps:$4 sm:$0xff]   ;;  %v13268_v28 = vld [vmem:[%s14603_s6 + $0xc18] ss:$100 sps:$4 sm:$0xff]  }
 0x505   : > { %6696 = vmatmul.mubr.bf16.gmra.mrb[132].mxu1 %v13254_v43  ;;  %12102 = vmatmul.mubr.bf16.gmra.mrb[132].mxu0 %v13258_v42 }
 0x506   : > { %v16066_v56 = vadd.f32 %v11626_v34, %v15938_v60  ;;  %v16069_v8 = vadd.f32 %v11690_v53, %v15941_v39  ;;  %6703 = vmatprep.mubr.bf16.mxu1 %v13261_v38  ;;  %12105 = vmatprep.mubr.bf16.mxu0 %v13262_v20 }
 0x508   : > { %v11627_v63 = vpop.f32.mrb[28].mxu0  ;;  %v11691_v49 = vpop.f32.mrb[28].mxu1 }
 0x509   : > { %v11628_v17 = vpop.f32.mrb[29].mxu0  ;;  %v11692_v25 = vpop.f32.mrb[29].mxu1 }
 0x50a   : > { %v11629_v14 = vadd.f32 %v11628_v17, %v11627_v63  ;;  %v11693_v41 = vadd.f32 %v11692_v25, %v11691_v49  ;;  %v11630_v58 = vpop.f32.mrb[30].mxu0  ;;  %v11694_v12 = vpop.f32.mrb[30].mxu1 }
 0x50b   : > { %v11631_v24 = vpop.f32.mrb[31].mxu0  ;;  %v11695_v60 = vpop.f32.mrb[31].mxu1 }
 0x50c   : > { %v16076_v39 = vadd.f32 %v11629_v14, %v15948_v44  ;;  %v16079_v7 = vadd.f32 %v11693_v41, %v15951_v61  ;;  %v11632_v51 = vadd.f32 %v11631_v24, %v11630_v58  ;;  %v11696_v18 = vadd.f32 %v11695_v60, %v11694_v12 }
 0x50d   : > { %6704 = vmatmul.mubr.bf16.gmra.mrb[136].mxu1 %v13259_v62  ;;  %12106 = vmatmul.mubr.bf16.gmra.mrb[136].mxu0 %v13263_v33 }
 0x50e   : > { %v16082_v30 = vadd.f32 %v11632_v51, %v15954_v22  ;;  %v16085_v46 = vadd.f32 %v11696_v18, %v15957_v26  ;;  %6711 = vmatprep.mubr.bf16.mxu1 %v13266_v13  ;;  %12109 = vmatprep.mubr.bf16.mxu0 %v13267_v19 }
 0x510   : > { %v11633_v43 = vpop.f32.mrb[32].mxu0  ;;  %v11697_v42 = vpop.f32.mrb[32].mxu1 }
 0x511   : > { %v11634_v35 = vpop.f32.mrb[33].mxu0  ;;  %v11698_v44 = vpop.f32.mrb[33].mxu1 }
 0x512   : > { %v11635_v61 = vadd.f32 %v11634_v35, %v11633_v43  ;;  %v11699_v23 = vadd.f32 %v11698_v44, %v11697_v42  ;;  %v11636_v38 = vpop.f32.mrb[34].mxu0  ;;  %v11700_v20 = vpop.f32.mrb[34].mxu1 }
 0x513   : > { %v11637_v54 = vpop.f32.mrb[35].mxu0  ;;  %v11701_v27 = vpop.f32.mrb[35].mxu1 }
 0x514   : > { %v16090_v22 = vadd.f32 %v11635_v61, %v15964_v2  ;;  %v16093_v26 = vadd.f32 %v11699_v23, %v15967_v4  ;;  %v11638_v34 = vadd.f32 %v11637_v54, %v11636_v38  ;;  %v11702_v53 = vadd.f32 %v11701_v27, %v11700_v20 }
 0x515   : > { %6712 = vmatmul.mubr.bf16.gmra.mrb[140].mxu1 %v13264_v5  ;;  %12110 = vmatmul.mubr.bf16.gmra.mrb[140].mxu0 %v13268_v28 }
 0x516   : > { %v16096_v63 = vadd.f32 %v11638_v34, %v15970_v47  ;;  %v16099_v49 = vadd.f32 %v11702_v53, %v15973_v21 }
 0x518   : > { %v11639_v17 = vpop.f32.mrb[36].mxu0  ;;  %v11703_v25 = vpop.f32.mrb[36].mxu1 }
 0x519   : > { %v11640_v62 = vpop.f32.mrb[37].mxu0  ;;  %v11704_v33 = vpop.f32.mrb[37].mxu1 }
 0x51a   : > { %v11641_v14 = vadd.f32 %v11640_v62, %v11639_v17  ;;  %v11705_v2 = vadd.f32 %v11704_v33, %v11703_v25  ;;  %v11642_v41 = vpop.f32.mrb[38].mxu0  ;;  %v11706_v58 = vpop.f32.mrb[38].mxu1 }
 0x51b   : > { %v11643_v4 = vpop.f32.mrb[39].mxu0  ;;  %v11707_v12 = vpop.f32.mrb[39].mxu1 }
 0x51c   : > { %v16102_v13 = vadd.f32 %v11641_v14, %v15980_v29  ;;  %v16105_v19 = vadd.f32 %v11705_v2, %v15983_v3  ;;  %v11644_v47 = vadd.f32 %v11643_v4, %v11642_v41  ;;  %v11708_v24 = vadd.f32 %v11707_v12, %v11706_v58 }
 0x51e   : > { %v16108_v21 = vadd.f32 %v11644_v47, %v15986_v0  ;;  %v16111_v60 = vadd.f32 %v11708_v24, %v15989_v16 }
 0x520   : > { %v11645_v51 = vpop.f32.mrb[40].mxu0  ;;  %v11709_v18 = vpop.f32.mrb[40].mxu1 }
 0x521   : > { %v11646_v43 = vpop.f32.mrb[41].mxu0  ;;  %v11710_v42 = vpop.f32.mrb[41].mxu1 }
 0x522   : > { %v11647_v35 = vadd.f32 %v11646_v43, %v11645_v51  ;;  %v11711_v44 = vadd.f32 %v11710_v42, %v11709_v18  ;;  %v11648_v5 = vpop.f32.mrb[42].mxu0  ;;  %v11712_v29 = vpop.f32.mrb[42].mxu1 }
 0x523   : > { %v11649_v28 = vpop.f32.mrb[43].mxu0  ;;  %v11713_v61 = vpop.f32.mrb[43].mxu1 }
 0x524   : > { %v16114_v3 = vadd.f32 %v11647_v35, %v15996_v36  ;;  %v16117_v23 = vadd.f32 %v11711_v44, %v15999_v40  ;;  %v11650_v0 = vadd.f32 %v11649_v28, %v11648_v5  ;;  %v11714_v38 = vadd.f32 %v11713_v61, %v11712_v29 }
 0x526   : > { %v16120_v16 = vadd.f32 %v11650_v0, %v16002_v57  ;;  %v16123_v20 = vadd.f32 %v11714_v38, %v16005_v15 }
 0x528   : > { %v11651_v54 = vpop.f32.mrb[44].mxu0  ;;  %v11715_v27 = vpop.f32.mrb[44].mxu1 }
 0x529   : > { %v11652_v34 = vpop.f32.mrb[45].mxu0  ;;  %v11716_v53 = vpop.f32.mrb[45].mxu1 }
 0x52a   : > { %v11653_v17 = vadd.f32 %v11652_v34, %v11651_v54  ;;  %v11717_v25 = vadd.f32 %v11716_v53, %v11715_v27  ;;  %v11654_v62 = vpop.f32.mrb[46].mxu0  ;;  %v11718_v36 = vpop.f32.mrb[46].mxu1 }
 0x52b   : > { %v11655_v33 = vpop.f32.mrb[47].mxu0  ;;  %v11719_v14 = vpop.f32.mrb[47].mxu1 }
 0x52c   : > { %v16126_v40 = vadd.f32 %v11653_v17, %v16012_v9  ;;  %v16129_v2 = vadd.f32 %v11717_v25, %v16015_v48  ;;  %v11656_v57 = vadd.f32 %v11655_v33, %v11654_v62  ;;  %v11720_v41 = vadd.f32 %v11719_v14, %v11718_v36 }
 0x52e   : > { %v16132_v15 = vadd.f32 %v11656_v57, %v16018_v50  ;;  %v16135_v58 = vadd.f32 %v11720_v41, %v16021_v6 }
 0x530   : > { %v11721_v4 = vpop.f32.mrb[48].mxu1  ;;  %v11785_v12 = vpop.f32.mrb[48].mxu0 }
 0x531   : > { %v11722_v47 = vpop.f32.mrb[49].mxu1  ;;  %v11786_v24 = vpop.f32.mrb[49].mxu0 }
 0x532   : > { %v11723_v51 = vadd.f32 %v11722_v47, %v11721_v4  ;;  %v11787_v18 = vadd.f32 %v11786_v24, %v11785_v12  ;;  %v11724_v43 = vpop.f32.mrb[50].mxu1  ;;  %v11788_v9 = vpop.f32.mrb[50].mxu0 }
 0x533   : > { %v11725_v42 = vpop.f32.mrb[51].mxu1  ;;  %v11789_v35 = vpop.f32.mrb[51].mxu0 }
 0x534   : > { %v16138_v48 = vadd.f32 %v11723_v51, %v16028_v59  ;;  %v16141_v44 = vadd.f32 %v11787_v18, %v16031_v11  ;;  %v11726_v50 = vadd.f32 %v11725_v42, %v11724_v43  ;;  %v11790_v5 = vadd.f32 %v11789_v35, %v11788_v9 }
 0x536   : > { %v16144_v6 = vadd.f32 %v11726_v50, %v16034_v1  ;;  %v16147_v29 = vadd.f32 %v11790_v5, %v16037_v32 }
 0x538   : > { %v11727_v28 = vpop.f32.mrb[52].mxu1  ;;  %v11791_v61 = vpop.f32.mrb[52].mxu0 }
 0x539   : > { %v11728_v0 = vpop.f32.mrb[53].mxu1  ;;  %v11792_v38 = vpop.f32.mrb[53].mxu0 }
 0x53a   : > { %v11729_v54 = vadd.f32 %v11728_v0, %v11727_v28  ;;  %v11793_v27 = vadd.f32 %v11792_v38, %v11791_v61  ;;  %v11730_v34 = vpop.f32.mrb[54].mxu1  ;;  %v11794_v59 = vpop.f32.mrb[54].mxu0 }
 0x53b   : > { %v11731_v53 = vpop.f32.mrb[55].mxu1  ;;  %v11795_v17 = vpop.f32.mrb[55].mxu0 }
 0x53c   : > { %v16150_v11 = vadd.f32 %v11729_v54, %v16044_v37  ;;  %v16153_v25 = vadd.f32 %v11793_v27, %v16047_v31  ;;  %v11732_v1 = vadd.f32 %v11731_v53, %v11730_v34  ;;  %v11796_v62 = vadd.f32 %v11795_v17, %v11794_v59 }
 0x53e   : > { %v16156_v32 = vadd.f32 %v11732_v1, %v16050_v45  ;;  %v16159_v36 = vadd.f32 %v11796_v62, %v16053_v55 }
 0x540   : > { %v11733_v33 = vpop.f32.mrb[56].mxu1  ;;  %v11797_v14 = vpop.f32.mrb[56].mxu0 }
 0x541   : > { %v11734_v57 = vpop.f32.mrb[57].mxu1  ;;  %v11798_v41 = vpop.f32.mrb[57].mxu0 }
 0x542   : > { %v11735_v4 = vadd.f32 %v11734_v57, %v11733_v33  ;;  %v11799_v12 = vadd.f32 %v11798_v41, %v11797_v14  ;;  %v11736_v47 = vpop.f32.mrb[58].mxu1  ;;  %v11800_v37 = vpop.f32.mrb[58].mxu0 }
 0x543   : > { %v11737_v24 = vpop.f32.mrb[59].mxu1  ;;  %v11801_v51 = vpop.f32.mrb[59].mxu0 }
 0x544   : > { %v16162_v31 = vadd.f32 %v11735_v4, %v16060_v10  ;;  %v16165_v18 = vadd.f32 %v11799_v12, %v16063_v52  ;;  %v11738_v45 = vadd.f32 %v11737_v24, %v11736_v47  ;;  %v11802_v43 = vadd.f32 %v11801_v51, %v11800_v37 }
 0x546   : > { %v16168_v55 = vadd.f32 %v11738_v45, %v16066_v56  ;;  %v16171_v9 = vadd.f32 %v11802_v43, %v16069_v8 }
 0x548   : > { %v11739_v42 = vpop.f32.mrb[60].mxu1  ;;  %v11803_v35 = vpop.f32.mrb[60].mxu0 }
 0x549   : > { %v11740_v50 = vpop.f32.mrb[61].mxu1  ;;  %v11804_v5 = vpop.f32.mrb[61].mxu0 }
 0x54a   : > { %v11741_v28 = vadd.f32 %v11740_v50, %v11739_v42  ;;  %v11805_v61 = vadd.f32 %v11804_v5, %v11803_v35  ;;  %v11742_v0 = vpop.f32.mrb[62].mxu1  ;;  %v11806_v10 = vpop.f32.mrb[62].mxu0 }
 0x54b   : > { %v11743_v38 = vpop.f32.mrb[63].mxu1  ;;  %v11807_v54 = vpop.f32.mrb[63].mxu0 }
 0x54c   : > { %v16174_v52 = vadd.f32 %v11741_v28, %v16076_v39  ;;  %v16177_v27 = vadd.f32 %v11805_v61, %v16079_v7  ;;  %v11744_v56 = vadd.f32 %v11743_v38, %v11742_v0  ;;  %v11808_v34 = vadd.f32 %v11807_v54, %v11806_v10 }
 0x54e   : > { %v16180_v8 = vadd.f32 %v11744_v56, %v16082_v30  ;;  %v16183_v59 = vadd.f32 %v11808_v34, %v16085_v46 }
 0x550   : > { %v11745_v53 = vpop.f32.mrb[64].mxu1  ;;  %v11809_v17 = vpop.f32.mrb[64].mxu0 }
 0x551   : > { %v11746_v1 = vpop.f32.mrb[65].mxu1  ;;  %v11810_v62 = vpop.f32.mrb[65].mxu0 }
 0x552   : > { %v11747_v33 = vadd.f32 %v11746_v1, %v11745_v53  ;;  %v11811_v14 = vadd.f32 %v11810_v62, %v11809_v17  ;;  %v11748_v57 = vpop.f32.mrb[66].mxu1  ;;  %v11812_v39 = vpop.f32.mrb[66].mxu0 }
 0x553   : > { %v11749_v41 = vpop.f32.mrb[67].mxu1  ;;  %v11813_v4 = vpop.f32.mrb[67].mxu0 }
 0x554   : > { %v16186_v7 = vadd.f32 %v11747_v33, %v16090_v22  ;;  %v16189_v12 = vadd.f32 %v11811_v14, %v16093_v26  ;;  %v11750_v30 = vadd.f32 %v11749_v41, %v11748_v57  ;;  %v11814_v47 = vadd.f32 %v11813_v4, %v11812_v39 }
 0x556   : > { %v16192_v46 = vadd.f32 %v11750_v30, %v16096_v63  ;;  %v16195_v37 = vadd.f32 %v11814_v47, %v16099_v49 }
 0x558   : > { %v11751_v24 = vpop.f32.mrb[68].mxu1  ;;  %v11815_v51 = vpop.f32.mrb[68].mxu0 }
 0x559   : > { %v11752_v45 = vpop.f32.mrb[69].mxu1  ;;  %v11816_v43 = vpop.f32.mrb[69].mxu0 }
 0x55a   : > { %v11753_v42 = vadd.f32 %v11752_v45, %v11751_v24  ;;  %v11817_v35 = vadd.f32 %v11816_v43, %v11815_v51  ;;  %v11754_v50 = vpop.f32.mrb[70].mxu1  ;;  %v11818_v22 = vpop.f32.mrb[70].mxu0 }
 0x55b   : > { %v11755_v5 = vpop.f32.mrb[71].mxu1  ;;  %v11819_v28 = vpop.f32.mrb[71].mxu0 }
 0x55c   : > { %v16198_v26 = vadd.f32 %v11753_v42, %v16102_v13  ;;  %v16201_v61 = vadd.f32 %v11817_v35, %v16105_v19  ;;  %v11756_v63 = vadd.f32 %v11755_v5, %v11754_v50  ;;  %v11820_v0 = vadd.f32 %v11819_v28, %v11818_v22 }
 0x55e   : > { %v16204_v49 = vadd.f32 %v11756_v63, %v16108_v21  ;;  %v16207_v10 = vadd.f32 %v11820_v0, %v16111_v60 }
 0x560   : > { %v11757_v38 = vpop.f32.mrb[72].mxu1  ;;  %v11821_v54 = vpop.f32.mrb[72].mxu0 }
 0x561   : > { %v11758_v56 = vpop.f32.mrb[73].mxu1  ;;  %v11822_v34 = vpop.f32.mrb[73].mxu0 }
 0x562   : > { %v11759_v53 = vadd.f32 %v11758_v56, %v11757_v38  ;;  %v11823_v17 = vadd.f32 %v11822_v34, %v11821_v54  ;;  %v11760_v1 = vpop.f32.mrb[74].mxu1  ;;  %v11824_v13 = vpop.f32.mrb[74].mxu0 }
 0x563   : > { %v11761_v62 = vpop.f32.mrb[75].mxu1  ;;  %v11825_v33 = vpop.f32.mrb[75].mxu0 }
 0x564   : > { %v16210_v19 = vadd.f32 %v11759_v53, %v16114_v3  ;;  %v16213_v14 = vadd.f32 %v11823_v17, %v16117_v23  ;;  %v11762_v21 = vadd.f32 %v11761_v62, %v11760_v1  ;;  %v11826_v57 = vadd.f32 %v11825_v33, %v11824_v13 }
 0x566   : > { %v16216_v60 = vadd.f32 %v11762_v21, %v16120_v16  ;;  %v16219_v39 = vadd.f32 %v11826_v57, %v16123_v20 }
 0x568   : > { %v11763_v41 = vpop.f32.mrb[76].mxu1  ;;  %v11827_v4 = vpop.f32.mrb[76].mxu0 }
 0x569   : > { %v11764_v30 = vpop.f32.mrb[77].mxu1  ;;  %v11828_v47 = vpop.f32.mrb[77].mxu0 }
 0x56a   : > { %v11765_v24 = vadd.f32 %v11764_v30, %v11763_v41  ;;  %v11829_v51 = vadd.f32 %v11828_v47, %v11827_v4  ;;  %v11766_v45 = vpop.f32.mrb[78].mxu1  ;;  %v11830_v3 = vpop.f32.mrb[78].mxu0 }
 0x56b   : > { %v11767_v43 = vpop.f32.mrb[79].mxu1  ;;  %v11831_v42 = vpop.f32.mrb[79].mxu0 }
 0x56c   : > { %v16222_v23 = vadd.f32 %v11765_v24, %v16126_v40  ;;  %v16225_v35 = vadd.f32 %v11829_v51, %v16129_v2  ;;  %v11768_v16 = vadd.f32 %v11767_v43, %v11766_v45  ;;  %v11832_v50 = vadd.f32 %v11831_v42, %v11830_v3 }
 0x56e   : > { %v16228_v20 = vadd.f32 %v11768_v16, %v16132_v15  ;;  %v16231_v22 = vadd.f32 %v11832_v50, %v16135_v58 }
 0x570   : > { %v11833_v5 = vpop.f32.mrb[80].mxu0  ;;  %v11897_v28 = vpop.f32.mrb[80].mxu1 }
 0x571   : > { %v11834_v63 = vpop.f32.mrb[81].mxu0  ;;  %v11898_v0 = vpop.f32.mrb[81].mxu1 }
 0x572   : > { %v11835_v38 = vadd.f32 %v11834_v63, %v11833_v5  ;;  %v11899_v54 = vadd.f32 %v11898_v0, %v11897_v28  ;;  %v11836_v56 = vpop.f32.mrb[82].mxu0  ;;  %v11900_v40 = vpop.f32.mrb[82].mxu1 }
 0x573   : > { %v11837_v34 = vpop.f32.mrb[83].mxu0  ;;  %v11901_v53 = vpop.f32.mrb[83].mxu1 }
 0x574   : > { %v16234_v2 = vadd.f32 %v11835_v38, %v16138_v48  ;;  %v11838_v17 = vadd.f32 %v11837_v34, %v11836_v56  ;;  %v11902_v1 = vadd.f32 %v11901_v53, %v11900_v40  ;;  %v16237_v15 = vadd.f32 %v11899_v54, %v16141_v44 }
 0x576   : > { %v16240_v58 = vadd.f32 %v11838_v17, %v16144_v6  ;;  %v16243_v13 = vadd.f32 %v11902_v1, %v16147_v29 }
 0x578   : > { %v11839_v62 = vpop.f32.mrb[84].mxu0  ;;  %v11903_v33 = vpop.f32.mrb[84].mxu1 }
 0x579   : > { %v11840_v21 = vpop.f32.mrb[85].mxu0  ;;  %v11904_v57 = vpop.f32.mrb[85].mxu1 }
 0x57a   : > { %v11841_v41 = vadd.f32 %v11840_v21, %v11839_v62  ;;  %v11905_v4 = vadd.f32 %v11904_v57, %v11903_v33  ;;  %v11842_v30 = vpop.f32.mrb[86].mxu0  ;;  %v11906_v48 = vpop.f32.mrb[86].mxu1 }
 0x57b   : > { %v11843_v47 = vpop.f32.mrb[87].mxu0  ;;  %v11907_v24 = vpop.f32.mrb[87].mxu1 }
 0x57c   : > { %v16246_v51 = vadd.f32 %v11841_v41, %v16150_v11  ;;  %v11844_v44 = vadd.f32 %v11843_v47, %v11842_v30  ;;  %v11908_v45 = vadd.f32 %v11907_v24, %v11906_v48  ;;  %v16249_v6 = vadd.f32 %v11905_v4, %v16153_v25 }
 0x57e   : > { %v16252_v29 = vadd.f32 %v11844_v44, %v16156_v32  ;;  %v16255_v3 = vadd.f32 %v11908_v45, %v16159_v36 }
 0x580   : > { %v11845_v43 = vpop.f32.mrb[88].mxu0  ;;  %v11909_v42 = vpop.f32.mrb[88].mxu1 }
 0x581   : > { %v11846_v16 = vpop.f32.mrb[89].mxu0  ;;  %v11910_v50 = vpop.f32.mrb[89].mxu1 }
 0x582   : > { %v11847_v5 = vadd.f32 %v11846_v16, %v11845_v43  ;;  %v11911_v28 = vadd.f32 %v11910_v50, %v11909_v42  ;;  %v11848_v63 = vpop.f32.mrb[90].mxu0  ;;  %v11912_v11 = vpop.f32.mrb[90].mxu1 }
 0x583   : > { %v11849_v0 = vpop.f32.mrb[91].mxu0  ;;  %v11913_v38 = vpop.f32.mrb[91].mxu1 }
 0x584   : > { %v16258_v54 = vadd.f32 %v11847_v5, %v16162_v31  ;;  %v11850_v25 = vadd.f32 %v11849_v0, %v11848_v63  ;;  %v11914_v56 = vadd.f32 %v11913_v38, %v11912_v11  ;;  %v16261_v32 = vadd.f32 %v11911_v28, %v16165_v18 }
 0x586   : > { %v16264_v36 = vadd.f32 %v11850_v25, %v16168_v55  ;;  %v16267_v40 = vadd.f32 %v11914_v56, %v16171_v9 }
 0x588   : > { %v11851_v34 = vpop.f32.mrb[92].mxu0  ;;  %v11915_v53 = vpop.f32.mrb[92].mxu1 }
 0x589   : > { %v11852_v17 = vpop.f32.mrb[93].mxu0  ;;  %v11916_v1 = vpop.f32.mrb[93].mxu1 }
 0x58a   : > { %v11853_v62 = vadd.f32 %v11852_v17, %v11851_v34  ;;  %v11917_v33 = vadd.f32 %v11916_v1, %v11915_v53  ;;  %v11854_v21 = vpop.f32.mrb[94].mxu0  ;;  %v11918_v31 = vpop.f32.mrb[94].mxu1 }
 0x58b   : > { %v11855_v57 = vpop.f32.mrb[95].mxu0  ;;  %v11919_v41 = vpop.f32.mrb[95].mxu1 }
 0x58c   : > { %v16270_v4 = vadd.f32 %v11853_v62, %v16174_v52  ;;  %v11856_v18 = vadd.f32 %v11855_v57, %v11854_v21  ;;  %v11920_v30 = vadd.f32 %v11919_v41, %v11918_v31  ;;  %v16273_v55 = vadd.f32 %v11917_v33, %v16177_v27 }
 0x58e   : > { %v16276_v9 = vadd.f32 %v11856_v18, %v16180_v8  ;;  %v16279_v48 = vadd.f32 %v11920_v30, %v16183_v59 }
 0x590   : > { %v11857_v47 = vpop.f32.mrb[96].mxu0  ;;  %v11921_v24 = vpop.f32.mrb[96].mxu1 }
 0x591   : > { %v11858_v44 = vpop.f32.mrb[97].mxu0  ;;  %v11922_v45 = vpop.f32.mrb[97].mxu1 }
 0x592   : > { %v11859_v43 = vadd.f32 %v11858_v44, %v11857_v47  ;;  %v11923_v42 = vadd.f32 %v11922_v45, %v11921_v24  ;;  %v11860_v16 = vpop.f32.mrb[98].mxu0  ;;  %v11924_v52 = vpop.f32.mrb[98].mxu1 }
 0x593   : > { %v11861_v50 = vpop.f32.mrb[99].mxu0  ;;  %v11925_v5 = vpop.f32.mrb[99].mxu1 }
 0x594   : > { %v16282_v28 = vadd.f32 %v11859_v43, %v16186_v7  ;;  %v11862_v27 = vadd.f32 %v11861_v50, %v11860_v16  ;;  %v11926_v63 = vadd.f32 %v11925_v5, %v11924_v52  ;;  %v16285_v8 = vadd.f32 %v11923_v42, %v16189_v12 }
 0x596   : > { %v16288_v59 = vadd.f32 %v11862_v27, %v16192_v46  ;;  %v16291_v11 = vadd.f32 %v11926_v63, %v16195_v37 }
 0x598   : > { %v11863_v0 = vpop.f32.mrb[100].mxu0  ;;  %v11927_v38 = vpop.f32.mrb[100].mxu1 }
 0x599   : > { %v11864_v25 = vpop.f32.mrb[101].mxu0  ;;  %v11928_v56 = vpop.f32.mrb[101].mxu1 }
 0x59a   : > { %v11865_v34 = vadd.f32 %v11864_v25, %v11863_v0  ;;  %v11929_v53 = vadd.f32 %v11928_v56, %v11927_v38  ;;  %v11866_v17 = vpop.f32.mrb[102].mxu0  ;;  %v11930_v7 = vpop.f32.mrb[102].mxu1 }
 0x59b   : > { %v11867_v1 = vpop.f32.mrb[103].mxu0  ;;  %v11931_v62 = vpop.f32.mrb[103].mxu1 }
 0x59c   : > { %v16294_v33 = vadd.f32 %v11865_v34, %v16198_v26  ;;  %v11868_v12 = vadd.f32 %v11867_v1, %v11866_v17  ;;  %v11932_v21 = vadd.f32 %v11931_v62, %v11930_v7  ;;  %v16297_v46 = vadd.f32 %v11929_v53, %v16201_v61  ;;  %v726_v62 = vld [vmem:[#allocation2 + $0x10] sm:$0xff] }
 0x59e   : > { %v16300_v37 = vadd.f32 %v11868_v12, %v16204_v49  ;;  %v16303_v31 = vadd.f32 %v11932_v21, %v16207_v10 }
 0x5a0   : > { %v11869_v57 = vpop.f32.mrb[104].mxu0  ;;  %v11933_v41 = vpop.f32.mrb[104].mxu1 }
 0x5a1   : > { %v11870_v18 = vpop.f32.mrb[105].mxu0  ;;  %v11934_v30 = vpop.f32.mrb[105].mxu1 }
 0x5a2   : > { %v11871_v47 = vadd.f32 %v11870_v18, %v11869_v57  ;;  %v11935_v24 = vadd.f32 %v11934_v30, %v11933_v41  ;;  %v11872_v44 = vpop.f32.mrb[106].mxu0  ;;  %v11936_v26 = vpop.f32.mrb[106].mxu1  ;;  %v724_v41 = vld [vmem:[#allocation2] sm:$0xff] }
 0x5a3   : > { %v11873_v45 = vpop.f32.mrb[107].mxu0  ;;  %v11937_v43 = vpop.f32.mrb[107].mxu1 }
 0x5a4   : > { %v16306_v42 = vadd.f32 %v11871_v47, %v16210_v19  ;;  %v11874_v61 = vadd.f32 %v11873_v45, %v11872_v44  ;;  %v11938_v16 = vadd.f32 %v11937_v43, %v11936_v26  ;;  %v16309_v49 = vadd.f32 %v11935_v24, %v16213_v14 }
 0x5a6   : > { %v16312_v10 = vadd.f32 %v11874_v61, %v16216_v60  ;;  %v16315_v52 = vadd.f32 %v11938_v16, %v16219_v39 }
 0x5a8   : > { %v11875_v50 = vpop.f32.mrb[108].mxu0  ;;  %v11939_v5 = vpop.f32.mrb[108].mxu1 }
 0x5a9   : > { %v11876_v27 = vpop.f32.mrb[109].mxu0  ;;  %v11940_v63 = vpop.f32.mrb[109].mxu1 }
 0x5aa   : > { %v11877_v0 = vadd.f32 %v11876_v27, %v11875_v50  ;;  %v11941_v38 = vadd.f32 %v11940_v63, %v11939_v5  ;;  %v11878_v25 = vpop.f32.mrb[110].mxu0  ;;  %v11942_v19 = vpop.f32.mrb[110].mxu1  ;;  %v730_v27 = vld [vmem:[#allocation2 + $0x30] sm:$0xff] }
 0x5ab   : > { %v11879_v56 = vpop.f32.mrb[111].mxu0  ;;  %v11943_v34 = vpop.f32.mrb[111].mxu1 }
 0x5ac   : > { %v16318_v53 = vadd.f32 %v11877_v0, %v16222_v23  ;;  %v11880_v14 = vadd.f32 %v11879_v56, %v11878_v25  ;;  %v11944_v17 = vadd.f32 %v11943_v34, %v11942_v19  ;;  %v16321_v60 = vadd.f32 %v11941_v38, %v16225_v35  ;;  %v727_v35 = vld [vmem:[#allocation2 + $0x18] sm:$0xff]  ;;  %v728_v25 = vld [vmem:[#allocation2 + $0x20] sm:$0xff] }
 0x5ad   : > { %v731_v34 = vld [vmem:[#allocation2 + $0x38] sm:$0xff] }
 0x5ae   : > { %v16324_v39 = vadd.f32 %v11880_v14, %v16228_v20  ;;  %v16327_v7 = vadd.f32 %v11944_v17, %v16231_v22  ;;  %v725_v22 = vld [vmem:[#allocation2 + $0x8] sm:$0xff] }
 0x5b0   : > { %v11945_v1 = vpop.f32.mrb[112].mxu1  ;;  %v12083_v12 = vpop.f32.mrb[112].mxu0 }
 0x5b1   : > { %v6763_v21 = vadd.f32 %v12083_v12, %v16249_v6  ;;  %v11946_v57 = vpop.f32.mrb[113].mxu1  ;;  %v6754_v23 = vpop.f32.mrb[113].mxu0 }
 0x5b2   : > { %v11947_v18 = vadd.f32 %v11946_v57, %v11945_v1  ;;  %v6755_v30 = vadd.f32 %v6754_v23, %v16237_v15  ;;  %v11948_v47 = vpop.f32.mrb[114].mxu1  ;;  %v12084_v24 = vpop.f32.mrb[114].mxu0 }
 0x5b3   : > { %v6883_v44 = vadd.f32 %v6763_v21, %v726_v62  ;;  %v6766_v20 = vadd.f32 %v12084_v24, %v16255_v3  ;;  %v11949_v26 = vpop.f32.mrb[115].mxu1  ;;  %v6757_v45 = vpop.f32.mrb[115].mxu0  ;;  %v729_v62 = vld [vmem:[#allocation2 + $0x28] sm:$0xff] }
 0x5b4   : > { %v6881_v43 = vadd.f32 %v6755_v30, %v724_v41  ;;  %v11950_v61 = vadd.f32 %v11949_v26, %v11948_v47  ;;  %v6758_v16 = vadd.f32 %v6757_v45, %v16243_v13  ;;  %v16334_v6 = vadd.f32 %v11947_v18, %v16234_v2  ;;  %v734_v30 = vld [vmem:[#allocation2 + $0x50] sm:$0xff] }
 0x5b5   : > { %6915 = vst [vmem:[#allocation2 + $0x10] sm:$0xff] %v6883_v44  ;;  %v6884_v50 = vadd.f32 %v6766_v20, %v727_v35  ;;  %v732_v44 = vld [vmem:[#allocation2 + $0x40] sm:$0xff] }
 0x5b6   : > { %6913 = vst [vmem:[#allocation2] sm:$0xff] %v6881_v43  ;;  %v6882_v15 = vadd.f32 %v6758_v16, %v725_v22  ;;  %v16337_v5 = vadd.f32 %v11950_v61, %v16240_v58  ;;  %v735_v22 = vld [vmem:[#allocation2 + $0x58] sm:$0xff]  ;;  %v733_v16 = vld [vmem:[#allocation2 + $0x48] sm:$0xff] }
 0x5b7   : > { %6916 = vst [vmem:[#allocation2 + $0x18] sm:$0xff] %v6884_v50 }
 0x5b8   : > { %6914 = vst [vmem:[#allocation2 + $0x8] sm:$0xff] %v6882_v15  ;;  %v11951_v3 = vpop.f32.mrb[116].mxu1  ;;  %v12087_v63 = vpop.f32.mrb[116].mxu0 }
 0x5b9   : > { %v6779_v0 = vadd.f32 %v12087_v63, %v16273_v55  ;;  %v11952_v38 = vpop.f32.mrb[117].mxu1  ;;  %v6770_v13 = vpop.f32.mrb[117].mxu0 }
 0x5ba   : > { %v11953_v19 = vadd.f32 %v11952_v38, %v11951_v3  ;;  %v6771_v2 = vadd.f32 %v6770_v13, %v16261_v32  ;;  %v11954_v56 = vpop.f32.mrb[118].mxu1  ;;  %v12088_v14 = vpop.f32.mrb[118].mxu0  ;;  %v738_v38 = vld [vmem:[#allocation2 + $0x70] sm:$0xff] }
 0x5bb   : > { %v6887_v17 = vadd.f32 %v6779_v0, %v730_v27  ;;  %v6782_v58 = vadd.f32 %v12088_v14, %v16279_v48  ;;  %v11955_v1 = vpop.f32.mrb[119].mxu1  ;;  %v6773_v12 = vpop.f32.mrb[119].mxu0  ;;  %v739_v14 = vld [vmem:[#allocation2 + $0x78] sm:$0xff] }
 0x5bc   : > { %v6885_v21 = vadd.f32 %v6771_v2, %v728_v25  ;;  %v11956_v57 = vadd.f32 %v11955_v1, %v11954_v56  ;;  %v6774_v41 = vadd.f32 %v6773_v12, %v16267_v40  ;;  %v16344_v55 = vadd.f32 %v11953_v19, %v16246_v51  ;;  %v736_v2 = vld [vmem:[#allocation2 + $0x60] sm:$0xff] }
 0x5bd   : > { %6919 = vst [vmem:[#allocation2 + $0x30] sm:$0xff] %v6887_v17  ;;  %v6888_v23 = vadd.f32 %v6782_v58, %v731_v34 }
 0x5be   : > { %6917 = vst [vmem:[#allocation2 + $0x20] sm:$0xff] %v6885_v21  ;;  %v6886_v32 = vadd.f32 %v6774_v41, %v729_v62  ;;  %v16347_v18 = vadd.f32 %v11956_v57, %v16252_v29  ;;  %v737_v62 = vld [vmem:[#allocation2 + $0x68] sm:$0xff] }
 0x5bf   : > { %6920 = vst [vmem:[#allocation2 + $0x38] sm:$0xff] %v6888_v23 }
 0x5c0   : > { %6918 = vst [vmem:[#allocation2 + $0x28] sm:$0xff] %v6886_v32  ;;  %v11957_v48 = vpop.f32.mrb[120].mxu1  ;;  %v12091_v47 = vpop.f32.mrb[120].mxu0 }
 0x5c1   : > { %v6795_v35 = vadd.f32 %v12091_v47, %v16297_v46  ;;  %v11958_v24 = vpop.f32.mrb[121].mxu1  ;;  %v6786_v40 = vpop.f32.mrb[121].mxu0 }
 0x5c2   : > { %v11959_v20 = vadd.f32 %v11958_v24, %v11957_v48  ;;  %v6787_v51 = vadd.f32 %v6786_v40, %v16285_v8  ;;  %v11960_v26 = vpop.f32.mrb[122].mxu1  ;;  %v12092_v45 = vpop.f32.mrb[122].mxu0  ;;  %v740_v24 = vld [vmem:[#allocation2 + $0x80] sm:$0xff] }
 0x5c3   : > { %v6891_v43 = vadd.f32 %v6795_v35, %v734_v30  ;;  %v6798_v29 = vadd.f32 %v12092_v45, %v16303_v31  ;;  %v11961_v61 = vpop.f32.mrb[123].mxu1  ;;  %v6789_v50 = vpop.f32.mrb[123].mxu0  ;;  %v742_v30 = vld [vmem:[#allocation2 + $0x90] sm:$0xff]  ;;  %v741_v45 = vld [vmem:[#allocation2 + $0x88] sm:$0xff] }
 0x5c4   : > { %v6889_v15 = vadd.f32 %v6787_v51, %v732_v44  ;;  %v11962_v3 = vadd.f32 %v11961_v61, %v11960_v26  ;;  %v6790_v27 = vadd.f32 %v6789_v50, %v16291_v11  ;;  %v16354_v46 = vadd.f32 %v11959_v20, %v16258_v54  ;;  %v743_v20 = vld [vmem:[#allocation2 + $0x98] sm:$0xff] }
 0x5c5   : > { %6923 = vst [vmem:[#allocation2 + $0x50] sm:$0xff] %v6891_v43  ;;  %v6892_v63 = vadd.f32 %v6798_v29, %v735_v22 }
 0x5c6   : > { %6921 = vst [vmem:[#allocation2 + $0x40] sm:$0xff] %v6889_v15  ;;  %v6890_v8 = vadd.f32 %v6790_v27, %v733_v16  ;;  %v16357_v0 = vadd.f32 %v11962_v3, %v16264_v36  ;;  %v746_v27 = vld [vmem:[#allocation2 + $0xb0] sm:$0xff] }
 0x5c7   : > { %6924 = vst [vmem:[#allocation2 + $0x58] sm:$0xff] %v6892_v63 }
 0x5c8   : > { %6922 = vst [vmem:[#allocation2 + $0x48] sm:$0xff] %v6890_v8  ;;  %v11963_v31 = vpop.f32.mrb[124].mxu1  ;;  %v12095_v25 = vpop.f32.mrb[124].mxu0 }
 0x5c9   : > { %v6811_v13 = vadd.f32 %v12095_v25, %v16321_v60  ;;  %v11964_v19 = vpop.f32.mrb[125].mxu1  ;;  %v6802_v11 = vpop.f32.mrb[125].mxu0 }
 0x5ca   : > { %v11965_v56 = vadd.f32 %v11964_v19, %v11963_v31  ;;  %v6803_v54 = vadd.f32 %v6802_v11, %v16309_v49  ;;  %v11966_v34 = vpop.f32.mrb[126].mxu1  ;;  %v12096_v17 = vpop.f32.mrb[126].mxu0  ;;  %v744_v31 = vld [vmem:[#allocation2 + $0xa0] sm:$0xff] }
 0x5cb   : > { %v6895_v58 = vadd.f32 %v6811_v13, %v738_v38  ;;  %v6814_v36 = vadd.f32 %v12096_v17, %v16327_v7  ;;  %v11967_v1 = vpop.f32.mrb[127].mxu1  ;;  %v6805_v12 = vpop.f32.mrb[127].mxu0 }
 0x5cc   : > { %v6893_v21 = vadd.f32 %v6803_v54, %v736_v2  ;;  %v11968_v57 = vadd.f32 %v11967_v1, %v11966_v34  ;;  %v6806_v41 = vadd.f32 %v6805_v12, %v16315_v52  ;;  %v6682_v60 = vadd.f32 %v11965_v56, %v16270_v4  ;;  %v745_v54 = vld [vmem:[#allocation2 + $0xa8] sm:$0xff]  ;;  %v750_v12 = vld [vmem:[#allocation2 + $0xd0] sm:$0xff] }
 0x5cd   : > { %6927 = vst [vmem:[#allocation2 + $0x70] sm:$0xff] %v6895_v58  ;;  %v6896_v23 = vadd.f32 %v6814_v36, %v739_v14 }
 0x5ce   : > { %6925 = vst [vmem:[#allocation2 + $0x60] sm:$0xff] %v6893_v21  ;;  %v6894_v32 = vadd.f32 %v6806_v41, %v737_v62  ;;  %v6685_v49 = vadd.f32 %v11968_v57, %v16276_v9 }
 0x5cf   : > { %6928 = vst [vmem:[#allocation2 + $0x78] sm:$0xff] %v6896_v23 }
 0x5d0   : > { %6926 = vst [vmem:[#allocation2 + $0x68] sm:$0xff] %v6894_v32  ;;  %v11969_v48 = vpop.f32.mrb[128].mxu1  ;;  %v12099_v7 = vpop.f32.mrb[128].mxu0 }
 0x5d1   : > { %v6827_v47 = vadd.f32 %v12099_v7, %v16344_v55  ;;  %v11970_v35 = vpop.f32.mrb[129].mxu1  ;;  %v6818_v44 = vpop.f32.mrb[129].mxu0 }
 0x5d2   : > { %v11971_v40 = vadd.f32 %v11970_v35, %v11969_v48  ;;  %v6819_v52 = vadd.f32 %v6818_v44, %v16334_v6  ;;  %v11972_v4 = vpop.f32.mrb[130].mxu1  ;;  %v12100_v51 = vpop.f32.mrb[130].mxu0  ;;  %v751_v48 = vld [vmem:[#allocation2 + $0xd8] sm:$0xff]  ;;  %v749_v35 = vld [vmem:[#allocation2 + $0xc8] sm:$0xff] }
 0x5d3   : > { %v6899_v26 = vadd.f32 %v6827_v47, %v742_v30  ;;  %v6830_v22 = vadd.f32 %v12100_v51, %v16347_v18  ;;  %v11973_v9 = vpop.f32.mrb[131].mxu1  ;;  %v6821_v43 = vpop.f32.mrb[131].mxu0 }
 0x5d4   : > { %v6897_v29 = vadd.f32 %v6819_v52, %v740_v24  ;;  %v11974_v61 = vadd.f32 %v11973_v9, %v11972_v4  ;;  %v6822_v16 = vadd.f32 %v6821_v43, %v16337_v5  ;;  %v6690_v55 = vadd.f32 %v11971_v40, %v16282_v28  ;;  %v747_v28 = vld [vmem:[#allocation2 + $0xb8] sm:$0xff] }
 0x5d5   : > { %6931 = vst [vmem:[#allocation2 + $0x90] sm:$0xff] %v6899_v26  ;;  %v6900_v50 = vadd.f32 %v6830_v22, %v743_v20 }
 0x5d6   : > { %6929 = vst [vmem:[#allocation2 + $0x80] sm:$0xff] %v6897_v29  ;;  %v6898_v15 = vadd.f32 %v6822_v16, %v741_v45  ;;  %v6693_v6 = vadd.f32 %v11974_v61, %v16288_v59  ;;  %v752_v45 = vld [vmem:[#allocation2 + $0xe0] sm:$0xff] }
 0x5d7   : > { %6932 = vst [vmem:[#allocation2 + $0x98] sm:$0xff] %v6900_v50 }
 0x5d8   : > { %6930 = vst [vmem:[#allocation2 + $0x88] sm:$0xff] %v6898_v15  ;;  %v11975_v3 = vpop.f32.mrb[132].mxu1  ;;  %v12103_v18 = vpop.f32.mrb[132].mxu0  ;;  %v753_v15 = vld [vmem:[#allocation2 + $0xe8] sm:$0xff] }
 0x5d9   : > { %v6843_v63 = vadd.f32 %v12103_v18, %v6682_v60  ;;  %v11976_v8 = vpop.f32.mrb[133].mxu1  ;;  %v6834_v38 = vpop.f32.mrb[133].mxu0  ;;  %v748_v60 = vld [vmem:[#allocation2 + $0xc0] sm:$0xff] }
 0x5da   : > { %v11977_v25 = vadd.f32 %v11976_v8, %v11975_v3  ;;  %v6835_v5 = vadd.f32 %v6834_v38, %v16354_v46  ;;  %v11978_v13 = vpop.f32.mrb[134].mxu1  ;;  %v12104_v19 = vpop.f32.mrb[134].mxu0  ;;  %v755_v38 = vld [vmem:[#allocation2 + $0xf8] sm:$0xff] }
 0x5db   : > { %v6903_v2 = vadd.f32 %v6843_v63, %v746_v27  ;;  %v6846_v11 = vadd.f32 %v12104_v19, %v6685_v49  ;;  %v11979_v56 = vpop.f32.mrb[135].mxu1  ;;  %v6837_v59 = vpop.f32.mrb[135].mxu0  ;;  %v13271_v19 = vld [vmem:[#allocation11 + $0x10] sm:$0xff] (!%p10233_p10)  }
 0x5dc   : > { %v6901_v34 = vadd.f32 %v6835_v5, %v744_v31  ;;  %v11980_v14 = vadd.f32 %v11979_v56, %v11978_v13  ;;  %v6838_v17 = vadd.f32 %v6837_v59, %v16357_v0  ;;  %v6698_v58 = vadd.f32 %v11977_v25, %v16294_v33  ;;  %v16380_v56 = vld [vmem:[#allocation9] ss:$0 sm:$0xff] (!%p10233_p10) }
 0x5dd   : > { %6935 = vst [vmem:[#allocation2 + $0xb0] sm:$0xff] %v6903_v2  ;;  %v6904_v36 = vadd.f32 %v6846_v11, %v747_v28  ;;  %v13270_v28 = vld [vmem:[#allocation11 + $0x8] sm:$0xff] (!%p10233_p10)   ;;  %v13272_v2 = vld [vmem:[#allocation11 + $0x18] sm:$0xff] (!%p10233_p10)  }
 0x5de   : > { %6933 = vst [vmem:[#allocation2 + $0xa0] sm:$0xff] %v6901_v34  ;;  %v6902_v1 = vadd.f32 %v6838_v17, %v745_v54  ;;  %v6701_v46 = vadd.f32 %v11980_v14, %v16300_v37  ;;  %v6950_v11 = vld [vmem:[#allocation2 + $0x8] sm:$0xff] (!%p10233_p10) }
 0x5df   : > { %6936 = vst [vmem:[#allocation2 + $0xb8] sm:$0xff] %v6904_v36  ;;  %v6989_v59 = vadd.f32 (!%p10233_p10), %v16380_v56, %v6950_v11  ;;  %v13273_v14 = vld [vmem:[#allocation11 + $0x20] sm:$0xff] (!%p10233_p10)   ;;  %v13274_v17 = vld [vmem:[#allocation11 + $0x28] sm:$0xff] (!%p10233_p10)  }
 0x5e0   : > { %6934 = vst [vmem:[#allocation2 + $0xa8] sm:$0xff] %v6902_v1  ;;  %v11981_v62 = vpop.f32.mrb[136].mxu1  ;;  %v12107_v21 = vpop.f32.mrb[136].mxu0  ;;  %v6951_v36 = vld [vmem:[#allocation2 + $0x10] sm:$0xff] (!%p10233_p10)  ;;  %v6952_v1 = vld [vmem:[#allocation2 + $0x18] sm:$0xff] (!%p10233_p10) }
 0x5e1   : > { %v6859_v57 = vadd.f32 %v12107_v21, %v6698_v58  ;;  %v11982_v41 = vpop.f32.mrb[137].mxu1  ;;  %v6850_v23 = vpop.f32.mrb[137].mxu0  ;;  %v13275_v58 = vld [vmem:[#allocation11 + $0x30] sm:$0xff] (!%p10233_p10)   ;;  %v6990_v21 = vadd.f32 (!%p10233_p10), %v16380_v56, %v6951_v36 }
 0x5e2   : > { %v11983_v32 = vadd.f32 %v11982_v41, %v11981_v62  ;;  %v6851_v49 = vadd.f32 %v6850_v23, %v6690_v55  ;;  %v11984_v0 = vpop.f32.mrb[138].mxu1  ;;  %v12108_v33 = vpop.f32.mrb[138].mxu0  ;;  %v6953_v62 = vld [vmem:[#allocation2 + $0x20] sm:$0xff] (!%p10233_p10) }
 0x5e3   : > { %v6907_v30 = vadd.f32 %v6859_v57, %v750_v12  ;;  %v6862_v7 = vadd.f32 %v12108_v33, %v6701_v46  ;;  %v11985_v47 = vpop.f32.mrb[139].mxu1  ;;  %v6853_v24 = vpop.f32.mrb[139].mxu0  ;;  %v13276_v46 = vld [vmem:[#allocation11 + $0x38] sm:$0xff] (!%p10233_p10)   ;;  %v6954_v12 = vld [vmem:[#allocation2 + $0x28] sm:$0xff] (!%p10233_p10)  ;;  %v6991_v57 = vadd.f32 (!%p10233_p10), %v16380_v56, %v6952_v1  ;;  %v6992_v41 = vadd.f32 (!%p10233_p10), %v16380_v56, %v6953_v62 }
 0x5e4   : > { %v6905_v37 = vadd.f32 %v6851_v49, %v748_v60  ;;  %v11986_v44 = vadd.f32 %v11985_v47, %v11984_v0  ;;  %v6854_v40 = vadd.f32 %v6853_v24, %v6693_v6  ;;  %v6706_v52 = vadd.f32 %v11983_v32, %v16306_v42  ;;  %v6955_v49 = vld [vmem:[#allocation2 + $0x30] sm:$0xff] (!%p10233_p10)  ;;  %v6956_v0 = vld [vmem:[#allocation2 + $0x38] sm:$0xff] (!%p10233_p10)  ;;  %v6958_v33 = vld [vmem:[#allocation2 + $0x48] sm:$0xff] (!%p10233_p10) }
 0x5e5   : > { %6939 = vst [vmem:[#allocation2 + $0xd0] sm:$0xff] %v6907_v30  ;;  %v6908_v4 = vadd.f32 %v6862_v7, %v751_v48  ;;  %v6993_v60 = vadd.f32 (!%p10233_p10), %v16380_v56, %v6954_v12  ;;  %v7021_v23 = vpack.c.bf16 (!%p10233_p10), %v6991_v57, %v6990_v21  ;;  %v6957_v48 = vld [vmem:[#allocation2 + $0x40] sm:$0xff] (!%p10233_p10)  ;;  %v6994_v30 = vadd.f32 (!%p10233_p10), %v16380_v56, %v6955_v49 }
 0x5e6   : > { %6937 = vst [vmem:[#allocation2 + $0xc0] sm:$0xff] %v6905_v37  ;;  %v6906_v20 = vadd.f32 %v6854_v40, %v749_v35  ;;  %v6709_v51 = vadd.f32 %v11986_v44, %v16312_v10  ;;  %v754_v10 = vld [vmem:[#allocation2 + $0xf0] sm:$0xff]  ;;  %v6995_v7 = vadd.f32 (!%p10233_p10), %v16380_v56, %v6956_v0  ;;  %v6996_v47 = vadd.f32 (!%p10233_p10), %v16380_v56, %v6957_v48  ;;  %v6960_v40 = vld [vmem:[#allocation2 + $0x58] sm:$0xff] (!%p10233_p10)  ;;  %v16414_v48 = vld [vmem:[#allocation12] ss:$0 sm:$0xff] (!%p10233_p10) }
 0x5e7   : > { %6940 = vst [vmem:[#allocation2 + $0xd8] sm:$0xff] %v6908_v4  ;;  %v7022_v32 = vpack.c.bf16 (!%p10233_p10), %v6993_v60, %v6992_v41  ;;  %v6997_v35 = vadd.f32 (!%p10233_p10), %v16380_v56, %v6958_v33  ;;  %v6959_v44 = vld [vmem:[#allocation2 + $0x50] sm:$0xff] (!%p10233_p10)  ;;  %v6962_v4 = vld [vmem:[#allocation2 + $0x68] sm:$0xff] (!%p10233_p10) }
 0x5e8   : > { %6938 = vst [vmem:[#allocation2 + $0xc8] sm:$0xff] %v6906_v20  ;;  %v11987_v26 = vpop.f32.mrb[140].mxu1  ;;  %v12111_v22 = vpop.f32.mrb[140].mxu0  ;;  %v7023_v24 = vpack.c.bf16 (!%p10233_p10), %v6995_v7, %v6994_v30  ;;  %v6998_v20 = vadd.f32 (!%p10233_p10), %v16380_v56, %v6959_v44 }
 0x5e9   : > { %v11988_v9 = vpop.f32.mrb[141].mxu1  ;;  %v6866_v43 = vpop.f32.mrb[141].mxu0  ;;  %v7024_v37 = vpack.c.bf16 (!%p10233_p10), %v6997_v35, %v6996_v47 }
 0x5ea   : > { %v11989_v29 = vadd.f32 %v11988_v9, %v11987_v26  ;;  %v6867_v61 = vadd.f32 %v6866_v43, %v6706_v52  ;;  %v11990_v16 = vpop.f32.mrb[142].mxu1  ;;  %v12112_v55 = vpop.f32.mrb[142].mxu0  ;;  %v6961_v52 = vld [vmem:[#allocation2 + $0x60] sm:$0xff] (!%p10233_p10)  ;;  %v6963_v43 = vld [vmem:[#allocation2 + $0x70] sm:$0xff] (!%p10233_p10) }
 0x5eb   : > { %v11991_v50 = vpop.f32.mrb[143].mxu1  ;;  %v6869_v42 = vpop.f32.mrb[143].mxu0  ;;  %v7000_v26 = vadd.f32 (!%p10233_p10), %v16380_v56, %v6961_v52 }
 0x5ec   : > { %v6714_v6 = vadd.f32 %v11989_v29, %v16318_v53  ;;  %v6909_v3 = vadd.f32 %v6867_v61, %v752_v45  ;;  %v11992_v27 = vadd.f32 %v11991_v50, %v11990_v16  ;;  %v6870_v18 = vadd.f32 %v6869_v42, %v6709_v51  ;;  %v13269_v53 = vld [vmem:[#allocation11] sm:$0xff] (!%p10233_p10)   ;;  %v6964_v29 = vld [vmem:[#allocation2 + $0x78] sm:$0xff] (!%p10233_p10) }
 0x5ed   : > { %12113 = vmatprep.subr.bf16.mxu0 (!%p10233_p10), %v13269_v53  ;;  %v6999_v51 = vadd.f32 (!%p10233_p10), %v16380_v56, %v6960_v40  ;;  %v6965_v61 = vld [vmem:[#allocation2 + $0x80] sm:$0xff] (!%p10233_p10)  ;;  %v6966_v16 = vld [vmem:[#allocation2 + $0x88] sm:$0xff] (!%p10233_p10)  ;;  %v7003_v50 = vadd.f32 (!%p10233_p10), %v16380_v56, %v6964_v29 }
 0x5ee   : > { %v6875_v63 = vadd.f32 %v12111_v22, %v6714_v6  ;;  %6941 = vst [vmem:[#allocation2 + $0xe0] sm:$0xff] %v6909_v3  ;;  %v6717_v8 = vadd.f32 %v11992_v27, %v16324_v39  ;;  %v6910_v31 = vadd.f32 %v6870_v18, %v753_v15  ;;  %6948 = sbr.rel (%p10233_p10) target bundleno = 2807 (0xaf7), region = 124  ;;  %12114 = vmatpush3.bf16.msra.mxu0 (!%p10233_p10), %v13269_v53  ;;  %v6949_v39 = vld [vmem:[#allocation2] sm:$0xff] (!%p10233_p10)  ;;  %v6967_v27 = vld [vmem:[#allocation2 + $0x90] sm:$0xff] (!%p10233_p10)  ;;  %v6968_v18 = vld [vmem:[#allocation2 + $0x98] sm:$0xff] (!%p10233_p10) }
 0x5ef   : > { %12115 = vmatprep.subr.bf16.mxu0 (!%p10233_p10), %v13270_v28  ;;  %v6988_v54 = vadd.f32 (!%p10233_p10), %v16380_v56, %v6949_v39  ;;  %v7001_v22 = vadd.f32 (!%p10233_p10), %v16380_v56, %v6962_v4  ;;  %v7025_v9 = vpack.c.bf16 (!%p10233_p10), %v6999_v51, %v6998_v20  ;;  %v7004_v15 = vadd.f32 (!%p10233_p10), %v16380_v56, %v6965_v61  ;;  %v6971_v53 = vld [vmem:[#allocation2 + $0xb0] sm:$0xff] (!%p10233_p10) }
 0x5f0   : > { %v6911_v25 = vadd.f32 %v6875_v63, %v754_v10  ;;  %v6878_v5 = vadd.f32 %v12112_v55, %v6717_v8  ;;  %6942 = vst [vmem:[#allocation2 + $0xe8] sm:$0xff] %v6910_v31  ;;  %v7002_v55 = vadd.f32 (!%p10233_p10), %v16380_v56, %v6963_v43  ;;  %v7005_v42 = vadd.f32 (!%p10233_p10), %v16380_v56, %v6966_v16  ;;  %v6969_v10 = vld [vmem:[#allocation2 + $0xa0] sm:$0xff] (!%p10233_p10)  ;;  %v6970_v63 = vld [vmem:[#allocation2 + $0xa8] sm:$0xff] (!%p10233_p10) }
 0x5f1   : > { %v7020_v34 = vpack.c.bf16 (!%p10233_p10), %v6989_v59, %v6988_v54  ;;  %v7026_v45 = vpack.c.bf16 (!%p10233_p10), %v7001_v22, %v7000_v26  ;;  %v7006_v8 = vadd.f32 (!%p10233_p10), %v16380_v56, %v6967_v27  ;;  %v7007_v31 = vadd.f32 (!%p10233_p10), %v16380_v56, %v6968_v18 }
 0x5f2   : > { %6943 = vst [vmem:[#allocation2 + $0xf0] sm:$0xff] %v6911_v25  ;;  %v6912_v13 = vadd.f32 %v6878_v5, %v755_v38  ;;  %12116 = vmatpush3.bf16.msra.mxu0 (!%p10233_p10), %v13270_v28  ;;  %v7027_v6 = vpack.c.bf16 (!%p10233_p10), %v7003_v50, %v7002_v55  ;;  %v7028_v3 = vpack.c.bf16 (!%p10233_p10), %v7005_v42, %v7004_v15  ;;  %v6972_v28 = vld [vmem:[#allocation2 + $0xb8] sm:$0xff] (!%p10233_p10) }
 0x5f3   : > { %12117 = vmatprep.subr.bf16.mxu0 (!%p10233_p10), %v13271_v19  ;;  %12129 = vmatprep.mubr.bf16.mxu0 (!%p10233_p10), %v7020_v34  ;;  %v7008_v38 = vadd.f32 (!%p10233_p10), %v16380_v56, %v6969_v10  ;;  %v7009_v25 = vadd.f32 (!%p10233_p10), %v16380_v56, %v6970_v63  ;;  %v7029_v5 = vpack.c.bf16 (!%p10233_p10), %v7007_v31, %v7006_v8 }
 0x5f4   : > { %6944 = vst [vmem:[#allocation2 + $0xf8] sm:$0xff] %v6912_v13  ;;  %v7010_v39 = vadd.f32 (!%p10233_p10), %v16380_v56, %v6971_v53  ;;  %v7011_v11 = vadd.f32 (!%p10233_p10), %v16380_v56, %v6972_v28 }
 0x5f5   : > { %v7030_v13 = vpack.c.bf16 %v7009_v25, %v7008_v38  ;;  %v6977_v36 = vld [vmem:[#allocation2 + $0xe0] sm:$0xff] }
 0x5f6   : > { %12118 = vmatpush3.bf16.msra.mxu0 %v13271_v19  ;;  %v6973_v19 = vld [vmem:[#allocation2 + $0xc0] sm:$0xff]  ;;  %v7031_v34 = vpack.c.bf16 %v7011_v11, %v7010_v39  ;;  %v7016_v12 = vadd.f32 %v16380_v56, %v6977_v36 }
 0x5f7   : > { %12119 = vmatprep.subr.bf16.mxu0 %v13272_v2  ;;  %v7012_v54 = vadd.f32 %v16380_v56, %v6973_v19  ;;  %v6978_v1 = vld [vmem:[#allocation2 + $0xe8] sm:$0xff] }
 0x5f8   : > { %v7017_v21 = vadd.f32 %v16380_v56, %v6978_v1 }
 0x5f9   : > { %v6979_v60 = vld [vmem:[#allocation2 + $0xf0] sm:$0xff] }
 0x5fa   : > { %12120 = vmatpush3.bf16.msra.mxu0 %v13272_v2  ;;  %v6974_v2 = vld [vmem:[#allocation2 + $0xc8] sm:$0xff]  ;;  %v7034_v41 = vpack.c.bf16 %v7017_v21, %v7016_v12 }
 0x5fb   : > { %12121 = vmatprep.subr.bf16.mxu0 %v13273_v14  ;;  %v7013_v59 = vadd.f32 %v16380_v56, %v6974_v2 }
 0x5fe   : > { %12122 = vmatpush3.bf16.msra.mxu0 %v13273_v14  ;;  %v7032_v14 = vpack.c.bf16 %v7013_v59, %v7012_v54 }
 0x5ff   : > { %12123 = vmatprep.subr.bf16.mxu0 %v13274_v17 }
 0x602   : > { %12124 = vmatpush3.bf16.msra.mxu0 %v13274_v17  ;;  %v6975_v17 = vld [vmem:[#allocation2 + $0xd0] sm:$0xff] }
 0x603   : > { %12125 = vmatprep.subr.bf16.mxu0 %v13275_v58 }
 0x606   : > { %12126 = vmatpush3.bf16.msra.mxu0 %v13275_v58  ;;  %v6976_v58 = vld [vmem:[#allocation2 + $0xd8] sm:$0xff] }
 0x607   : > { %12127 = vmatprep.subr.bf16.mxu0 %v13276_v46  ;;  %v7015_v62 = vadd.f32 %v16380_v56, %v6976_v58 }
 0x60a   : > { %12128 = vmatpush3.bf16.msra.mxu0 %v13276_v46  ;;  %v7014_v46 = vadd.f32 %v16380_v56, %v6975_v17 }
 0x60c   : > { %v7033_v57 = vpack.c.bf16 %v7015_v62, %v7014_v46 }
 0x60d   : > { %12130 = vmatmul.mubr.bf16.vlgmr.msra.gmra.mrb[0].mxu0 %v7021_v23  ;;  %v6980_v23 = vld [vmem:[#allocation2 + $0xf8] sm:$0xff] }
 0x60e   : > { %12133 = vmatprep.mubr.bf16.mxu0 %v7022_v32  ;;  %v7018_v32 = vadd.f32 %v16380_v56, %v6979_v60  ;;  %v7019_v49 = vadd.f32 %v16380_v56, %v6980_v23 }
 0x610   : > { %v7035_v0 = vpack.c.bf16 %v7019_v49, %v7018_v32 }
 0x615   : > { %12134 = vmatmul.mubr.bf16.gmra.mrb[4].mxu0 %v7023_v24 }
 0x616   : > { %12137 = vmatprep.mubr.bf16.mxu0 %v7024_v37 }
 0x61d   : > { %12138 = vmatmul.mubr.bf16.gmra.mrb[8].mxu0 %v7025_v9 }
 0x61e   : > { %12141 = vmatprep.mubr.bf16.mxu0 %v7026_v45 }
 0x625   : > { %12142 = vmatmul.mubr.bf16.gmra.mrb[12].mxu0 %v7027_v6 }
 0x626   : > { %12145 = vmatprep.mubr.bf16.mxu0 %v7028_v3 }
 0x62d   : > { %12146 = vmatmul.mubr.bf16.gmra.mrb[16].mxu0 %v7029_v5 }
 0x62e   : > { %12149 = vmatprep.mubr.bf16.mxu0 %v7030_v13 }
 0x635   : > { %12150 = vmatmul.mubr.bf16.gmra.mrb[20].mxu0 %v7031_v34 }
 0x636   : > { %12153 = vmatprep.mubr.bf16.mxu0 %v7032_v14 }
 0x63d   : > { %12154 = vmatmul.mubr.bf16.gmra.mrb[24].mxu0 %v7033_v57 }
 0x63e   : > { %12157 = vmatprep.mubr.bf16.mxu0 %v7034_v41 }
 0x645   : > { %12158 = vmatmul.mubr.bf16.gmra.mrb[28].mxu0 %v7035_v0 }
 0x6e0   : > { %v12131_v33 = vpop.f32.mrb[0].mxu0 }
 0x6e1   : > { %v16417_v30 = vadd.f32 %v12131_v33, %v16414_v48  ;;  %v7141_v7 = vpop.f32.mrb[1].mxu0 }
 0x6e2   : > { %v16420_v47 = vadd.f32 %v16414_v48, %v7141_v7  ;;  %v12132_v35 = vpop.f32.mrb[2].mxu0 }
 0x6e3   : > { %7338 = vadd.xlane.f32.xlu1 %v16417_v30  ;;  %v7144_v24 = vpop.f32.mrb[3].mxu0  ;;  %v16425_v56 = vadd.f32 %v12132_v35, %v16414_v48 }
 0x6e4   : > { %7334 = vadd.xlane.f32.xlu0 %v16420_v47  ;;  %v16428_v37 = vadd.f32 %v16414_v48, %v7144_v24 }
 0x6e7   : > { %7340 = vadd.xlane.f32.xlu1 %v16425_v56 }
 0x6e8   : > { %v12135_v44 = vpop.f32.mrb[4].mxu0  ;;  %7336 = vadd.xlane.f32.xlu0 %v16428_v37 }
 0x6e9   : > { %v7157_v40 = vpop.f32.mrb[5].mxu0  ;;  %v16436_v51 = vadd.f32 %v12135_v44, %v16414_v48 }
 0x6ea   : > { %v16433_v52 = vadd.f32 %v16414_v48, %v7157_v40  ;;  %v12136_v4 = vpop.f32.mrb[6].mxu0 }
 0x6eb   : > { %v7160_v20 = vpop.f32.mrb[7].mxu0  ;;  %v16443_v22 = vadd.f32 %v12136_v4, %v16414_v48 }
 0x6ec   : > { %v16439_v26 = vadd.f32 %v16414_v48, %v7160_v20  ;;  %7342 = vadd.xlane.f32.xlu0 %v16433_v52 }
 0x6ee   : > { %7344 = vadd.xlane.f32.xlu1 %v16439_v26 }
 0x6f0   : > { %v12139_v9 = vpop.f32.mrb[8].mxu0  ;;  %7346 = vadd.xlane.f32.xlu0 %v16436_v51 }
 0x6f1   : > { %v7173_v45 = vpop.f32.mrb[9].mxu0  ;;  %v16452_v16 = vadd.f32 %v12139_v9, %v16414_v48 }
 0x6f2   : > { %v16448_v43 = vadd.f32 %v16414_v48, %v7173_v45  ;;  %v12140_v29 = vpop.f32.mrb[10].mxu0  ;;  %7348 = vadd.xlane.f32.xlu1 %v16443_v22 }
 0x6f3   : > { %v7176_v61 = vpop.f32.mrb[11].mxu0  ;;  %v16459_v50 = vadd.f32 %v12140_v29, %v16414_v48 }
 0x6f4   : > { %v16455_v55 = vadd.f32 %v16414_v48, %v7176_v61  ;;  %7350 = vadd.xlane.f32.xlu0 %v16448_v43 }
 0x6f6   : > { %7352 = vadd.xlane.f32.xlu1 %v16455_v55 }
 0x6f8   : > { %v12143_v15 = vpop.f32.mrb[12].mxu0  ;;  %7354 = vadd.xlane.f32.xlu0 %v16452_v16 }
 0x6f9   : > { %v7189_v42 = vpop.f32.mrb[13].mxu0  ;;  %v16468_v18 = vadd.f32 %v12143_v15, %v16414_v48 }
 0x6fa   : > { %v16464_v6 = vadd.f32 %v16414_v48, %v7189_v42  ;;  %v12144_v3 = vpop.f32.mrb[14].mxu0  ;;  %7356 = vadd.xlane.f32.xlu1 %v16459_v50 }
 0x6fb   : > { %v7192_v27 = vpop.f32.mrb[15].mxu0  ;;  %v16475_v63 = vadd.f32 %v12144_v3, %v16414_v48 }
 0x6fc   : > { %v16471_v10 = vadd.f32 %v16414_v48, %v7192_v27  ;;  %7358 = vadd.xlane.f32.xlu0 %v16464_v6 }
 0x6fe   : > { %7360 = vadd.xlane.f32.xlu1 %v16471_v10 }
 0x700   : > { %v12147_v8 = vpop.f32.mrb[16].mxu0  ;;  %7362 = vadd.xlane.f32.xlu0 %v16468_v18 }
 0x701   : > { %v7205_v31 = vpop.f32.mrb[17].mxu0  ;;  %v16484_v13 = vadd.f32 %v12147_v8, %v16414_v48 }
 0x702   : > { %v16480_v38 = vadd.f32 %v16414_v48, %v7205_v31  ;;  %v12148_v25 = vpop.f32.mrb[18].mxu0  ;;  %7364 = vadd.xlane.f32.xlu1 %v16475_v63 }
 0x703   : > { %v7208_v5 = vpop.f32.mrb[19].mxu0  ;;  %v16491_v28 = vadd.f32 %v12148_v25, %v16414_v48 }
 0x704   : > { %v16487_v53 = vadd.f32 %v16414_v48, %v7208_v5  ;;  %7366 = vadd.xlane.f32.xlu0 %v16480_v38 }
 0x706   : > { %7368 = vadd.xlane.f32.xlu1 %v16487_v53 }
 0x708   : > { %7370 = vadd.xlane.f32.xlu0 %v16484_v13  ;;  %v12151_v19 = vpop.f32.mrb[20].mxu0 }
 0x709   : > { %v16496_v2 = vadd.f32 %v12151_v19, %v16414_v48  ;;  %v7221_v39 = vpop.f32.mrb[21].mxu0 }
 0x70a   : > { %7372 = vadd.xlane.f32.xlu1 %v16491_v28  ;;  %v16500_v11 = vadd.f32 %v16414_v48, %v7221_v39  ;;  %v12152_v54 = vpop.f32.mrb[22].mxu0 }
 0x70b   : > { %v16503_v59 = vadd.f32 %v12152_v54, %v16414_v48  ;;  %v7224_v34 = vpop.f32.mrb[23].mxu0 }
 0x70c   : > { %v16506_v14 = vadd.f32 %v16414_v48, %v7224_v34 }
 0x710   : > { %v12155_v17 = vpop.f32.mrb[24].mxu0 }
 0x711   : > { %v16509_v58 = vadd.f32 %v12155_v17, %v16414_v48  ;;  %v7237_v36 = vpop.f32.mrb[25].mxu0 }
 0x712   : > { %v16512_v1 = vadd.f32 %v16414_v48, %v7237_v36  ;;  %v12156_v46 = vpop.f32.mrb[26].mxu0 }
 0x713   : > { %v16515_v62 = vadd.f32 %v12156_v46, %v16414_v48  ;;  %v7240_v12 = vpop.f32.mrb[27].mxu0 }
 0x714   : > { %v16518_v21 = vadd.f32 %v16414_v48, %v7240_v12 }
 0x718   : > { %v12159_v57 = vpop.f32.mrb[28].mxu0 }
 0x719   : > { %v16521_v41 = vadd.f32 %v12159_v57, %v16414_v48  ;;  %v7253_v60 = vpop.f32.mrb[29].mxu0 }
 0x71a   : > { %v16524_v23 = vadd.f32 %v16414_v48, %v7253_v60  ;;  %v12160_v32 = vpop.f32.mrb[30].mxu0 }
 0x71b   : > { %v16527_v49 = vadd.f32 %v12160_v32, %v16414_v48  ;;  %v7256_v0 = vpop.f32.mrb[31].mxu0 }
 0x71c   : > { %v16530_v33 = vadd.f32 %v16414_v48, %v7256_v0 }
 0x770   : > { %v7339_v7 = vpop.xlane.xlu1 %7338 }
 0x771   : > { %v7335_v35 = vpop.xlane.xlu0 %7334  ;;  %v7401_v4 = vmul.f32 0.0078125, %v7339_v7 }
 0x772   : > { %v7399_v24 = vmul.f32 0.0078125, %v7335_v35 }
 0x773   : > { %v16543_v15 = vsub.f32 %v16417_v30, %v7401_v4 }
 0x774   : > { %v16533_v44 = vsub.f32 %v16420_v47, %v7399_v24  ;;  %v7341_v45 = vpop.xlane.xlu1 %7340 }
 0x775   : > { %v7337_v40 = vpop.xlane.xlu0 %7336  ;;  %v7402_v61 = vmul.f32 0.0078125, %v7341_v45  ;;  %v7465_v3 = vmul.f32 %v16543_v15, %v16543_v15 }
 0x776   : > { %v7400_v20 = vmul.f32 0.0078125, %v7337_v40  ;;  %v7463_v9 = vmul.f32 %v16533_v44, %v16533_v44 }
 0x777   : > { %v16549_v27 = vsub.f32 %v16425_v56, %v7402_v61 }
 0x778   : > { %7495 = vadd.xlane.f32.xlu0 %v7463_v9  ;;  %v16538_v29 = vsub.f32 %v16428_v37, %v7400_v20 }
 0x779   : > { %v7343_v47 = vpop.xlane.xlu0 %7342  ;;  %v7466_v30 = vmul.f32 %v16549_v27, %v16549_v27 }
 0x77a   : > { %v7464_v48 = vmul.f32 %v16538_v29, %v16538_v29  ;;  %v7403_v42 = vmul.f32 0.0078125, %v7343_v47 }
 0x77b   : > { %v7345_v37 = vpop.xlane.xlu1 %7344 }
 0x77c   : > { %7374 = vadd.xlane.f32.xlu0 %v16500_v11  ;;  %7497 = vadd.xlane.f32.xlu1 %v7464_v48  ;;  %v7404_v8 = vmul.f32 0.0078125, %v7345_v37  ;;  %v16555_v31 = vsub.f32 %v16433_v52, %v7403_v42 }
 0x77d   : > { %v7347_v25 = vpop.xlane.xlu0 %7346 }
 0x77e   : > { %v7405_v5 = vmul.f32 0.0078125, %v7347_v25  ;;  %v7467_v56 = vmul.f32 %v16555_v31, %v16555_v31  ;;  %v16561_v19 = vsub.f32 %v16439_v26, %v7404_v8 }
 0x77f   : > { %v7349_v39 = vpop.xlane.xlu1 %7348 }
 0x780   : > { %7499 = vadd.xlane.f32.xlu0 %v7465_v3  ;;  %7376 = vadd.xlane.f32.xlu1 %v16506_v14  ;;  %v7406_v34 = vmul.f32 0.0078125, %v7349_v39  ;;  %v7468_v52 = vmul.f32 %v16561_v19, %v16561_v19  ;;  %v16567_v17 = vsub.f32 %v16436_v51, %v7405_v5 }
 0x781   : > { %v7351_v54 = vpop.xlane.xlu0 %7350 }
 0x782   : > { %v7407_v46 = vmul.f32 0.0078125, %v7351_v54  ;;  %v7469_v26 = vmul.f32 %v16567_v17, %v16567_v17  ;;  %v16573_v12 = vsub.f32 %v16443_v22, %v7406_v34 }
 0x783   : > { %v7353_v36 = vpop.xlane.xlu1 %7352 }
 0x784   : > { %7378 = vadd.xlane.f32.xlu0 %v16496_v2  ;;  %7501 = vadd.xlane.f32.xlu1 %v7466_v30  ;;  %v7408_v60 = vmul.f32 0.0078125, %v7353_v36  ;;  %v7470_v51 = vmul.f32 %v16573_v12, %v16573_v12  ;;  %v16579_v32 = vsub.f32 %v16448_v43, %v7407_v46 }
 0x785   : > { %v7355_v57 = vpop.xlane.xlu0 %7354 }
 0x786   : > { %v7409_v35 = vmul.f32 0.0078125, %v7355_v57  ;;  %v7471_v22 = vmul.f32 %v16579_v32, %v16579_v32  ;;  %v16585_v24 = vsub.f32 %v16455_v55, %v7408_v60 }
 0x787   : > { %v7357_v0 = vpop.xlane.xlu1 %7356 }
 0x788   : > { %7380 = vadd.xlane.f32.xlu1 %v16503_v59  ;;  %7503 = vadd.xlane.f32.xlu0 %v7467_v56  ;;  %v7410_v4 = vmul.f32 0.0078125, %v7357_v0  ;;  %v7472_v43 = vmul.f32 %v16585_v24, %v16585_v24  ;;  %v16591_v20 = vsub.f32 %v16452_v16, %v7409_v35 }
 0x789   : > { %v7359_v7 = vpop.xlane.xlu0 %7358 }
 0x78a   : > { %v7411_v45 = vmul.f32 0.0078125, %v7359_v7  ;;  %v7473_v55 = vmul.f32 %v16591_v20, %v16591_v20  ;;  %v16597_v61 = vsub.f32 %v16459_v50, %v7410_v4 }
 0x78b   : > { %v7361_v40 = vpop.xlane.xlu1 %7360 }
 0x78c   : > { %7505 = vadd.xlane.f32.xlu1 %v7468_v52  ;;  %7382 = vadd.xlane.f32.xlu0 %v16512_v1  ;;  %v7412_v47 = vmul.f32 0.0078125, %v7361_v40  ;;  %v7474_v16 = vmul.f32 %v16597_v61, %v16597_v61  ;;  %v16603_v37 = vsub.f32 %v16464_v6, %v7411_v45 }
 0x78d   : > { %v7363_v9 = vpop.xlane.xlu0 %7362 }
 0x78e   : > { %v7413_v3 = vmul.f32 0.0078125, %v7363_v9  ;;  %v16607_v50 = vsub.f32 %v16471_v10, %v7412_v47  ;;  %v7475_v5 = vmul.f32 %v16603_v37, %v16603_v37 }
 0x78f   : > { %v7365_v48 = vpop.xlane.xlu1 %7364 }
 0x790   : > { %7384 = vadd.xlane.f32.xlu1 %v16518_v21  ;;  %7507 = vadd.xlane.f32.xlu0 %v7469_v26  ;;  %v7414_v8 = vmul.f32 0.0078125, %v7365_v48  ;;  %v16612_v56 = vsub.f32 %v16468_v18, %v7413_v3  ;;  %v7476_v6 = vmul.f32 %v16607_v50, %v16607_v50 }
 0x791   : > { %v7367_v42 = vpop.xlane.xlu0 %7366 }
 0x792   : > { %v7415_v25 = vmul.f32 0.0078125, %v7367_v42  ;;  %v16618_v54 = vsub.f32 %v16475_v63, %v7414_v8  ;;  %v7477_v52 = vmul.f32 %v16612_v56, %v16612_v56 }
 0x793   : > { %v7369_v30 = vpop.xlane.xlu1 %7368 }
 0x794   : > { %7509 = vadd.xlane.f32.xlu1 %v7470_v51  ;;  %7386 = vadd.xlane.f32.xlu0 %v16509_v58  ;;  %v7416_v34 = vmul.f32 0.0078125, %v7369_v30  ;;  %v16623_v36 = vsub.f32 %v16480_v38, %v7415_v25  ;;  %v7478_v46 = vmul.f32 %v16618_v54, %v16618_v54 }
 0x795   : > { %v7371_v39 = vpop.xlane.xlu0 %7370 }
 0x796   : > { %v7417_v10 = vmul.f32 0.0078125, %v7371_v39  ;;  %v7479_v57 = vmul.f32 %v16623_v36, %v16623_v36  ;;  %v16630_v63 = vsub.f32 %v16487_v53, %v7416_v34 }
 0x797   : > { %v7373_v18 = vpop.xlane.xlu1 %7372 }
 0x798   : > { %7388 = vadd.xlane.f32.xlu1 %v16515_v62  ;;  %7511 = vadd.xlane.f32.xlu0 %v7471_v22  ;;  %v7418_v26 = vmul.f32 0.0078125, %v7373_v18  ;;  %v16633_v60 = vsub.f32 %v16484_v13, %v7417_v10  ;;  %v7480_v38 = vmul.f32 %v16630_v63, %v16630_v63  ;;  %v10476_v10 = vld [vmem:[%s14614_s28] sm:$0xff]  }
 0x79a   : > { %v7481_v51 = vmul.f32 %v16633_v60, %v16633_v60  ;;  %v16640_v0 = vsub.f32 %v16491_v28, %v7418_v26 }
 0x79c   : > { %7513 = vadd.xlane.f32.xlu1 %v7472_v43  ;;  %7390 = vadd.xlane.f32.xlu0 %v16524_v23  ;;  %v7482_v53 = vmul.f32 %v16640_v0, %v16640_v0 }
 0x7a0   : > { %7392 = vadd.xlane.f32.xlu1 %v16530_v33  ;;  %7515 = vadd.xlane.f32.xlu0 %v7473_v55 }
 0x7a4   : > { %7517 = vadd.xlane.f32.xlu1 %v7474_v16  ;;  %7394 = vadd.xlane.f32.xlu0 %v16521_v41 }
 0x7a8   : > { %7396 = vadd.xlane.f32.xlu1 %v16527_v49  ;;  %7519 = vadd.xlane.f32.xlu0 %v7475_v5 }
 0x7ac   : > { %7521 = vadd.xlane.f32.xlu1 %v7476_v6  ;;  %7523 = vadd.xlane.f32.xlu0 %v7477_v52  ;;  %v16658_v52 = vld [vmem:[#allocation14] ss:$0 sm:$0xff] }
 0x7b0   : > { %7525 = vadd.xlane.f32.xlu1 %v7478_v46  ;;  %7527 = vadd.xlane.f32.xlu0 %v7479_v57 }
 0x7b4   : > { %7529 = vadd.xlane.f32.xlu1 %v7480_v38  ;;  %7531 = vadd.xlane.f32.xlu0 %v7481_v51  ;;  %v16663_v51 = vld [vmem:[#allocation15] ss:$0 sm:$0xff] }
 0x7b8   : > { %7533 = vadd.xlane.f32.xlu1 %v7482_v53  ;;  %v10477_v53 = vunpack.c.l.bf16 %v10476_v10 }
 0x805   : > { %v7496_v7 = vpop.xlane.xlu0 %7495 }
 0x806   : > { %v7559_v13 = vmul.f32 0.0078125, %v7496_v7 }
 0x808   : > { %v7591_v35 = vadd.f32 1e-05, %v7559_v13 }
 0x809   : > { %v7498_v22 = vpop.xlane.xlu1 %7497  ;;  %v7375_v40 = vpop.xlane.xlu0 %7374 }
 0x80a   : > { %13309 = vrsqrt.f32 %v7591_v35  ;;  %v7560_v4 = vmul.f32 0.0078125, %v7498_v22  ;;  %v7419_v43 = vmul.f32 0.0078125, %v7375_v40 }
 0x80c   : > { %v7592_v9 = vadd.f32 1e-05, %v7560_v4  ;;  %v16645_v45 = vsub.f32 %v16500_v11, %v7419_v43 }
 0x80d   : > { %v7377_v28 = vpop.xlane.xlu1 %7376  ;;  %v7500_v55 = vpop.xlane.xlu0 %7499 }
 0x80e   : > { %13311 = vrsqrt.f32 %v7592_v9  ;;  %v7420_v48 = vmul.f32 0.0078125, %v7377_v28  ;;  %v7561_v47 = vmul.f32 0.0078125, %v7500_v55  ;;  %v7483_v42 = vmul.f32 %v16645_v45, %v16645_v45 }
 0x810   : > { %v7593_v3 = vadd.f32 1e-05, %v7561_v47  ;;  %7535 = vadd.xlane.f32.xlu0 %v7483_v42  ;;  %v16650_v16 = vsub.f32 %v16506_v14, %v7420_v48  ;;  %v10478_v48 = vunpack.c.h.bf16 %v10476_v10 }
 0x811   : > { %v7502_v8 = vpop.xlane.xlu1 %7501  ;;  %v7379_v30 = vpop.xlane.xlu0 %7378 }
 0x812   : > { %13313 = vrsqrt.f32 %v7593_v3  ;;  %v7562_v25 = vmul.f32 0.0078125, %v7502_v8  ;;  %v7421_v11 = vmul.f32 0.0078125, %v7379_v30  ;;  %v7484_v5 = vmul.f32 %v16650_v16, %v16650_v16  ;;  %v10619_v8 = vld [vmem:[%s14614_s28 + $0x8] sm:$0xff]  }
 0x814   : > { %v13310_v39 = vpop.eup %13309  ;;  %v7594_v6 = vadd.f32 1e-05, %v7562_v25  ;;  %7537 = vadd.xlane.f32.xlu1 %v7484_v5  ;;  %v16655_v34 = vsub.f32 %v16496_v2, %v7421_v11 }
 0x815   : > { %v7381_v18 = vpop.xlane.xlu1 %7380  ;;  %v7504_v14 = vpop.xlane.xlu0 %7503  ;;  %v7655_v46 = vmul.f32 %v13310_v39, %v16533_v44 }
 0x816   : > { %13315 = vrsqrt.f32 %v7594_v6  ;;  %v7422_v26 = vmul.f32 0.0078125, %v7381_v18  ;;  %v7563_v57 = vmul.f32 0.0078125, %v7504_v14  ;;  %v7485_v38 = vmul.f32 %v16655_v34, %v16655_v34 }
 0x817   : > { %v7693_v7 = vmul.f32 %v16658_v52, %v7655_v46 }
 0x818   : > { %v13312_v2 = vpop.eup %13311  ;;  %v7595_v13 = vadd.f32 1e-05, %v7563_v57  ;;  %7539 = vadd.xlane.f32.xlu0 %v7485_v38  ;;  %v16667_v35 = vsub.f32 %v16503_v59, %v7422_v26 }
 0x819   : > { %v7506_v22 = vpop.xlane.xlu1 %7505  ;;  %v7383_v44 = vpop.xlane.xlu0 %7382  ;;  %v7731_v40 = vadd.f32 %v16663_v51, %v7693_v7  ;;  %v7656_v4 = vmul.f32 %v13312_v2, %v16538_v29 }
 0x81a   : > { %13317 = vrsqrt.f32 %v7595_v13  ;;  %v7564_v43 = vmul.f32 0.0078125, %v7506_v22  ;;  %v7423_v9 = vmul.f32 0.0078125, %v7383_v44  ;;  %v7486_v28 = vmul.f32 %v16667_v35, %v16667_v35 }
 0x81b   : > { %v16673_v55 = vadd.f32 %v10477_v53, %v7731_v40  ;;  %v7694_v47 = vmul.f32 %v16658_v52, %v7656_v4  ;;  %v10482_v44 = vunpack.c.h.bf16 %v10619_v8 }
 0x81c   : > { %v13314_v59 = vpop.eup %13313  ;;  %v7596_v42 = vadd.f32 1e-05, %v7564_v43  ;;  %v16677_v3 = vsub.f32 %v16512_v1, %v7423_v9  ;;  %7541 = vadd.xlane.f32.xlu1 %v7486_v28  ;;  %v10481_v1 = vunpack.c.l.bf16 %v10619_v8  ;;  %v10620_v28 = vld [vmem:[%s14614_s28 + $0x10] sm:$0xff]  }
 0x81d   : > { %v7385_v30 = vpop.xlane.xlu1 %7384  ;;  %7957 = vadd.xlane.f32.xlu0 %v16673_v55  ;;  %v7508_v29 = vpop.xlane.xlu0 %7507  ;;  %v7732_v25 = vadd.f32 %v16663_v51, %v7694_v47  ;;  %v7657_v11 = vmul.f32 %v13314_v59, %v16543_v15 }
 0x81e   : > { %13319 = vrsqrt.f32 %v7596_v42  ;;  %v7424_v5 = vmul.f32 0.0078125, %v7385_v30  ;;  %v7565_v39 = vmul.f32 0.0078125, %v7508_v29  ;;  %v7487_v6 = vmul.f32 %v16677_v3, %v16677_v3 }
 0x81f   : > { %v16685_v10 = vadd.f32 %v10478_v48, %v7732_v25  ;;  %v7695_v18 = vmul.f32 %v16658_v52, %v7657_v11 }
 0x820   : > { %v13316_v14 = vpop.eup %13315  ;;  %v16689_v46 = vsub.f32 %v16518_v21, %v7424_v5  ;;  %v7597_v26 = vadd.f32 1e-05, %v7565_v39 }
 0x821   : > { %7959 = vadd.xlane.f32.xlu1 %v16685_v10  ;;  %v10542_v15 = vpack.c.bf16 %v16685_v10, %v16673_v55  ;;  %v7510_v57 = vpop.xlane.xlu1 %7509  ;;  %7543 = vadd.xlane.f32.xlu0 %v7487_v6  ;;  %v7387_v38 = vpop.xlane.xlu0 %7386  ;;  %v7733_v53 = vadd.f32 %v16663_v51, %v7695_v18  ;;  %v7658_v7 = vmul.f32 %v13316_v14, %v16549_v27 }
 0x822   : > { %13321 = vrsqrt.f32 %v7597_v26  ;;  %v7566_v2 = vmul.f32 0.0078125, %v7510_v57  ;;  %v7425_v13 = vmul.f32 0.0078125, %v7387_v38  ;;  %v7488_v21 = vmul.f32 %v16689_v46, %v16689_v46 }
 0x823   : > { %10543 = vst [vmem:[%s14648_s26] sm:$0xff] %v10542_v15   ;;  %v16699_v22 = vadd.f32 %v10481_v1, %v7733_v53  ;;  %v7696_v40 = vmul.f32 %v16658_v52, %v7658_v7  ;;  %v10486_v38 = vunpack.c.h.bf16 %v10620_v28 }
 0x824   : > { %v13318_v4 = vpop.eup %13317  ;;  %v7598_v43 = vadd.f32 1e-05, %v7566_v2  ;;  %v16703_v9 = vsub.f32 %v16509_v58, %v7425_v13  ;;  %v10485_v58 = vunpack.c.l.bf16 %v10620_v28 }
 0x825   : > { %7545 = vadd.xlane.f32.xlu1 %v7488_v21  ;;  %v7389_v27 = vpop.xlane.xlu1 %7388  ;;  %7961 = vadd.xlane.f32.xlu0 %v16699_v22  ;;  %v7512_v48 = vpop.xlane.xlu0 %7511  ;;  %v7734_v47 = vadd.f32 %v16663_v51, %v7696_v40  ;;  %v7659_v59 = vmul.f32 %v13318_v4, %v16555_v31  ;;  %v10621_v21 = vld [vmem:[%s14614_s28 + $0x18] sm:$0xff]  }
 0x826   : > { %13323 = vrsqrt.f32 %v7598_v43  ;;  %v7426_v42 = vmul.f32 0.0078125, %v7389_v27  ;;  %v7567_v8 = vmul.f32 0.0078125, %v7512_v48  ;;  %v7489_v30 = vmul.f32 %v16703_v9, %v16703_v9 }
 0x827   : > { %v16711_v29 = vadd.f32 %v10482_v44, %v7734_v47  ;;  %v7697_v25 = vmul.f32 %v16658_v52, %v7659_v59 }
 0x828   : > { %v13320_v11 = vpop.eup %13319  ;;  %v16715_v5 = vsub.f32 %v16515_v62, %v7426_v42  ;;  %v7599_v39 = vadd.f32 1e-05, %v7567_v8 }
 0x829   : > { %7963 = vadd.xlane.f32.xlu1 %v16711_v29  ;;  %v10547_v31 = vpack.c.bf16 %v16711_v29, %v16699_v22  ;;  %v7514_v6 = vpop.xlane.xlu1 %7513  ;;  %7547 = vadd.xlane.f32.xlu0 %v7489_v30  ;;  %v7391_v1 = vpop.xlane.xlu0 %7390  ;;  %v7735_v18 = vadd.f32 %v16663_v51, %v7697_v25  ;;  %v7660_v14 = vmul.f32 %v13320_v11, %v16561_v19 }
 0x82a   : > { %13325 = vrsqrt.f32 %v7599_v39  ;;  %v7568_v26 = vmul.f32 0.0078125, %v7514_v6  ;;  %v7427_v15 = vmul.f32 0.0078125, %v7391_v1  ;;  %v7490_v62 = vmul.f32 %v16715_v5, %v16715_v5 }
 0x82b   : > { %10634 = vst [vmem:[%s14648_s26 + $0x8] sm:$0xff] %v10547_v31   ;;  %v16725_v57 = vadd.f32 %v10485_v58, %v7735_v18  ;;  %v7698_v53 = vmul.f32 %v16658_v52, %v7660_v14  ;;  %v10490_v1 = vunpack.c.h.bf16 %v10621_v21 }
 0x82c   : > { %v13322_v7 = vpop.eup %13321  ;;  %v7600_v2 = vadd.f32 1e-05, %v7568_v26  ;;  %v16729_v13 = vsub.f32 %v16524_v23, %v7427_v15  ;;  %v10489_v23 = vunpack.c.l.bf16 %v10621_v21 }
 0x82d   : > { %7549 = vadd.xlane.f32.xlu1 %v7490_v62  ;;  %v7393_v19 = vpop.xlane.xlu1 %7392  ;;  %7965 = vadd.xlane.f32.xlu0 %v16725_v57  ;;  %v7516_v44 = vpop.xlane.xlu0 %7515  ;;  %v7736_v40 = vadd.f32 %v16663_v51, %v7698_v53  ;;  %v7661_v4 = vmul.f32 %v13322_v7, %v16567_v17  ;;  %v10622_v62 = vld [vmem:[%s14614_s28 + $0x20] sm:$0xff]  }
 0x82e   : > { %13327 = vrsqrt.f32 %v7600_v2  ;;  %v7428_v43 = vmul.f32 0.0078125, %v7393_v19  ;;  %v7569_v28 = vmul.f32 0.0078125, %v7516_v44  ;;  %v7491_v27 = vmul.f32 %v16729_v13, %v16729_v13 }
 0x82f   : > { %v16737_v48 = vadd.f32 %v10486_v38, %v7736_v40  ;;  %v7699_v47 = vmul.f32 %v16658_v52, %v7661_v4 }
 0x830   : > { %v13324_v59 = vpop.eup %13323  ;;  %v16741_v42 = vsub.f32 %v16530_v33, %v7428_v43  ;;  %v7601_v8 = vadd.f32 1e-05, %v7569_v28 }
 0x831   : > { %7967 = vadd.xlane.f32.xlu1 %v16737_v48  ;;  %v10552_v17 = vpack.c.bf16 %v16737_v48, %v16725_v57  ;;  %v7518_v30 = vpop.xlane.xlu1 %7517  ;;  %7551 = vadd.xlane.f32.xlu0 %v7491_v27  ;;  %v7395_v58 = vpop.xlane.xlu0 %7394  ;;  %v7737_v25 = vadd.f32 %v16663_v51, %v7699_v47  ;;  %v7662_v11 = vmul.f32 %v13324_v59, %v16573_v12 }
 0x832   : > { %13329 = vrsqrt.f32 %v7601_v8  ;;  %v7570_v39 = vmul.f32 0.0078125, %v7518_v30  ;;  %v7429_v31 = vmul.f32 0.0078125, %v7395_v58  ;;  %v7492_v33 = vmul.f32 %v16741_v42, %v16741_v42 }
 0x833   : > { %10635 = vst [vmem:[%s14648_s26 + $0x10] sm:$0xff] %v10552_v17   ;;  %v16751_v6 = vadd.f32 %v10489_v23, %v7737_v25  ;;  %v7700_v18 = vmul.f32 %v16658_v52, %v7662_v11  ;;  %v10494_v58 = vunpack.c.h.bf16 %v10622_v62 }
 0x834   : > { %v13326_v14 = vpop.eup %13325  ;;  %v7602_v26 = vadd.f32 1e-05, %v7570_v39  ;;  %v16755_v15 = vsub.f32 %v16521_v41, %v7429_v31  ;;  %v10493_v41 = vunpack.c.l.bf16 %v10622_v62 }
 0x835   : > { %7553 = vadd.xlane.f32.xlu1 %v7492_v33  ;;  %v7397_v12 = vpop.xlane.xlu1 %7396  ;;  %7969 = vadd.xlane.f32.xlu0 %v16751_v6  ;;  %v7520_v38 = vpop.xlane.xlu0 %7519  ;;  %v7738_v53 = vadd.f32 %v16663_v51, %v7700_v18  ;;  %v7663_v7 = vmul.f32 %v13326_v14, %v16579_v32  ;;  %v10623_v33 = vld [vmem:[%s14614_s28 + $0x28] sm:$0xff]  }
 0x836   : > { %13331 = vrsqrt.f32 %v7602_v26  ;;  %v7430_v2 = vmul.f32 0.0078125, %v7397_v12  ;;  %v7571_v21 = vmul.f32 0.0078125, %v7520_v38  ;;  %v7493_v19 = vmul.f32 %v16755_v15, %v16755_v15 }
 0x837   : > { %v16763_v44 = vadd.f32 %v10490_v1, %v7738_v53  ;;  %v7701_v40 = vmul.f32 %v16658_v52, %v7663_v7  ;;  %v10497_v38 = vunpack.c.l.bf16 %v10623_v33 }
 0x838   : > { %v13328_v4 = vpop.eup %13327  ;;  %v16767_v43 = vsub.f32 %v16527_v49, %v7430_v2  ;;  %v7603_v28 = vadd.f32 1e-05, %v7571_v21 }
 0x839   : > { %7971 = vadd.xlane.f32.xlu1 %v16763_v44  ;;  %v10557_v32 = vpack.c.bf16 %v16763_v44, %v16751_v6  ;;  %v7522_v27 = vpop.xlane.xlu1 %7521  ;;  %7555 = vadd.xlane.f32.xlu0 %v7493_v19  ;;  %v7524_v23 = vpop.xlane.xlu0 %7523  ;;  %v7739_v47 = vadd.f32 %v16663_v51, %v7701_v40  ;;  %v7664_v59 = vmul.f32 %v13328_v4, %v16585_v24 }
 0x83a   : > { %13333 = vrsqrt.f32 %v7603_v28  ;;  %v7572_v8 = vmul.f32 0.0078125, %v7522_v27  ;;  %v7573_v17 = vmul.f32 0.0078125, %v7524_v23  ;;  %v7494_v49 = vmul.f32 %v16767_v43, %v16767_v43 }
 0x83b   : > { %10636 = vst [vmem:[%s14648_s26 + $0x18] sm:$0xff] %v10557_v32   ;;  %v16777_v30 = vadd.f32 %v10493_v41, %v7739_v47  ;;  %v7702_v25 = vmul.f32 %v16658_v52, %v7664_v59  ;;  %v10498_v23 = vunpack.c.h.bf16 %v10623_v33 }
 0x83c   : > { %v13330_v11 = vpop.eup %13329  ;;  %v7604_v39 = vadd.f32 1e-05, %v7572_v8  ;;  %v7605_v31 = vadd.f32 1e-05, %v7573_v17 }
 0x83d   : > { %7557 = vadd.xlane.f32.xlu1 %v7494_v49  ;;  %v7526_v1 = vpop.xlane.xlu1 %7525  ;;  %7973 = vadd.xlane.f32.xlu0 %v16777_v30  ;;  %v7528_v24 = vpop.xlane.xlu0 %7527  ;;  %v7740_v18 = vadd.f32 %v16663_v51, %v7702_v25  ;;  %v7665_v14 = vmul.f32 %v13330_v11, %v16591_v20  ;;  %v10624_v49 = vld [vmem:[%s14614_s28 + $0x30] sm:$0xff]  }
 0x83e   : > { %13335 = vrsqrt.f32 %v7604_v39  ;;  %v7574_v26 = vmul.f32 0.0078125, %v7526_v1  ;;  %v7575_v12 = vmul.f32 0.0078125, %v7528_v24 }
 0x83f   : > { %13337 = vrsqrt.f32 %v7605_v31  ;;  %v16784_v62 = vadd.f32 %v10494_v58, %v7740_v18  ;;  %v7703_v53 = vmul.f32 %v16658_v52, %v7665_v14  ;;  %v10501_v31 = vunpack.c.l.bf16 %v10624_v49 }
 0x840   : > { %v13332_v7 = vpop.eup %13331  ;;  %v7606_v2 = vadd.f32 1e-05, %v7574_v26  ;;  %v7607_v21 = vadd.f32 1e-05, %v7575_v12  ;;  %v10625_v12 = vld [vmem:[%s14614_s28 + $0x38] sm:$0xff]  }
 0x841   : > { %7975 = vadd.xlane.f32.xlu1 %v16784_v62  ;;  %v10562_v19 = vpack.c.bf16 %v16784_v62, %v16777_v30  ;;  %v7530_v20 = vpop.xlane.xlu1 %7529  ;;  %v7532_v41 = vpop.xlane.xlu0 %7531  ;;  %v7741_v40 = vadd.f32 %v16663_v51, %v7703_v53  ;;  %v7666_v4 = vmul.f32 %v13332_v7, %v16597_v61  ;;  %v10502_v7 = vunpack.c.h.bf16 %v10624_v49 }
 0x842   : > { %13339 = vrsqrt.f32 %v7606_v2  ;;  %v7576_v28 = vmul.f32 0.0078125, %v7530_v20  ;;  %v7577_v32 = vmul.f32 0.0078125, %v7532_v41 }
 0x843   : > { %13341 = vrsqrt.f32 %v7607_v21  ;;  %10637 = vst [vmem:[%s14648_s26 + $0x20] sm:$0xff] %v10562_v19   ;;  %v16793_v27 = vadd.f32 %v10497_v38, %v7741_v40  ;;  %v7704_v47 = vmul.f32 %v16658_v52, %v7666_v4  ;;  %v10505_v19 = vunpack.c.l.bf16 %v10625_v12  ;;  %v10626_v4 = vld [vmem:[%s14614_s28 + $0x40] sm:$0xff]  }
 0x844   : > { %v13334_v59 = vpop.eup %13333  ;;  %v7608_v8 = vadd.f32 1e-05, %v7576_v28  ;;  %v7609_v17 = vadd.f32 1e-05, %v7577_v32 }
 0x845   : > { %v7534_v58 = vpop.xlane.xlu1 %7533  ;;  %7977 = vadd.xlane.f32.xlu0 %v16793_v27  ;;  %v7742_v61 = vadd.f32 %v16663_v51, %v7704_v47  ;;  %v7667_v25 = vmul.f32 %v13334_v59, %v16603_v37 }
 0x846   : > { %13343 = vrsqrt.f32 %v7608_v8  ;;  %v7578_v11 = vmul.f32 0.0078125, %v7534_v58 }
 0x847   : > { %13345 = vrsqrt.f32 %v7609_v17  ;;  %v16800_v39 = vadd.f32 %v10498_v23, %v7742_v61  ;;  %v7705_v33 = vmul.f32 %v16658_v52, %v7667_v25  ;;  %v10506_v23 = vunpack.c.h.bf16 %v10625_v12  ;;  %v10627_v25 = vld [vmem:[%s14614_s28 + $0x48] sm:$0xff]  }
 0x848   : > { %v13336_v1 = vpop.eup %13335  ;;  %v7610_v24 = vadd.f32 1e-05, %v7578_v11  ;;  %v10509_v17 = vunpack.c.l.bf16 %v10626_v4 }
 0x849   : > { %v13338_v18 = vpop.eup %13337  ;;  %7979 = vadd.xlane.f32.xlu1 %v16800_v39  ;;  %v10567_v14 = vpack.c.bf16 %v16800_v39, %v16793_v27  ;;  %v7743_v26 = vadd.f32 %v16663_v51, %v7705_v33  ;;  %v7668_v37 = vmul.f32 %v13336_v1, %v16607_v50  ;;  %v10510_v1 = vunpack.c.h.bf16 %v10626_v4  ;;  %v13279_v4 = vld [vmem:[#allocation20] ss:$12 sps:$4 sm:$0xff]  }
 0x84a   : > { %13347 = vrsqrt.f32 %v7610_v24  ;;  %v7669_v38 = vmul.f32 %v13338_v18, %v16612_v56 }
 0x84b   : > { %10638 = vst [vmem:[%s14648_s26 + $0x28] sm:$0xff] %v10567_v14   ;;  %v16811_v53 = vadd.f32 %v10501_v31, %v7743_v26  ;;  %v7706_v2 = vmul.f32 %v16658_v52, %v7668_v37  ;;  %v10513_v26 = vunpack.c.l.bf16 %v10627_v25 }
 0x84c   : > { %v13340_v21 = vpop.eup %13339  ;;  %v7707_v20 = vmul.f32 %v16658_v52, %v7669_v38 }
 0x84d   : > { %v13342_v41 = vpop.eup %13341  ;;  %7981 = vadd.xlane.f32.xlu0 %v16811_v53  ;;  %v7744_v40 = vadd.f32 %v16663_v51, %v7706_v2  ;;  %v7670_v50 = vmul.f32 %v13340_v21, %v16618_v54  ;;  %v10514_v2 = vunpack.c.h.bf16 %v10627_v25 }
 0x84e   : > { %v7745_v56 = vadd.f32 %v16663_v51, %v7707_v20  ;;  %v7671_v28 = vmul.f32 %v13342_v41, %v16623_v36 }
 0x84f   : > { %v16821_v32 = vadd.f32 %v10502_v7, %v7744_v40  ;;  %v7708_v47 = vmul.f32 %v16658_v52, %v7670_v50  ;;  %v13277_v50 = vld [vmem:[#allocation20 + $0x4] ss:$12 sps:$4 sm:$0xff]  }
 0x850   : > { %v13344_v59 = vpop.eup %13343  ;;  %v16824_v8 = vadd.f32 %v10505_v19, %v7745_v56  ;;  %v7709_v49 = vmul.f32 %v16658_v52, %v7671_v28  ;;  %v13280_v56 = vld [vmem:[#allocation20 + $0x1c] ss:$12 sps:$4 sm:$0xff]   ;;  %8578 = vmatprep.subr.bf16.mxu1 %v13277_v50 }
 0x851   : > { %v13346_v58 = vpop.eup %13345  ;;  %7983 = vadd.xlane.f32.xlu1 %v16821_v32  ;;  %v10572_v54 = vpack.c.bf16 %v16821_v32, %v16811_v53  ;;  %v7746_v36 = vadd.f32 %v16663_v51, %v7708_v47  ;;  %v7672_v61 = vmul.f32 %v13344_v59, %v16630_v63  ;;  %8579 = vmatpush1.bf16.msra.mxu1 %v13279_v4 }
 0x852   : > { %7985 = vadd.xlane.f32.xlu0 %v16824_v8  ;;  %v7747_v11 = vadd.f32 %v16663_v51, %v7709_v49  ;;  %v7673_v31 = vmul.f32 %v13346_v58, %v16633_v60  ;;  %8580 = vmatprep.subr.bf16.mxu1 %v13280_v56 }
 0x853   : > { %10639 = vst [vmem:[%s14648_s26 + $0x30] sm:$0xff] %v10572_v54   ;;  %v16837_v33 = vadd.f32 %v10506_v23, %v7746_v36  ;;  %v7710_v24 = vmul.f32 %v16658_v52, %v7672_v61 }
 0x854   : > { %v13348_v18 = vpop.eup %13347  ;;  %v16840_v14 = vadd.f32 %v10509_v17, %v7747_v11  ;;  %v7711_v63 = vmul.f32 %v16658_v52, %v7673_v31 }
 0x855   : > { %7987 = vadd.xlane.f32.xlu1 %v16837_v33  ;;  %v10577_v37 = vpack.c.bf16 %v16837_v33, %v16824_v8  ;;  %v7748_v60 = vadd.f32 %v16663_v51, %v7710_v24  ;;  %v7674_v12 = vmul.f32 %v13348_v18, %v16640_v0 }
 0x856   : > { %7989 = vadd.xlane.f32.xlu0 %v16840_v14  ;;  %v7749_v38 = vadd.f32 %v16663_v51, %v7711_v63 }
 0x857   : > { %10640 = vst [vmem:[%s14648_s26 + $0x38] sm:$0xff] %v10577_v37   ;;  %v16851_v7 = vadd.f32 %v10510_v1, %v7748_v60  ;;  %v7712_v21 = vmul.f32 %v16658_v52, %v7674_v12 }
 0x858   : > { %v16854_v19 = vadd.f32 %v10513_v26, %v7749_v38  ;;  %v10628_v26 = vld [vmem:[%s14614_s28 + $0x50] sm:$0xff]  }
 0x859   : > { %7991 = vadd.xlane.f32.xlu1 %v16851_v7  ;;  %v10582_v20 = vpack.c.bf16 %v16851_v7, %v16840_v14  ;;  %v7750_v0 = vadd.f32 %v16663_v51, %v7712_v21 }
 0x85a   : > { %7993 = vadd.xlane.f32.xlu0 %v16854_v19 }
 0x85b   : > { %10641 = vst [vmem:[%s14648_s26 + $0x40] sm:$0xff] %v10582_v20   ;;  %v16862_v41 = vadd.f32 %v10514_v2, %v7750_v0  ;;  %v10517_v0 = vunpack.c.l.bf16 %v10628_v26 }
 0x85d   : > { %7995 = vadd.xlane.f32.xlu1 %v16862_v41  ;;  %v10587_v40 = vpack.c.bf16 %v16862_v41, %v16854_v19 }
 0x85f   : > { %10642 = vst [vmem:[%s14648_s26 + $0x48] sm:$0xff] %v10587_v40  }
 0x89d   : > { %v7536_v28 = vpop.xlane.xlu0 %7535 }
 0x89e   : > { %v7579_v23 = vmul.f32 0.0078125, %v7536_v28 }
 0x8a0   : > { %v7611_v47 = vadd.f32 1e-05, %v7579_v23 }
 0x8a1   : > { %v7538_v59 = vpop.xlane.xlu1 %7537 }
 0x8a2   : > { %13349 = vrsqrt.f32 %v7611_v47  ;;  %v7580_v17 = vmul.f32 0.0078125, %v7538_v59 }
 0x8a4   : > { %v7612_v49 = vadd.f32 1e-05, %v7580_v17 }
 0x8a5   : > { %v7540_v58 = vpop.xlane.xlu0 %7539 }
 0x8a6   : > { %13351 = vrsqrt.f32 %v7612_v49  ;;  %v7581_v54 = vmul.f32 0.0078125, %v7540_v58 }
 0x8a8   : > { %v7613_v36 = vadd.f32 1e-05, %v7581_v54 }
 0x8a9   : > { %v7542_v61 = vpop.xlane.xlu1 %7541 }
 0x8aa   : > { %13353 = vrsqrt.f32 %v7613_v36  ;;  %v7582_v25 = vmul.f32 0.0078125, %v7542_v61  ;;  %v7958_v11 = vpop.xlane.xlu0 %7957 }
 0x8ab   : > { %v8021_v31 = vmul.f32 0.0078125, %v7958_v11 }
 0x8ac   : > { %v13350_v1 = vpop.eup %13349  ;;  %v7614_v24 = vadd.f32 1e-05, %v7582_v25 }
 0x8ad   : > { %v16869_v18 = vsub.f32 %v16673_v55, %v8021_v31  ;;  %v7675_v63 = vmul.f32 %v13350_v1, %v16645_v45 }
 0x8ae   : > { %13355 = vrsqrt.f32 %v7614_v24  ;;  %v7960_v37 = vpop.xlane.xlu1 %7959  ;;  %v7544_v60 = vpop.xlane.xlu0 %7543 }
 0x8af   : > { %v8022_v12 = vmul.f32 0.0078125, %v7960_v37  ;;  %v7583_v38 = vmul.f32 0.0078125, %v7544_v60  ;;  %v8085_v2 = vmul.f32 %v16869_v18, %v16869_v18  ;;  %v7713_v21 = vmul.f32 %v16658_v52, %v7675_v63 }
 0x8b0   : > { %v13352_v20 = vpop.eup %13351 }
 0x8b1   : > { %v16877_v40 = vsub.f32 %v16685_v10, %v8022_v12  ;;  %v7615_v55 = vadd.f32 1e-05, %v7583_v38  ;;  %8117 = vadd.xlane.f32.xlu0 %v8085_v2  ;;  %v7751_v45 = vadd.f32 %v16663_v51, %v7713_v21  ;;  %v7676_v50 = vmul.f32 %v13352_v20, %v16650_v16  ;;  %v10629_v16 = vld [vmem:[%s14614_s28 + $0x58] sm:$0xff]  }
 0x8b2   : > { %v7546_v4 = vpop.xlane.xlu1 %7545  ;;  %v7962_v56 = vpop.xlane.xlu0 %7961  ;;  %v10518_v10 = vunpack.c.h.bf16 %v10628_v26 }
 0x8b3   : > { %13357 = vrsqrt.f32 %v7615_v55  ;;  %v7584_v28 = vmul.f32 0.0078125, %v7546_v4  ;;  %v8023_v23 = vmul.f32 0.0078125, %v7962_v56  ;;  %v8086_v47 = vmul.f32 %v16877_v40, %v16877_v40 }
 0x8b4   : > { %v13354_v59 = vpop.eup %13353  ;;  %v16883_v17 = vadd.f32 %v10517_v0, %v7751_v45  ;;  %v7714_v49 = vmul.f32 %v16658_v52, %v7676_v50 }
 0x8b5   : > { %v7616_v58 = vadd.f32 1e-05, %v7584_v28  ;;  %v16887_v54 = vsub.f32 %v16699_v22, %v8023_v23  ;;  %8119 = vadd.xlane.f32.xlu1 %v8086_v47  ;;  %v7677_v36 = vmul.f32 %v13354_v59, %v16655_v34  ;;  %v10521_v22 = vunpack.c.l.bf16 %v10629_v16  ;;  %v10630_v23 = vld [vmem:[%s14614_s28 + $0x60] sm:$0xff]  }
 0x8b6   : > { %7997 = vadd.xlane.f32.xlu0 %v16883_v17  ;;  %v7964_v61 = vpop.xlane.xlu1 %7963  ;;  %v7548_v25 = vpop.xlane.xlu0 %7547  ;;  %v7752_v11 = vadd.f32 %v16663_v51, %v7714_v49 }
 0x8b7   : > { %13359 = vrsqrt.f32 %v7616_v58  ;;  %v8024_v31 = vmul.f32 0.0078125, %v7964_v61  ;;  %v7585_v1 = vmul.f32 0.0078125, %v7548_v25  ;;  %v8087_v24 = vmul.f32 %v16887_v54, %v16887_v54  ;;  %v13282_v58 = vld [vmem:[#allocation20 + $0x18] ss:$12 sps:$4 sm:$0xff]  }
 0x8b8   : > { %v13356_v26 = vpop.eup %13355  ;;  %v16895_v63 = vadd.f32 %v10518_v10, %v7752_v11  ;;  %v7715_v37 = vmul.f32 %v16658_v52, %v7677_v36  ;;  %8581 = vmatpush1.bf16.msra.mxu1 %v13282_v58  ;;  %v13290_v58 = vld [vmem:[#allocation20 + $0x48] ss:$12 sps:$4 sm:$0xff]  }
 0x8b9   : > { %v16899_v34 = vsub.f32 %v16711_v29, %v8024_v31  ;;  %v7617_v60 = vadd.f32 1e-05, %v7585_v1  ;;  %v7678_v12 = vmul.f32 %v13356_v26, %v16667_v35  ;;  %v10522_v35 = vunpack.c.h.bf16 %v10629_v16  ;;  %v13283_v26 = vld [vmem:[#allocation20 + $0x34] ss:$12 sps:$4 sm:$0xff]  }
 0x8ba   : > { %7999 = vadd.xlane.f32.xlu1 %v16895_v63  ;;  %v10592_v38 = vpack.c.bf16 %v16895_v63, %v16883_v17  ;;  %8121 = vadd.xlane.f32.xlu0 %v8087_v24  ;;  %v7550_v2 = vpop.xlane.xlu1 %7549  ;;  %v7966_v21 = vpop.xlane.xlu0 %7965  ;;  %v7753_v20 = vadd.f32 %v16663_v51, %v7715_v37 }
 0x8bb   : > { %13361 = vrsqrt.f32 %v7617_v60  ;;  %v7586_v0 = vmul.f32 0.0078125, %v7550_v2  ;;  %v8025_v55 = vmul.f32 0.0078125, %v7966_v21  ;;  %v8088_v29 = vmul.f32 %v16899_v34, %v16899_v34  ;;  %v13286_v2 = vld [vmem:[#allocation20 + $0x30] ss:$12 sps:$4 sm:$0xff]   ;;  %8582 = vmatprep.subr.bf16.mxu1 %v13283_v26 }
 0x8bc   : > { %10643 = vst [vmem:[%s14648_s26 + $0x50] sm:$0xff] %v10592_v38   ;;  %v16909_v45 = vadd.f32 %v10521_v22, %v7753_v20  ;;  %v7716_v50 = vmul.f32 %v16658_v52, %v7678_v12  ;;  %8583 = vmatpush1.bf16.msra.mxu1 %v13286_v2  ;;  %v13291_v26 = vld [vmem:[#allocation20 + $0x64] ss:$12 sps:$4 sm:$0xff]   ;;  %v13294_v2 = vld [vmem:[#allocation20 + $0x60] ss:$12 sps:$4 sm:$0xff]  }
 0x8bd   : > { %v13358_v4 = vpop.eup %13357  ;;  %v7618_v56 = vadd.f32 1e-05, %v7586_v0  ;;  %v16913_v28 = vsub.f32 %v16725_v57, %v8025_v55  ;;  %v10525_v57 = vunpack.c.l.bf16 %v10630_v23  ;;  %v10526_v55 = vunpack.c.h.bf16 %v10630_v23 }
 0x8be   : > { %8123 = vadd.xlane.f32.xlu1 %v8088_v29  ;;  %8001 = vadd.xlane.f32.xlu0 %v16909_v45  ;;  %v7968_v47 = vpop.xlane.xlu1 %7967  ;;  %v7552_v59 = vpop.xlane.xlu0 %7551  ;;  %v7754_v10 = vadd.f32 %v16663_v51, %v7716_v50  ;;  %v7679_v49 = vmul.f32 %v13358_v4, %v16677_v3  ;;  %v13285_v3 = vld [vmem:[#allocation20 + $0x8] ss:$12 sps:$4 sm:$0xff]  }
 0x8bf   : > { %13363 = vrsqrt.f32 %v7618_v56  ;;  %v8026_v16 = vmul.f32 0.0078125, %v7968_v47  ;;  %v7587_v36 = vmul.f32 0.0078125, %v7552_v59  ;;  %v8089_v61 = vmul.f32 %v16913_v28, %v16913_v28  ;;  %12161 = vmatprep.subr.bf16.mxu0 %v13285_v3  ;;  %v13287_v56 = vld [vmem:[#allocation20 + $0x4c] ss:$12 sps:$4 sm:$0xff]  }
 0x8c0   : > { %v16921_v25 = vadd.f32 %v10522_v35, %v7754_v10  ;;  %v7717_v11 = vmul.f32 %v16658_v52, %v7679_v49  ;;  %v16939_v35 = vld [vmem:[%s14614_s28 + $0x68] sm:$0xff]   ;;  %12162 = vmatpush3.bf16.msra.mxu0 %v13285_v3  ;;  %8584 = vmatprep.subr.bf16.mxu1 %v13287_v56  ;;  %v13293_v3 = vld [vmem:[#allocation20 + $0x38] ss:$12 sps:$4 sm:$0xff]  }
 0x8c1   : > { %v13360_v31 = vpop.eup %13359  ;;  %v16925_v1 = vsub.f32 %v16737_v48, %v8026_v16  ;;  %v7619_v24 = vadd.f32 1e-05, %v7587_v36  ;;  %v13289_v47 = vld [vmem:[#allocation20 + $0x20] ss:$12 sps:$4 sm:$0xff]   ;;  %8585 = vmatpush1.bf16.msra.mxu1 %v13290_v58 }
 0x8c2   : > { %8003 = vadd.xlane.f32.xlu1 %v16921_v25  ;;  %v10597_v22 = vpack.c.bf16 %v16921_v25, %v16909_v45  ;;  %8125 = vadd.xlane.f32.xlu0 %v8089_v61  ;;  %v7554_v37 = vpop.xlane.xlu1 %7553  ;;  %v7970_v60 = vpop.xlane.xlu0 %7969  ;;  %v7755_v12 = vadd.f32 %v16663_v51, %v7717_v11  ;;  %v7680_v38 = vmul.f32 %v13360_v31, %v16689_v46 }
 0x8c3   : > { %13365 = vrsqrt.f32 %v7619_v24  ;;  %v7588_v48 = vmul.f32 0.0078125, %v7554_v37  ;;  %v8027_v21 = vmul.f32 0.0078125, %v7970_v60  ;;  %v8090_v20 = vmul.f32 %v16925_v1, %v16925_v1  ;;  %12163 = vmatprep.subr.bf16.mxu0 %v13289_v47  ;;  %8586 = vmatprep.subr.bf16.mxu1 %v13291_v26 }
 0x8c4   : > { %10644 = vst [vmem:[%s14648_s26 + $0x58] sm:$0xff] %v10597_v22   ;;  %v16935_v0 = vadd.f32 %v10525_v57, %v7755_v12  ;;  %v7718_v29 = vmul.f32 %v16658_v52, %v7680_v38  ;;  %v10529_v57 = vunpack.c.l.bf16 %v16939_v35  ;;  %12164 = vmatpush3.bf16.msra.mxu0 %v13289_v47  ;;  %v13295_v47 = vld [vmem:[#allocation20 + $0x7c] ss:$12 sps:$4 sm:$0xff]  }
 0x8c5   : > { %v13362_v46 = vpop.eup %13361  ;;  %v7620_v50 = vadd.f32 1e-05, %v7588_v48  ;;  %v16942_v4 = vsub.f32 %v16751_v6, %v8027_v21  ;;  %12165 = vmatprep.subr.bf16.mxu0 %v13293_v3  ;;  %8587 = vmatpush1.bf16.msra.mxu1 %v13294_v2 }
 0x8c6   : > { %8127 = vadd.xlane.f32.xlu1 %v8090_v20  ;;  %v7972_v59 = vpop.xlane.xlu1 %7971  ;;  %8005 = vadd.xlane.f32.xlu0 %v16935_v0  ;;  %v7556_v10 = vpop.xlane.xlu0 %7555  ;;  %v7756_v23 = vadd.f32 %v16663_v51, %v7718_v29  ;;  %v7681_v49 = vmul.f32 %v13362_v46, %v16703_v9  ;;  %v10632_v46 = vld [vmem:[%s14614_s28 + $0x70] sm:$0xff]  }
 0x8c7   : > { %13367 = vrsqrt.f32 %v7620_v50  ;;  %v8028_v16 = vmul.f32 0.0078125, %v7972_v59  ;;  %v7589_v36 = vmul.f32 0.0078125, %v7556_v10  ;;  %v8091_v61 = vmul.f32 %v16942_v4, %v16942_v4  ;;  %v13297_v59 = vld [vmem:[#allocation20 + $0x50] ss:$12 sps:$4 sm:$0xff]   ;;  %8588 = vmatprep.subr.bf16.mxu1 %v13295_v47 }
 0x8c8   : > { %v16949_v6 = vadd.f32 %v10526_v55, %v7756_v23  ;;  %v7719_v11 = vmul.f32 %v16658_v52, %v7681_v49  ;;  %v10530_v55 = vunpack.c.h.bf16 %v16939_v35  ;;  %12166 = vmatpush3.bf16.msra.mxu0 %v13293_v3  ;;  %v13298_v49 = vld [vmem:[#allocation20 + $0x78] ss:$12 sps:$4 sm:$0xff]  }
 0x8c9   : > { %v13364_v31 = vpop.eup %13363  ;;  %v16954_v9 = vsub.f32 %v16763_v44, %v8028_v16  ;;  %v7621_v24 = vadd.f32 1e-05, %v7589_v36  ;;  %12167 = vmatprep.subr.bf16.mxu0 %v13297_v59  ;;  %v10533_v36 = vunpack.c.l.bf16 %v10632_v46  ;;  %8589 = vmatpush1.bf16.msra.mxu1 %v13298_v49 }
 0x8ca   : > { %8007 = vadd.xlane.f32.xlu1 %v16949_v6  ;;  %v10602_v22 = vpack.c.bf16 %v16949_v6, %v16935_v0  ;;  %v7558_v37 = vpop.xlane.xlu1 %7557  ;;  %8129 = vadd.xlane.f32.xlu0 %v8091_v61  ;;  %v7974_v60 = vpop.xlane.xlu0 %7973  ;;  %v7757_v12 = vadd.f32 %v16663_v51, %v7719_v11  ;;  %v7682_v38 = vmul.f32 %v13364_v31, %v16715_v5  ;;  %v13301_v31 = vld [vmem:[#allocation20 + $0x68] ss:$12 sps:$4 sm:$0xff]  }
 0x8cb   : > { %13369 = vrsqrt.f32 %v7621_v24  ;;  %v7590_v44 = vmul.f32 0.0078125, %v7558_v37  ;;  %v8029_v48 = vmul.f32 0.0078125, %v7974_v60  ;;  %v8092_v21 = vmul.f32 %v16954_v9, %v16954_v9  ;;  %v13302_v37 = vld [vmem:[#allocation20 + $0x90] ss:$12 sps:$4 sm:$0xff]  }
 0x8cc   : > { %10645 = vst [vmem:[%s14648_s26 + $0x60] sm:$0xff] %v10602_v22   ;;  %v16964_v20 = vadd.f32 %v10529_v57, %v7757_v12  ;;  %v7720_v29 = vmul.f32 %v16658_v52, %v7682_v38  ;;  %12168 = vmatpush3.bf16.msra.mxu0 %v13297_v59  ;;  %v10534_v38 = vunpack.c.h.bf16 %v10632_v46  ;;  %v13306_v46 = vld [vmem:[#allocation20 + $0xa8] ss:$12 sps:$4 sm:$0xff]  }
 0x8cd   : > { %v13366_v5 = vpop.eup %13365  ;;  %v7622_v50 = vadd.f32 1e-05, %v7590_v44  ;;  %v16970_v56 = vsub.f32 %v16777_v30, %v8029_v48  ;;  %12169 = vmatprep.subr.bf16.mxu0 %v13301_v31 }
 0x8ce   : > { %8131 = vadd.xlane.f32.xlu1 %v8092_v21  ;;  %v7976_v10 = vpop.xlane.xlu1 %7975  ;;  %8009 = vadd.xlane.f32.xlu0 %v16964_v20  ;;  %v7758_v23 = vadd.f32 %v16663_v51, %v7720_v29  ;;  %v7683_v35 = vmul.f32 %v13366_v5, %v16729_v13  ;;  %v13299_v13 = vld [vmem:[#allocation20 + $0x94] ss:$12 sps:$4 sm:$0xff]   ;;  %v13303_v21 = vld [vmem:[#allocation20 + $0xac] ss:$12 sps:$4 sm:$0xff]  }
 0x8cf   : > { %13371 = vrsqrt.f32 %v7622_v50  ;;  %v8030_v58 = vmul.f32 0.0078125, %v7976_v10  ;;  %v8093_v16 = vmul.f32 %v16970_v56, %v16970_v56  ;;  %8590 = vmatprep.subr.bf16.mxu1 %v13299_v13  ;;  %v13437_v10 = vld [vmem:[#allocation14] ss:$0 sm:$0xff] }
 0x8d0   : > { %v16977_v30 = vadd.f32 %v10530_v55, %v7758_v23  ;;  %v7721_v61 = vmul.f32 %v16658_v52, %v7683_v35  ;;  %8591 = vmatpush1.bf16.msra.mxu1 %v13302_v37  ;;  %12170 = vmatpush3.bf16.msra.mxu0 %v13301_v31  ;;  %v13305_v55 = vld [vmem:[#allocation20 + $0x80] ss:$12 sps:$4 sm:$0xff]   ;;  %v14009_v31 = vmov 0  }
 0x8d1   : > { %v13368_v57 = vpop.eup %13367  ;;  %v16981_v11 = vsub.f32 %v16784_v62, %v8030_v58  ;;  %8592 = vmatprep.subr.bf16.mxu1 %v13303_v21  ;;  %12171 = vmatprep.subr.bf16.mxu0 %v13305_v55 }
 0x8d2   : > { %8011 = vadd.xlane.f32.xlu1 %v16977_v30  ;;  %v10607_v24 = vpack.c.bf16 %v16977_v30, %v16964_v20  ;;  %8133 = vadd.xlane.f32.xlu0 %v8093_v16  ;;  %v7978_v26 = vpop.xlane.xlu0 %7977  ;;  %v7759_v3 = vadd.f32 %v16663_v51, %v7721_v61  ;;  %v7684_v22 = vmul.f32 %v13368_v57, %v16741_v42  ;;  %v10633_v42 = vld [vmem:[%s14614_s28 + $0x78] sm:$0xff]   ;;  %v13438_v16 = vld [vmem:[#allocation15] ss:$0 sm:$0xff] }
 0x8d3   : > { %v8031_v60 = vmul.f32 0.0078125, %v7978_v26  ;;  %v8094_v62 = vmul.f32 %v16981_v11, %v16981_v11  ;;  %v10537_v59 = vunpack.c.l.bf16 %v10633_v42  ;;  %8610 = vmatprep.mubr.bf16.mxu1 %v14009_v31 }
 0x8d4   : > { %10646 = vst [vmem:[%s14648_s26 + $0x68] sm:$0xff] %v10607_v24   ;;  %v16991_v12 = vadd.f32 %v10533_v36, %v7759_v3  ;;  %v7722_v2 = vmul.f32 %v16658_v52, %v7684_v22  ;;  %8593 = vmatpush1.bf16.msra.mxu1 %v13306_v46  ;;  %12172 = vmatpush3.bf16.msra.mxu0 %v13305_v55  ;;  %v10538_v24 = vunpack.c.h.bf16 %v10633_v42  ;;  %v13308_v22 = vld [vmem:[#allocation20 + $0xb0] ss:$12 sps:$4 sm:$0xff]  }
 0x8d5   : > { %v13370_v44 = vpop.eup %13369  ;;  %v16995_v48 = vsub.f32 %v16793_v27, %v8031_v60 }
 0x8d6   : > { %8135 = vadd.xlane.f32.xlu1 %v8094_v62  ;;  %v7980_v29 = vpop.xlane.xlu1 %7979  ;;  %8013 = vadd.xlane.f32.xlu0 %v16991_v12  ;;  %v7760_v5 = vadd.f32 %v16663_v51, %v7722_v2  ;;  %v7685_v50 = vmul.f32 %v13370_v44, %v16755_v15  ;;  %v13307_v15 = vld [vmem:[#allocation20 + $0x98] ss:$12 sps:$4 sm:$0xff]  }
 0x8d7   : > { %v8032_v47 = vmul.f32 0.0078125, %v7980_v29  ;;  %v8095_v52 = vmul.f32 %v16995_v48, %v16995_v48  ;;  %12173 = vmatprep.subr.bf16.mxu0 %v13307_v15 }
 0x8d8   : > { %v17003_v27 = vadd.f32 %v10534_v38, %v7760_v5  ;;  %v7723_v23 = vmul.f32 %v13437_v10, %v7685_v50  ;;  %12174 = vmatpush3.bf16.msra.mxu0 %v13307_v15 }
 0x8d9   : > { %v13372_v35 = vpop.eup %13371  ;;  %v17006_v51 = vsub.f32 %v16800_v39, %v8032_v47  ;;  %12175 = vmatprep.subr.bf16.mxu0 %v13308_v22 }
 0x8da   : > { %8015 = vadd.xlane.f32.xlu1 %v17003_v27  ;;  %v10612_v49 = vpack.c.bf16 %v17003_v27, %v16991_v12  ;;  %8137 = vadd.xlane.f32.xlu0 %v8095_v52  ;;  %v7982_v58 = vpop.xlane.xlu0 %7981  ;;  %v7761_v36 = vadd.f32 %v13438_v16, %v7723_v23  ;;  %v7686_v61 = vmul.f32 %v13372_v35, %v16767_v43 }
 0x8db   : > { %v8033_v57 = vmul.f32 0.0078125, %v7982_v58  ;;  %v8096_v13 = vmul.f32 %v17006_v51, %v17006_v51 }
 0x8dc   : > { %10647 = vst [vmem:[%s14648_s26 + $0x70] sm:$0xff] %v10612_v49   ;;  %v17016_v39 = vadd.f32 %v10537_v59, %v7761_v36  ;;  %v7724_v26 = vmul.f32 %v13437_v10, %v7686_v61  ;;  %12176 = vmatpush3.bf16.msra.mxu0 %v13308_v22 }
 0x8dd   : > { %v17019_v3 = vsub.f32 %v16811_v53, %v8033_v57 }
 0x8de   : > { %8139 = vadd.xlane.f32.xlu1 %v8096_v13  ;;  %v7984_v43 = vpop.xlane.xlu1 %7983  ;;  %8017 = vadd.xlane.f32.xlu0 %v17016_v39  ;;  %v7762_v37 = vadd.f32 %v13438_v16, %v7724_v26 }
 0x8df   : > { %v8034_v60 = vmul.f32 0.0078125, %v7984_v43  ;;  %v7986_v62 = vpop.xlane.xlu0 %7985  ;;  %v8097_v38 = vmul.f32 %v17019_v3, %v17019_v3 }
 0x8e0   : > { %v8035_v2 = vmul.f32 0.0078125, %v7986_v62  ;;  %v17024_v44 = vadd.f32 %v10538_v24, %v7762_v37 }
 0x8e1   : > { %v17027_v53 = vsub.f32 %v16821_v32, %v8034_v60 }
 0x8e2   : > { %v17030_v42 = vsub.f32 %v16824_v8, %v8035_v2  ;;  %8019 = vadd.xlane.f32.xlu1 %v17024_v44  ;;  %v10617_v21 = vpack.c.bf16 %v17024_v44, %v17016_v39  ;;  %v7988_v55 = vpop.xlane.xlu1 %7987  ;;  %8141 = vadd.xlane.f32.xlu0 %v8097_v38 }
 0x8e3   : > { %v8036_v29 = vmul.f32 0.0078125, %v7988_v55  ;;  %v7990_v5 = vpop.xlane.xlu0 %7989  ;;  %v8098_v50 = vmul.f32 %v17027_v53, %v17027_v53 }
 0x8e4   : > { %10648 = vst [vmem:[%s14648_s26 + $0x78] sm:$0xff] %v10617_v21   ;;  %v8037_v46 = vmul.f32 0.0078125, %v7990_v5  ;;  %v8099_v32 = vmul.f32 %v17030_v42, %v17030_v42 }
 0x8e5   : > { %v17041_v8 = vsub.f32 %v16837_v33, %v8036_v29 }
 0x8e6   : > { %v17044_v47 = vsub.f32 %v16840_v14, %v8037_v46  ;;  %8143 = vadd.xlane.f32.xlu1 %v8098_v50  ;;  %v7992_v52 = vpop.xlane.xlu1 %7991  ;;  %8145 = vadd.xlane.f32.xlu0 %v8099_v32 }
 0x8e7   : > { %v8038_v59 = vmul.f32 0.0078125, %v7992_v52  ;;  %v7994_v10 = vpop.xlane.xlu0 %7993  ;;  %v8100_v23 = vmul.f32 %v17041_v8, %v17041_v8 }
 0x8e8   : > { %v8039_v35 = vmul.f32 0.0078125, %v7994_v10  ;;  %v8101_v15 = vmul.f32 %v17044_v47, %v17044_v47 }
 0x8e9   : > { %v17051_v49 = vsub.f32 %v16851_v7, %v8038_v59 }
 0x8ea   : > { %v17054_v33 = vsub.f32 %v16854_v19, %v8039_v35  ;;  %8147 = vadd.xlane.f32.xlu1 %v8100_v23  ;;  %v7996_v14 = vpop.xlane.xlu1 %7995  ;;  %8149 = vadd.xlane.f32.xlu0 %v8101_v15 }
 0x8eb   : > { %v8040_v58 = vmul.f32 0.0078125, %v7996_v14  ;;  %v8102_v16 = vmul.f32 %v17051_v49, %v17051_v49 }
 0x8ec   : > { %v8103_v36 = vmul.f32 %v17054_v33, %v17054_v33 }
 0x8ed   : > { %v17061_v61 = vsub.f32 %v16862_v41, %v8040_v58 }
 0x8ee   : > { %8151 = vadd.xlane.f32.xlu1 %v8102_v16  ;;  %8153 = vadd.xlane.f32.xlu0 %v8103_v36  ;;  %v17081_v16 = vld [vmem:[#allocation17] ss:$0 sm:$0xff] }
 0x8ef   : > { %v8104_v7 = vmul.f32 %v17061_v61, %v17061_v61 }
 0x8f2   : > { %8155 = vadd.xlane.f32.xlu1 %v8104_v7 }
 0x93e   : > { %v8118_v19 = vpop.xlane.xlu0 %8117 }
 0x93f   : > { %v8181_v57 = vmul.f32 0.0078125, %v8118_v19 }
 0x941   : > { %v8213_v13 = vadd.f32 1e-05, %v8181_v57 }
 0x942   : > { %v8120_v24 = vpop.xlane.xlu1 %8119 }
 0x943   : > { %13373 = vrsqrt.f32 %v8213_v13  ;;  %v8182_v26 = vmul.f32 0.0078125, %v8120_v24  ;;  %v7998_v22 = vpop.xlane.xlu0 %7997 }
 0x944   : > { %v8041_v43 = vmul.f32 0.0078125, %v7998_v22 }
 0x945   : > { %v8214_v37 = vadd.f32 1e-05, %v8182_v26 }
 0x946   : > { %v17066_v60 = vsub.f32 %v16883_v17, %v8041_v43  ;;  %v17090_v43 = vld [vmem:[#allocation18] ss:$0 sm:$0xff] }
 0x947   : > { %13375 = vrsqrt.f32 %v8214_v37  ;;  %v8000_v41 = vpop.xlane.xlu1 %7999  ;;  %v8122_v62 = vpop.xlane.xlu0 %8121 }
 0x948   : > { %v8042_v38 = vmul.f32 0.0078125, %v8000_v41  ;;  %v8183_v2 = vmul.f32 0.0078125, %v8122_v62  ;;  %v8105_v21 = vmul.f32 %v17066_v60, %v17066_v60 }
 0x94a   : > { %v17071_v55 = vsub.f32 %v16895_v63, %v8042_v38  ;;  %v8215_v29 = vadd.f32 1e-05, %v8183_v2  ;;  %8157 = vadd.xlane.f32.xlu0 %v8105_v21 }
 0x94b   : > { %v8124_v5 = vpop.xlane.xlu1 %8123  ;;  %v8002_v50 = vpop.xlane.xlu0 %8001 }
 0x94c   : > { %13377 = vrsqrt.f32 %v8215_v29  ;;  %v8184_v46 = vmul.f32 0.0078125, %v8124_v5  ;;  %v8043_v32 = vmul.f32 0.0078125, %v8002_v50  ;;  %v8106_v17 = vmul.f32 %v17071_v55, %v17071_v55 }
 0x94d   : > { %v13374_v52 = vpop.eup %13373 }
 0x94e   : > { %v8216_v59 = vadd.f32 1e-05, %v8184_v46  ;;  %v17076_v10 = vsub.f32 %v16909_v45, %v8043_v32  ;;  %8159 = vadd.xlane.f32.xlu1 %v8106_v17  ;;  %v8277_v63 = vmul.f32 %v13374_v52, %v16869_v18 }
 0x94f   : > { %v8004_v23 = vpop.xlane.xlu1 %8003  ;;  %v8126_v35 = vpop.xlane.xlu0 %8125 }
 0x950   : > { %13379 = vrsqrt.f32 %v8216_v59  ;;  %v8044_v15 = vmul.f32 0.0078125, %v8004_v23  ;;  %v8185_v14 = vmul.f32 0.0078125, %v8126_v35  ;;  %v8107_v58 = vmul.f32 %v17076_v10, %v17076_v10 }
 0x951   : > { %v13376_v36 = vpop.eup %13375  ;;  %v8315_v18 = vmul.f32 %v17081_v16, %v8277_v63 }
 0x952   : > { %v17084_v7 = vsub.f32 %v16921_v25, %v8044_v15  ;;  %v8217_v19 = vadd.f32 1e-05, %v8185_v14  ;;  %8161 = vadd.xlane.f32.xlu0 %v8107_v58  ;;  %v8278_v45 = vmul.f32 %v13376_v36, %v16877_v40 }
 0x953   : > { %v8128_v57 = vpop.xlane.xlu1 %8127  ;;  %v8006_v13 = vpop.xlane.xlu0 %8005  ;;  %v8353_v2 = vadd.f32 %v17090_v43, %v8315_v18 }
 0x954   : > { %13381 = vrsqrt.f32 %v8217_v19  ;;  %v8186_v24 = vmul.f32 0.0078125, %v8128_v57  ;;  %v8045_v26 = vmul.f32 0.0078125, %v8006_v13  ;;  %v8108_v22 = vmul.f32 %v17084_v7, %v17084_v7 }
 0x955   : > { %v8316_v37 = vmul.f32 %v17081_v16, %v8278_v45 }
 0x956   : > { %v13378_v25 = vpop.eup %13377  ;;  %v8218_v41 = vadd.f32 1e-05, %v8186_v24  ;;  %v17094_v62 = vsub.f32 %v16935_v0, %v8045_v26  ;;  %8163 = vadd.xlane.f32.xlu1 %v8108_v22 }
 0x957   : > { %v8008_v40 = vpop.xlane.xlu1 %8007  ;;  %v8130_v38 = vpop.xlane.xlu0 %8129  ;;  %v8354_v21 = vadd.f32 %v17090_v43, %v8316_v37  ;;  %v8279_v29 = vmul.f32 %v13378_v25, %v16887_v54 }
 0x958   : > { %13383 = vrsqrt.f32 %v8218_v41  ;;  %v8046_v5 = vmul.f32 0.0078125, %v8008_v40  ;;  %v8187_v50 = vmul.f32 0.0078125, %v8130_v38  ;;  %v8109_v46 = vmul.f32 %v17094_v62, %v17094_v62 }
 0x959   : > { %v8385_v32 = vpack.c.bf16 %v8354_v21, %v8353_v2  ;;  %v8317_v54 = vmul.f32 %v17081_v16, %v8279_v29 }
 0x95a   : > { %v13380_v17 = vpop.eup %13379  ;;  %v17102_v0 = vsub.f32 %v16949_v6, %v8046_v5  ;;  %v8219_v52 = vadd.f32 1e-05, %v8187_v50  ;;  %8165 = vadd.xlane.f32.xlu0 %v8109_v46 }
 0x95b   : > { %8611 = vmatmul.mubr.bf16.vlgmr.msra.gmra.mrb[0].mxu1 %v8385_v32  ;;  %12177 = vmatprep.mubr.bf16.mxu0 %v8385_v32  ;;  %v8132_v59 = vpop.xlane.xlu1 %8131  ;;  %v8010_v23 = vpop.xlane.xlu0 %8009  ;;  %v8280_v35 = vmul.f32 %v13380_v17, %v16899_v34  ;;  %v8355_v57 = vadd.f32 %v17090_v43, %v8317_v54 }
 0x95c   : > { %13385 = vrsqrt.f32 %v8219_v52  ;;  %v8188_v63 = vmul.f32 0.0078125, %v8132_v59  ;;  %v8047_v15 = vmul.f32 0.0078125, %v8010_v23  ;;  %v8110_v14 = vmul.f32 %v17102_v0, %v17102_v0  ;;  %8620 = vmatprep.mubr.bf16.mxu1 %v14009_v31 }
 0x95d   : > { %v8318_v6 = vmul.f32 %v17081_v16, %v8280_v35 }
 0x95e   : > { %v13382_v58 = vpop.eup %13381  ;;  %v8220_v36 = vadd.f32 1e-05, %v8188_v63  ;;  %v17111_v19 = vsub.f32 %v16964_v20, %v8047_v15  ;;  %8167 = vadd.xlane.f32.xlu1 %v8110_v14 }
 0x95f   : > { %v8012_v45 = vpop.xlane.xlu1 %8011  ;;  %v8134_v34 = vpop.xlane.xlu0 %8133  ;;  %v8356_v13 = vadd.f32 %v17090_v43, %v8318_v6  ;;  %v8281_v18 = vmul.f32 %v13382_v58, %v16913_v28 }
 0x960   : > { %13387 = vrsqrt.f32 %v8220_v36  ;;  %v8048_v24 = vmul.f32 0.0078125, %v8012_v45  ;;  %v8189_v26 = vmul.f32 0.0078125, %v8134_v34  ;;  %v8111_v22 = vmul.f32 %v17111_v19, %v17111_v19 }
 0x961   : > { %v8386_v37 = vpack.c.bf16 %v8356_v13, %v8355_v57  ;;  %v8319_v28 = vmul.f32 %v17081_v16, %v8281_v18 }
 0x962   : > { %v13384_v25 = vpop.eup %13383  ;;  %v17119_v20 = vsub.f32 %v16977_v30, %v8048_v24  ;;  %v8221_v41 = vadd.f32 1e-05, %v8189_v26  ;;  %8169 = vadd.xlane.f32.xlu0 %v8111_v22 }
 0x963   : > { %8621 = vmatmul.mubr.bf16.gmra.mrb[4].mxu1 %v8386_v37  ;;  %12178 = vmatmul.mubr.bf16.vlgmr.msra.gmra.mrb[32].mxu0 %v8386_v37  ;;  %v8136_v40 = vpop.xlane.xlu1 %8135  ;;  %v8014_v38 = vpop.xlane.xlu0 %8013  ;;  %v8282_v2 = vmul.f32 %v13384_v25, %v16925_v1  ;;  %v8357_v52 = vadd.f32 %v17090_v43, %v8319_v28 }
 0x964   : > { %13389 = vrsqrt.f32 %v8221_v41  ;;  %v8190_v21 = vmul.f32 0.0078125, %v8136_v40  ;;  %v8049_v29 = vmul.f32 0.0078125, %v8014_v38  ;;  %v8112_v5 = vmul.f32 %v17119_v20, %v17119_v20  ;;  %8630 = vmatprep.mubr.bf16.mxu1 %v14009_v31 }
 0x965   : > { %v8320_v30 = vmul.f32 %v17081_v16, %v8282_v2 }
 0x966   : > { %v13386_v50 = vpop.eup %13385  ;;  %v8222_v46 = vadd.f32 1e-05, %v8190_v21  ;;  %v17128_v32 = vsub.f32 %v16991_v12, %v8049_v29  ;;  %8171 = vadd.xlane.f32.xlu1 %v8112_v5 }
 0x967   : > { %v8016_v17 = vpop.xlane.xlu1 %8015  ;;  %v8138_v1 = vpop.xlane.xlu0 %8137  ;;  %v8358_v59 = vadd.f32 %v17090_v43, %v8320_v30  ;;  %v8283_v23 = vmul.f32 %v13386_v50, %v16942_v4 }
 0x968   : > { %13391 = vrsqrt.f32 %v8222_v46  ;;  %v8050_v35 = vmul.f32 0.0078125, %v8016_v17  ;;  %v8191_v54 = vmul.f32 0.0078125, %v8138_v1  ;;  %v8113_v63 = vmul.f32 %v17128_v32, %v17128_v32 }
 0x969   : > { %v8387_v15 = vpack.c.bf16 %v8358_v59, %v8357_v52  ;;  %v8321_v4 = vmul.f32 %v17081_v16, %v8283_v23 }
 0x96a   : > { %v13388_v14 = vpop.eup %13387  ;;  %v17136_v12 = vsub.f32 %v17003_v27, %v8050_v35  ;;  %v8223_v6 = vadd.f32 1e-05, %v8191_v54  ;;  %8173 = vadd.xlane.f32.xlu0 %v8113_v63 }
 0x96b   : > { %8631 = vmatmul.mubr.bf16.gmra.mrb[8].mxu1 %v8387_v15  ;;  %12181 = vmatprep.mubr.bf16.mxu0 %v8387_v15  ;;  %v8140_v58 = vpop.xlane.xlu1 %8139  ;;  %v8018_v36 = vpop.xlane.xlu0 %8017  ;;  %v8284_v45 = vmul.f32 %v13388_v14, %v16954_v9  ;;  %v8359_v37 = vadd.f32 %v17090_v43, %v8321_v4 }
 0x96c   : > { %13393 = vrsqrt.f32 %v8223_v6  ;;  %v8192_v34 = vmul.f32 0.0078125, %v8140_v58  ;;  %v8051_v57 = vmul.f32 0.0078125, %v8018_v36  ;;  %v8114_v13 = vmul.f32 %v17136_v12, %v17136_v12  ;;  %8640 = vmatprep.mubr.bf16.mxu1 %v14009_v31 }
 0x96d   : > { %v8322_v27 = vmul.f32 %v17081_v16, %v8284_v45 }
 0x96e   : > { %v13390_v18 = vpop.eup %13389  ;;  %v8224_v24 = vadd.f32 1e-05, %v8192_v34  ;;  %v17145_v26 = vsub.f32 %v17016_v39, %v8051_v57  ;;  %8175 = vadd.xlane.f32.xlu1 %v8114_v13 }
 0x96f   : > { %v8020_v22 = vpop.xlane.xlu1 %8019  ;;  %v8142_v9 = vpop.xlane.xlu0 %8141  ;;  %v8360_v25 = vadd.f32 %v17090_v43, %v8322_v27  ;;  %v8285_v41 = vmul.f32 %v13390_v18, %v16970_v56 }
 0x970   : > { %13395 = vrsqrt.f32 %v8224_v24  ;;  %v8052_v40 = vmul.f32 0.0078125, %v8020_v22  ;;  %v8193_v38 = vmul.f32 0.0078125, %v8142_v9  ;;  %v8115_v2 = vmul.f32 %v17145_v26, %v17145_v26 }
 0x971   : > { %v8388_v28 = vpack.c.bf16 %v8360_v25, %v8359_v37  ;;  %v8323_v56 = vmul.f32 %v17081_v16, %v8285_v41 }
 0x972   : > { %v13392_v21 = vpop.eup %13391  ;;  %v17153_v39 = vsub.f32 %v17024_v44, %v8052_v40  ;;  %v8225_v29 = vadd.f32 1e-05, %v8193_v38  ;;  %8177 = vadd.xlane.f32.xlu0 %v8115_v2 }
 0x973   : > { %v8144_v5 = vpop.xlane.xlu1 %8143  ;;  %8641 = vmatmul.mubr.bf16.gmra.mrb[12].mxu1 %v8388_v28  ;;  %12182 = vmatmul.mubr.bf16.gmra.mrb[36].mxu0 %v8388_v28  ;;  %v8146_v30 = vpop.xlane.xlu0 %8145  ;;  %v8286_v50 = vmul.f32 %v13392_v21, %v16981_v11  ;;  %v8361_v11 = vadd.f32 %v17090_v43, %v8323_v56 }
 0x974   : > { %13397 = vrsqrt.f32 %v8225_v29  ;;  %v8194_v46 = vmul.f32 0.0078125, %v8144_v5  ;;  %v8195_v17 = vmul.f32 0.0078125, %v8146_v30  ;;  %v8116_v1 = vmul.f32 %v17153_v39, %v17153_v39  ;;  %8650 = vmatprep.mubr.bf16.mxu1 %v14009_v31 }
 0x975   : > { %v8324_v44 = vmul.f32 %v17081_v16, %v8286_v50 }
 0x976   : > { %v13394_v52 = vpop.eup %13393  ;;  %v8226_v59 = vadd.f32 1e-05, %v8194_v46  ;;  %v8227_v23 = vadd.f32 1e-05, %v8195_v17  ;;  %8179 = vadd.xlane.f32.xlu1 %v8116_v1 }
 0x977   : > { %v8148_v35 = vpop.xlane.xlu1 %8147  ;;  %v8150_v54 = vpop.xlane.xlu0 %8149  ;;  %v8362_v63 = vadd.f32 %v17090_v43, %v8324_v44  ;;  %v8287_v15 = vmul.f32 %v13394_v52, %v16995_v48 }
 0x978   : > { %13399 = vrsqrt.f32 %v8226_v59  ;;  %v8196_v14 = vmul.f32 0.0078125, %v8148_v35  ;;  %v8197_v6 = vmul.f32 0.0078125, %v8150_v54 }
 0x979   : > { %13401 = vrsqrt.f32 %v8227_v23  ;;  %v8389_v58 = vpack.c.bf16 %v8362_v63, %v8361_v11  ;;  %v8325_v27 = vmul.f32 %v17081_v16, %v8287_v15 }
 0x97a   : > { %v13396_v36 = vpop.eup %13395  ;;  %v8228_v45 = vadd.f32 1e-05, %v8196_v14  ;;  %v8229_v4 = vadd.f32 1e-05, %v8197_v6 }
 0x97b   : > { %v8152_v34 = vpop.xlane.xlu1 %8151  ;;  %8651 = vmatmul.mubr.bf16.gmra.mrb[16].mxu1 %v8389_v58  ;;  %12185 = vmatprep.mubr.bf16.mxu0 %v8389_v58  ;;  %v8154_v57 = vpop.xlane.xlu0 %8153  ;;  %v8288_v13 = vmul.f32 %v13396_v36, %v17006_v51  ;;  %v8363_v41 = vadd.f32 %v17090_v43, %v8325_v27 }
 0x97c   : > { %13403 = vrsqrt.f32 %v8228_v45  ;;  %v8198_v18 = vmul.f32 0.0078125, %v8152_v34  ;;  %v8199_v24 = vmul.f32 0.0078125, %v8154_v57  ;;  %8660 = vmatprep.mubr.bf16.mxu1 %v14009_v31 }
 0x97d   : > { %13405 = vrsqrt.f32 %v8229_v4  ;;  %v8326_v48 = vmul.f32 %v17081_v16, %v8288_v13 }
 0x97e   : > { %v13398_v22 = vpop.eup %13397  ;;  %v8230_v9 = vadd.f32 1e-05, %v8198_v18  ;;  %v8231_v37 = vadd.f32 1e-05, %v8199_v24 }
 0x97f   : > { %v8156_v25 = vpop.xlane.xlu1 %8155  ;;  %v8364_v40 = vadd.f32 %v17090_v43, %v8326_v48  ;;  %v8289_v51 = vmul.f32 %v13398_v22, %v17019_v3 }
 0x980   : > { %13407 = vrsqrt.f32 %v8230_v9  ;;  %v8200_v38 = vmul.f32 0.0078125, %v8156_v25 }
 0x981   : > { %13409 = vrsqrt.f32 %v8231_v37  ;;  %v8390_v2 = vpack.c.bf16 %v8364_v40, %v8363_v41  ;;  %v8327_v30 = vmul.f32 %v17081_v16, %v8289_v51 }
 0x982   : > { %v13400_v28 = vpop.eup %13399  ;;  %v8232_v21 = vadd.f32 1e-05, %v8200_v38 }
 0x983   : > { %v13402_v29 = vpop.eup %13401  ;;  %8661 = vmatmul.mubr.bf16.gmra.mrb[20].mxu1 %v8390_v2  ;;  %12186 = vmatmul.mubr.bf16.gmra.mrb[40].mxu0 %v8390_v2  ;;  %v8290_v5 = vmul.f32 %v13400_v28, %v17027_v53  ;;  %v8365_v1 = vadd.f32 %v17090_v43, %v8327_v30 }
 0x984   : > { %13411 = vrsqrt.f32 %v8232_v21  ;;  %8670 = vmatprep.mubr.bf16.mxu1 %v14009_v31  ;;  %v8291_v50 = vmul.f32 %v13402_v29, %v17030_v42 }
 0x985   : > { %v8328_v3 = vmul.f32 %v17081_v16, %v8290_v5 }
 0x986   : > { %v13404_v56 = vpop.eup %13403  ;;  %v8329_v46 = vmul.f32 %v17081_v16, %v8291_v50 }
 0x987   : > { %v13406_v17 = vpop.eup %13405  ;;  %v8366_v44 = vadd.f32 %v17090_v43, %v8328_v3  ;;  %v8292_v52 = vmul.f32 %v13404_v56, %v17041_v8 }
 0x988   : > { %v8293_v53 = vmul.f32 %v13406_v17, %v17044_v47  ;;  %v8367_v42 = vadd.f32 %v17090_v43, %v8329_v46 }
 0x989   : > { %v8391_v59 = vpack.c.bf16 %v8366_v44, %v8365_v1  ;;  %v8330_v23 = vmul.f32 %v17081_v16, %v8292_v52 }
 0x98a   : > { %v13408_v35 = vpop.eup %13407  ;;  %v8331_v15 = vmul.f32 %v17081_v16, %v8293_v53 }
 0x98b   : > { %v13410_v54 = vpop.eup %13409  ;;  %8671 = vmatmul.mubr.bf16.gmra.mrb[24].mxu1 %v8391_v59  ;;  %12189 = vmatprep.mubr.bf16.mxu0 %v8391_v59  ;;  %v8368_v11 = vadd.f32 %v17090_v43, %v8330_v23  ;;  %v8294_v63 = vmul.f32 %v13408_v35, %v17051_v49 }
 0x98c   : > { %8680 = vmatprep.mubr.bf16.mxu1 %v14009_v31  ;;  %v8295_v8 = vmul.f32 %v13410_v54, %v17054_v33  ;;  %v8369_v58 = vadd.f32 %v17090_v43, %v8331_v15 }
 0x98d   : > { %v8392_v47 = vpack.c.bf16 %v8368_v11, %v8367_v42  ;;  %v8332_v14 = vmul.f32 %v17081_v16, %v8294_v63 }
 0x98e   : > { %v13412_v6 = vpop.eup %13411  ;;  %v8333_v4 = vmul.f32 %v17081_v16, %v8295_v8 }
 0x98f   : > { %12190 = vmatmul.mubr.bf16.gmra.mrb[44].mxu0 %v8392_v47  ;;  %v8370_v36 = vadd.f32 %v17090_v43, %v8332_v14  ;;  %v8296_v45 = vmul.f32 %v13412_v6, %v17061_v61 }
 0x990   : > { %v8371_v33 = vadd.f32 %v17090_v43, %v8333_v4 }
 0x991   : > { %v8393_v49 = vpack.c.bf16 %v8370_v36, %v8369_v58  ;;  %v8334_v34 = vmul.f32 %v17081_v16, %v8296_v45 }
 0x993   : > { %8681 = vmatmul.mubr.bf16.gmra.mrb[28].mxu1 %v8392_v47  ;;  %12193 = vmatprep.mubr.bf16.mxu0 %v8393_v49  ;;  %v8372_v57 = vadd.f32 %v17090_v43, %v8334_v34 }
 0x994   : > { %8690 = vmatprep.mubr.bf16.mxu1 %v14009_v31 }
 0x995   : > { %v8394_v13 = vpack.c.bf16 %v8372_v57, %v8371_v33 }
 0x997   : > { %12194 = vmatmul.mubr.bf16.gmra.mrb[48].mxu0 %v8394_v13 }
 0x99b   : > { %8691 = vmatmul.mubr.bf16.gmra.mrb[32].mxu1 %v8393_v49 }
 0x99c   : > { %8700 = vmatprep.mubr.bf16.mxu1 %v14009_v31 }
 0x9a3   : > { %8701 = vmatmul.mubr.bf16.gmra.mrb[36].mxu1 %v8394_v13 }
 0x9a4   : > { %8710 = vmatprep.mubr.bf16.mxu1 %v14009_v31 }
 0x9d7   : > { %v8158_v61 = vpop.xlane.xlu0 %8157 }
 0x9d8   : > { %v8201_v27 = vmul.f32 0.0078125, %v8158_v61 }
 0x9da   : > { %v8233_v18 = vadd.f32 1e-05, %v8201_v27 }
 0x9db   : > { %v8160_v24 = vpop.xlane.xlu1 %8159 }
 0x9dc   : > { %13413 = vrsqrt.f32 %v8233_v18  ;;  %v8202_v48 = vmul.f32 0.0078125, %v8160_v24 }
 0x9de   : > { %v8234_v22 = vadd.f32 1e-05, %v8202_v48 }
 0x9df   : > { %v8162_v9 = vpop.xlane.xlu0 %8161 }
 0x9e0   : > { %13415 = vrsqrt.f32 %v8234_v22  ;;  %v8203_v37 = vmul.f32 0.0078125, %v8162_v9 }
 0x9e2   : > { %v8235_v25 = vadd.f32 1e-05, %v8203_v37 }
 0x9e3   : > { %v8164_v41 = vpop.xlane.xlu1 %8163 }
 0x9e4   : > { %13417 = vrsqrt.f32 %v8235_v25  ;;  %v8204_v40 = vmul.f32 0.0078125, %v8164_v41 }
 0x9e6   : > { %v13414_v51 = vpop.eup %13413  ;;  %v8236_v38 = vadd.f32 1e-05, %v8204_v40 }
 0x9e7   : > { %v8166_v2 = vpop.xlane.xlu0 %8165  ;;  %v8297_v28 = vmul.f32 %v13414_v51, %v17066_v60 }
 0x9e8   : > { %13419 = vrsqrt.f32 %v8236_v38  ;;  %v8205_v21 = vmul.f32 0.0078125, %v8166_v2 }
 0x9e9   : > { %v8335_v3 = vmul.f32 %v17081_v16, %v8297_v28 }
 0x9ea   : > { %v13416_v29 = vpop.eup %13415  ;;  %v8237_v5 = vadd.f32 1e-05, %v8205_v21 }
 0x9eb   : > { %v8168_v30 = vpop.xlane.xlu1 %8167  ;;  %v8298_v50 = vmul.f32 %v13416_v29, %v17071_v55  ;;  %v8373_v52 = vadd.f32 %v17090_v43, %v8335_v3 }
 0x9ec   : > { %13421 = vrsqrt.f32 %v8237_v5  ;;  %v8206_v56 = vmul.f32 0.0078125, %v8168_v30 }
 0x9ed   : > { %v8336_v46 = vmul.f32 %v17081_v16, %v8298_v50 }
 0x9ee   : > { %v13418_v17 = vpop.eup %13417  ;;  %v8238_v1 = vadd.f32 1e-05, %v8206_v56 }
 0x9ef   : > { %v8170_v44 = vpop.xlane.xlu0 %8169  ;;  %v8374_v60 = vadd.f32 %v17090_v43, %v8336_v46  ;;  %v8299_v53 = vmul.f32 %v13418_v17, %v17076_v10 }
 0x9f0   : > { %13423 = vrsqrt.f32 %v8238_v1  ;;  %v8207_v59 = vmul.f32 0.0078125, %v8170_v44 }
 0x9f1   : > { %v8395_v23 = vpack.c.bf16 %v8374_v60, %v8373_v52  ;;  %v8337_v11 = vmul.f32 %v17081_v16, %v8299_v53 }
 0x9f2   : > { %v13420_v35 = vpop.eup %13419  ;;  %v8239_v55 = vadd.f32 1e-05, %v8207_v59 }
 0x9f3   : > { %8711 = vmatmul.mubr.bf16.gmra.mrb[40].mxu1 %v8395_v23  ;;  %12197 = vmatprep.mubr.bf16.mxu0 %v8395_v23  ;;  %v8172_v42 = vpop.xlane.xlu1 %8171  ;;  %v8300_v54 = vmul.f32 %v13420_v35, %v17084_v7  ;;  %v8375_v14 = vadd.f32 %v17090_v43, %v8337_v11 }
 0x9f4   : > { %13425 = vrsqrt.f32 %v8239_v55  ;;  %v8208_v63 = vmul.f32 0.0078125, %v8172_v42  ;;  %8720 = vmatprep.mubr.bf16.mxu1 %v14009_v31  ;;  %v8433_v42 = vld [vmem:[#allocation21] sm:$0x7] }
 0x9f5   : > { %v8338_v15 = vmul.f32 %v17081_v16, %v8300_v54 }
 0x9f6   : > { %v13422_v8 = vpop.eup %13421  ;;  %v8240_v10 = vadd.f32 1e-05, %v8208_v63 }
 0x9f7   : > { %v8174_v47 = vpop.xlane.xlu0 %8173  ;;  %v8376_v6 = vadd.f32 %v17090_v43, %v8338_v15  ;;  %v8301_v58 = vmul.f32 %v13422_v8, %v17094_v62 }
 0x9f8   : > { %13427 = vrsqrt.f32 %v8240_v10  ;;  %v8209_v36 = vmul.f32 0.0078125, %v8174_v47 }
 0x9f9   : > { %v8396_v7 = vpack.c.bf16 %v8376_v6, %v8375_v14  ;;  %v8339_v33 = vmul.f32 %v17081_v16, %v8301_v58 }
 0x9fa   : > { %v13424_v45 = vpop.eup %13423  ;;  %v8241_v4 = vadd.f32 1e-05, %v8209_v36 }
 0x9fb   : > { %8721 = vmatmul.mubr.bf16.gmra.mrb[44].mxu1 %v8396_v7  ;;  %12198 = vmatmul.mubr.bf16.gmra.mrb[52].mxu0 %v8396_v7  ;;  %v8176_v49 = vpop.xlane.xlu1 %8175  ;;  %v8302_v34 = vmul.f32 %v13424_v45, %v17102_v0  ;;  %v8377_v18 = vadd.f32 %v17090_v43, %v8339_v33 }
 0x9fc   : > { %13429 = vrsqrt.f32 %v8241_v4  ;;  %v8210_v57 = vmul.f32 0.0078125, %v8176_v49  ;;  %8730 = vmatprep.mubr.bf16.mxu1 %v14009_v31 }
 0x9fd   : > { %v8340_v13 = vmul.f32 %v17081_v16, %v8302_v34 }
 0x9fe   : > { %v13426_v61 = vpop.eup %13425  ;;  %v8242_v62 = vadd.f32 1e-05, %v8210_v57 }
 0x9ff   : > { %v8178_v27 = vpop.xlane.xlu0 %8177  ;;  %v8378_v24 = vadd.f32 %v17090_v43, %v8340_v13  ;;  %v8303_v48 = vmul.f32 %v13426_v61, %v17111_v19 }
 0xa00   : > { %13431 = vrsqrt.f32 %v8242_v62  ;;  %v8211_v22 = vmul.f32 0.0078125, %v8178_v27 }
 0xa01   : > { %v8397_v0 = vpack.c.bf16 %v8378_v24, %v8377_v18  ;;  %v8341_v40 = vmul.f32 %v17081_v16, %v8303_v48 }
 0xa02   : > { %v13428_v9 = vpop.eup %13427  ;;  %v8243_v37 = vadd.f32 1e-05, %v8211_v22 }
 0xa03   : > { %v8180_v25 = vpop.xlane.xlu1 %8179  ;;  %8731 = vmatmul.mubr.bf16.gmra.mrb[48].mxu1 %v8397_v0  ;;  %12201 = vmatprep.mubr.bf16.mxu0 %v8397_v0  ;;  %v8304_v41 = vmul.f32 %v13428_v9, %v17119_v20  ;;  %v8379_v28 = vadd.f32 %v17090_v43, %v8341_v40 }
 0xa04   : > { %13433 = vrsqrt.f32 %v8243_v37  ;;  %v8212_v51 = vmul.f32 0.0078125, %v8180_v25  ;;  %8740 = vmatprep.mubr.bf16.mxu1 %v14009_v31 }
 0xa05   : > { %v8342_v38 = vmul.f32 %v17081_v16, %v8304_v41 }
 0xa06   : > { %v13430_v2 = vpop.eup %13429  ;;  %v8244_v19 = vadd.f32 1e-05, %v8212_v51 }
 0xa07   : > { %v8380_v21 = vadd.f32 %v17090_v43, %v8342_v38  ;;  %v8305_v29 = vmul.f32 %v13430_v2, %v17128_v32 }
 0xa08   : > { %13435 = vrsqrt.f32 %v8244_v19 }
 0xa09   : > { %v8398_v5 = vpack.c.bf16 %v8380_v21, %v8379_v28  ;;  %v8343_v50 = vmul.f32 %v17081_v16, %v8305_v29 }
 0xa0a   : > { %v13432_v30 = vpop.eup %13431 }
 0xa0b   : > { %8741 = vmatmul.mubr.bf16.gmra.mrb[52].mxu1 %v8398_v5  ;;  %12202 = vmatmul.mubr.bf16.gmra.mrb[56].mxu0 %v8398_v5  ;;  %v8306_v20 = vmul.f32 %v13432_v30, %v17136_v12  ;;  %v8381_v46 = vadd.f32 %v17090_v43, %v8343_v50 }
 0xa0c   : > { %8750 = vmatprep.mubr.bf16.mxu1 %v14009_v31 }
 0xa0d   : > { %v8344_v3 = vmul.f32 %v17081_v16, %v8306_v20 }
 0xa0e   : > { %v13434_v56 = vpop.eup %13433 }
 0xa0f   : > { %v8382_v17 = vadd.f32 %v17090_v43, %v8344_v3  ;;  %v8307_v32 = vmul.f32 %v13434_v56, %v17145_v26  ;;  %v8435_v26 = vlaneseq }
 0xa11   : > { %v8399_v1 = vpack.c.bf16 %v8382_v17, %v8381_v46  ;;  %v8345_v12 = vmul.f32 %v17081_v16, %v8307_v32  ;;  %v8436_v35 = vshrl.u32 %v8435_v26, 7 }
 0xa12   : > { %v13436_v44 = vpop.eup %13435 }
 0xa13   : > { %8751 = vmatmul.mubr.bf16.gmra.mrb[56].mxu1 %v8399_v1  ;;  %12205 = vmatprep.mubr.bf16.mxu0 %v8399_v1  ;;  %v8308_v52 = vmul.f32 %v13436_v44, %v17153_v39  ;;  %v8383_v53 = vadd.f32 %v17090_v43, %v8345_v12  ;;  %v8437_v55 = vsub.s32 0, %v8436_v35  ;;  %v8441_v54 = vsub.s32 1, %v8436_v35 }
 0xa14   : > { %8760 = vmatprep.mubr.bf16.mxu1 %v14009_v31  ;;  %v8445_v15 = vsub.s32 2, %v8436_v35 }
 0xa15   : > { %v8346_v60 = vmul.f32 %v17081_v16, %v8308_v52  ;;  %v17240_v39 = vrot.slane %v8433_v42, %v8437_v55  ;;  %v17242_v11 = vrot.slane %v8433_v42, %v8441_v54 }
 0xa16   : > { %v17248_v58 = vrot.slane %v8433_v42, %v8445_v15 }
 0xa17   : > { %v8384_v59 = vadd.f32 %v17090_v43, %v8346_v60 }
 0xa19   : > { %v8400_v23 = vpack.c.bf16 %v8384_v59, %v8383_v53 }
 0xa1b   : > { %8761 = vmatmul.mubr.bf16.gmra.mrb[60].mxu1 %v8400_v23  ;;  %12206 = vmatmul.mubr.bf16.gmra.mrb[60].mxu0 %v8400_v23 }
 0xa2e   : > { %v8612_v31 = vpop.f32.mrb[0].mxu1 }
 0xa2f   : > { %v8613_v16 = vadd.f32 %v8612_v31, %v17240_v39  ;;  %v8614_v63 = vpop.f32.mrb[1].mxu1 }
 0xa30   : > { %v8615_v43 = vadd.f32 %v8614_v63, %v17242_v11  ;;  %v8616_v8 = vpop.f32.mrb[2].mxu1 }
 0xa31   : > { %v8617_v10 = vadd.f32 %v8616_v8, %v17240_v39  ;;  %v8618_v47 = vpop.f32.mrb[3].mxu1 }
 0xa32   : > { %v10410_v14 = vpack.c.bf16 %v8615_v43, %v8613_v16  ;;  %v8619_v6 = vadd.f32 %v8618_v47, %v17242_v11 }
 0xa34   : > { %9252 = vst [vmem:[%s14650_s23] sm:$0xff] %v10410_v14  ;;  %v10412_v36 = vpack.c.bf16 %v8619_v6, %v8617_v10 }
 0xa36   : > { %9254 = vst [vmem:[%s14650_s23 + $0xc] sm:$0xff] %v10412_v36  ;;  %v8622_v7 = vpop.f32.mrb[4].mxu1  ;;  %v12179_v45 = vpop.f32.mrb[32].mxu0 }
 0xa37   : > { %v8623_v4 = vadd.f32 %v8622_v7, %v17240_v39  ;;  %v8814_v49 = vadd.f32 %v12179_v45, %v17248_v58  ;;  %v8624_v34 = vpop.f32.mrb[5].mxu1  ;;  %v8805_v33 = vpop.f32.mrb[33].mxu0 }
 0xa38   : > { %v8625_v57 = vadd.f32 %v8624_v34, %v17242_v11  ;;  %v8806_v13 = vadd.f32 %v8805_v33, %v17248_v58  ;;  %v8626_v61 = vpop.f32.mrb[6].mxu1  ;;  %v12180_v62 = vpop.f32.mrb[34].mxu0 }
 0xa39   : > { %v10415_v27 = vpack.c.bf16 %v8814_v49, %v8814_v49  ;;  %v8627_v18 = vadd.f32 %v8626_v61, %v17240_v39  ;;  %v8817_v24 = vadd.f32 %v12180_v62, %v17248_v58  ;;  %v8628_v48 = vpop.f32.mrb[7].mxu1  ;;  %v8808_v22 = vpop.f32.mrb[35].mxu0 }
 0xa3a   : > { %v10414_v0 = vpack.c.bf16 %v8625_v57, %v8623_v4  ;;  %v10411_v9 = vpack.c.bf16 %v8806_v13, %v8806_v13  ;;  %v8629_v37 = vadd.f32 %v8628_v48, %v17242_v11  ;;  %v8809_v25 = vadd.f32 %v8808_v22, %v17248_v58 }
 0xa3b   : > { %9257 = vst [vmem:[%s14650_s23 + $0x20] sm:$0xf] %v10415_v27  ;;  %v10417_v41 = vpack.c.bf16 %v8817_v24, %v8817_v24 }
 0xa3c   : > { %9256 = vst [vmem:[%s14650_s23 + $0x18] sm:$0xff] %v10414_v0  ;;  %9253 = vst [vmem:[%s14650_s23 + $0x8] sm:$0xf] %v10411_v9  ;;  %v10416_v40 = vpack.c.bf16 %v8629_v37, %v8627_v18  ;;  %v10413_v51 = vpack.c.bf16 %v8809_v25, %v8809_v25 }
 0xa3d   : > { %9259 = vst [vmem:[%s14650_s23 + $0x2c] sm:$0xf] %v10417_v41 }
 0xa3e   : > { %9258 = vst [vmem:[%s14650_s23 + $0x24] sm:$0xff] %v10416_v40  ;;  %9255 = vst [vmem:[%s14650_s23 + $0x14] sm:$0xf] %v10413_v51  ;;  %v8632_v38 = vpop.f32.mrb[8].mxu1 }
 0xa3f   : > { %v8633_v2 = vadd.f32 %v8632_v38, %v17240_v39  ;;  %v8634_v19 = vpop.f32.mrb[9].mxu1 }
 0xa40   : > { %v8635_v28 = vadd.f32 %v8634_v19, %v17242_v11  ;;  %v8636_v21 = vpop.f32.mrb[10].mxu1 }
 0xa41   : > { %v8637_v29 = vadd.f32 %v8636_v21, %v17240_v39  ;;  %v8638_v5 = vpop.f32.mrb[11].mxu1 }
 0xa42   : > { %v10418_v30 = vpack.c.bf16 %v8635_v28, %v8633_v2  ;;  %v8639_v20 = vadd.f32 %v8638_v5, %v17242_v11 }
 0xa44   : > { %9260 = vst [vmem:[%s14650_s23 + $0x30] sm:$0xff] %v10418_v30  ;;  %v10420_v50 = vpack.c.bf16 %v8639_v20, %v8637_v29 }
 0xa46   : > { %9262 = vst [vmem:[%s14650_s23 + $0x3c] sm:$0xff] %v10420_v50  ;;  %v8642_v3 = vpop.f32.mrb[12].mxu1  ;;  %v12183_v56 = vpop.f32.mrb[36].mxu0 }
 0xa47   : > { %v8643_v46 = vadd.f32 %v8642_v3, %v17240_v39  ;;  %v8830_v17 = vadd.f32 %v12183_v56, %v17248_v58  ;;  %v8644_v32 = vpop.f32.mrb[13].mxu1  ;;  %v8821_v1 = vpop.f32.mrb[37].mxu0 }
 0xa48   : > { %v8645_v44 = vadd.f32 %v8644_v32, %v17242_v11  ;;  %v8822_v52 = vadd.f32 %v8821_v1, %v17248_v58  ;;  %v8646_v12 = vpop.f32.mrb[14].mxu1  ;;  %v12184_v60 = vpop.f32.mrb[38].mxu0 }
 0xa49   : > { %v10423_v53 = vpack.c.bf16 %v8830_v17, %v8830_v17  ;;  %v8647_v59 = vadd.f32 %v8646_v12, %v17240_v39  ;;  %v8833_v23 = vadd.f32 %v12184_v60, %v17248_v58  ;;  %v8648_v26 = vpop.f32.mrb[15].mxu1  ;;  %v8824_v35 = vpop.f32.mrb[39].mxu0 }
 0xa4a   : > { %v10422_v55 = vpack.c.bf16 %v8645_v44, %v8643_v46  ;;  %v10419_v42 = vpack.c.bf16 %v8822_v52, %v8822_v52  ;;  %v8649_v54 = vadd.f32 %v8648_v26, %v17242_v11  ;;  %v8825_v31 = vadd.f32 %v8824_v35, %v17248_v58 }
 0xa4b   : > { %9265 = vst [vmem:[%s14650_s23 + $0x50] sm:$0xf] %v10423_v53  ;;  %v10425_v16 = vpack.c.bf16 %v8833_v23, %v8833_v23 }
 0xa4c   : > { %9264 = vst [vmem:[%s14650_s23 + $0x48] sm:$0xff] %v10422_v55  ;;  %9261 = vst [vmem:[%s14650_s23 + $0x38] sm:$0xf] %v10419_v42  ;;  %v10424_v63 = vpack.c.bf16 %v8649_v54, %v8647_v59  ;;  %v10421_v15 = vpack.c.bf16 %v8825_v31, %v8825_v31 }
 0xa4d   : > { %9267 = vst [vmem:[%s14650_s23 + $0x5c] sm:$0xf] %v10425_v16 }
 0xa4e   : > { %9266 = vst [vmem:[%s14650_s23 + $0x54] sm:$0xff] %v10424_v63  ;;  %9263 = vst [vmem:[%s14650_s23 + $0x44] sm:$0xf] %v10421_v15  ;;  %v8652_v43 = vpop.f32.mrb[16].mxu1 }
 0xa4f   : > { %v8653_v8 = vadd.f32 %v8652_v43, %v17240_v39  ;;  %v8654_v10 = vpop.f32.mrb[17].mxu1 }
 0xa50   : > { %v8655_v47 = vadd.f32 %v8654_v10, %v17242_v11  ;;  %v8656_v14 = vpop.f32.mrb[18].mxu1 }
 0xa51   : > { %v8657_v6 = vadd.f32 %v8656_v14, %v17240_v39  ;;  %v8658_v36 = vpop.f32.mrb[19].mxu1 }
 0xa52   : > { %v10426_v7 = vpack.c.bf16 %v8655_v47, %v8653_v8  ;;  %v8659_v45 = vadd.f32 %v8658_v36, %v17242_v11 }
 0xa54   : > { %9268 = vst [vmem:[%s14650_s23 + $0x60] sm:$0xff] %v10426_v7  ;;  %v10428_v4 = vpack.c.bf16 %v8659_v45, %v8657_v6 }
 0xa56   : > { %9270 = vst [vmem:[%s14650_s23 + $0x6c] sm:$0xff] %v10428_v4  ;;  %v8662_v49 = vpop.f32.mrb[20].mxu1  ;;  %v12187_v34 = vpop.f32.mrb[40].mxu0 }
 0xa57   : > { %v8663_v33 = vadd.f32 %v8662_v49, %v17240_v39  ;;  %v8846_v57 = vadd.f32 %v12187_v34, %v17248_v58  ;;  %v8664_v13 = vpop.f32.mrb[21].mxu1  ;;  %v8837_v61 = vpop.f32.mrb[41].mxu0 }
 0xa58   : > { %v8665_v62 = vadd.f32 %v8664_v13, %v17242_v11  ;;  %v8838_v27 = vadd.f32 %v8837_v61, %v17248_v58  ;;  %v8666_v18 = vpop.f32.mrb[22].mxu1  ;;  %v12188_v24 = vpop.f32.mrb[42].mxu0 }
 0xa59   : > { %v10431_v48 = vpack.c.bf16 %v8846_v57, %v8846_v57  ;;  %v8667_v22 = vadd.f32 %v8666_v18, %v17240_v39  ;;  %v8849_v0 = vadd.f32 %v12188_v24, %v17248_v58  ;;  %v8668_v9 = vpop.f32.mrb[23].mxu1  ;;  %v8840_v37 = vpop.f32.mrb[43].mxu0 }
 0xa5a   : > { %v10430_v25 = vpack.c.bf16 %v8665_v62, %v8663_v33  ;;  %v10427_v41 = vpack.c.bf16 %v8838_v27, %v8838_v27  ;;  %v8669_v40 = vadd.f32 %v8668_v9, %v17242_v11  ;;  %v8841_v51 = vadd.f32 %v8840_v37, %v17248_v58 }
 0xa5b   : > { %9273 = vst [vmem:[%s14650_s23 + $0x80] sm:$0xf] %v10431_v48  ;;  %v10433_v38 = vpack.c.bf16 %v8849_v0, %v8849_v0 }
 0xa5c   : > { %9272 = vst [vmem:[%s14650_s23 + $0x78] sm:$0xff] %v10430_v25  ;;  %9269 = vst [vmem:[%s14650_s23 + $0x68] sm:$0xf] %v10427_v41  ;;  %v10432_v2 = vpack.c.bf16 %v8669_v40, %v8667_v22  ;;  %v10429_v19 = vpack.c.bf16 %v8841_v51, %v8841_v51 }
 0xa5d   : > { %9275 = vst [vmem:[%s14650_s23 + $0x8c] sm:$0xf] %v10433_v38 }
 0xa5e   : > { %9274 = vst [vmem:[%s14650_s23 + $0x84] sm:$0xff] %v10432_v2  ;;  %9271 = vst [vmem:[%s14650_s23 + $0x74] sm:$0xf] %v10429_v19  ;;  %v8672_v28 = vpop.f32.mrb[24].mxu1 }
 0xa5f   : > { %v8673_v21 = vadd.f32 %v8672_v28, %v17240_v39  ;;  %v8674_v29 = vpop.f32.mrb[25].mxu1 }
 0xa60   : > { %v8675_v5 = vadd.f32 %v8674_v29, %v17242_v11  ;;  %v8676_v30 = vpop.f32.mrb[26].mxu1 }
 0xa61   : > { %v8677_v20 = vadd.f32 %v8676_v30, %v17240_v39  ;;  %v8678_v50 = vpop.f32.mrb[27].mxu1 }
 0xa62   : > { %v10434_v3 = vpack.c.bf16 %v8675_v5, %v8673_v21  ;;  %v8679_v56 = vadd.f32 %v8678_v50, %v17242_v11  ;;  %v12191_v46 = vpop.f32.mrb[44].mxu0 }
 0xa63   : > { %v8862_v17 = vadd.f32 %v12191_v46, %v17248_v58  ;;  %v8853_v32 = vpop.f32.mrb[45].mxu0 }
 0xa64   : > { %9276 = vst [vmem:[%s14650_s23 + $0x90] sm:$0xff] %v10434_v3  ;;  %v10436_v1 = vpack.c.bf16 %v8679_v56, %v8677_v20  ;;  %v8854_v44 = vadd.f32 %v8853_v32, %v17248_v58  ;;  %v12192_v52 = vpop.f32.mrb[46].mxu0 }
 0xa65   : > { %v10439_v12 = vpack.c.bf16 %v8862_v17, %v8862_v17  ;;  %v8865_v60 = vadd.f32 %v12192_v52, %v17248_v58  ;;  %v8856_v53 = vpop.f32.mrb[47].mxu0 }
 0xa66   : > { %9278 = vst [vmem:[%s14650_s23 + $0x9c] sm:$0xff] %v10436_v1  ;;  %v10435_v59 = vpack.c.bf16 %v8854_v44, %v8854_v44  ;;  %v8857_v23 = vadd.f32 %v8856_v53, %v17248_v58  ;;  %v8682_v26 = vpop.f32.mrb[28].mxu1 }
 0xa67   : > { %9281 = vst [vmem:[%s14650_s23 + $0xb0] sm:$0xf] %v10439_v12  ;;  %v10441_v35 = vpack.c.bf16 %v8865_v60, %v8865_v60  ;;  %v8683_v55 = vadd.f32 %v8682_v26, %v17240_v39  ;;  %v8684_v42 = vpop.f32.mrb[29].mxu1 }
 0xa68   : > { %9277 = vst [vmem:[%s14650_s23 + $0x98] sm:$0xf] %v10435_v59  ;;  %v10437_v54 = vpack.c.bf16 %v8857_v23, %v8857_v23  ;;  %v8685_v31 = vadd.f32 %v8684_v42, %v17242_v11  ;;  %v8686_v16 = vpop.f32.mrb[30].mxu1 }
 0xa69   : > { %9283 = vst [vmem:[%s14650_s23 + $0xbc] sm:$0xf] %v10441_v35  ;;  %v8687_v63 = vadd.f32 %v8686_v16, %v17240_v39  ;;  %v8688_v15 = vpop.f32.mrb[31].mxu1 }
 0xa6a   : > { %9279 = vst [vmem:[%s14650_s23 + $0xa4] sm:$0xf] %v10437_v54  ;;  %v10438_v43 = vpack.c.bf16 %v8685_v31, %v8683_v55  ;;  %v8689_v8 = vadd.f32 %v8688_v15, %v17242_v11  ;;  %v12195_v10 = vpop.f32.mrb[48].mxu0 }
 0xa6b   : > { %v8878_v47 = vadd.f32 %v12195_v10, %v17248_v58  ;;  %v8869_v14 = vpop.f32.mrb[49].mxu0 }
 0xa6c   : > { %9280 = vst [vmem:[%s14650_s23 + $0xa8] sm:$0xff] %v10438_v43  ;;  %v10440_v6 = vpack.c.bf16 %v8689_v8, %v8687_v63  ;;  %v8870_v36 = vadd.f32 %v8869_v14, %v17248_v58  ;;  %v12196_v7 = vpop.f32.mrb[50].mxu0 }
 0xa6d   : > { %v10447_v45 = vpack.c.bf16 %v8878_v47, %v8878_v47  ;;  %v8881_v4 = vadd.f32 %v12196_v7, %v17248_v58  ;;  %v8872_v49 = vpop.f32.mrb[51].mxu0 }
 0xa6e   : > { %9282 = vst [vmem:[%s14650_s23 + $0xb4] sm:$0xff] %v10440_v6  ;;  %v10443_v34 = vpack.c.bf16 %v8870_v36, %v8870_v36  ;;  %v8873_v33 = vadd.f32 %v8872_v49, %v17248_v58  ;;  %v8692_v57 = vpop.f32.mrb[32].mxu1 }
 0xa6f   : > { %9289 = vst [vmem:[%s14650_s23 + $0xe0] sm:$0xf] %v10447_v45  ;;  %v10449_v13 = vpack.c.bf16 %v8881_v4, %v8881_v4  ;;  %v8693_v61 = vadd.f32 %v8692_v57, %v17240_v39  ;;  %v8694_v62 = vpop.f32.mrb[33].mxu1 }
 0xa70   : > { %9285 = vst [vmem:[%s14650_s23 + $0xc8] sm:$0xf] %v10443_v34  ;;  %v10445_v27 = vpack.c.bf16 %v8873_v33, %v8873_v33  ;;  %v8695_v18 = vadd.f32 %v8694_v62, %v17242_v11  ;;  %v8696_v24 = vpop.f32.mrb[34].mxu1 }
 0xa71   : > { %9291 = vst [vmem:[%s14650_s23 + $0xec] sm:$0xf] %v10449_v13  ;;  %v8697_v48 = vadd.f32 %v8696_v24, %v17240_v39  ;;  %v8698_v22 = vpop.f32.mrb[35].mxu1 }
 0xa72   : > { %9287 = vst [vmem:[%s14650_s23 + $0xd4] sm:$0xf] %v10445_v27  ;;  %v10442_v0 = vpack.c.bf16 %v8695_v18, %v8693_v61  ;;  %v8699_v9 = vadd.f32 %v8698_v22, %v17242_v11 }
 0xa74   : > { %9284 = vst [vmem:[%s14650_s23 + $0xc0] sm:$0xff] %v10442_v0  ;;  %v10444_v37 = vpack.c.bf16 %v8699_v9, %v8697_v48 }
 0xa76   : > { %9286 = vst [vmem:[%s14650_s23 + $0xcc] sm:$0xff] %v10444_v37  ;;  %v8702_v25 = vpop.f32.mrb[36].mxu1 }
 0xa77   : > { %v8703_v41 = vadd.f32 %v8702_v25, %v17240_v39  ;;  %v8704_v40 = vpop.f32.mrb[37].mxu1 }
 0xa78   : > { %v8705_v51 = vadd.f32 %v8704_v40, %v17242_v11  ;;  %v8706_v38 = vpop.f32.mrb[38].mxu1 }
 0xa79   : > { %v8707_v2 = vadd.f32 %v8706_v38, %v17240_v39  ;;  %v8708_v19 = vpop.f32.mrb[39].mxu1 }
 0xa7a   : > { %v10446_v28 = vpack.c.bf16 %v8705_v51, %v8703_v41  ;;  %v8709_v21 = vadd.f32 %v8708_v19, %v17242_v11 }
 0xa7c   : > { %9288 = vst [vmem:[%s14650_s23 + $0xd8] sm:$0xff] %v10446_v28  ;;  %v10448_v29 = vpack.c.bf16 %v8709_v21, %v8707_v2 }
 0xa7e   : > { %9290 = vst [vmem:[%s14650_s23 + $0xe4] sm:$0xff] %v10448_v29 }
 0xac6   : > { %v8712_v5 = vpop.f32.mrb[40].mxu1 }
 0xac7   : > { %v8713_v30 = vadd.f32 %v8712_v5, %v17240_v39  ;;  %v8714_v20 = vpop.f32.mrb[41].mxu1 }
 0xac8   : > { %v8715_v50 = vadd.f32 %v8714_v20, %v17242_v11  ;;  %v8716_v3 = vpop.f32.mrb[42].mxu1 }
 0xac9   : > { %v8717_v56 = vadd.f32 %v8716_v3, %v17240_v39  ;;  %v8718_v46 = vpop.f32.mrb[43].mxu1 }
 0xaca   : > { %v10450_v17 = vpack.c.bf16 %v8715_v50, %v8713_v30  ;;  %v8719_v32 = vadd.f32 %v8718_v46, %v17242_v11 }
 0xacc   : > { %9292 = vst [vmem:[%s14650_s23 + $0xf0] sm:$0xff] %v10450_v17  ;;  %v10452_v1 = vpack.c.bf16 %v8719_v32, %v8717_v56 }
 0xace   : > { %9294 = vst [vmem:[%s14650_s23 + $0xfc] sm:$0xff] %v10452_v1  ;;  %v8722_v44 = vpop.f32.mrb[44].mxu1  ;;  %v12199_v52 = vpop.f32.mrb[52].mxu0 }
 0xacf   : > { %v8723_v12 = vadd.f32 %v8722_v44, %v17240_v39  ;;  %v8894_v60 = vadd.f32 %v12199_v52, %v17248_v58  ;;  %v8724_v53 = vpop.f32.mrb[45].mxu1  ;;  %v8885_v59 = vpop.f32.mrb[53].mxu0 }
 0xad0   : > { %v8725_v23 = vadd.f32 %v8724_v53, %v17242_v11  ;;  %v8886_v26 = vadd.f32 %v8885_v59, %v17248_v58  ;;  %v8726_v35 = vpop.f32.mrb[46].mxu1  ;;  %v12200_v55 = vpop.f32.mrb[54].mxu0 }
 0xad1   : > { %v10455_v42 = vpack.c.bf16 %v8894_v60, %v8894_v60  ;;  %v8727_v54 = vadd.f32 %v8726_v35, %v17240_v39  ;;  %v8897_v31 = vadd.f32 %v12200_v55, %v17248_v58  ;;  %v8728_v16 = vpop.f32.mrb[47].mxu1  ;;  %v8888_v63 = vpop.f32.mrb[55].mxu0 }
 0xad2   : > { %v10454_v15 = vpack.c.bf16 %v8725_v23, %v8723_v12  ;;  %v10451_v43 = vpack.c.bf16 %v8886_v26, %v8886_v26  ;;  %v8729_v8 = vadd.f32 %v8728_v16, %v17242_v11  ;;  %v8889_v10 = vadd.f32 %v8888_v63, %v17248_v58 }
 0xad3   : > { %9297 = vst [vmem:[%s14650_s23 + $0x110] sm:$0xf] %v10455_v42  ;;  %v10457_v47 = vpack.c.bf16 %v8897_v31, %v8897_v31 }
 0xad4   : > { %9296 = vst [vmem:[%s14650_s23 + $0x108] sm:$0xff] %v10454_v15  ;;  %9293 = vst [vmem:[%s14650_s23 + $0xf8] sm:$0xf] %v10451_v43  ;;  %v10456_v14 = vpack.c.bf16 %v8729_v8, %v8727_v54  ;;  %v10453_v6 = vpack.c.bf16 %v8889_v10, %v8889_v10 }
 0xad5   : > { %9299 = vst [vmem:[%s14650_s23 + $0x11c] sm:$0xf] %v10457_v47 }
 0xad6   : > { %9298 = vst [vmem:[%s14650_s23 + $0x114] sm:$0xff] %v10456_v14  ;;  %9295 = vst [vmem:[%s14650_s23 + $0x104] sm:$0xf] %v10453_v6  ;;  %v8732_v36 = vpop.f32.mrb[48].mxu1 }
 0xad7   : > { %v8733_v7 = vadd.f32 %v8732_v36, %v17240_v39  ;;  %v8734_v45 = vpop.f32.mrb[49].mxu1 }
 0xad8   : > { %v8735_v4 = vadd.f32 %v8734_v45, %v17242_v11  ;;  %v8736_v49 = vpop.f32.mrb[50].mxu1 }
 0xad9   : > { %v8737_v34 = vadd.f32 %v8736_v49, %v17240_v39  ;;  %v8738_v33 = vpop.f32.mrb[51].mxu1 }
 0xada   : > { %v10458_v57 = vpack.c.bf16 %v8735_v4, %v8733_v7  ;;  %v8739_v13 = vadd.f32 %v8738_v33, %v17242_v11 }
 0xadc   : > { %9300 = vst [vmem:[%s14650_s23 + $0x120] sm:$0xff] %v10458_v57  ;;  %v10460_v61 = vpack.c.bf16 %v8739_v13, %v8737_v34 }
 0xade   : > { %9302 = vst [vmem:[%s14650_s23 + $0x12c] sm:$0xff] %v10460_v61  ;;  %v8742_v62 = vpop.f32.mrb[52].mxu1  ;;  %v12203_v27 = vpop.f32.mrb[56].mxu0 }
 0xadf   : > { %v8743_v18 = vadd.f32 %v8742_v62, %v17240_v39  ;;  %v8910_v24 = vadd.f32 %v12203_v27, %v17248_v58  ;;  %v8744_v48 = vpop.f32.mrb[53].mxu1  ;;  %v8901_v22 = vpop.f32.mrb[57].mxu0 }
 0xae0   : > { %v8745_v0 = vadd.f32 %v8744_v48, %v17242_v11  ;;  %v8902_v9 = vadd.f32 %v8901_v22, %v17248_v58  ;;  %v8746_v37 = vpop.f32.mrb[54].mxu1  ;;  %v12204_v25 = vpop.f32.mrb[58].mxu0 }
 0xae1   : > { %v10463_v41 = vpack.c.bf16 %v8910_v24, %v8910_v24  ;;  %v8747_v40 = vadd.f32 %v8746_v37, %v17240_v39  ;;  %v8913_v51 = vadd.f32 %v12204_v25, %v17248_v58  ;;  %v8748_v38 = vpop.f32.mrb[55].mxu1  ;;  %v8904_v2 = vpop.f32.mrb[59].mxu0 }
 0xae2   : > { %v10462_v19 = vpack.c.bf16 %v8745_v0, %v8743_v18  ;;  %v10459_v28 = vpack.c.bf16 %v8902_v9, %v8902_v9  ;;  %v8749_v21 = vadd.f32 %v8748_v38, %v17242_v11  ;;  %v8905_v29 = vadd.f32 %v8904_v2, %v17248_v58 }
 0xae3   : > { %9305 = vst [vmem:[%s14650_s23 + $0x140] sm:$0xf] %v10463_v41  ;;  %v10465_v5 = vpack.c.bf16 %v8913_v51, %v8913_v51 }
 0xae4   : > { %9304 = vst [vmem:[%s14650_s23 + $0x138] sm:$0xff] %v10462_v19  ;;  %9301 = vst [vmem:[%s14650_s23 + $0x128] sm:$0xf] %v10459_v28  ;;  %v10464_v30 = vpack.c.bf16 %v8749_v21, %v8747_v40  ;;  %v10461_v20 = vpack.c.bf16 %v8905_v29, %v8905_v29 }
 0xae5   : > { %9307 = vst [vmem:[%s14650_s23 + $0x14c] sm:$0xf] %v10465_v5 }
 0xae6   : > { %9306 = vst [vmem:[%s14650_s23 + $0x144] sm:$0xff] %v10464_v30  ;;  %9303 = vst [vmem:[%s14650_s23 + $0x134] sm:$0xf] %v10461_v20  ;;  %v8752_v50 = vpop.f32.mrb[56].mxu1 }
 0xae7   : > { %v8753_v3 = vadd.f32 %v8752_v50, %v17240_v39  ;;  %v8754_v56 = vpop.f32.mrb[57].mxu1 }
 0xae8   : > { %v8755_v46 = vadd.f32 %v8754_v56, %v17242_v11  ;;  %v8756_v17 = vpop.f32.mrb[58].mxu1 }
 0xae9   : > { %v8757_v32 = vadd.f32 %v8756_v17, %v17240_v39  ;;  %v8758_v1 = vpop.f32.mrb[59].mxu1 }
 0xaea   : > { %v10466_v44 = vpack.c.bf16 %v8755_v46, %v8753_v3  ;;  %v8759_v52 = vadd.f32 %v8758_v1, %v17242_v11 }
 0xaec   : > { %9308 = vst [vmem:[%s14650_s23 + $0x150] sm:$0xff] %v10466_v44  ;;  %v10468_v12 = vpack.c.bf16 %v8759_v52, %v8757_v32 }
 0xaee   : > { %9310 = vst [vmem:[%s14650_s23 + $0x15c] sm:$0xff] %v10468_v12  ;;  %v8762_v60 = vpop.f32.mrb[60].mxu1  ;;  %v12207_v53 = vpop.f32.mrb[60].mxu0 }
 0xaef   : > { %v8763_v59 = vadd.f32 %v8762_v60, %v17240_v39  ;;  %v8926_v23 = vadd.f32 %v12207_v53, %v17248_v58  ;;  %v8764_v26 = vpop.f32.mrb[61].mxu1  ;;  %v8917_v35 = vpop.f32.mrb[61].mxu0 }
 0xaf0   : > { %v8765_v55 = vadd.f32 %v8764_v26, %v17242_v11  ;;  %v8918_v42 = vadd.f32 %v8917_v35, %v17248_v58  ;;  %v8766_v54 = vpop.f32.mrb[62].mxu1  ;;  %v12208_v31 = vpop.f32.mrb[62].mxu0 }
 0xaf1   : > { %v10471_v16 = vpack.c.bf16 %v8926_v23, %v8926_v23  ;;  %v8767_v63 = vadd.f32 %v8766_v54, %v17240_v39  ;;  %v8929_v15 = vadd.f32 %v12208_v31, %v17248_v58  ;;  %v8768_v43 = vpop.f32.mrb[63].mxu1  ;;  %v8920_v8 = vpop.f32.mrb[63].mxu0 }
 0xaf2   : > { %v10470_v10 = vpack.c.bf16 %v8765_v55, %v8763_v59  ;;  %v10467_v47 = vpack.c.bf16 %v8918_v42, %v8918_v42  ;;  %v8769_v14 = vadd.f32 %v8768_v43, %v17242_v11  ;;  %v8921_v6 = vadd.f32 %v8920_v8, %v17248_v58 }
 0xaf3   : > { %9313 = vst [vmem:[%s14650_s23 + $0x170] sm:$0xf] %v10471_v16  ;;  %v10473_v36 = vpack.c.bf16 %v8929_v15, %v8929_v15 }
 0xaf4   : > { %9312 = vst [vmem:[%s14650_s23 + $0x168] sm:$0xff] %v10470_v10  ;;  %9309 = vst [vmem:[%s14650_s23 + $0x158] sm:$0xf] %v10467_v47  ;;  %v10472_v7 = vpack.c.bf16 %v8769_v14, %v8767_v63  ;;  %v10469_v45 = vpack.c.bf16 %v8921_v6, %v8921_v6 }
 0xaf5   : > { %9315 = vst [vmem:[%s14650_s23 + $0x17c] sm:$0xf] %v10473_v36 }
 0xaf6   : > { %9314 = vst [vmem:[%s14650_s23 + $0x174] sm:$0xff] %v10472_v7  ;;  %9311 = vst [vmem:[%s14650_s23 + $0x164] sm:$0xf] %v10469_v45 }
 0xaf7 PF: > { %s17649_s16 = sld [smem:[#allocation45_spill]]  ;;  %s17650_s6 = sld [smem:[#allocation60_spill]] }
 0xaf8   : > { %s9335_s30 = sshll.u32 %s14648_s26, 4  ;;  %s9317_s25 = scalar_lea.sflag [#allocation5], %s14611_s9  ;;  %s17413_s30 = int_to_ptr.vmem [resolvable:$true] %s9335_s30 }
 0xaf9   : > { %s13781_s28 = scalar_lea.vmem %s17413_s30, 2048  ;;  %p17651_p9 = scmp.ne.s32.totalorder %s17599_s27, 0 }
 0xafa   : > { %p13782_p0 = scmp.ne.s32.totalorder %s17413_s30, %s13781_s28  ;;  %s14010_s13 = smov [#allocation23]  }
 0xafb   : > { %s13785_s2 = sshll.u32 %s14010_s13, 4  ;;  %s13786_s2 = int_to_ptr.vmem [resolvable:$false] %s13785_s2 }
 0xafc   : > { %p13783_p2 = pnand %p13782_p0, %p17651_p9  ;;  %s13787_s5 = scalar_lea.vmem %s13786_s2, 4096 }
 0xafd   : > { %s10474_s14 = sshll.u32 %s17649_s16, 11  ;;  %p13788_p6 = scmp.lt.s32.totalorder %s17413_s30, %s13786_s2 }
 0xafe   : > { %s17410_s1 = scalar_lea.hbm %s17650_s6, %s10474_s14  ;;  %p13784_p5 = pneg %p13783_p2 }
 0xaff   : > { %p13789_p1 = scmp.lt.s32.totalorder %s13787_s5, %s13781_s28 }
 0xb01   : > { %p13790_p12 = por %p13789_p1, %p13788_p6 }
 0xb03   : > { %p13791_p8 = pnand %p13790_p12, %p13784_p5 }
 0xb05   : > { %13794 = shalt.err (!%p13791_p8)
}
 0xb06   : > { %s13795_s4 = scalar_lea.hbm %s17410_s1, 2048  ;;  %s13799_s7 = scalar_lea.hbm %s17650_s6, 4096 }
 0xb07   : > { %p13796_p4 = scmp.ne.s32.totalorder %s17410_s1, %s13795_s4  ;;  %p13800_p11 = scmp.lt.u32.totalorder %s17410_s1, %s17650_s6 }
 0xb08   : > { %p13801_p13 = scmp.lt.u32.totalorder %s13799_s7, %s13795_s4  ;;  %p13803_p0 = scmp.lt.u32.totalorder %s13795_s4, %s17410_s1 }
 0xb09   : > { %p13797_p7 = pnand %p13796_p4, %p17651_p9 }
 0xb0a   : > { %p13802_p10 = por %p13801_p13, %p13800_p11 }
 0xb0b   : > { %p13798_p3 = pneg %p13797_p7 }
 0xb0c   : > { %p13804_p2 = por %p13803_p0, %p13802_p10 }
 0xb0e   : > { %p13805_p5 = pnand %p13804_p2, %p13798_p3 }
 0xb10   : > { %13808 = shalt.err (!%p13805_p5)
}
 0xb11   : > { %s14011_s0 = smov 64   ;;  %s14012_s15 = smov 4  }
 0xb12   : > { %12274 = dma.vmem_to_hbm [thread:$0]  (%p17651_p9), %s17413_s30, 2048, %s17410_s1, %s9317_s25, %s14011_s0, %s14011_s0, %s14012_s15  }
 0xb13   : > { %s12231_s28 = smul.u32 6144, %s17649_s16  ;;  %s9352_s13 = sshll.u32 %s14650_s23, 4  ;;  %s17441_s13 = int_to_ptr.vmem [resolvable:$true] %s9352_s13 }
 0xb14   : > { %s17652_s4 = sld [smem:[#allocation61_spill]]  ;;  %s9322_s26 = scalar_lea.sflag [#allocation25], %s14611_s9 }
 0xb15   : > { %s13809_s7 = scalar_lea.vmem %s17441_s13, 6144  ;;  %s14013_s22 = smov [#allocation24]  }
 0xb16   : > { %p13810_p6 = scmp.ne.s32.totalorder %s17441_s13, %s13809_s7  ;;  %s13813_s1 = sshll.u32 %s14013_s22, 4  ;;  %s13814_s1 = int_to_ptr.vmem [resolvable:$false] %s13813_s1 }
 0xb17   : > { %s13815_s23 = scalar_lea.vmem %s13814_s1, 12288  ;;  %p13816_p8 = scmp.lt.s32.totalorder %s17441_s13, %s13814_s1 }
 0xb18   : > { %p13811_p1 = pnand %p13810_p6, %p17651_p9  ;;  %p13817_p4 = scmp.lt.s32.totalorder %s13815_s23, %s13809_s7 }
 0xb1a   : > { %s17446_s18 = scalar_lea.hbm %s17652_s4, %s12231_s28  ;;  %p13812_p12 = pneg %p13811_p1 }
 0xb1b   : > { %p13818_p7 = por %p13817_p4, %p13816_p8 }
 0xb1d   : > { %p13819_p3 = pnand %p13818_p7, %p13812_p12 }
 0xb1f   : > { %13822 = shalt.err (!%p13819_p3)
}
 0xb20   : > { %s13823_s16 = scalar_lea.hbm %s17446_s18, 6144  ;;  %s13827_s14 = scalar_lea.hbm %s17652_s4, 12288 }
 0xb21   : > { %p13824_p11 = scmp.ne.s32.totalorder %s17446_s18, %s13823_s16  ;;  %p13828_p0 = scmp.lt.u32.totalorder %s17446_s18, %s17652_s4 }
 0xb22   : > { %p13829_p2 = scmp.lt.u32.totalorder %s13827_s14, %s13823_s16  ;;  %p13831_p6 = scmp.lt.u32.totalorder %s13823_s16, %s17446_s18 }
 0xb23   : > { %p13825_p13 = pnand %p13824_p11, %p17651_p9 }
 0xb24   : > { %p13830_p5 = por %p13829_p2, %p13828_p0 }
 0xb25   : > { %p13826_p10 = pneg %p13825_p13 }
 0xb26   : > { %p13832_p1 = por %p13831_p6, %p13830_p5 }
 0xb28   : > { %p13833_p12 = pnand %p13832_p1, %p13826_p10 }
 0xb2a   : > { %13836 = shalt.err (!%p13833_p12)
}
 0xb2b   : > { %s14014_s28 = smov 192   ;;  %s14015_s2 = smov 12  }
 0xb2c   : > { %12275 = dma.vmem_to_hbm [thread:$0]  (%p17651_p9), %s17441_s13, 6144, %s17446_s18, %s9322_s26, %s14014_s28, %s14014_s28, %s14015_s2  }
 0xb2d PF: > { %s17653_s5 = sld [smem:[#allocation39_spill]]  ;;  %s17654_s7 = sld [smem:[#allocation50_spill]] }
 0xb2e   : > { %p12342_p8 = scmp.ge.s32.totalorder %s13987_s21, 2 }
 0xb33   : > { %s9367_s22 = sand.u32 1, %s17653_s5   ;;  %p17655_p4 = scmp.ne.s32.totalorder %s17654_s7, 0 }
 0xb34   : > { %s9368_s1 = scalar_lea.sflag [#allocation5], %s9367_s22 }
 0xb35   : > { %p12317_p7 = pnand %p12342_p8, %p17655_p4 }
 0xb37   : > { %13926 = dma.done.wait (!%p12317_p7), %s9368_s1, 2048  }
 0xb38   : > { %13928 = vsyncadd (!%p12317_p7), %s9368_s1, 4294965248  ;;  %s9377_s23 = scalar_lea.sflag [#allocation25], %s9367_s22 }
 0xb39   : > { %13930 = dma.done.wait (!%p12317_p7), %s9377_s23, 6144  }
 0xb3a   : > { %13932 = vsyncadd (!%p12317_p7), %s9377_s23, 4294961152  ;;  %s41_s21 = sadd.s32 1, %s13987_s21   ;;  %s17657_s25 = sld [smem:[#allocation37_spill]] }
 0xb3b   : > { %p17477_p3 = scmp.ge.s32.totalorder %s41_s21, 12   ;;  %s17658_s26 = sld [smem:[#allocation38_spill]] }
 0xb3c   : > { %s17659_s9 = sld [smem:[#allocation40_spill]]  ;;  %s17660_s30 = sld [smem:[#allocation49_spill]] }
 0xb3d   : > { %s17661_s14 = sld [smem:[#allocation42_spill]]  ;;  %s17662_s15 = sld [smem:[#allocation43_spill]] }
 0xb3e   : > { %s17663_s13 = sld [smem:[#allocation47_spill]]  ;;  %s17664_s0 = sld [smem:[#allocation48_spill]] }
 0xb3f   : > { %s17666_s27 = smov %s14542_s3  ;;  %s17667_s28 = smov %s13951_s29 }
 0xb40   : > { %s17669_s16 = smov %s14482_s17  ;;  %s17670_s17 = smov %s13979_s19 }
 0xb41   : > { %s17671_s18 = smov %s13983_s20  ;;  %40 = sbr.rel (!%p17477_p3) target bundleno = 31 (0x1f), region = 198 }
 0xb42   : > { %s17668_s29 = smov %s17659_s9 }
 0xb44   : > { %s17672_s19 = smov %s17663_s13  ;;  %s17673_s20 = smov %s17664_s0 }
 0xb48   :  { %9382 = vsyncpa [#allocation4], 1 }
 0xb49   :  { %9384 = vsyncpa [#allocation4 + $0x1], 1 }
 0xb4a   :  { %9385 = vsyncpa [#allocation7], 1 }
 0xb4b   :  { %9387 = vsyncpa [#allocation7 + $0x1], 1 }
 0xb4c   :  { %9388 = vsyncpa [#allocation10], 1 }
 0xb4d   :  { %9389 = vsyncpa [#allocation13], 1 }
 0xb4e   :  { %9390 = vsyncpa [#allocation16], 1 }
 0xb4f   :  { %9391 = vsyncpa [#allocation19], 1 }
 0xb50   :  { %9392 = vsyncpa [#allocation22], 1 }
 0xb51   :  { %9393 = vsyncpa [#allocation5], 1 }
 0xb52   :  { %9395 = vsyncpa [#allocation5 + $0x1], 1 }
 0xb53   :  { %9396 = vsyncpa [#allocation25], 1 }
 0xb54   :  { %9398 = vsyncpa [#allocation25 + $0x1], 1 }

</bundles_post_ra>
